<compile_context>
chip_gen: v6e
topology: v6e:2x2x1
jax: 0.10.0
libtpu: 0.0.40
codegen_flags: <defaults>
</compile_context>

<pallas_src>
import jax
import jax.numpy as jnp
from jax import lax
from jax.experimental import pallas as pl
from jax.experimental.pallas import tpu as pltpu

LANE = 128  # channel padding target: keeps matmul operands and stores 128-lane dense


def _full_spec(shape):
    nd = len(shape)
    return pl.BlockSpec(shape, lambda i, _nd=nd: (0,) * _nd)


# ----------------------------- Pallas kernels ------------------------------ #

def _make_conv_block_kernel(H, W, C):
    """Fused Conv2d(3x3, s=1, p=1) + folded-BN + ReLU + MaxPool2d(2, 2) for one image.

    x_ref: (1, H+2, W+2, C)   spatially zero-padded NHWC tile (channels padded to C), bf16
    w_ref: (9, C, C)          per-tap (Cin x Cout) weights with BN scale folded in, bf16
    b_ref: (1, C)             folded conv-bias + BN shift, f32
    o_ref: (1, H//2, W//2, C) pooled activations, bf16 (lane-dense, C == 128)
    """
    Ho, Wo = H // 2, W // 2
    offs = tuple((ky, kx) for ky in range(3) for kx in range(3))

    def kernel(x_ref, w_ref, b_ref, o_ref):
        def tap_dot(t):
            ky, kx = offs[t]
            tap = x_ref[0, ky:ky + H, kx:kx + W, :].reshape(H * W, C)  # in-kernel im2col tap
            return jnp.dot(tap, w_ref[t], preferred_element_type=jnp.float32)

        acc = tap_dot(0)
        for t in range(1, 9):
            acc = acc + tap_dot(t)

        z = jnp.maximum(acc + b_ref[...], 0.0)                   # (H*W, C) f32
        zh = jnp.max(z.reshape(Ho, 2, W, C), axis=1)             # pool along H -> (Ho, W, C)
        zp = jnp.max(zh.reshape(Ho, Wo, 2, C), axis=2)           # pool along W -> (Ho, Wo, C)
        o_ref[0] = zp.astype(o_ref.dtype)

    return kernel


def fc_head_kernel(x_ref, w1_ref, b1_ref, w2_ref, b2_ref, o_ref):
    """Linear -> ReLU -> Linear -> Sigmoid. (Dropout = identity in eval mode.)"""
    h = jnp.dot(x_ref[...], w1_ref[...], preferred_element_type=jnp.float32) + b1_ref[...]
    h = jnp.maximum(h, 0.0)
    z = jnp.dot(h.astype(w2_ref.dtype), w2_ref[...],
                preferred_element_type=jnp.float32) + b2_ref[...]
    # Numerically stable sigmoid; the reciprocal rides the (otherwise idle) EUP slot.
    e = jnp.exp(-jnp.abs(z))
    s = pl.reciprocal(1.0 + e, approx=True)
    o_ref[...] = jnp.where(z >= 0.0, s, 1.0 - s)


# ----------------------------- wrappers ------------------------------------ #

def conv_block(x_nhwc, w_prep, b_prep):
    """x_nhwc: (B, H, W, Cr) with Cr <= 128. Returns (B, H//2, W//2, 128) bf16."""
    B, H, W, Cr = x_nhwc.shape
    C = LANE
    xp = jnp.pad(x_nhwc.astype(jnp.bfloat16),
                 ((0, 0), (1, 1), (1, 1), (0, C - Cr)))
    Ho, Wo = H // 2, W // 2
    return pl.pallas_call(
        _make_conv_block_kernel(H, W, C),
        grid=(B,),
        in_specs=[
            pl.BlockSpec((1, H + 2, W + 2, C), lambda b: (b, 0, 0, 0)),
            pl.BlockSpec((9, C, C), lambda b: (0, 0, 0)),   # weights stay resident
            pl.BlockSpec((1, C), lambda b: (0, 0)),
        ],
        out_specs=pl.BlockSpec((1, Ho, Wo, C), lambda b: (b, 0, 0, 0)),
        out_shape=jax.ShapeDtypeStruct((B, Ho, Wo, C), jnp.bfloat16),
        compiler_params=pltpu.CompilerParams(dimension_semantics=("parallel",)),
    )(xp, w_prep, b_prep)


def fc_head(x_flat, w1, b1, w2, b2):
    Bp, F = x_flat.shape
    return pl.pallas_call(
        fc_head_kernel,
        grid=(1,),
        in_specs=[_full_spec((Bp, F)), _full_spec(w1.shape), _full_spec(b1.shape),
                  _full_spec(w2.shape), _full_spec(b2.shape)],
        out_specs=_full_spec((Bp, LANE)),
        out_shape=jax.ShapeDtypeStruct((Bp, LANE), jnp.float32),
        compiler_params=pltpu.CompilerParams(dimension_semantics=("arbitrary",)),
    )(x_flat.astype(jnp.bfloat16), w1, b1, w2, b2)


# ------------------------- params & preparation ---------------------------- #

def init_params(key, image_size=16):
    def conv_params(k, cin, cout):
        k1, k2, k3, k4, k5 = jax.random.split(k, 5)
        fan_in = cin * 9
        return dict(
            w=jax.random.normal(k1, (cout, cin, 3, 3), jnp.float32) / jnp.sqrt(fan_in),
            b=0.01 * jax.random.normal(k2, (cout,), jnp.float32),
            gamma=1.0 + 0.1 * jax.random.normal(k3, (cout,), jnp.float32),
            beta=0.1 * jax.random.normal(k4, (cout,), jnp.float32),
            mean=0.05 * jax.random.normal(k5, (cout,), jnp.float32),
            var=jnp.ones((cout,), jnp.float32),
        )

    k1, k2, k3, k4, k5, k6, k7 = jax.random.split(key, 7)
    feat = 64 * (image_size // 8) * (image_size // 8)
    return dict(
        conv1=conv_params(k1, 1, 16),
        conv2=conv_params(k2, 16, 32),
        conv3=conv_params(k3, 32, 64),
        fc1_w=jax.random.normal(k4, (feat, 128), jnp.float32) / jnp.sqrt(feat),
        fc1_b=0.01 * jax.random.normal(k5, (128,), jnp.float32),
        fc2_w=jax.random.normal(k6, (128, 1), jnp.float32) / jnp.sqrt(128.0),
        fc2_b=0.01 * jax.random.normal(k7, (1,), jnp.float32),
    )


def prepare_params(params, image_size=16, eps=1e-5):
    """One-time offline folding: BN scale into conv weights, channel padding to 128,
    fc1 row permutation to the NHWC/channel-padded flatten order, bf16 weight casts."""
    prep = {}
    for name in ("conv1", "conv2", "conv3"):
        p = params[name]
        Cout, Cin, _, _ = p["w"].shape
        scale = p["gamma"] / jnp.sqrt(p["var"] + eps)
        w_fold = jnp.transpose(p["w"], (2, 3, 1, 0)) * scale          # (3,3,Cin,Cout)
        w9 = w_fold.reshape(9, Cin, Cout)
        wp = jnp.zeros((9, LANE, LANE), jnp.float32).at[:, :Cin, :Cout].set(w9)
        bias = scale * (p["b"] - p["mean"]) + p["beta"]
        bp = jnp.zeros((1, LANE), jnp.float32).at[0, :Cout].set(bias)
        prep[f"{name}_w"] = wp.astype(jnp.bfloat16)
        prep[f"{name}_b"] = bp

    hw = image_size // 8
    s = hw * hw                                    # spatial positions after conv3
    # PyTorch flatten order is c*s + sp; our flatten is sp*128 + c (channels padded to 128).
    w1 = params["fc1_w"].reshape(64, s, 128).transpose(1, 0, 2)        # (s, 64, 128)
    w1 = jnp.pad(w1, ((0, 0), (0, LANE - 64), (0, 0))).reshape(s * LANE, 128)
    prep["fc1_w"] = w1.astype(jnp.bfloat16)
    prep["fc1_b"] = params["fc1_b"].reshape(1, 128).astype(jnp.float32)
    w2 = jnp.zeros((128, LANE), jnp.float32).at[:, :1].set(params["fc2_w"])
    prep["fc2_w"] = w2.astype(jnp.bfloat16)
    prep["fc2_b"] = jnp.zeros((1, LANE), jnp.float32).at[0, :1].set(params["fc2_b"])
    return prep


# ------------------------------ forward ------------------------------------ #

def simple_cnn_forward(prep, x_nchw):
    x = jnp.transpose(x_nchw, (0, 2, 3, 1)).astype(jnp.float32)        # NCHW -> NHWC
    for name in ("conv1", "conv2", "conv3"):
        x = conv_block(x, prep[f"{name}_w"], prep[f"{name}_b"])        # (B, H/2, W/2, 128)
    B = x.shape[0]
    flat = x.reshape(B, -1)                      # NHWC flatten; fc1_w is pre-permuted to match
    Bp = ((B + 7) // 8) * 8                      # pad batch to full sublanes
    flat = jnp.pad(flat, ((0, Bp - B), (0, 0)))
    out = fc_head(flat, prep["fc1_w"], prep["fc1_b"], prep["fc2_w"], prep["fc2_b"])
    return out[:B, :1]


def reference_forward(params, x_nchw, eps=1e-5):
    """Pure-JAX f32 reference matching the PyTorch module (eval mode)."""
    x = x_nchw.astype(jnp.float32)
    for name in ("conv1", "conv2", "conv3"):
        p = params[name]
        x = lax.conv_general_dilated(x, p["w"], (1, 1), ((1, 1), (1, 1)),
                                     dimension_numbers=("NCHW", "OIHW", "NCHW"))
        x = x + p["b"].reshape(1, -1, 1, 1)
        scale = p["gamma"] / jnp.sqrt(p["var"] + eps)
        x = (x - p["mean"].reshape(1, -1, 1, 1)) * scale.reshape(1, -1, 1, 1) \
            + p["beta"].reshape(1, -1, 1, 1)
        x = jnp.maximum(x, 0.0)
        x = lax.reduce_window(x, -jnp.inf, lax.max, (1, 1, 2, 2), (1, 1, 2, 2), "VALID")
    B = x.shape[0]
    x = x.reshape(B, -1)
    h = jnp.maximum(x @ params["fc1_w"] + params["fc1_b"], 0.0)
    z = h @ params["fc2_w"] + params["fc2_b"]
    return jax.nn.sigmoid(z)


if __name__ == "__main__":
    image_size = 16  # small, divisible by 8 (matches image_size // 8 in fc_layers)
    key = jax.random.PRNGKey(0)
    k_params, k_x = jax.random.split(key)
    params = init_params(k_params, image_size=image_size)
    prep = prepare_params(params, image_size=image_size)
    x = jax.random.normal(k_x, (2, 1, image_size, image_size), jnp.float32)

    fwd = jax.jit(simple_cnn_forward)
    out = jax.block_until_ready(fwd(prep, x))
    ref = jax.block_until_ready(reference_forward(params, x))

    assert out.shape == (2, 1), out.shape
    assert bool(jnp.all((out >= 0.0) & (out <= 1.0)))
    max_err = float(jnp.max(jnp.abs(out - ref)))
    assert max_err < 0.05, f"mismatch vs f32 reference: {max_err}"
    print("KERNEL_OK")
</pallas_src>

<mosaic_0001>
module attributes {stable_mosaic.version = 11 : i64} {
  func.func @kernel(%arg0: i32, %arg1: memref<1x18x18x128xbf16, #tpu.memory_space<vmem>>, %arg2: memref<9x128x128xbf16, #tpu.memory_space<vmem>>, %arg3: memref<1x128xf32, #tpu.memory_space<vmem>>, %arg4: memref<1x8x8x128xbf16, #tpu.memory_space<vmem>>) attributes {dimension_semantics = [#tpu.dimension_semantics<parallel>], iteration_bounds = array<i64: 2>, scalar_prefetch = 0 : i64, scratch_operands = 0 : i64, tpu.core_type = #tpu.core_type<tc>, window_params = [{transform_indices = @transform_0, window_bounds = array<i64: 1, 18, 18, 128>}, {pipeline_mode = #tpu.pipeline_mode<synchronous>, transform_indices = @transform_1, window_bounds = array<i64: 9, 128, 128>}, {pipeline_mode = #tpu.pipeline_mode<synchronous>, transform_indices = @transform_2, window_bounds = array<i64: 1, 128>}, {transform_indices = @transform_3, window_bounds = array<i64: 1, 8, 8, 128>}]} {
    %c0 = arith.constant 0 : index
    %c0_0 = arith.constant 0 : index
    %c0_1 = arith.constant 0 : index
    %c0_2 = arith.constant 0 : index
    %0 = vector.load %arg1[%c0, %c0_0, %c0_1, %c0_2] : memref<1x18x18x128xbf16, #tpu.memory_space<vmem>>, vector<1x16x16x128xbf16>
    %1 = vector.shape_cast %0 : vector<1x16x16x128xbf16> to vector<16x16x128xbf16>
    %2 = vector.shape_cast %1 : vector<16x16x128xbf16> to vector<256x128xbf16>
    %c0_3 = arith.constant 0 : index
    %c0_4 = arith.constant 0 : index
    %c0_5 = arith.constant 0 : index
    %3 = vector.load %arg2[%c0_3, %c0_4, %c0_5] : memref<9x128x128xbf16, #tpu.memory_space<vmem>>, vector<1x128x128xbf16>
    %4 = vector.shape_cast %3 : vector<1x128x128xbf16> to vector<128x128xbf16>
    %cst = arith.constant dense<0.000000e+00> : vector<256x128xf32>
    %5 = tpu.matmul %2, %4, %cst {dimension_numbers = #tpu.dot_dimension_numbers<[1], [0], [0], [1], [0, 0, 1, 1], [], []>} : vector<256x128xbf16>, vector<128x128xbf16>, vector<256x128xf32> -> vector<256x128xf32>
    %c0_6 = arith.constant 0 : index
    %c0_7 = arith.constant 0 : index
    %c1 = arith.constant 1 : index
    %c0_8 = arith.constant 0 : index
    %6 = vector.load %arg1[%c0_6, %c0_7, %c1, %c0_8] : memref<1x18x18x128xbf16, #tpu.memory_space<vmem>>, vector<1x16x16x128xbf16>
    %7 = vector.shape_cast %6 : vector<1x16x16x128xbf16> to vector<16x16x128xbf16>
    %8 = vector.shape_cast %7 : vector<16x16x128xbf16> to vector<256x128xbf16>
    %c1_9 = arith.constant 1 : index
    %c0_10 = arith.constant 0 : index
    %c0_11 = arith.constant 0 : index
    %9 = vector.load %arg2[%c1_9, %c0_10, %c0_11] : memref<9x128x128xbf16, #tpu.memory_space<vmem>>, vector<1x128x128xbf16>
    %10 = vector.shape_cast %9 : vector<1x128x128xbf16> to vector<128x128xbf16>
    %cst_12 = arith.constant dense<0.000000e+00> : vector<256x128xf32>
    %11 = tpu.matmul %8, %10, %cst_12 {dimension_numbers = #tpu.dot_dimension_numbers<[1], [0], [0], [1], [0, 0, 1, 1], [], []>} : vector<256x128xbf16>, vector<128x128xbf16>, vector<256x128xf32> -> vector<256x128xf32>
    %12 = arith.addf %5, %11 : vector<256x128xf32>
    %c0_13 = arith.constant 0 : index
    %c0_14 = arith.constant 0 : index
    %c2 = arith.constant 2 : index
    %c0_15 = arith.constant 0 : index
    %13 = vector.load %arg1[%c0_13, %c0_14, %c2, %c0_15] : memref<1x18x18x128xbf16, #tpu.memory_space<vmem>>, vector<1x16x16x128xbf16>
    %14 = vector.shape_cast %13 : vector<1x16x16x128xbf16> to vector<16x16x128xbf16>
    %15 = vector.shape_cast %14 : vector<16x16x128xbf16> to vector<256x128xbf16>
    %c2_16 = arith.constant 2 : index
    %c0_17 = arith.constant 0 : index
    %c0_18 = arith.constant 0 : index
    %16 = vector.load %arg2[%c2_16, %c0_17, %c0_18] : memref<9x128x128xbf16, #tpu.memory_space<vmem>>, vector<1x128x128xbf16>
    %17 = vector.shape_cast %16 : vector<1x128x128xbf16> to vector<128x128xbf16>
    %cst_19 = arith.constant dense<0.000000e+00> : vector<256x128xf32>
    %18 = tpu.matmul %15, %17, %cst_19 {dimension_numbers = #tpu.dot_dimension_numbers<[1], [0], [0], [1], [0, 0, 1, 1], [], []>} : vector<256x128xbf16>, vector<128x128xbf16>, vector<256x128xf32> -> vector<256x128xf32>
    %19 = arith.addf %12, %18 : vector<256x128xf32>
    %c0_20 = arith.constant 0 : index
    %c1_21 = arith.constant 1 : index
    %c0_22 = arith.constant 0 : index
    %c0_23 = arith.constant 0 : index
    %20 = vector.load %arg1[%c0_20, %c1_21, %c0_22, %c0_23] : memref<1x18x18x128xbf16, #tpu.memory_space<vmem>>, vector<1x16x16x128xbf16>
    %21 = vector.shape_cast %20 : vector<1x16x16x128xbf16> to vector<16x16x128xbf16>
    %22 = vector.shape_cast %21 : vector<16x16x128xbf16> to vector<256x128xbf16>
    %c3 = arith.constant 3 : index
    %c0_24 = arith.constant 0 : index
    %c0_25 = arith.constant 0 : index
    %23 = vector.load %arg2[%c3, %c0_24, %c0_25] : memref<9x128x128xbf16, #tpu.memory_space<vmem>>, vector<1x128x128xbf16>
    %24 = vector.shape_cast %23 : vector<1x128x128xbf16> to vector<128x128xbf16>
    %cst_26 = arith.constant dense<0.000000e+00> : vector<256x128xf32>
    %25 = tpu.matmul %22, %24, %cst_26 {dimension_numbers = #tpu.dot_dimension_numbers<[1], [0], [0], [1], [0, 0, 1, 1], [], []>} : vector<256x128xbf16>, vector<128x128xbf16>, vector<256x128xf32> -> vector<256x128xf32>
    %26 = arith.addf %19, %25 : vector<256x128xf32>
    %c0_27 = arith.constant 0 : index
    %c1_28 = arith.constant 1 : index
    %c1_29 = arith.constant 1 : index
    %c0_30 = arith.constant 0 : index
    %27 = vector.load %arg1[%c0_27, %c1_28, %c1_29, %c0_30] : memref<1x18x18x128xbf16, #tpu.memory_space<vmem>>, vector<1x16x16x128xbf16>
    %28 = vector.shape_cast %27 : vector<1x16x16x128xbf16> to vector<16x16x128xbf16>
    %29 = vector.shape_cast %28 : vector<16x16x128xbf16> to vector<256x128xbf16>
    %c4 = arith.constant 4 : index
    %c0_31 = arith.constant 0 : index
    %c0_32 = arith.constant 0 : index
    %30 = vector.load %arg2[%c4, %c0_31, %c0_32] : memref<9x128x128xbf16, #tpu.memory_space<vmem>>, vector<1x128x128xbf16>
    %31 = vector.shape_cast %30 : vector<1x128x128xbf16> to vector<128x128xbf16>
    %cst_33 = arith.constant dense<0.000000e+00> : vector<256x128xf32>
    %32 = tpu.matmul %29, %31, %cst_33 {dimension_numbers = #tpu.dot_dimension_numbers<[1], [0], [0], [1], [0, 0, 1, 1], [], []>} : vector<256x128xbf16>, vector<128x128xbf16>, vector<256x128xf32> -> vector<256x128xf32>
    %33 = arith.addf %26, %32 : vector<256x128xf32>
    %c0_34 = arith.constant 0 : index
    %c1_35 = arith.constant 1 : index
    %c2_36 = arith.constant 2 : index
    %c0_37 = arith.constant 0 : index
    %34 = vector.load %arg1[%c0_34, %c1_35, %c2_36, %c0_37] : memref<1x18x18x128xbf16, #tpu.memory_space<vmem>>, vector<1x16x16x128xbf16>
    %35 = vector.shape_cast %34 : vector<1x16x16x128xbf16> to vector<16x16x128xbf16>
    %36 = vector.shape_cast %35 : vector<16x16x128xbf16> to vector<256x128xbf16>
    %c5 = arith.constant 5 : index
    %c0_38 = arith.constant 0 : index
    %c0_39 = arith.constant 0 : index
    %37 = vector.load %arg2[%c5, %c0_38, %c0_39] : memref<9x128x128xbf16, #tpu.memory_space<vmem>>, vector<1x128x128xbf16>
    %38 = vector.shape_cast %37 : vector<1x128x128xbf16> to vector<128x128xbf16>
    %cst_40 = arith.constant dense<0.000000e+00> : vector<256x128xf32>
    %39 = tpu.matmul %36, %38, %cst_40 {dimension_numbers = #tpu.dot_dimension_numbers<[1], [0], [0], [1], [0, 0, 1, 1], [], []>} : vector<256x128xbf16>, vector<128x128xbf16>, vector<256x128xf32> -> vector<256x128xf32>
    %40 = arith.addf %33, %39 : vector<256x128xf32>
    %c0_41 = arith.constant 0 : index
    %c2_42 = arith.constant 2 : index
    %c0_43 = arith.constant 0 : index
    %c0_44 = arith.constant 0 : index
    %41 = vector.load %arg1[%c0_41, %c2_42, %c0_43, %c0_44] : memref<1x18x18x128xbf16, #tpu.memory_space<vmem>>, vector<1x16x16x128xbf16>
    %42 = vector.shape_cast %41 : vector<1x16x16x128xbf16> to vector<16x16x128xbf16>
    %43 = vector.shape_cast %42 : vector<16x16x128xbf16> to vector<256x128xbf16>
    %c6 = arith.constant 6 : index
    %c0_45 = arith.constant 0 : index
    %c0_46 = arith.constant 0 : index
    %44 = vector.load %arg2[%c6, %c0_45, %c0_46] : memref<9x128x128xbf16, #tpu.memory_space<vmem>>, vector<1x128x128xbf16>
    %45 = vector.shape_cast %44 : vector<1x128x128xbf16> to vector<128x128xbf16>
    %cst_47 = arith.constant dense<0.000000e+00> : vector<256x128xf32>
    %46 = tpu.matmul %43, %45, %cst_47 {dimension_numbers = #tpu.dot_dimension_numbers<[1], [0], [0], [1], [0, 0, 1, 1], [], []>} : vector<256x128xbf16>, vector<128x128xbf16>, vector<256x128xf32> -> vector<256x128xf32>
    %47 = arith.addf %40, %46 : vector<256x128xf32>
    %c0_48 = arith.constant 0 : index
    %c2_49 = arith.constant 2 : index
    %c1_50 = arith.constant 1 : index
    %c0_51 = arith.constant 0 : index
    %48 = vector.load %arg1[%c0_48, %c2_49, %c1_50, %c0_51] : memref<1x18x18x128xbf16, #tpu.memory_space<vmem>>, vector<1x16x16x128xbf16>
    %49 = vector.shape_cast %48 : vector<1x16x16x128xbf16> to vector<16x16x128xbf16>
    %50 = vector.shape_cast %49 : vector<16x16x128xbf16> to vector<256x128xbf16>
    %c7 = arith.constant 7 : index
    %c0_52 = arith.constant 0 : index
    %c0_53 = arith.constant 0 : index
    %51 = vector.load %arg2[%c7, %c0_52, %c0_53] : memref<9x128x128xbf16, #tpu.memory_space<vmem>>, vector<1x128x128xbf16>
    %52 = vector.shape_cast %51 : vector<1x128x128xbf16> to vector<128x128xbf16>
    %cst_54 = arith.constant dense<0.000000e+00> : vector<256x128xf32>
    %53 = tpu.matmul %50, %52, %cst_54 {dimension_numbers = #tpu.dot_dimension_numbers<[1], [0], [0], [1], [0, 0, 1, 1], [], []>} : vector<256x128xbf16>, vector<128x128xbf16>, vector<256x128xf32> -> vector<256x128xf32>
    %54 = arith.addf %47, %53 : vector<256x128xf32>
    %c0_55 = arith.constant 0 : index
    %c2_56 = arith.constant 2 : index
    %c2_57 = arith.constant 2 : index
    %c0_58 = arith.constant 0 : index
    %55 = vector.load %arg1[%c0_55, %c2_56, %c2_57, %c0_58] : memref<1x18x18x128xbf16, #tpu.memory_space<vmem>>, vector<1x16x16x128xbf16>
    %56 = vector.shape_cast %55 : vector<1x16x16x128xbf16> to vector<16x16x128xbf16>
    %57 = vector.shape_cast %56 : vector<16x16x128xbf16> to vector<256x128xbf16>
    %c8 = arith.constant 8 : index
    %c0_59 = arith.constant 0 : index
    %c0_60 = arith.constant 0 : index
    %58 = vector.load %arg2[%c8, %c0_59, %c0_60] : memref<9x128x128xbf16, #tpu.memory_space<vmem>>, vector<1x128x128xbf16>
    %59 = vector.shape_cast %58 : vector<1x128x128xbf16> to vector<128x128xbf16>
    %cst_61 = arith.constant dense<0.000000e+00> : vector<256x128xf32>
    %60 = tpu.matmul %57, %59, %cst_61 {dimension_numbers = #tpu.dot_dimension_numbers<[1], [0], [0], [1], [0, 0, 1, 1], [], []>} : vector<256x128xbf16>, vector<128x128xbf16>, vector<256x128xf32> -> vector<256x128xf32>
    %61 = arith.addf %54, %60 : vector<256x128xf32>
    %c0_62 = arith.constant 0 : index
    %c0_63 = arith.constant 0 : index
    %62 = vector.load %arg3[%c0_62, %c0_63] : memref<1x128xf32, #tpu.memory_space<vmem>>, vector<1x128xf32>
    %63 = vector.broadcast %62 : vector<1x128xf32> to vector<256x128xf32>
    %64 = arith.addf %61, %63 : vector<256x128xf32>
    %cst_64 = arith.constant 0.000000e+00 : f32
    %65 = vector.broadcast %cst_64 : f32 to vector<256x128xf32>
    %66 = arith.maximumf %64, %65 : vector<256x128xf32>
    %67 = vector.shape_cast %66 : vector<256x128xf32> to vector<8x2x16x128xf32>
    %cst_65 = arith.constant dense<0xFF800000> : vector<8x16x128xf32>
    %68 = vector.multi_reduction <maximumf>, %67, %cst_65 [1] : vector<8x2x16x128xf32> to vector<8x16x128xf32>
    %69 = vector.shape_cast %68 : vector<8x16x128xf32> to vector<8x8x2x128xf32>
    %cst_66 = arith.constant dense<0xFF800000> : vector<8x8x128xf32>
    %70 = vector.multi_reduction <maximumf>, %69, %cst_66 [2] : vector<8x8x2x128xf32> to vector<8x8x128xf32>
    %71 = arith.truncf %70 : vector<8x8x128xf32> to vector<8x8x128xbf16>
    %c0_67 = arith.constant 0 : index
    %c0_68 = arith.constant 0 : index
    %c0_69 = arith.constant 0 : index
    %c0_70 = arith.constant 0 : index
    %72 = vector.load %arg4[%c0_67, %c0_68, %c0_69, %c0_70] : memref<1x8x8x128xbf16, #tpu.memory_space<vmem>>, vector<1x8x8x128xbf16>
    %73 = vector.shape_cast %72 : vector<1x8x8x128xbf16> to vector<8x8x128xbf16>
    %74 = vector.shape_cast %71 : vector<8x8x128xbf16> to vector<1x8x8x128xbf16>
    tpu.vector_store %arg4[%c0_67, %c0_68, %c0_69, %c0_70], %74 {strides = array<i32>} : memref<1x8x8x128xbf16, #tpu.memory_space<vmem>>, vector<1x8x8x128xbf16>,
    return
  }
  func.func @transform_0(%arg0: i32) -> (i32, i32, i32, i32) {
    %c0_i32 = arith.constant 0 : i32
    %c0_i32_0 = arith.constant 0 : i32
    %c0_i32_1 = arith.constant 0 : i32
    %c0_i32_2 = arith.constant 0 : i32
    return %arg0, %c0_i32, %c0_i32_0, %c0_i32_1 : i32, i32, i32, i32
  }
  func.func @transform_1(%arg0: i32) -> (i32, i32, i32) {
    %c0_i32 = arith.constant 0 : i32
    %c0_i32_0 = arith.constant 0 : i32
    %c0_i32_1 = arith.constant 0 : i32
    %c0_i32_2 = arith.constant 0 : i32
    return %c0_i32, %c0_i32_0, %c0_i32_1 : i32, i32, i32
  }
  func.func @transform_2(%arg0: i32) -> (i32, i32) {
    %c0_i32 = arith.constant 0 : i32
    %c0_i32_0 = arith.constant 0 : i32
    %c0_i32_1 = arith.constant 0 : i32
    return %c0_i32, %c0_i32_0 : i32, i32
  }
  func.func @transform_3(%arg0: i32) -> (i32, i32, i32, i32) {
    %c0_i32 = arith.constant 0 : i32
    %c0_i32_0 = arith.constant 0 : i32
    %c0_i32_1 = arith.constant 0 : i32
    %c0_i32_2 = arith.constant 0 : i32
    return %arg0, %c0_i32, %c0_i32_0, %c0_i32_1 : i32, i32, i32, i32
  }
}

module attributes {stable_mosaic.version = 11 : i64} {
  func.func @kernel(%arg0: i32, %arg1: memref<1x10x10x128xbf16, #tpu.memory_space<vmem>>, %arg2: memref<9x128x128xbf16, #tpu.memory_space<vmem>>, %arg3: memref<1x128xf32, #tpu.memory_space<vmem>>, %arg4: memref<1x4x4x128xbf16, #tpu.memory_space<vmem>>) attributes {dimension_semantics = [#tpu.dimension_semantics<parallel>], iteration_bounds = array<i64: 2>, scalar_prefetch = 0 : i64, scratch_operands = 0 : i64, tpu.core_type = #tpu.core_type<tc>, window_params = [{transform_indices = @transform_0, window_bounds = array<i64: 1, 10, 10, 128>}, {pipeline_mode = #tpu.pipeline_mode<synchronous>, transform_indices = @transform_1, window_bounds = array<i64: 9, 128, 128>}, {pipeline_mode = #tpu.pipeline_mode<synchronous>, transform_indices = @transform_2, window_bounds = array<i64: 1, 128>}, {transform_indices = @transform_3, window_bounds = array<i64: 1, 4, 4, 128>}]} {
    %c0 = arith.constant 0 : index
    %c0_0 = arith.constant 0 : index
    %c0_1 = arith.constant 0 : index
    %c0_2 = arith.constant 0 : index
    %0 = vector.load %arg1[%c0, %c0_0, %c0_1, %c0_2] : memref<1x10x10x128xbf16, #tpu.memory_space<vmem>>, vector<1x8x8x128xbf16>
    %1 = vector.shape_cast %0 : vector<1x8x8x128xbf16> to vector<8x8x128xbf16>
    %2 = vector.shape_cast %1 : vector<8x8x128xbf16> to vector<64x128xbf16>
    %c0_3 = arith.constant 0 : index
    %c0_4 = arith.constant 0 : index
    %c0_5 = arith.constant 0 : index
    %3 = vector.load %arg2[%c0_3, %c0_4, %c0_5] : memref<9x128x128xbf16, #tpu.memory_space<vmem>>, vector<1x128x128xbf16>
    %4 = vector.shape_cast %3 : vector<1x128x128xbf16> to vector<128x128xbf16>
    %cst = arith.constant dense<0.000000e+00> : vector<64x128xf32>
    %5 = tpu.matmul %2, %4, %cst {dimension_numbers = #tpu.dot_dimension_numbers<[1], [0], [0], [1], [0, 0, 1, 1], [], []>} : vector<64x128xbf16>, vector<128x128xbf16>, vector<64x128xf32> -> vector<64x128xf32>
    %c0_6 = arith.constant 0 : index
    %c0_7 = arith.constant 0 : index
    %c1 = arith.constant 1 : index
    %c0_8 = arith.constant 0 : index
    %6 = vector.load %arg1[%c0_6, %c0_7, %c1, %c0_8] : memref<1x10x10x128xbf16, #tpu.memory_space<vmem>>, vector<1x8x8x128xbf16>
    %7 = vector.shape_cast %6 : vector<1x8x8x128xbf16> to vector<8x8x128xbf16>
    %8 = vector.shape_cast %7 : vector<8x8x128xbf16> to vector<64x128xbf16>
    %c1_9 = arith.constant 1 : index
    %c0_10 = arith.constant 0 : index
    %c0_11 = arith.constant 0 : index
    %9 = vector.load %arg2[%c1_9, %c0_10, %c0_11] : memref<9x128x128xbf16, #tpu.memory_space<vmem>>, vector<1x128x128xbf16>
    %10 = vector.shape_cast %9 : vector<1x128x128xbf16> to vector<128x128xbf16>
    %cst_12 = arith.constant dense<0.000000e+00> : vector<64x128xf32>
    %11 = tpu.matmul %8, %10, %cst_12 {dimension_numbers = #tpu.dot_dimension_numbers<[1], [0], [0], [1], [0, 0, 1, 1], [], []>} : vector<64x128xbf16>, vector<128x128xbf16>, vector<64x128xf32> -> vector<64x128xf32>
    %12 = arith.addf %5, %11 : vector<64x128xf32>
    %c0_13 = arith.constant 0 : index
    %c0_14 = arith.constant 0 : index
    %c2 = arith.constant 2 : index
    %c0_15 = arith.constant 0 : index
    %13 = vector.load %arg1[%c0_13, %c0_14, %c2, %c0_15] : memref<1x10x10x128xbf16, #tpu.memory_space<vmem>>, vector<1x8x8x128xbf16>
    %14 = vector.shape_cast %13 : vector<1x8x8x128xbf16> to vector<8x8x128xbf16>
    %15 = vector.shape_cast %14 : vector<8x8x128xbf16> to vector<64x128xbf16>
    %c2_16 = arith.constant 2 : index
    %c0_17 = arith.constant 0 : index
    %c0_18 = arith.constant 0 : index
    %16 = vector.load %arg2[%c2_16, %c0_17, %c0_18] : memref<9x128x128xbf16, #tpu.memory_space<vmem>>, vector<1x128x128xbf16>
    %17 = vector.shape_cast %16 : vector<1x128x128xbf16> to vector<128x128xbf16>
    %cst_19 = arith.constant dense<0.000000e+00> : vector<64x128xf32>
    %18 = tpu.matmul %15, %17, %cst_19 {dimension_numbers = #tpu.dot_dimension_numbers<[1], [0], [0], [1], [0, 0, 1, 1], [], []>} : vector<64x128xbf16>, vector<128x128xbf16>, vector<64x128xf32> -> vector<64x128xf32>
    %19 = arith.addf %12, %18 : vector<64x128xf32>
    %c0_20 = arith.constant 0 : index
    %c1_21 = arith.constant 1 : index
    %c0_22 = arith.constant 0 : index
    %c0_23 = arith.constant 0 : index
    %20 = vector.load %arg1[%c0_20, %c1_21, %c0_22, %c0_23] : memref<1x10x10x128xbf16, #tpu.memory_space<vmem>>, vector<1x8x8x128xbf16>
    %21 = vector.shape_cast %20 : vector<1x8x8x128xbf16> to vector<8x8x128xbf16>
    %22 = vector.shape_cast %21 : vector<8x8x128xbf16> to vector<64x128xbf16>
    %c3 = arith.constant 3 : index
    %c0_24 = arith.constant 0 : index
    %c0_25 = arith.constant 0 : index
    %23 = vector.load %arg2[%c3, %c0_24, %c0_25] : memref<9x128x128xbf16, #tpu.memory_space<vmem>>, vector<1x128x128xbf16>
    %24 = vector.shape_cast %23 : vector<1x128x128xbf16> to vector<128x128xbf16>
    %cst_26 = arith.constant dense<0.000000e+00> : vector<64x128xf32>
    %25 = tpu.matmul %22, %24, %cst_26 {dimension_numbers = #tpu.dot_dimension_numbers<[1], [0], [0], [1], [0, 0, 1, 1], [], []>} : vector<64x128xbf16>, vector<128x128xbf16>, vector<64x128xf32> -> vector<64x128xf32>
    %26 = arith.addf %19, %25 : vector<64x128xf32>
    %c0_27 = arith.constant 0 : index
    %c1_28 = arith.constant 1 : index
    %c1_29 = arith.constant 1 : index
    %c0_30 = arith.constant 0 : index
    %27 = vector.load %arg1[%c0_27, %c1_28, %c1_29, %c0_30] : memref<1x10x10x128xbf16, #tpu.memory_space<vmem>>, vector<1x8x8x128xbf16>
    %28 = vector.shape_cast %27 : vector<1x8x8x128xbf16> to vector<8x8x128xbf16>
    %29 = vector.shape_cast %28 : vector<8x8x128xbf16> to vector<64x128xbf16>
    %c4 = arith.constant 4 : index
    %c0_31 = arith.constant 0 : index
    %c0_32 = arith.constant 0 : index
    %30 = vector.load %arg2[%c4, %c0_31, %c0_32] : memref<9x128x128xbf16, #tpu.memory_space<vmem>>, vector<1x128x128xbf16>
    %31 = vector.shape_cast %30 : vector<1x128x128xbf16> to vector<128x128xbf16>
    %cst_33 = arith.constant dense<0.000000e+00> : vector<64x128xf32>
    %32 = tpu.matmul %29, %31, %cst_33 {dimension_numbers = #tpu.dot_dimension_numbers<[1], [0], [0], [1], [0, 0, 1, 1], [], []>} : vector<64x128xbf16>, vector<128x128xbf16>, vector<64x128xf32> -> vector<64x128xf32>
    %33 = arith.addf %26, %32 : vector<64x128xf32>
    %c0_34 = arith.constant 0 : index
    %c1_35 = arith.constant 1 : index
    %c2_36 = arith.constant 2 : index
    %c0_37 = arith.constant 0 : index
    %34 = vector.load %arg1[%c0_34, %c1_35, %c2_36, %c0_37] : memref<1x10x10x128xbf16, #tpu.memory_space<vmem>>, vector<1x8x8x128xbf16>
    %35 = vector.shape_cast %34 : vector<1x8x8x128xbf16> to vector<8x8x128xbf16>
    %36 = vector.shape_cast %35 : vector<8x8x128xbf16> to vector<64x128xbf16>
    %c5 = arith.constant 5 : index
    %c0_38 = arith.constant 0 : index
    %c0_39 = arith.constant 0 : index
    %37 = vector.load %arg2[%c5, %c0_38, %c0_39] : memref<9x128x128xbf16, #tpu.memory_space<vmem>>, vector<1x128x128xbf16>
    %38 = vector.shape_cast %37 : vector<1x128x128xbf16> to vector<128x128xbf16>
    %cst_40 = arith.constant dense<0.000000e+00> : vector<64x128xf32>
    %39 = tpu.matmul %36, %38, %cst_40 {dimension_numbers = #tpu.dot_dimension_numbers<[1], [0], [0], [1], [0, 0, 1, 1], [], []>} : vector<64x128xbf16>, vector<128x128xbf16>, vector<64x128xf32> -> vector<64x128xf32>
    %40 = arith.addf %33, %39 : vector<64x128xf32>
    %c0_41 = arith.constant 0 : index
    %c2_42 = arith.constant 2 : index
    %c0_43 = arith.constant 0 : index
    %c0_44 = arith.constant 0 : index
    %41 = vector.load %arg1[%c0_41, %c2_42, %c0_43, %c0_44] : memref<1x10x10x128xbf16, #tpu.memory_space<vmem>>, vector<1x8x8x128xbf16>
    %42 = vector.shape_cast %41 : vector<1x8x8x128xbf16> to vector<8x8x128xbf16>
    %43 = vector.shape_cast %42 : vector<8x8x128xbf16> to vector<64x128xbf16>
    %c6 = arith.constant 6 : index
    %c0_45 = arith.constant 0 : index
    %c0_46 = arith.constant 0 : index
    %44 = vector.load %arg2[%c6, %c0_45, %c0_46] : memref<9x128x128xbf16, #tpu.memory_space<vmem>>, vector<1x128x128xbf16>
    %45 = vector.shape_cast %44 : vector<1x128x128xbf16> to vector<128x128xbf16>
    %cst_47 = arith.constant dense<0.000000e+00> : vector<64x128xf32>
    %46 = tpu.matmul %43, %45, %cst_47 {dimension_numbers = #tpu.dot_dimension_numbers<[1], [0], [0], [1], [0, 0, 1, 1], [], []>} : vector<64x128xbf16>, vector<128x128xbf16>, vector<64x128xf32> -> vector<64x128xf32>
    %47 = arith.addf %40, %46 : vector<64x128xf32>
    %c0_48 = arith.constant 0 : index
    %c2_49 = arith.constant 2 : index
    %c1_50 = arith.constant 1 : index
    %c0_51 = arith.constant 0 : index
    %48 = vector.load %arg1[%c0_48, %c2_49, %c1_50, %c0_51] : memref<1x10x10x128xbf16, #tpu.memory_space<vmem>>, vector<1x8x8x128xbf16>
    %49 = vector.shape_cast %48 : vector<1x8x8x128xbf16> to vector<8x8x128xbf16>
    %50 = vector.shape_cast %49 : vector<8x8x128xbf16> to vector<64x128xbf16>
    %c7 = arith.constant 7 : index
    %c0_52 = arith.constant 0 : index
    %c0_53 = arith.constant 0 : index
    %51 = vector.load %arg2[%c7, %c0_52, %c0_53] : memref<9x128x128xbf16, #tpu.memory_space<vmem>>, vector<1x128x128xbf16>
    %52 = vector.shape_cast %51 : vector<1x128x128xbf16> to vector<128x128xbf16>
    %cst_54 = arith.constant dense<0.000000e+00> : vector<64x128xf32>
    %53 = tpu.matmul %50, %52, %cst_54 {dimension_numbers = #tpu.dot_dimension_numbers<[1], [0], [0], [1], [0, 0, 1, 1], [], []>} : vector<64x128xbf16>, vector<128x128xbf16>, vector<64x128xf32> -> vector<64x128xf32>
    %54 = arith.addf %47, %53 : vector<64x128xf32>
    %c0_55 = arith.constant 0 : index
    %c2_56 = arith.constant 2 : index
    %c2_57 = arith.constant 2 : index
    %c0_58 = arith.constant 0 : index
    %55 = vector.load %arg1[%c0_55, %c2_56, %c2_57, %c0_58] : memref<1x10x10x128xbf16, #tpu.memory_space<vmem>>, vector<1x8x8x128xbf16>
    %56 = vector.shape_cast %55 : vector<1x8x8x128xbf16> to vector<8x8x128xbf16>
    %57 = vector.shape_cast %56 : vector<8x8x128xbf16> to vector<64x128xbf16>
    %c8 = arith.constant 8 : index
    %c0_59 = arith.constant 0 : index
    %c0_60 = arith.constant 0 : index
    %58 = vector.load %arg2[%c8, %c0_59, %c0_60] : memref<9x128x128xbf16, #tpu.memory_space<vmem>>, vector<1x128x128xbf16>
    %59 = vector.shape_cast %58 : vector<1x128x128xbf16> to vector<128x128xbf16>
    %cst_61 = arith.constant dense<0.000000e+00> : vector<64x128xf32>
    %60 = tpu.matmul %57, %59, %cst_61 {dimension_numbers = #tpu.dot_dimension_numbers<[1], [0], [0], [1], [0, 0, 1, 1], [], []>} : vector<64x128xbf16>, vector<128x128xbf16>, vector<64x128xf32> -> vector<64x128xf32>
    %61 = arith.addf %54, %60 : vector<64x128xf32>
    %c0_62 = arith.constant 0 : index
    %c0_63 = arith.constant 0 : index
    %62 = vector.load %arg3[%c0_62, %c0_63] : memref<1x128xf32, #tpu.memory_space<vmem>>, vector<1x128xf32>
    %63 = vector.broadcast %62 : vector<1x128xf32> to vector<64x128xf32>
    %64 = arith.addf %61, %63 : vector<64x128xf32>
    %cst_64 = arith.constant 0.000000e+00 : f32
    %65 = vector.broadcast %cst_64 : f32 to vector<64x128xf32>
    %66 = arith.maximumf %64, %65 : vector<64x128xf32>
    %67 = vector.shape_cast %66 : vector<64x128xf32> to vector<4x2x8x128xf32>
    %cst_65 = arith.constant dense<0xFF800000> : vector<4x8x128xf32>
    %68 = vector.multi_reduction <maximumf>, %67, %cst_65 [1] : vector<4x2x8x128xf32> to vector<4x8x128xf32>
    %69 = vector.shape_cast %68 : vector<4x8x128xf32> to vector<4x4x2x128xf32>
    %cst_66 = arith.constant dense<0xFF800000> : vector<4x4x128xf32>
    %70 = vector.multi_reduction <maximumf>, %69, %cst_66 [2] : vector<4x4x2x128xf32> to vector<4x4x128xf32>
    %71 = arith.truncf %70 : vector<4x4x128xf32> to vector<4x4x128xbf16>
    %c0_67 = arith.constant 0 : index
    %c0_68 = arith.constant 0 : index
    %c0_69 = arith.constant 0 : index
    %c0_70 = arith.constant 0 : index
    %72 = vector.load %arg4[%c0_67, %c0_68, %c0_69, %c0_70] : memref<1x4x4x128xbf16, #tpu.memory_space<vmem>>, vector<1x4x4x128xbf16>
    %73 = vector.shape_cast %72 : vector<1x4x4x128xbf16> to vector<4x4x128xbf16>
    %74 = vector.shape_cast %71 : vector<4x4x128xbf16> to vector<1x4x4x128xbf16>
    tpu.vector_store %arg4[%c0_67, %c0_68, %c0_69, %c0_70], %74 {strides = array<i32>} : memref<1x4x4x128xbf16, #tpu.memory_space<vmem>>, vector<1x4x4x128xbf16>,
    return
  }
  func.func @transform_0(%arg0: i32) -> (i32, i32, i32, i32) {
    %c0_i32 = arith.constant 0 : i32
    %c0_i32_0 = arith.constant 0 : i32
    %c0_i32_1 = arith.constant 0 : i32
    %c0_i32_2 = arith.constant 0 : i32
    return %arg0, %c0_i32, %c0_i32_0, %c0_i32_1 : i32, i32, i32, i32
  }
  func.func @transform_1(%arg0: i32) -> (i32, i32, i32) {
    %c0_i32 = arith.constant 0 : i32
    %c0_i32_0 = arith.constant 0 : i32
    %c0_i32_1 = arith.constant 0 : i32
    %c0_i32_2 = arith.constant 0 : i32
    return %c0_i32, %c0_i32_0, %c0_i32_1 : i32, i32, i32
  }
  func.func @transform_2(%arg0: i32) -> (i32, i32) {
    %c0_i32 = arith.constant 0 : i32
    %c0_i32_0 = arith.constant 0 : i32
    %c0_i32_1 = arith.constant 0 : i32
    return %c0_i32, %c0_i32_0 : i32, i32
  }
  func.func @transform_3(%arg0: i32) -> (i32, i32, i32, i32) {
    %c0_i32 = arith.constant 0 : i32
    %c0_i32_0 = arith.constant 0 : i32
    %c0_i32_1 = arith.constant 0 : i32
    %c0_i32_2 = arith.constant 0 : i32
    return %arg0, %c0_i32, %c0_i32_0, %c0_i32_1 : i32, i32, i32, i32
  }
}

module attributes {stable_mosaic.version = 11 : i64} {
  func.func @kernel(%arg0: i32, %arg1: memref<1x6x6x128xbf16, #tpu.memory_space<vmem>>, %arg2: memref<9x128x128xbf16, #tpu.memory_space<vmem>>, %arg3: memref<1x128xf32, #tpu.memory_space<vmem>>, %arg4: memref<1x2x2x128xbf16, #tpu.memory_space<vmem>>) attributes {dimension_semantics = [#tpu.dimension_semantics<parallel>], iteration_bounds = array<i64: 2>, scalar_prefetch = 0 : i64, scratch_operands = 0 : i64, tpu.core_type = #tpu.core_type<tc>, window_params = [{transform_indices = @transform_0, window_bounds = array<i64: 1, 6, 6, 128>}, {pipeline_mode = #tpu.pipeline_mode<synchronous>, transform_indices = @transform_1, window_bounds = array<i64: 9, 128, 128>}, {pipeline_mode = #tpu.pipeline_mode<synchronous>, transform_indices = @transform_2, window_bounds = array<i64: 1, 128>}, {transform_indices = @transform_3, window_bounds = array<i64: 1, 2, 2, 128>}]} {
    %c0 = arith.constant 0 : index
    %c0_0 = arith.constant 0 : index
    %c0_1 = arith.constant 0 : index
    %c0_2 = arith.constant 0 : index
    %0 = vector.load %arg1[%c0, %c0_0, %c0_1, %c0_2] : memref<1x6x6x128xbf16, #tpu.memory_space<vmem>>, vector<1x4x4x128xbf16>
    %1 = vector.shape_cast %0 : vector<1x4x4x128xbf16> to vector<4x4x128xbf16>
    %2 = vector.shape_cast %1 : vector<4x4x128xbf16> to vector<16x128xbf16>
    %c0_3 = arith.constant 0 : index
    %c0_4 = arith.constant 0 : index
    %c0_5 = arith.constant 0 : index
    %3 = vector.load %arg2[%c0_3, %c0_4, %c0_5] : memref<9x128x128xbf16, #tpu.memory_space<vmem>>, vector<1x128x128xbf16>
    %4 = vector.shape_cast %3 : vector<1x128x128xbf16> to vector<128x128xbf16>
    %cst = arith.constant dense<0.000000e+00> : vector<16x128xf32>
    %5 = tpu.matmul %2, %4, %cst {dimension_numbers = #tpu.dot_dimension_numbers<[1], [0], [0], [1], [0, 0, 1, 1], [], []>} : vector<16x128xbf16>, vector<128x128xbf16>, vector<16x128xf32> -> vector<16x128xf32>
    %c0_6 = arith.constant 0 : index
    %c0_7 = arith.constant 0 : index
    %c1 = arith.constant 1 : index
    %c0_8 = arith.constant 0 : index
    %6 = vector.load %arg1[%c0_6, %c0_7, %c1, %c0_8] : memref<1x6x6x128xbf16, #tpu.memory_space<vmem>>, vector<1x4x4x128xbf16>
    %7 = vector.shape_cast %6 : vector<1x4x4x128xbf16> to vector<4x4x128xbf16>
    %8 = vector.shape_cast %7 : vector<4x4x128xbf16> to vector<16x128xbf16>
    %c1_9 = arith.constant 1 : index
    %c0_10 = arith.constant 0 : index
    %c0_11 = arith.constant 0 : index
    %9 = vector.load %arg2[%c1_9, %c0_10, %c0_11] : memref<9x128x128xbf16, #tpu.memory_space<vmem>>, vector<1x128x128xbf16>
    %10 = vector.shape_cast %9 : vector<1x128x128xbf16> to vector<128x128xbf16>
    %cst_12 = arith.constant dense<0.000000e+00> : vector<16x128xf32>
    %11 = tpu.matmul %8, %10, %cst_12 {dimension_numbers = #tpu.dot_dimension_numbers<[1], [0], [0], [1], [0, 0, 1, 1], [], []>} : vector<16x128xbf16>, vector<128x128xbf16>, vector<16x128xf32> -> vector<16x128xf32>
    %12 = arith.addf %5, %11 : vector<16x128xf32>
    %c0_13 = arith.constant 0 : index
    %c0_14 = arith.constant 0 : index
    %c2 = arith.constant 2 : index
    %c0_15 = arith.constant 0 : index
    %13 = vector.load %arg1[%c0_13, %c0_14, %c2, %c0_15] : memref<1x6x6x128xbf16, #tpu.memory_space<vmem>>, vector<1x4x4x128xbf16>
    %14 = vector.shape_cast %13 : vector<1x4x4x128xbf16> to vector<4x4x128xbf16>
    %15 = vector.shape_cast %14 : vector<4x4x128xbf16> to vector<16x128xbf16>
    %c2_16 = arith.constant 2 : index
    %c0_17 = arith.constant 0 : index
    %c0_18 = arith.constant 0 : index
    %16 = vector.load %arg2[%c2_16, %c0_17, %c0_18] : memref<9x128x128xbf16, #tpu.memory_space<vmem>>, vector<1x128x128xbf16>
    %17 = vector.shape_cast %16 : vector<1x128x128xbf16> to vector<128x128xbf16>
    %cst_19 = arith.constant dense<0.000000e+00> : vector<16x128xf32>
    %18 = tpu.matmul %15, %17, %cst_19 {dimension_numbers = #tpu.dot_dimension_numbers<[1], [0], [0], [1], [0, 0, 1, 1], [], []>} : vector<16x128xbf16>, vector<128x128xbf16>, vector<16x128xf32> -> vector<16x128xf32>
    %19 = arith.addf %12, %18 : vector<16x128xf32>
    %c0_20 = arith.constant 0 : index
    %c1_21 = arith.constant 1 : index
    %c0_22 = arith.constant 0 : index
    %c0_23 = arith.constant 0 : index
    %20 = vector.load %arg1[%c0_20, %c1_21, %c0_22, %c0_23] : memref<1x6x6x128xbf16, #tpu.memory_space<vmem>>, vector<1x4x4x128xbf16>
    %21 = vector.shape_cast %20 : vector<1x4x4x128xbf16> to vector<4x4x128xbf16>
    %22 = vector.shape_cast %21 : vector<4x4x128xbf16> to vector<16x128xbf16>
    %c3 = arith.constant 3 : index
    %c0_24 = arith.constant 0 : index
    %c0_25 = arith.constant 0 : index
    %23 = vector.load %arg2[%c3, %c0_24, %c0_25] : memref<9x128x128xbf16, #tpu.memory_space<vmem>>, vector<1x128x128xbf16>
    %24 = vector.shape_cast %23 : vector<1x128x128xbf16> to vector<128x128xbf16>
    %cst_26 = arith.constant dense<0.000000e+00> : vector<16x128xf32>
    %25 = tpu.matmul %22, %24, %cst_26 {dimension_numbers = #tpu.dot_dimension_numbers<[1], [0], [0], [1], [0, 0, 1, 1], [], []>} : vector<16x128xbf16>, vector<128x128xbf16>, vector<16x128xf32> -> vector<16x128xf32>
    %26 = arith.addf %19, %25 : vector<16x128xf32>
    %c0_27 = arith.constant 0 : index
    %c1_28 = arith.constant 1 : index
    %c1_29 = arith.constant 1 : index
    %c0_30 = arith.constant 0 : index
    %27 = vector.load %arg1[%c0_27, %c1_28, %c1_29, %c0_30] : memref<1x6x6x128xbf16, #tpu.memory_space<vmem>>, vector<1x4x4x128xbf16>
    %28 = vector.shape_cast %27 : vector<1x4x4x128xbf16> to vector<4x4x128xbf16>
    %29 = vector.shape_cast %28 : vector<4x4x128xbf16> to vector<16x128xbf16>
    %c4 = arith.constant 4 : index
    %c0_31 = arith.constant 0 : index
    %c0_32 = arith.constant 0 : index
    %30 = vector.load %arg2[%c4, %c0_31, %c0_32] : memref<9x128x128xbf16, #tpu.memory_space<vmem>>, vector<1x128x128xbf16>
    %31 = vector.shape_cast %30 : vector<1x128x128xbf16> to vector<128x128xbf16>
    %cst_33 = arith.constant dense<0.000000e+00> : vector<16x128xf32>
    %32 = tpu.matmul %29, %31, %cst_33 {dimension_numbers = #tpu.dot_dimension_numbers<[1], [0], [0], [1], [0, 0, 1, 1], [], []>} : vector<16x128xbf16>, vector<128x128xbf16>, vector<16x128xf32> -> vector<16x128xf32>
    %33 = arith.addf %26, %32 : vector<16x128xf32>
    %c0_34 = arith.constant 0 : index
    %c1_35 = arith.constant 1 : index
    %c2_36 = arith.constant 2 : index
    %c0_37 = arith.constant 0 : index
    %34 = vector.load %arg1[%c0_34, %c1_35, %c2_36, %c0_37] : memref<1x6x6x128xbf16, #tpu.memory_space<vmem>>, vector<1x4x4x128xbf16>
    %35 = vector.shape_cast %34 : vector<1x4x4x128xbf16> to vector<4x4x128xbf16>
    %36 = vector.shape_cast %35 : vector<4x4x128xbf16> to vector<16x128xbf16>
    %c5 = arith.constant 5 : index
    %c0_38 = arith.constant 0 : index
    %c0_39 = arith.constant 0 : index
    %37 = vector.load %arg2[%c5, %c0_38, %c0_39] : memref<9x128x128xbf16, #tpu.memory_space<vmem>>, vector<1x128x128xbf16>
    %38 = vector.shape_cast %37 : vector<1x128x128xbf16> to vector<128x128xbf16>
    %cst_40 = arith.constant dense<0.000000e+00> : vector<16x128xf32>
    %39 = tpu.matmul %36, %38, %cst_40 {dimension_numbers = #tpu.dot_dimension_numbers<[1], [0], [0], [1], [0, 0, 1, 1], [], []>} : vector<16x128xbf16>, vector<128x128xbf16>, vector<16x128xf32> -> vector<16x128xf32>
    %40 = arith.addf %33, %39 : vector<16x128xf32>
    %c0_41 = arith.constant 0 : index
    %c2_42 = arith.constant 2 : index
    %c0_43 = arith.constant 0 : index
    %c0_44 = arith.constant 0 : index
    %41 = vector.load %arg1[%c0_41, %c2_42, %c0_43, %c0_44] : memref<1x6x6x128xbf16, #tpu.memory_space<vmem>>, vector<1x4x4x128xbf16>
    %42 = vector.shape_cast %41 : vector<1x4x4x128xbf16> to vector<4x4x128xbf16>
    %43 = vector.shape_cast %42 : vector<4x4x128xbf16> to vector<16x128xbf16>
    %c6 = arith.constant 6 : index
    %c0_45 = arith.constant 0 : index
    %c0_46 = arith.constant 0 : index
    %44 = vector.load %arg2[%c6, %c0_45, %c0_46] : memref<9x128x128xbf16, #tpu.memory_space<vmem>>, vector<1x128x128xbf16>
    %45 = vector.shape_cast %44 : vector<1x128x128xbf16> to vector<128x128xbf16>
    %cst_47 = arith.constant dense<0.000000e+00> : vector<16x128xf32>
    %46 = tpu.matmul %43, %45, %cst_47 {dimension_numbers = #tpu.dot_dimension_numbers<[1], [0], [0], [1], [0, 0, 1, 1], [], []>} : vector<16x128xbf16>, vector<128x128xbf16>, vector<16x128xf32> -> vector<16x128xf32>
    %47 = arith.addf %40, %46 : vector<16x128xf32>
    %c0_48 = arith.constant 0 : index
    %c2_49 = arith.constant 2 : index
    %c1_50 = arith.constant 1 : index
    %c0_51 = arith.constant 0 : index
    %48 = vector.load %arg1[%c0_48, %c2_49, %c1_50, %c0_51] : memref<1x6x6x128xbf16, #tpu.memory_space<vmem>>, vector<1x4x4x128xbf16>
    %49 = vector.shape_cast %48 : vector<1x4x4x128xbf16> to vector<4x4x128xbf16>
    %50 = vector.shape_cast %49 : vector<4x4x128xbf16> to vector<16x128xbf16>
    %c7 = arith.constant 7 : index
    %c0_52 = arith.constant 0 : index
    %c0_53 = arith.constant 0 : index
    %51 = vector.load %arg2[%c7, %c0_52, %c0_53] : memref<9x128x128xbf16, #tpu.memory_space<vmem>>, vector<1x128x128xbf16>
    %52 = vector.shape_cast %51 : vector<1x128x128xbf16> to vector<128x128xbf16>
    %cst_54 = arith.constant dense<0.000000e+00> : vector<16x128xf32>
    %53 = tpu.matmul %50, %52, %cst_54 {dimension_numbers = #tpu.dot_dimension_numbers<[1], [0], [0], [1], [0, 0, 1, 1], [], []>} : vector<16x128xbf16>, vector<128x128xbf16>, vector<16x128xf32> -> vector<16x128xf32>
    %54 = arith.addf %47, %53 : vector<16x128xf32>
    %c0_55 = arith.constant 0 : index
    %c2_56 = arith.constant 2 : index
    %c2_57 = arith.constant 2 : index
    %c0_58 = arith.constant 0 : index
    %55 = vector.load %arg1[%c0_55, %c2_56, %c2_57, %c0_58] : memref<1x6x6x128xbf16, #tpu.memory_space<vmem>>, vector<1x4x4x128xbf16>
    %56 = vector.shape_cast %55 : vector<1x4x4x128xbf16> to vector<4x4x128xbf16>
    %57 = vector.shape_cast %56 : vector<4x4x128xbf16> to vector<16x128xbf16>
    %c8 = arith.constant 8 : index
    %c0_59 = arith.constant 0 : index
    %c0_60 = arith.constant 0 : index
    %58 = vector.load %arg2[%c8, %c0_59, %c0_60] : memref<9x128x128xbf16, #tpu.memory_space<vmem>>, vector<1x128x128xbf16>
    %59 = vector.shape_cast %58 : vector<1x128x128xbf16> to vector<128x128xbf16>
    %cst_61 = arith.constant dense<0.000000e+00> : vector<16x128xf32>
    %60 = tpu.matmul %57, %59, %cst_61 {dimension_numbers = #tpu.dot_dimension_numbers<[1], [0], [0], [1], [0, 0, 1, 1], [], []>} : vector<16x128xbf16>, vector<128x128xbf16>, vector<16x128xf32> -> vector<16x128xf32>
    %61 = arith.addf %54, %60 : vector<16x128xf32>
    %c0_62 = arith.constant 0 : index
    %c0_63 = arith.constant 0 : index
    %62 = vector.load %arg3[%c0_62, %c0_63] : memref<1x128xf32, #tpu.memory_space<vmem>>, vector<1x128xf32>
    %63 = vector.broadcast %62 : vector<1x128xf32> to vector<16x128xf32>
    %64 = arith.addf %61, %63 : vector<16x128xf32>
    %cst_64 = arith.constant 0.000000e+00 : f32
    %65 = vector.broadcast %cst_64 : f32 to vector<16x128xf32>
    %66 = arith.maximumf %64, %65 : vector<16x128xf32>
    %67 = vector.shape_cast %66 : vector<16x128xf32> to vector<2x2x4x128xf32>
    %cst_65 = arith.constant dense<0xFF800000> : vector<2x4x128xf32>
    %68 = vector.multi_reduction <maximumf>, %67, %cst_65 [1] : vector<2x2x4x128xf32> to vector<2x4x128xf32>
    %69 = vector.shape_cast %68 : vector<2x4x128xf32> to vector<2x2x2x128xf32>
    %cst_66 = arith.constant dense<0xFF800000> : vector<2x2x128xf32>
    %70 = vector.multi_reduction <maximumf>, %69, %cst_66 [2] : vector<2x2x2x128xf32> to vector<2x2x128xf32>
    %71 = arith.truncf %70 : vector<2x2x128xf32> to vector<2x2x128xbf16>
    %c0_67 = arith.constant 0 : index
    %c0_68 = arith.constant 0 : index
    %c0_69 = arith.constant 0 : index
    %c0_70 = arith.constant 0 : index
    %72 = vector.load %arg4[%c0_67, %c0_68, %c0_69, %c0_70] : memref<1x2x2x128xbf16, #tpu.memory_space<vmem>>, vector<1x2x2x128xbf16>
    %73 = vector.shape_cast %72 : vector<1x2x2x128xbf16> to vector<2x2x128xbf16>
    %74 = vector.shape_cast %71 : vector<2x2x128xbf16> to vector<1x2x2x128xbf16>
    tpu.vector_store %arg4[%c0_67, %c0_68, %c0_69, %c0_70], %74 {strides = array<i32>} : memref<1x2x2x128xbf16, #tpu.memory_space<vmem>>, vector<1x2x2x128xbf16>,
    return
  }
  func.func @transform_0(%arg0: i32) -> (i32, i32, i32, i32) {
    %c0_i32 = arith.constant 0 : i32
    %c0_i32_0 = arith.constant 0 : i32
    %c0_i32_1 = arith.constant 0 : i32
    %c0_i32_2 = arith.constant 0 : i32
    return %arg0, %c0_i32, %c0_i32_0, %c0_i32_1 : i32, i32, i32, i32
  }
  func.func @transform_1(%arg0: i32) -> (i32, i32, i32) {
    %c0_i32 = arith.constant 0 : i32
    %c0_i32_0 = arith.constant 0 : i32
    %c0_i32_1 = arith.constant 0 : i32
    %c0_i32_2 = arith.constant 0 : i32
    return %c0_i32, %c0_i32_0, %c0_i32_1 : i32, i32, i32
  }
  func.func @transform_2(%arg0: i32) -> (i32, i32) {
    %c0_i32 = arith.constant 0 : i32
    %c0_i32_0 = arith.constant 0 : i32
    %c0_i32_1 = arith.constant 0 : i32
    return %c0_i32, %c0_i32_0 : i32, i32
  }
  func.func @transform_3(%arg0: i32) -> (i32, i32, i32, i32) {
    %c0_i32 = arith.constant 0 : i32
    %c0_i32_0 = arith.constant 0 : i32
    %c0_i32_1 = arith.constant 0 : i32
    %c0_i32_2 = arith.constant 0 : i32
    return %arg0, %c0_i32, %c0_i32_0, %c0_i32_1 : i32, i32, i32, i32
  }
}

module attributes {stable_mosaic.version = 11 : i64} {
  func.func @fc_head_kernel(%arg0: i32, %arg1: memref<8x512xbf16, #tpu.memory_space<vmem>>, %arg2: memref<512x128xbf16, #tpu.memory_space<vmem>>, %arg3: memref<1x128xf32, #tpu.memory_space<vmem>>, %arg4: memref<128x128xbf16, #tpu.memory_space<vmem>>, %arg5: memref<1x128xf32, #tpu.memory_space<vmem>>, %arg6: memref<8x128xf32, #tpu.memory_space<vmem>>) attributes {dimension_semantics = [#tpu.dimension_semantics<arbitrary>], iteration_bounds = array<i64: 1>, scalar_prefetch = 0 : i64, scratch_operands = 0 : i64, tpu.core_type = #tpu.core_type<tc>, window_params = [{pipeline_mode = #tpu.pipeline_mode<synchronous>, transform_indices = @transform_0, window_bounds = array<i64: 8, 512>}, {pipeline_mode = #tpu.pipeline_mode<synchronous>, transform_indices = @transform_1, window_bounds = array<i64: 512, 128>}, {pipeline_mode = #tpu.pipeline_mode<synchronous>, transform_indices = @transform_2, window_bounds = array<i64: 1, 128>}, {pipeline_mode = #tpu.pipeline_mode<synchronous>, transform_indices = @transform_3, window_bounds = array<i64: 128, 128>}, {pipeline_mode = #tpu.pipeline_mode<synchronous>, transform_indices = @transform_4, window_bounds = array<i64: 1, 128>}, {pipeline_mode = #tpu.pipeline_mode<synchronous>, transform_indices = @transform_5, window_bounds = array<i64: 8, 128>}]} {
    %c0 = arith.constant 0 : index
    %c0_0 = arith.constant 0 : index
    %0 = vector.load %arg1[%c0, %c0_0] : memref<8x512xbf16, #tpu.memory_space<vmem>>, vector<8x512xbf16>
    %c0_1 = arith.constant 0 : index
    %c0_2 = arith.constant 0 : index
    %1 = vector.load %arg2[%c0_1, %c0_2] : memref<512x128xbf16, #tpu.memory_space<vmem>>, vector<512x128xbf16>
    %cst = arith.constant dense<0.000000e+00> : vector<8x128xf32>
    %2 = tpu.matmul %0, %1, %cst {dimension_numbers = #tpu.dot_dimension_numbers<[1], [0], [0], [1], [0, 0, 1, 1], [], []>} : vector<8x512xbf16>, vector<512x128xbf16>, vector<8x128xf32> -> vector<8x128xf32>
    %c0_3 = arith.constant 0 : index
    %c0_4 = arith.constant 0 : index
    %3 = vector.load %arg3[%c0_3, %c0_4] : memref<1x128xf32, #tpu.memory_space<vmem>>, vector<1x128xf32>
    %4 = vector.broadcast %3 : vector<1x128xf32> to vector<8x128xf32>
    %5 = arith.addf %2, %4 : vector<8x128xf32>
    %cst_5 = arith.constant 0.000000e+00 : f32
    %6 = vector.broadcast %cst_5 : f32 to vector<8x128xf32>
    %7 = arith.maximumf %5, %6 : vector<8x128xf32>
    %8 = arith.truncf %7 : vector<8x128xf32> to vector<8x128xbf16>
    %c0_6 = arith.constant 0 : index
    %c0_7 = arith.constant 0 : index
    %9 = vector.load %arg4[%c0_6, %c0_7] : memref<128x128xbf16, #tpu.memory_space<vmem>>, vector<128x128xbf16>
    %cst_8 = arith.constant dense<0.000000e+00> : vector<8x128xf32>
    %10 = tpu.matmul %8, %9, %cst_8 {dimension_numbers = #tpu.dot_dimension_numbers<[1], [0], [0], [1], [0, 0, 1, 1], [], []>} : vector<8x128xbf16>, vector<128x128xbf16>, vector<8x128xf32> -> vector<8x128xf32>
    %c0_9 = arith.constant 0 : index
    %c0_10 = arith.constant 0 : index
    %11 = vector.load %arg5[%c0_9, %c0_10] : memref<1x128xf32, #tpu.memory_space<vmem>>, vector<1x128xf32>
    %12 = vector.broadcast %11 : vector<1x128xf32> to vector<8x128xf32>
    %13 = arith.addf %10, %12 : vector<8x128xf32>
    %14 = math.absf %13 : vector<8x128xf32>
    %cst_11 = arith.constant 0.000000e+00 : f32
    %15 = vector.broadcast %cst_11 : f32 to vector<8x128xf32>
    %16 = arith.subf %15, %14 : vector<8x128xf32>
    %17 = math.exp %16 : vector<8x128xf32>
    %cst_12 = arith.constant 1.000000e+00 : f32
    %18 = vector.broadcast %cst_12 : f32 to vector<8x128xf32>
    %19 = arith.addf %18, %17 : vector<8x128xf32>
    %20 = tpu.reciprocal %19 {approx = true} : vector<8x128xf32> -> vector<8x128xf32>
    %cst_13 = arith.constant 0.000000e+00 : f32
    %21 = vector.broadcast %cst_13 : f32 to vector<8x128xf32>
    %22 = arith.cmpf oge, %13, %21 : vector<8x128xf32>
    %cst_14 = arith.constant 1.000000e+00 : f32
    %23 = vector.broadcast %cst_14 : f32 to vector<8x128xf32>
    %24 = arith.subf %23, %20 : vector<8x128xf32>
    %25 = arith.select %22, %20, %24 : vector<8x128xi1>, vector<8x128xf32>
    %c0_15 = arith.constant 0 : index
    %c0_16 = arith.constant 0 : index
    %26 = vector.load %arg6[%c0_15, %c0_16] : memref<8x128xf32, #tpu.memory_space<vmem>>, vector<8x128xf32>
    tpu.vector_store %arg6[%c0_15, %c0_16], %25 {strides = array<i32>} : memref<8x128xf32, #tpu.memory_space<vmem>>, vector<8x128xf32>,
    return
  }
  func.func @transform_0(%arg0: i32) -> (i32, i32) {
    %c0_i32 = arith.constant 0 : i32
    %c0_i32_0 = arith.constant 0 : i32
    %c0_i32_1 = arith.constant 0 : i32
    return %c0_i32, %c0_i32_0 : i32, i32
  }
  func.func @transform_1(%arg0: i32) -> (i32, i32) {
    %c0_i32 = arith.constant 0 : i32
    %c0_i32_0 = arith.constant 0 : i32
    %c0_i32_1 = arith.constant 0 : i32
    return %c0_i32, %c0_i32_0 : i32, i32
  }
  func.func @transform_2(%arg0: i32) -> (i32, i32) {
    %c0_i32 = arith.constant 0 : i32
    %c0_i32_0 = arith.constant 0 : i32
    %c0_i32_1 = arith.constant 0 : i32
    return %c0_i32, %c0_i32_0 : i32, i32
  }
  func.func @transform_3(%arg0: i32) -> (i32, i32) {
    %c0_i32 = arith.constant 0 : i32
    %c0_i32_0 = arith.constant 0 : i32
    %c0_i32_1 = arith.constant 0 : i32
    return %c0_i32, %c0_i32_0 : i32, i32
  }
  func.func @transform_4(%arg0: i32) -> (i32, i32) {
    %c0_i32 = arith.constant 0 : i32
    %c0_i32_0 = arith.constant 0 : i32
    %c0_i32_1 = arith.constant 0 : i32
    return %c0_i32, %c0_i32_0 : i32, i32
  }
  func.func @transform_5(%arg0: i32) -> (i32, i32) {
    %c0_i32 = arith.constant 0 : i32
    %c0_i32_0 = arith.constant 0 : i32
    %c0_i32_1 = arith.constant 0 : i32
    return %c0_i32, %c0_i32_0 : i32, i32
  }
}

</mosaic_0001>

<bundles_post_ra>
// kernel: simple_cnn_forward.7
= control target key start
LH: loop header
LB: loop body
LE: loop exit
PB: predicated region body
PF: predicated region fallthrough
CT: control target
= control target key end

     0   :  { %v676_v39 = vmov 0.0   ;;  %vm677_vm0 = vmmov 0   ;;  %s843_s1 = inlined_call_operand.vmem [shape: bf16[512,128], index: 1, kind: input, shape index: {}]   ;;  %s844_s0 = inlined_call_operand.vmem [shape: bf16[8,512], index: 0, kind: input, shape index: {}]   ;;  %s845_s3 = inlined_call_operand.vmem [shape: bf16[128,128], index: 3, kind: input, shape index: {}]   ;;  %s846_s2 = inlined_call_operand.vmem [shape: f32[1,128], index: 2, kind: input, shape index: {}]   ;;  %s847_s4 = inlined_call_operand.vmem [shape: f32[1,128], index: 4, kind: input, shape index: {}]   ;;  %s848_s5 = inlined_call_operand.vmem [shape: f32[8,128], index: 5, kind: output, shape index: {}]  }
   0x1   :  { %v628_v0 = vld [vmem:[%s843_s1 + $0x78] sm:$0xff]   ;;  %v632_v4 = vld [vmem:[%s843_s1 + $0x70] sm:$0xff]   ;;  %v636_v8 = vld [vmem:[%s843_s1 + $0x68] sm:$0xff]  }
   0x2   :  { %v629_v1 = vld [vmem:[%s843_s1 + $0xf8] sm:$0xff]   ;;  %553 = vmatprep.subr.bf16.mxu0 %v628_v0  ;;  %v633_v5 = vld [vmem:[%s843_s1 + $0xf0] sm:$0xff]   ;;  %v637_v9 = vld [vmem:[%s843_s1 + $0xe8] sm:$0xff]  }
   0x3   :  { %v630_v2 = vld [vmem:[%s843_s1 + $0x38] sm:$0xff]   ;;  %575 = vmatprep.subr.bf16.mxu1 %v629_v1  ;;  %v634_v6 = vld [vmem:[%s843_s1 + $0x30] sm:$0xff]   ;;  %v638_v10 = vld [vmem:[%s843_s1 + $0x28] sm:$0xff]  }
   0x4   :  { %v631_v3 = vld [vmem:[%s843_s1 + $0xb8] sm:$0xff]   ;;  %554 = vmatpush3.bf16.msra.mxu0 %v630_v2  ;;  %v635_v7 = vld [vmem:[%s843_s1 + $0xb0] sm:$0xff]   ;;  %v639_v11 = vld [vmem:[%s843_s1 + $0xa8] sm:$0xff]  }
   0x5   :  { %576 = vmatpush3.bf16.msra.mxu1 %v631_v3  ;;  %555 = vmatprep.subr.bf16.mxu0 %v632_v4  ;;  %v640_v12 = vld [vmem:[%s843_s1 + $0x60] sm:$0xff]   ;;  %v644_v16 = vld [vmem:[%s843_s1 + $0x58] sm:$0xff]   ;;  %v648_v20 = vld [vmem:[%s843_s1 + $0x50] sm:$0xff]  }
   0x6   :  { %577 = vmatprep.subr.bf16.mxu1 %v633_v5  ;;  %v641_v13 = vld [vmem:[%s843_s1 + $0xe0] sm:$0xff]   ;;  %v645_v17 = vld [vmem:[%s843_s1 + $0xd8] sm:$0xff]   ;;  %v649_v21 = vld [vmem:[%s843_s1 + $0xd0] sm:$0xff]  }
   0x7   :  { %v642_v14 = vld [vmem:[%s843_s1 + $0x20] sm:$0xff]   ;;  %v646_v18 = vld [vmem:[%s843_s1 + $0x18] sm:$0xff]   ;;  %v650_v22 = vld [vmem:[%s843_s1 + $0x10] sm:$0xff]  }
   0x8   :  { %556 = vmatpush3.bf16.msra.mxu0 %v634_v6  ;;  %v643_v15 = vld [vmem:[%s843_s1 + $0xa0] sm:$0xff]   ;;  %v647_v19 = vld [vmem:[%s843_s1 + $0x98] sm:$0xff]   ;;  %v651_v23 = vld [vmem:[%s843_s1 + $0x90] sm:$0xff]  }
   0x9   :  { %578 = vmatpush3.bf16.msra.mxu1 %v635_v7  ;;  %557 = vmatprep.subr.bf16.mxu0 %v636_v8  ;;  %v652_v24 = vld [vmem:[%s843_s1 + $0x48] sm:$0xff]   ;;  %v656_v28 = vld [vmem:[%s843_s1 + $0x40] sm:$0xff]   ;;  %v664_v38 = vld [vmem:[%s845_s3 + $0x38] sm:$0xff]  }
   0xa   :  { %579 = vmatprep.subr.bf16.mxu1 %v637_v9  ;;  %v653_v25 = vld [vmem:[%s843_s1 + $0xc8] sm:$0xff]   ;;  %v657_v29 = vld [vmem:[%s843_s1 + $0xc0] sm:$0xff]   ;;  %v665_v40 = vld [vmem:[%s845_s3 + $0x30] sm:$0xff]  }
   0xb   :  { %v654_v26 = vld [vmem:[%s843_s1 + $0x8] sm:$0xff]   ;;  %v658_v30 = vld [vmem:[%s843_s1] sm:$0xff]   ;;  %v668_v43 = vld [vmem:[%s845_s3 + $0x18] sm:$0xff]  }
   0xc   :  { %558 = vmatpush3.bf16.msra.mxu0 %v638_v10  ;;  %v655_v27 = vld [vmem:[%s843_s1 + $0x88] sm:$0xff]   ;;  %v659_v31 = vld [vmem:[%s843_s1 + $0x80] sm:$0xff]   ;;  %v669_v44 = vld [vmem:[%s845_s3 + $0x10] sm:$0xff]  }
   0xd   :  { %580 = vmatpush3.bf16.msra.mxu1 %v639_v11  ;;  %559 = vmatprep.subr.bf16.mxu0 %v640_v12  ;;  %v21_v32 = vld [vmem:[%s844_s0] sm:$0xff]  ;;  %v22_v33 = vld [vmem:[%s844_s0 + $0x8] sm:$0xff] }
   0xe   :  { %581 = vmatprep.subr.bf16.mxu1 %v641_v13  ;;  %v508_v34 = vcombine.low %v21_v32, %v21_v32  ;;  %v509_v35 = vcombine.high %v21_v32, %v21_v32  ;;  %v510_v36 = vcombine.low %v22_v33, %v22_v33  ;;  %v511_v37 = vcombine.high %v22_v33, %v22_v33  ;;  %v666_v41 = vld [vmem:[%s845_s3 + $0x28] sm:$0xff]   ;;  %v667_v42 = vld [vmem:[%s845_s3 + $0x20] sm:$0xff]  }
   0xf   :  { %v670_v45 = vld [vmem:[%s845_s3 + $0x8] sm:$0xff]   ;;  %v671_v46 = vld [vmem:[%s845_s3] sm:$0xff]  }
  0x10   :  { %560 = vmatpush3.bf16.msra.mxu0 %v642_v14  ;;  %332 = vmatprep.mubr.bf16.mxu0 %v509_v35  ;;  %v507_v49 = vld [vmem:[%s846_s2] ss:$0 sm:$0xff] }
  0x11   :  { %582 = vmatpush3.bf16.msra.mxu1 %v643_v15  ;;  %561 = vmatprep.subr.bf16.mxu0 %v644_v16  ;;  %v544_v62 = vld [vmem:[%s847_s4] ss:$0 sm:$0xff] }
  0x12   :  { %583 = vmatprep.subr.bf16.mxu1 %v645_v17  ;;  %372 = vmatprep.mubr.bf16.mxu1 %v511_v37 }
  0x14   :  { %562 = vmatpush3.bf16.msra.mxu0 %v646_v18 }
  0x15   :  { %584 = vmatpush3.bf16.msra.mxu1 %v647_v19  ;;  %563 = vmatprep.subr.bf16.mxu0 %v648_v20 }
  0x16   :  { %585 = vmatprep.subr.bf16.mxu1 %v649_v21 }
  0x18   :  { %564 = vmatpush3.bf16.msra.mxu0 %v650_v22 }
  0x19   :  { %586 = vmatpush3.bf16.msra.mxu1 %v651_v23  ;;  %565 = vmatprep.subr.bf16.mxu0 %v652_v24 }
  0x1a   :  { %587 = vmatprep.subr.bf16.mxu1 %v653_v25 }
  0x1c   :  { %566 = vmatpush3.bf16.msra.mxu0 %v654_v26 }
  0x1d   :  { %588 = vmatpush3.bf16.msra.mxu1 %v655_v27  ;;  %567 = vmatprep.subr.bf16.mxu0 %v656_v28 }
  0x1e   :  { %589 = vmatprep.subr.bf16.mxu1 %v657_v29 }
  0x20   :  { %568 = vmatpush3.bf16.msra.mxu0 %v658_v30 }
  0x21   :  { %590 = vmatpush3.bf16.msra.mxu1 %v659_v31  ;;  %606 = vmatprep.subr.bf16.mxu0 %v676_v39 }
  0x23   :  { %333 = vmatmul.mubr.bf16.vlgmr.msra.gmra.mxu0 %v508_v34 }
  0x24   :  { %373 = vmatmul.mubr.bf16.vlgmr.msra.gmra.mxu1 %v510_v36  ;;  %607 = vmatpush3.bf16.msra.mxu0 %v664_v38 }
  0x25   :  { %608 = vmatprep.subr.bf16.mxu0 %v676_v39  ;;  %622 = vmatprep.mubr.msk.bf16.mxu0 %vm677_vm0, %v676_v39 }
  0x28   :  { %609 = vmatpush3.bf16.msra.mxu0 %v665_v40 }
  0x29   :  { %610 = vmatprep.subr.bf16.mxu0 %v676_v39 }
  0x2c   :  { %611 = vmatpush3.bf16.msra.mxu0 %v666_v41 }
  0x2d   :  { %612 = vmatprep.subr.bf16.mxu0 %v676_v39 }
  0x30   :  { %613 = vmatpush3.bf16.msra.mxu0 %v667_v42 }
  0x31   :  { %614 = vmatprep.subr.bf16.mxu0 %v676_v39 }
  0x34   :  { %615 = vmatpush3.bf16.msra.mxu0 %v668_v43 }
  0x35   :  { %616 = vmatprep.subr.bf16.mxu0 %v676_v39 }
  0x38   :  { %617 = vmatpush3.bf16.msra.mxu0 %v669_v44 }
  0x39   :  { %618 = vmatprep.subr.bf16.mxu0 %v676_v39 }
  0x3c   :  { %619 = vmatpush3.bf16.msra.mxu0 %v670_v45 }
  0x3d   :  { %620 = vmatprep.subr.bf16.mxu0 %v676_v39 }
  0x40   :  { %621 = vmatpush3.bf16.msra.mxu0 %v671_v46 }
  0xe3   :  { %v569_v47 = vpop.f32.mrf.mxu0 }
  0xe4   :  { %v591_v48 = vpop.f32.mrf.mxu1 }
  0xe5   :  { %v570_v50 = vpop.f32.mrf.mxu0 }
  0xe6   :  { %v592_v51 = vpop.f32.mrf.mxu1  ;;  %v571_v52 = vadd.f32 %v570_v50, %v569_v47 }
  0xe7   :  { %v572_v53 = vpop.f32.mrf.mxu0  ;;  %v593_v56 = vadd.f32 %v592_v51, %v591_v48 }
  0xe8   :  { %v594_v54 = vpop.f32.mrf.mxu1  ;;  %v335_v55 = vadd.f32 %v571_v52, %v507_v49 }
  0xe9   :  { %v573_v57 = vpop.f32.mrf.mxu0 }
  0xea   :  { %v595_v58 = vpop.f32.mrf.mxu1  ;;  %v375_v59 = vadd.f32 %v593_v56, %v335_v55 }
  0xec   :  { %v380_v60 = vmax.f32 %v375_v59, 0.0 }
  0xee   :  { %v381_v61 = vpack.c.bf16 %v380_v60, %v380_v60 }
  0xf0   :  { %623 = vmatmul.mubr.bf16.vlgmr.msra.gmra.mxu0 %v381_v61 }
 0x1b0   :  { %v487_v63 = vpop.f32.mrf.mxu0 }
 0x1b1   :  { %v488_v0 = vadd.f32 %v544_v62, %v487_v63 }
 0x1b2   :  { %v624_v1 = vpop.f32.mrf.mxu0 }
 0x1b3   :  { %v493_v2 = vand.u32 2147483647, %v488_v0  ;;  %vm499_vm1 = vcmp.ge.f32.partialorder %v488_v0, 0.0 }
 0x1b4   :  { %v490_v3 = vpop.f32.mrf.mxu0 }
 0x1b5   :  { %v494_v4 = vsub.f32 0.0, %v493_v2 }
 0x1b6   :  { %v625_v5 = vpop.f32.mrf.mxu0 }
 0x1b7   :  { %v495_v6 = vmul.f32 1.442695, %v494_v4 }
 0x1b9   :  { %672 = vpow2.f32 %v495_v6 }
 0x1c6   :  { %v673_v7 = vpop.eup %672 }
 0x1c7   :  { %v497_v8 = vadd.f32 1.0, %v673_v7 }
 0x1c9   :  { %674 = vrcp.f32 %v497_v8 }
 0x1d6   :  { %v675_v9 = vpop.eup %674 }
 0x1d7   :  { %v500_v10 = vsub.f32 1.0, %v675_v9 }
 0x1d9   :  { %v501_v11 = vsel %vm499_vm1, %v675_v9, %v500_v10 }
 0x1da   :  { %502 = vst [vmem:[%s848_s5] sm:$0xff] %v501_v11 }

// kernel: simple_cnn_forward.6
= control target key start
LH: loop header
LB: loop body
LE: loop exit
PB: predicated region body
PF: predicated region fallthrough
CT: control target
= control target key end

     0   :  { %s2750_s12 = smov 0   ;;  %s3225_s0 = inlined_call_operand.vmem [shape: bf16[2,6,6,128], index: 0, kind: input, shape index: {}]   ;;  %s3226_s1 = inlined_call_operand.vmem [shape: bf16[9,128,128], index: 1, kind: input, shape index: {}]   ;;  %s3227_s2 = inlined_call_operand.vmem [shape: f32[1,128], index: 2, kind: input, shape index: {}]   ;;  %s3228_s3 = inlined_call_operand.vmem [shape: bf16[2,2,2,128], index: 3, kind: output, shape index: {}]  }
   0x1 LB: > { %s2086_s13 = sadd.s32 4294967295, %s2723_s12   ;;  %p2090_p0 = scmp.ge.s32.totalorder %s2723_s12, 1  ;;  %s2723_s12 = sphi %s2750_s12, %s13_s12  }
   0x2   : > { %p137_p1 = scmp.lt.s32.totalorder %s2723_s12, 3 }
   0x4   : > { %p138_p2 = pnand %p2090_p0, %p137_p1 }
   0x5   : > { %p160_p3 = scmp.lt.s32.totalorder (!%p138_p2), %s2086_s13, 1 }
   0x6   : > { %141 = sbr.rel (%p138_p2) target bundleno = 417 (0x1a1), region = 32 }
   0xb   : > { %v2633_v0 = vld [vmem:[%s3226_s1 + $0x78] sm:$0xff]   ;;  %v2725_v1 = vmov 0.0   ;;  %v2635_v3 = vld [vmem:[%s3226_s1 + $0x70] sm:$0xff]   ;;  %vm2726_vm0 = vmmov 0   ;;  %s3238_s13 = smov (!%p160_p3, %s2086_s13), 1  ;;  %v2637_v5 = vld [vmem:[%s3226_s1 + $0x68] sm:$0xff]   ;;  %v315_v9 = vlaneseq }
   0xc   : > { %2439 = vmatprep.subr.bf16.mxu0 %v2725_v1  ;;  %2459 = vmatprep.subr.bf16.mxu1 %v2725_v1  ;;  %v2634_v2 = vld [vmem:[%s3226_s1 + $0x38] sm:$0xff]   ;;  %v2636_v4 = vld [vmem:[%s3226_s1 + $0x30] sm:$0xff]   ;;  %v2638_v6 = vld [vmem:[%s3226_s1 + $0x28] sm:$0xff]   ;;  %s2619_s26 = smul.u32 24, %s3238_s13  ;;  %vm230_vm1 = vsmask.f32 1280 }
   0xd   : > { %2440 = vmatpush3.bf16.msra.mxu0 %v2633_v0  ;;  %2455 = vmatprep.mubr.msk.bf16.mxu0 %vm2726_vm0, %v2725_v1  ;;  %v2639_v7 = vld [vmem:[%s3226_s1 + $0x60] sm:$0xff]   ;;  %v2641_v10 = vld [vmem:[%s3226_s1 + $0x58] sm:$0xff]   ;;  %v2809_v12 = vshrl.u32 %v315_v9, 7  ;;  %v2643_v13 = vld [vmem:[%s3226_s1 + $0x50] sm:$0xff]   ;;  %vm231_vm2 = vsmask.f32 3336 }
   0xe   : > { %2460 = vmatpush3.bf16.msra.mxu1 %v2634_v2  ;;  %2441 = vmatprep.subr.bf16.mxu0 %v2725_v1  ;;  %v2640_v8 = vld [vmem:[%s3226_s1 + $0x20] sm:$0xff]   ;;  %s2800_s6 = scalar_lea.vmem %s3225_s0, %s2619_s26  ;;  %v2642_v11 = vld [vmem:[%s3226_s1 + $0x18] sm:$0xff]   ;;  %v2644_v15 = vld [vmem:[%s3226_s1 + $0x10] sm:$0xff]   ;;  %vm233_vm3 = vsmask.f32 5392  ;;  %vm568_vm8 = vcmask 1040384  }
   0xf   : > { %2461 = vmatprep.subr.bf16.mxu1 %v2725_v1  ;;  %2475 = vmatprep.mubr.msk.bf16.mxu1 %vm2726_vm0, %v2725_v1  ;;  %v2093_v14 = vld.sshfl [vmem:[%s2800_s6] sm:$0x13 pattern:$0x76325410]  ;;  %vm232_vm4 = vmor %vm230_vm1, %vm231_vm2  ;;  %vm235_vm5 = vsmask.f32 7448 }
  0x10   : > { %v2094_v16 = vld.sshfl [vmem:[%s2800_s6 + $0x4] sm:$0x13 pattern:$0x76325410]  ;;  %v205_v17 = vcombine.high %v2093_v14, %v2093_v14  ;;  %v2645_v22 = vld [vmem:[%s3226_s1 + $0x48] sm:$0xff]   ;;  %v238_v24 = vshrl.u32 %v2093_v14, 16  ;;  %vm2831_vm6 = vmor %vm232_vm4, %vm233_vm3 }
  0x11   : > { %2442 = vmatpush3.bf16.msra.mxu0 %v2635_v3  ;;  %v2095_v18 = vld.sshfl [vmem:[%s2800_s6 + $0x8] sm:$0x13 pattern:$0x76325410]  ;;  %v213_v19 = vcombine.high %v2094_v16, %v2094_v16  ;;  %v241_v25 = vshll.u32 %v2093_v14, 16  ;;  %v252_v28 = vshrl.u32 %v2094_v16, 16  ;;  %vm2843_vm7 = vmor %vm2831_vm6, %vm235_vm5 }
  0x12   : > { %2462 = vmatpush3.bf16.msra.mxu1 %v2636_v4  ;;  %2443 = vmatprep.subr.bf16.mxu0 %v2725_v1  ;;  %v2096_v20 = vld.sshfl [vmem:[%s2800_s6 + $0xc] sm:$0x13 pattern:$0x76325410]  ;;  %v221_v21 = vcombine.high %v2095_v18, %v2095_v18  ;;  %v247_v26 = vshll.u32 %v205_v17, 16  ;;  %v255_v29 = vshll.u32 %v2094_v16, 16 }
  0x13   : > { %2463 = vmatprep.subr.bf16.mxu1 %v2725_v1  ;;  %v229_v23 = vcombine.high %v2096_v20, %v2096_v20  ;;  %v2646_v27 = vld [vmem:[%s3226_s1 + $0x8] sm:$0xff]   ;;  %v261_v30 = vshll.u32 %v213_v19, 16  ;;  %v266_v31 = vshrl.u32 %v2095_v18, 16  ;;  %v240_v33 = vrot.slane %v238_v24, 6  ;;  %v2647_v45 = vld [vmem:[%s3226_s1 + $0x40] sm:$0xff]   ;;  %v2651_v16 = vld [vmem:[%s3226_s1 + $0xb8] sm:$0xff]  }
  0x14   : > { %v243_v34 = vrot.slane %v241_v25, 7  ;;  %v249_v35 = vrot.slane %v247_v26, 7  ;;  %v269_v36 = vshll.u32 %v2095_v18, 16  ;;  %v254_v37 = vrot.slane %v252_v28, 6  ;;  %v2648_v50 = vld [vmem:[%s3226_s1] sm:$0xff]   ;;  %v2654_v18 = vld [vmem:[%s3226_s1 + $0xf0] sm:$0xff]  }
  0x15   : > { %2444 = vmatpush3.bf16.msra.mxu0 %v2637_v5  ;;  %v257_v38 = vrot.slane %v255_v29, 7  ;;  %v263_v39 = vrot.slane %v261_v30, 7  ;;  %v268_v40 = vrot.slane %v266_v31, 6  ;;  %v275_v43 = vshll.u32 %v221_v21, 16  ;;  %v2653_v19 = vld [vmem:[%s3226_s1 + $0xb0] sm:$0xff]   ;;  %v2655_v24 = vld [vmem:[%s3226_s1 + $0xa8] sm:$0xff]  }
  0x16   : > { %2464 = vmatpush3.bf16.msra.mxu1 %v2638_v6  ;;  %2445 = vmatprep.subr.bf16.mxu0 %v2725_v1  ;;  %v244_v41 = vor.u32 %v243_v34, %v240_v33  ;;  %v271_v42 = vrot.slane %v269_v36, 7  ;;  %v280_v44 = vshrl.u32 %v2096_v20, 16  ;;  %v283_v48 = vshll.u32 %v2096_v20, 16  ;;  %v2656_v20 = vld [vmem:[%s3226_s1 + $0xe8] sm:$0xff]   ;;  %v2658_v28 = vld [vmem:[%s3226_s1 + $0xe0] sm:$0xff]   ;;  %v2660_v30 = vld [vmem:[%s3226_s1 + $0xd8] sm:$0xff]  }
  0x17   : > { %2465 = vmatprep.subr.bf16.mxu1 %v2725_v1  ;;  %v258_v47 = vor.u32 %v257_v38, %v254_v37  ;;  %v289_v49 = vshll.u32 %v229_v23, 16  ;;  %v277_v53 = vrot.slane %v275_v43, 7  ;;  %v2727_v57 = vmov 1983009808   ;;  %v2657_v29 = vld [vmem:[%s3226_s1 + $0xa0] sm:$0xff]   ;;  %v2659_v38 = vld [vmem:[%s3226_s1 + $0x98] sm:$0xff]  }
  0x18   : > { %v245_v51 = vrot.slane %v244_v41, 2  ;;  %v272_v52 = vor.u32 %v271_v42, %v268_v40  ;;  %v282_v54 = vrot.slane %v280_v44, 6  ;;  %v285_v56 = vrot.slane %v283_v48, 7  ;;  %v2662_v44 = vld [vmem:[%s3226_s1 + $0xd0] sm:$0xff]   ;;  %v2685_v41 = vld [vmem:[%s3226_s1 + $0x1b8] sm:$0xff]   ;;  %s2092_s18 = sshll.u32 %s3238_s13, 1 }
  0x19   : > { %2446 = vmatpush3.bf16.msra.mxu0 %v2639_v7  ;;  %v259_v55 = vrot.slane %v258_v47, 2  ;;  %v313_v58 = vunpack.c.l.s4 %v2727_v57  ;;  %v2711_v59 = vld.sshfl [vmem:[%s2800_s6] sm:$0xf pattern:$0x76325410]  ;;  %v291_v63 = vrot.slane %v289_v49, 7  ;;  %s168_s21 = scalar_lea.vmem %s3228_s3, %s2092_s18 }
  0x1a   : > { %2466 = vmatpush3.bf16.msra.mxu1 %v2640_v8  ;;  %2447 = vmatprep.subr.bf16.mxu0 %v2725_v1  ;;  %v2712_v60 = vld.sshfl [vmem:[%s2800_s6 + $0x8] sm:$0xf pattern:$0x76325410]  ;;  %v250_v61 = vsel %vm2843_vm7, %v245_v51, %v249_v35  ;;  %v273_v62 = vrot.slane %v272_v52, 2  ;;  %v286_v2 = vor.u32 %v285_v56, %v282_v54  ;;  %vm569_vm9 = vcmask 1042434  }
  0x1b   : > { %2467 = vmatprep.subr.bf16.mxu1 %v2725_v1  ;;  %v2858_v0 = vsel %vm2843_vm7, %v259_v55, %v263_v39  ;;  %v314_v3 = vunpack.c.0.s8 %v313_v58  ;;  %v437_v14 = vcombine.low %v2711_v59, %v2712_v60  ;;  %v2129_v21 = vld.sshfl [vmem:[%s2800_s6] sm:$0x12 pattern:$0x76325410]  ;;  %vm2913_vm10 = vmor %vm568_vm8, %vm569_vm9  ;;  %vm571_vm11 = vcmask 1044484   ;;  %v2663_v56 = vld [vmem:[%s3226_s1 + $0x88] sm:$0xff]  }
  0x1c   : > { %v2862_v4 = vsel %vm2843_vm7, %v273_v62, %v277_v53  ;;  %v310_v5 = vcombine.low %v250_v61, %v2858_v0  ;;  %v287_v6 = vrot.slane %v286_v2, 2  ;;  %v2131_v23 = vld.sshfl [vmem:[%s2800_s6 + $0x8] sm:$0x12 pattern:$0x76325410]  ;;  %v543_v26 = vcombine.high %v2129_v21, %v2129_v21  ;;  %vm572_vm13 = vmor %vm2913_vm10, %vm571_vm11  ;;  %v2666_v57 = vld [vmem:[%s3226_s1 + $0xc0] sm:$0xff]  }
  0x1d   : > { %2448 = vmatpush3.bf16.msra.mxu0 %v2641_v10  ;;  %v2866_v7 = vsub.s32 %v314_v3, %v2809_v12  ;;  %v965_v8 = vcombine.low %v2858_v0, %v2862_v4  ;;  %v2132_v25 = vld.sshfl [vmem:[%s2800_s6 + $0xc] sm:$0x12 pattern:$0x76325410]  ;;  %vm573_vm12 = vcmask 1046534   ;;  %v2133_v32 = vrot.slane %v2129_v21, 9 }
  0x1e   : > { %2468 = vmatpush3.bf16.msra.mxu1 %v2642_v11  ;;  %2449 = vmatprep.subr.bf16.mxu0 %v2725_v1  ;;  %v2874_v9 = vsel %vm2843_vm7, %v287_v6, %v291_v63  ;;  %v559_v34 = vcombine.high %v2131_v23, %v2131_v23  ;;  %v567_v35 = vcombine.high %v2132_v25, %v2132_v25  ;;  %v577_v36 = vrot.slane %v543_v26, 7  ;;  %vm2936_vm14 = vmor %vm572_vm13, %vm573_vm12  ;;  %v2713_v49 = vld.sshfl [vmem:[%s2800_s6 + $0x4] sm:$0xf pattern:$0x76325410]  ;;  %v2671_v21 = vld [vmem:[%s3226_s1 + $0x130] sm:$0xff]  }
  0x1f   : > { %2469 = vmatprep.subr.bf16.mxu1 %v2725_v1  ;;  %v311_v10 = vcombine.low %v2862_v4, %v2874_v9  ;;  %v318_v11 = vrot.slane %v310_v5, %v2866_v7  ;;  %v2135_v37 = vrot.slane %v2131_v23, 9  ;;  %v2136_v40 = vrot.slane %v2132_v25, 9  ;;  %v2714_v52 = vld.sshfl [vmem:[%s2800_s6 + $0xc] sm:$0xf pattern:$0x76325410] }
  0x20   : > { %v585_v42 = vrot.slane %v559_v34, 7  ;;  %v589_v43 = vrot.slane %v567_v35, 7  ;;  %v578_v47 = vsel %vm2936_vm14, %v2133_v32, %v577_v36  ;;  %v2664_v53 = vld [vmem:[%s3226_s1 + $0xc8] sm:$0xff]   ;;  %v2665_v2 = vld [vmem:[%s3226_s1 + $0x80] sm:$0xff]   ;;  %v759_v3 = vcombine.low %v2713_v49, %v2714_v52  ;;  %v2670_v5 = vld [vmem:[%s3226_s1 + $0x178] sm:$0xff]  }
  0x21   : > { %2450 = vmatpush3.bf16.msra.mxu0 %v2643_v13  ;;  %v2652_v13 = vld [vmem:[%s3226_s1 + $0xf8] sm:$0xff]   ;;  %v2196_v59 = vld.sshfl [vmem:[%s2800_s6 + $0x10] sm:$0x13 pattern:$0x76325410]  ;;  %v3019_v23 = vrot.slane %v965_v8, %v2866_v7  ;;  %v2674_v25 = vld [vmem:[%s3226_s1 + $0x168] sm:$0xff]  }
  0x22   : > { %2470 = vmatpush3.bf16.msra.mxu1 %v2644_v15  ;;  %2451 = vmatprep.subr.bf16.mxu0 %v2725_v1  ;;  %v2883_v15 = vrot.slane %v311_v10, %v2866_v7  ;;  %v2961_v51 = vsel %vm2936_vm14, %v2136_v40, %v589_v43  ;;  %v891_v61 = vcombine.high %v2196_v59, %v2196_v59  ;;  %v935_v62 = vshrl.u32 %v2196_v59, 16  ;;  %v2673_v0 = vld [vmem:[%s3226_s1 + $0x128] sm:$0xff]   ;;  %v2676_v8 = vld [vmem:[%s3226_s1 + $0x160] sm:$0xff]   ;;  %v2680_v32 = vld [vmem:[%s3226_s1 + $0x150] sm:$0xff]  }
  0x23   : > { %2471 = vmatprep.subr.bf16.mxu1 %v2725_v1  ;;  %v938_v63 = vshll.u32 %v2196_v59, 16  ;;  %v2679_v34 = vld [vmem:[%s3226_s1 + $0x110] sm:$0xff]   ;;  %v2715_v46 = vld.sshfl [vmem:[%s2800_s6 + $0x8] sm:$0xf pattern:$0x76325410] }
  0x24   : > { %v326_v17 = vcombine.low %v318_v11, %v2883_v15  ;;  %v937_v6 = vrot.slane %v935_v62, 6  ;;  %v944_v11 = vshll.u32 %v891_v61, 16  ;;  %v2687_v59 = vld [vmem:[%s3226_s1 + $0x1b0] sm:$0xff]   ;;  %v2690_v61 = vld [vmem:[%s3226_s1 + $0x1e8] sm:$0xff]   ;;  %vm1812_vm15 = vcmask 1043456  }
  0x25   : > { %2452 = vmatpush3.bf16.msra.mxu0 %v2645_v22  ;;  %v2130_v22 = vld.sshfl [vmem:[%s2800_s6 + $0x4] sm:$0x12 pattern:$0x76325410]  ;;  %v940_v10 = vrot.slane %v938_v63, 7  ;;  %vm1995_vm1 = vcmask 1041409  }
  0x26   : > { %2472 = vmatpush3.bf16.msra.mxu1 %v2646_v27  ;;  %2453 = vmatprep.subr.bf16.mxu0 %v2725_v1  ;;  %v551_v31 = vcombine.high %v2130_v22, %v2130_v22  ;;  %v2134_v33 = vrot.slane %v2130_v22, 9  ;;  %v2675_v27 = vld [vmem:[%s3226_s1 + $0x120] sm:$0xff]  }
  0x27   : > { %2473 = vmatprep.subr.bf16.mxu1 %v2725_v1 }
  0x28   : > { %v581_v39 = vrot.slane %v551_v31, 7  ;;  %v2677_v31 = vld [vmem:[%s3226_s1 + $0x118] sm:$0xff]  }
  0x29   : > { %2454 = vmatpush3.bf16.msra.mxu0 %v2647_v45  ;;  %v2661_v45 = vld [vmem:[%s3226_s1 + $0x90] sm:$0xff]  }
  0x2a   : > { %2474 = vmatpush3.bf16.msra.mxu1 %v2648_v50  ;;  %2479 = vmatprep.subr.bf16.mxu0 %v2725_v1  ;;  %v2952_v48 = vsel %vm2936_vm14, %v2134_v33, %v581_v39  ;;  %v2957_v50 = vsel %vm2936_vm14, %v2135_v37, %v585_v42  ;;  %v2682_v37 = vld [vmem:[%s3226_s1 + $0x148] sm:$0xff]  }
  0x2b   : > { %2499 = vmatprep.subr.bf16.mxu1 %v2725_v1  ;;  %v608_v54 = vcombine.low %v578_v47, %v2952_v48  ;;  %v609_v55 = vcombine.low %v2957_v50, %v2961_v51  ;;  %v1147_v35 = vcombine.low %v2952_v48, %v2957_v50  ;;  %v2681_v39 = vld [vmem:[%s3226_s1 + $0x108] sm:$0xff]   ;;  %v2683_v48 = vld [vmem:[%s3226_s1 + $0x100] sm:$0xff]  }
  0x2c   : > { %2456 = vmatmul.mubr.bf16.vlgmr.msra.gmra.mxu0 %v326_v17  ;;  %v2667_v17 = vld [vmem:[%s3226_s1 + $0x138] sm:$0xff]  }
  0x2d   : > { %2476 = vmatmul.mubr.bf16.vlgmr.msra.gmra.mxu1 %v437_v14  ;;  %2480 = vmatpush3.bf16.msra.mxu0 %v2651_v16  ;;  %v616_v58 = vrot.slane %v608_v54, %v2866_v7  ;;  %v2983_v60 = vrot.slane %v609_v55, %v2866_v7  ;;  %v941_v14 = vor.u32 %v940_v10, %v937_v6  ;;  %v946_v16 = vrot.slane %v944_v11, 7  ;;  %v2688_v55 = vld [vmem:[%s3226_s1 + $0x1f0] sm:$0xff]   ;;  %v2691_v11 = vld [vmem:[%s3226_s1 + $0x1a0] sm:$0xff]  }
  0x2e   : > { %2500 = vmatpush3.bf16.msra.mxu1 %v2652_v13  ;;  %2515 = vmatprep.mubr.msk.bf16.mxu1 %vm2726_vm0, %v2725_v1  ;;  %v1155_v40 = vrot.slane %v1147_v35, %v2866_v7 }
  0x2f   : > { %2501 = vmatprep.subr.bf16.mxu1 %v2725_v1  ;;  %2495 = vmatprep.mubr.msk.bf16.mxu0 %vm2726_vm0, %v2725_v1  ;;  %v624_v13 = vcombine.low %v616_v58, %v2983_v60 }
  0x30   : > { %2481 = vmatprep.subr.bf16.mxu0 %v2725_v1 }
  0x31   : > { %2482 = vmatpush3.bf16.msra.mxu0 %v2653_v19  ;;  %v942_v19 = vrot.slane %v941_v14, 2 }
  0x32   : > { %2502 = vmatpush3.bf16.msra.mxu1 %v2654_v18  ;;  %2483 = vmatprep.subr.bf16.mxu0 %v2725_v1  ;;  %v2672_v18 = vld [vmem:[%s3226_s1 + $0x170] sm:$0xff]  }
  0x33   : > { %2503 = vmatprep.subr.bf16.mxu1 %v2725_v1 }
  0x35   : > { %2484 = vmatpush3.bf16.msra.mxu0 %v2655_v24  ;;  %v2228_v24 = vld.sshfl [vmem:[%s2800_s6 + $0x10] sm:$0x12 pattern:$0x76325410] }
  0x36   : > { %2504 = vmatpush3.bf16.msra.mxu1 %v2656_v20  ;;  %2485 = vmatprep.subr.bf16.mxu0 %v2725_v1  ;;  %v3006_v20 = vsel %vm2843_vm7, %v942_v19, %v946_v16 }
  0x37   : > { %2505 = vmatprep.subr.bf16.mxu1 %v2725_v1  ;;  %v966_v22 = vcombine.low %v2874_v9, %v3006_v20  ;;  %v1113_v9 = vcombine.high %v2228_v24, %v2228_v24 }
  0x39   : > { %2486 = vmatpush3.bf16.msra.mxu0 %v2657_v29  ;;  %v3028_v26 = vrot.slane %v966_v22, %v2866_v7  ;;  %v2232_v29 = vrot.slane %v2228_v24, 9  ;;  %v2716_v24 = vld.sshfl [vmem:[%s2800_s6 + $0x10] sm:$0xf pattern:$0x76325410] }
  0x3a   : > { %2506 = vmatpush3.bf16.msra.mxu1 %v2658_v28  ;;  %2487 = vmatprep.subr.bf16.mxu0 %v2725_v1  ;;  %v2678_v28 = vld [vmem:[%s3226_s1 + $0x158] sm:$0xff]  }
  0x3b   : > { %2507 = vmatprep.subr.bf16.mxu1 %v2725_v1  ;;  %v981_v4 = vcombine.low %v3019_v23, %v3028_v26  ;;  %v2698_v23 = vld [vmem:[%s3226_s1 + $0x1c8] sm:$0xff]  }
  0x3d   : > { %2488 = vmatpush3.bf16.msra.mxu0 %v2659_v38  ;;  %v2324_v38 = vld.sshfl [vmem:[%s2800_s6 + $0x14] sm:$0x12 pattern:$0x76325410] }
  0x3e   : > { %2508 = vmatpush3.bf16.msra.mxu1 %v2660_v30  ;;  %2489 = vmatprep.subr.bf16.mxu0 %v2725_v1  ;;  %v1128_v30 = vrot.slane %v1113_v9, 7  ;;  %v1652_v43 = vcombine.high %v2324_v38, %v2324_v38  ;;  %v2703_v9 = vld [vmem:[%s3226_s1 + $0x238] sm:$0xff]  }
  0x3f   : > { %2509 = vmatprep.subr.bf16.mxu1 %v2725_v1 }
  0x40   : > { %v1129_v33 = vsel %vm2936_vm14, %v2232_v29, %v1128_v30  ;;  %v1667_v47 = vrot.slane %v1652_v43, 7  ;;  %v2707_v29 = vld [vmem:[%s3226_s1 + $0x218] sm:$0xff]   ;;  %v2708_v30 = vld [vmem:[%s3226_s1 + $0x210] sm:$0xff]  }
  0x41   : > { %2490 = vmatpush3.bf16.msra.mxu0 %v2661_v45  ;;  %v1148_v36 = vcombine.low %v2961_v51, %v1129_v33  ;;  %v2684_v45 = vld [vmem:[%s3226_s1 + $0x140] sm:$0xff]   ;;  %v2686_v51 = vld [vmem:[%s3226_s1 + $0x1f8] sm:$0xff]  }
  0x42   : > { %2510 = vmatpush3.bf16.msra.mxu1 %v2662_v44  ;;  %2491 = vmatprep.subr.bf16.mxu0 %v2725_v1  ;;  %v2328_v44 = vrot.slane %v2324_v38, 9 }
  0x43   : > { %2511 = vmatprep.subr.bf16.mxu1 %v2725_v1  ;;  %v1162_v42 = vrot.slane %v1148_v36, %v2866_v7 }
  0x44   : > { %v1668_v50 = vsel %vm2936_vm14, %v2328_v44, %v1667_v47 }
  0x45   : > { %2492 = vmatpush3.bf16.msra.mxu0 %v2663_v56  ;;  %v1163_v49 = vcombine.low %v1155_v40, %v1162_v42  ;;  %v1687_v52 = vcombine.low %v1129_v33, %v1668_v50 }
  0x46   : > { %2512 = vmatpush3.bf16.msra.mxu1 %v2664_v53  ;;  %2493 = vmatprep.subr.bf16.mxu0 %v2725_v1  ;;  %v2292_v53 = vld.sshfl [vmem:[%s2800_s6 + $0x14] sm:$0x13 pattern:$0x76325410] }
  0x47   : > { %2513 = vmatprep.subr.bf16.mxu1 %v2725_v1  ;;  %v3092_v54 = vrot.slane %v1687_v52, %v2866_v7  ;;  %v1474_v56 = vshrl.u32 %v2292_v53, 16  ;;  %v1430_v62 = vcombine.high %v2292_v53, %v2292_v53 }
  0x49   : > { %2494 = vmatpush3.bf16.msra.mxu0 %v2665_v2  ;;  %v1702_v58 = vcombine.low %v2983_v60, %v3092_v54  ;;  %v1476_v63 = vrot.slane %v1474_v56, 6  ;;  %v1483_v10 = vshll.u32 %v1430_v62, 16 }
  0x4a   : > { %2514 = vmatpush3.bf16.msra.mxu1 %v2666_v57  ;;  %2519 = vmatprep.subr.bf16.mxu0 %v2725_v1  ;;  %v1477_v57 = vshll.u32 %v2292_v53, 16 }
  0x4b   : > { %2539 = vmatprep.subr.bf16.mxu1 %v2725_v1  ;;  %v1485_v16 = vrot.slane %v1483_v10, 7 }
  0x4c   : > { %2496 = vmatmul.mubr.bf16.vlgmr.msra.gmra.mxu0 %v624_v13  ;;  %v1479_v2 = vrot.slane %v1477_v57, 7  ;;  %v2694_v13 = vld [vmem:[%s3226_s1 + $0x1d8] sm:$0xff]  }
  0x4d   : > { %2516 = vmatmul.mubr.bf16.vlgmr.msra.gmra.mxu1 %v759_v3  ;;  %2520 = vmatpush3.bf16.msra.mxu0 %v2667_v17  ;;  %v2689_v3 = vld [vmem:[%s3226_s1 + $0x1a8] sm:$0xff]   ;;  %v2693_v17 = vld [vmem:[%s3226_s1 + $0x198] sm:$0xff]  }
  0x4e   : > { %2540 = vmatpush3.bf16.msra.mxu1 %v2670_v5  ;;  %2555 = vmatprep.mubr.msk.bf16.mxu1 %vm2726_vm0, %v2725_v1  ;;  %v2692_v5 = vld [vmem:[%s3226_s1 + $0x1e0] sm:$0xff]   ;;  %v1480_v6 = vor.u32 %v1479_v2, %v1476_v63 }
  0x4f   : > { %2541 = vmatprep.subr.bf16.mxu1 %v2725_v1  ;;  %2535 = vmatprep.mubr.msk.bf16.mxu0 %vm2726_vm0, %v2725_v1 }
  0x50   : > { %2521 = vmatprep.subr.bf16.mxu0 %v2725_v1  ;;  %v1481_v14 = vrot.slane %v1480_v6, 2 }
  0x51   : > { %2522 = vmatpush3.bf16.msra.mxu0 %v2671_v21  ;;  %v2695_v21 = vld [vmem:[%s3226_s1 + $0x190] sm:$0xff]  }
  0x52   : > { %2542 = vmatpush3.bf16.msra.mxu1 %v2672_v18  ;;  %2523 = vmatprep.subr.bf16.mxu0 %v2725_v1  ;;  %v2696_v18 = vld [vmem:[%s3226_s1 + $0x1d0] sm:$0xff]   ;;  %v1486_v19 = vsel %vm2843_vm7, %v1481_v14, %v1485_v16 }
  0x53   : > { %2543 = vmatprep.subr.bf16.mxu1 %v2725_v1  ;;  %v1505_v22 = vcombine.low %v3006_v20, %v1486_v19  ;;  %v2700_v20 = vld [vmem:[%s3226_s1 + $0x1c0] sm:$0xff]  }
  0x55   : > { %2524 = vmatpush3.bf16.msra.mxu0 %v2673_v0  ;;  %v1519_v26 = vrot.slane %v1505_v22, %v2866_v7  ;;  %v2699_v0 = vld [vmem:[%s3226_s1 + $0x180] sm:$0xff]  }
  0x56   : > { %2544 = vmatpush3.bf16.msra.mxu1 %v2674_v25  ;;  %2525 = vmatprep.subr.bf16.mxu0 %v2725_v1  ;;  %v2697_v25 = vld [vmem:[%s3226_s1 + $0x188] sm:$0xff]  }
  0x57   : > { %2545 = vmatprep.subr.bf16.mxu1 %v2725_v1 }
  0x59   : > { %2526 = vmatpush3.bf16.msra.mxu0 %v2675_v27  ;;  %v2704_v27 = vld [vmem:[%s3226_s1 + $0x230] sm:$0xff]  }
  0x5a   : > { %2546 = vmatpush3.bf16.msra.mxu1 %v2676_v8  ;;  %2527 = vmatprep.subr.bf16.mxu0 %v2725_v1  ;;  %v1298_v8 = vcombine.low %v2715_v46, %v2716_v24  ;;  %v2353_v46 = vld [vmem:[%s3227_s2] ss:$0 sm:$0xff] }
  0x5b   : > { %2547 = vmatprep.subr.bf16.mxu1 %v2725_v1 }
  0x5d   : > { %2528 = vmatpush3.bf16.msra.mxu0 %v2677_v31  ;;  %v2709_v31 = vld [vmem:[%s3226_s1 + $0x208] sm:$0xff]  }
  0x5e   : > { %2548 = vmatpush3.bf16.msra.mxu1 %v2678_v28  ;;  %2529 = vmatprep.subr.bf16.mxu0 %v2725_v1  ;;  %v2706_v28 = vld [vmem:[%s3226_s1 + $0x220] sm:$0xff]  }
  0x5f   : > { %2549 = vmatprep.subr.bf16.mxu1 %v2725_v1 }
  0x61   : > { %2530 = vmatpush3.bf16.msra.mxu0 %v2679_v34 }
  0x62   : > { %2550 = vmatpush3.bf16.msra.mxu1 %v2680_v32  ;;  %2531 = vmatprep.subr.bf16.mxu0 %v2725_v1  ;;  %v2710_v32 = vld [vmem:[%s3226_s1 + $0x200] sm:$0xff]  }
  0x63   : > { %2551 = vmatprep.subr.bf16.mxu1 %v2725_v1 }
  0x65   : > { %2532 = vmatpush3.bf16.msra.mxu0 %v2681_v39 }
  0x66   : > { %2552 = vmatpush3.bf16.msra.mxu1 %v2682_v37  ;;  %2533 = vmatprep.subr.bf16.mxu0 %v2725_v1 }
  0x67   : > { %2553 = vmatprep.subr.bf16.mxu1 %v2725_v1 }
  0x69   : > { %2534 = vmatpush3.bf16.msra.mxu0 %v2683_v48 }
  0x6a   : > { %2554 = vmatpush3.bf16.msra.mxu1 %v2684_v45  ;;  %2559 = vmatprep.subr.bf16.mxu0 %v2725_v1 }
  0x6b   : > { %2579 = vmatprep.subr.bf16.mxu1 %v2725_v1 }
  0x6c   : > { %2536 = vmatmul.mubr.bf16.vlgmr.msra.gmra.mxu0 %v981_v4  ;;  %v1520_v4 = vcombine.low %v2883_v15, %v1519_v26  ;;  %v2705_v15 = vld [vmem:[%s3226_s1 + $0x228] sm:$0xff]  }
  0x6d   : > { %2556 = vmatmul.mubr.bf16.vlgmr.msra.gmra.mxu1 %v1163_v49  ;;  %2560 = vmatpush3.bf16.msra.mxu0 %v2685_v41 }
  0x6e   : > { %2580 = vmatpush3.bf16.msra.mxu1 %v2686_v51  ;;  %2595 = vmatprep.mubr.msk.bf16.mxu1 %vm2726_vm0, %v2725_v1 }
  0x6f   : > { %2581 = vmatprep.subr.bf16.mxu1 %v2725_v1  ;;  %2575 = vmatprep.mubr.msk.bf16.mxu0 %vm2726_vm0, %v2725_v1 }
  0x70   : > { %2561 = vmatprep.subr.bf16.mxu0 %v2725_v1 }
  0x71   : > { %2562 = vmatpush3.bf16.msra.mxu0 %v2687_v59 }
  0x72   : > { %2582 = vmatpush3.bf16.msra.mxu1 %v2688_v55  ;;  %2563 = vmatprep.subr.bf16.mxu0 %v2725_v1 }
  0x73   : > { %2583 = vmatprep.subr.bf16.mxu1 %v2725_v1 }
  0x75   : > { %2564 = vmatpush3.bf16.msra.mxu0 %v2689_v3 }
  0x76   : > { %2584 = vmatpush3.bf16.msra.mxu1 %v2690_v61  ;;  %2565 = vmatprep.subr.bf16.mxu0 %v2725_v1 }
  0x77   : > { %2585 = vmatprep.subr.bf16.mxu1 %v2725_v1 }
  0x79   : > { %2566 = vmatpush3.bf16.msra.mxu0 %v2691_v11 }
  0x7a   : > { %2586 = vmatpush3.bf16.msra.mxu1 %v2692_v5  ;;  %2567 = vmatprep.subr.bf16.mxu0 %v2725_v1 }
  0x7b   : > { %2587 = vmatprep.subr.bf16.mxu1 %v2725_v1 }
  0x7d   : > { %2568 = vmatpush3.bf16.msra.mxu0 %v2693_v17 }
  0x7e   : > { %2588 = vmatpush3.bf16.msra.mxu1 %v2694_v13  ;;  %2569 = vmatprep.subr.bf16.mxu0 %v2725_v1 }
  0x7f   : > { %2589 = vmatprep.subr.bf16.mxu1 %v2725_v1 }
  0x81   : > { %2570 = vmatpush3.bf16.msra.mxu0 %v2695_v21 }
  0x82   : > { %2590 = vmatpush3.bf16.msra.mxu1 %v2696_v18  ;;  %2571 = vmatprep.subr.bf16.mxu0 %v2725_v1 }
  0x83   : > { %2591 = vmatprep.subr.bf16.mxu1 %v2725_v1 }
  0x85   : > { %2572 = vmatpush3.bf16.msra.mxu0 %v2697_v25 }
  0x86   : > { %2592 = vmatpush3.bf16.msra.mxu1 %v2698_v23  ;;  %2573 = vmatprep.subr.bf16.mxu0 %v2725_v1 }
  0x87   : > { %2593 = vmatprep.subr.bf16.mxu1 %v2725_v1 }
  0x89   : > { %2574 = vmatpush3.bf16.msra.mxu0 %v2699_v0 }
  0x8a   : > { %2594 = vmatpush3.bf16.msra.mxu1 %v2700_v20  ;;  %2599 = vmatprep.subr.bf16.mxu0 %v2725_v1 }
  0x8c   : > { %2576 = vmatmul.mubr.bf16.vlgmr.msra.gmra.mxu0 %v1298_v8 }
  0x8d   : > { %2596 = vmatmul.mubr.bf16.vlgmr.msra.gmra.mxu1 %v1520_v4  ;;  %2600 = vmatpush3.bf16.msra.mxu0 %v2703_v9 }
  0x8e   : > { %2615 = vmatprep.mubr.msk.bf16.mxu0 %vm2726_vm0, %v2725_v1  ;;  %2601 = vmatprep.subr.bf16.mxu0 %v2725_v1  ;;  %vm1841_vm0 = vcmask 1041408  }
  0x91   : > { %2602 = vmatpush3.bf16.msra.mxu0 %v2704_v27 }
  0x92   : > { %2603 = vmatprep.subr.bf16.mxu0 %v2725_v1 }
  0x95   : > { %2604 = vmatpush3.bf16.msra.mxu0 %v2705_v15 }
  0x96   : > { %2605 = vmatprep.subr.bf16.mxu0 %v2725_v1 }
  0x99   : > { %2606 = vmatpush3.bf16.msra.mxu0 %v2706_v28 }
  0x9a   : > { %2607 = vmatprep.subr.bf16.mxu0 %v2725_v1 }
  0x9d   : > { %2608 = vmatpush3.bf16.msra.mxu0 %v2707_v29 }
  0x9e   : > { %2609 = vmatprep.subr.bf16.mxu0 %v2725_v1 }
  0xa1   : > { %2610 = vmatpush3.bf16.msra.mxu0 %v2708_v30 }
  0xa2   : > { %2611 = vmatprep.subr.bf16.mxu0 %v2725_v1 }
  0xa5   : > { %2612 = vmatpush3.bf16.msra.mxu0 %v2709_v31 }
  0xa6   : > { %2613 = vmatprep.subr.bf16.mxu0 %v2725_v1 }
  0xa9   : > { %2614 = vmatpush3.bf16.msra.mxu0 %v2710_v32 }
  0xac   : > { %2616 = vmatmul.mubr.bf16.vlgmr.msra.gmra.mxu0 %v1702_v58 }
  0xec   : > { %v410_v35 = vpop.f32.mrf.mxu0 }
  0xed   : > { %v521_v33 = vpop.f32.mrf.mxu1 }
  0xee   : > { %v522_v36 = vadd.f32 %v521_v33, %v410_v35  ;;  %v2457_v38 = vpop.f32.mrf.mxu0 }
  0xef   : > { %v2477_v34 = vpop.f32.mrf.mxu1 }
  0xf0   : > { %v413_v40 = vpop.f32.mrf.mxu0 }
  0xf1   : > { %v524_v37 = vpop.f32.mrf.mxu1 }
  0xf2   : > { %v525_v42 = vadd.f32 %v524_v37, %v413_v40  ;;  %v2458_v43 = vpop.f32.mrf.mxu0 }
  0xf3   : > { %v2478_v39 = vpop.f32.mrf.mxu1 }
 0x10c   : > { %v708_v47 = vpop.f32.mrf.mxu0 }
 0x10d   : > { %v843_v44 = vpop.f32.mrf.mxu1  ;;  %v715_v48 = vadd.f32 %v708_v47, %v522_v36 }
 0x10e   : > { %v2497_v49 = vpop.f32.mrf.mxu0 }
 0x10f   : > { %v2517_v45 = vpop.f32.mrf.mxu1  ;;  %v850_v50 = vadd.f32 %v843_v44, %v715_v48 }
 0x110   : > { %v711_v60 = vpop.f32.mrf.mxu0 }
 0x111   : > { %v846_v1 = vpop.f32.mrf.mxu1  ;;  %v716_v52 = vadd.f32 %v711_v60, %v525_v42  ;;  %v2728_v42 = vmov 1966171168  }
 0x112   : > { %v2498_v53 = vpop.f32.mrf.mxu0  ;;  %v1879_v43 = vunpack.c.l.s4 %v2728_v42 }
 0x113   : > { %v2518_v51 = vpop.f32.mrf.mxu1  ;;  %v851_v54 = vadd.f32 %v846_v1, %v716_v52  ;;  %v2729_v52 = vmov 1935823168  }
 0x114   : > { %v1880_v60 = vunpack.c.0.s8 %v1879_v43  ;;  %v1935_v53 = vunpack.c.l.s4 %v2729_v52 }
 0x12c   : > { %v1065_v56 = vpop.f32.mrf.mxu0 }
 0x12d   : > { %v1247_v41 = vpop.f32.mrf.mxu1  ;;  %v1072_v14 = vadd.f32 %v1065_v56, %v850_v50 }
 0x12e   : > { %v2537_v58 = vpop.f32.mrf.mxu0 }
 0x12f   : > { %v2557_v55 = vpop.f32.mrf.mxu1  ;;  %v1254_v16 = vadd.f32 %v1247_v41, %v1072_v14 }
 0x130   : > { %v1068_v61 = vpop.f32.mrf.mxu0 }
 0x131   : > { %v1250_v57 = vpop.f32.mrf.mxu1  ;;  %v1073_v17 = vadd.f32 %v1068_v61, %v851_v54 }
 0x132   : > { %v2538_v62 = vpop.f32.mrf.mxu0 }
 0x133   : > { %v2558_v59 = vpop.f32.mrf.mxu1  ;;  %v1255_v19 = vadd.f32 %v1250_v57, %v1073_v17  ;;  %v1883_v62 = vsub.s32 %v1880_v60, %v2809_v12 }
 0x14c   : > { %v1382_v3 = vpop.f32.mrf.mxu0 }
 0x14d   : > { %v1604_v63 = vpop.f32.mrf.mxu1  ;;  %v1389_v18 = vadd.f32 %v1382_v3, %v1254_v16 }
 0x14e   : > { %v2577_v6 = vpop.f32.mrf.mxu0 }
 0x14f   : > { %v2597_v2 = vpop.f32.mrf.mxu1  ;;  %v1611_v21 = vadd.f32 %v1604_v63, %v1389_v18  ;;  %v1936_v63 = vunpack.c.0.s8 %v1935_v53 }
 0x150   : > { %v1385_v11 = vpop.f32.mrf.mxu0 }
 0x151   : > { %v1607_v5 = vpop.f32.mrf.mxu1  ;;  %v1390_v22 = vadd.f32 %v1385_v11, %v1255_v19  ;;  %v1939_v16 = vsub.s32 %v1936_v63, %v2809_v12 }
 0x152   : > { %v2578_v13 = vpop.f32.mrf.mxu0 }
 0x153   : > { %v2598_v10 = vpop.f32.mrf.mxu1  ;;  %v1612_v26 = vadd.f32 %v1607_v5, %v1390_v22 }
 0x16c   : > { %v1786_v23 = vpop.f32.mrf.mxu0 }
 0x16d   : > { %v1793_v24 = vadd.f32 %v1786_v23, %v1611_v21 }
 0x16e   : > { %v2617_v25 = vpop.f32.mrf.mxu0 }
 0x16f   : > { %v1802_v20 = vadd.f32 %v2353_v46, %v1793_v24 }
 0x170   : > { %v1789_v0 = vpop.f32.mrf.mxu0 }
 0x171   : > { %v1804_v4 = vmax.f32 %v1802_v20, 0.0  ;;  %v1794_v8 = vadd.f32 %v1789_v0, %v1612_v26 }
 0x172   : > { %v2618_v9 = vpop.f32.mrf.mxu0 }
 0x173   : > { %v1808_v27 = vcombine.high %v1804_v4, %v1804_v4  ;;  %v1803_v15 = vadd.f32 %v2353_v46, %v1794_v8  ;;  %v1813_v28 = vsel %vm1812_vm15, %v1804_v4, -inf }
 0x175   : > { %v1814_v29 = vsel %vm1812_vm15, %v1808_v27, -inf  ;;  %v1805_v30 = vmax.f32 %v1803_v15, 0.0 }
 0x176   : > { %v1815_v31 = vmax.f32 %v1813_v28, %v1814_v29 }
 0x177   : > { %v1809_v32 = vcombine.high %v1805_v30, %v1805_v30  ;;  %v1816_v34 = vsel %vm1812_vm15, %v1805_v30, -inf }
 0x178   : > { %v1827_v33 = vrot.slane %v1815_v31, %v2866_v7 }
 0x179   : > { %v1817_v35 = vsel %vm1812_vm15, %v1809_v32, -inf }
 0x17a   : > { %v1828_v36 = vcombine.high %v1827_v33, %v1827_v33  ;;  %v1842_v37 = vsel %vm1841_vm0, %v1827_v33, -inf  ;;  %v1818_v38 = vmax.f32 %v1816_v34, %v1817_v35 }
 0x17b   : > { %v1843_v39 = vrot.slane %v1842_v37, 4 }
 0x17c   : > { %v1849_v40 = vsel %vm1841_vm0, %v1828_v36, -inf  ;;  %v1835_v44 = vrot.slane %v1818_v38, %v2866_v7 }
 0x17d   : > { %v1844_v45 = vmax.f32 %v1842_v37, %v1843_v39  ;;  %v1850_v47 = vrot.slane %v1849_v40, 4 }
 0x17e   : > { %v1836_v48 = vcombine.high %v1835_v44, %v1835_v44  ;;  %v1856_v1 = vsel %vm1841_vm0, %v1835_v44, -inf }
 0x17f   : > { %v1845_v49 = vrot.slane %v1844_v45, 2  ;;  %v1851_v50 = vmax.f32 %v1849_v40, %v1850_v47  ;;  %v1857_v51 = vrot.slane %v1856_v1, 4 }
 0x180   : > { %v1863_v54 = vsel %vm1841_vm0, %v1836_v48, -inf }
 0x181   : > { %v1846_v41 = vmax.f32 %v1844_v45, %v1845_v49  ;;  %v1852_v55 = vrot.slane %v1851_v50, 2  ;;  %v1858_v56 = vmax.f32 %v1856_v1, %v1857_v51  ;;  %v1864_v57 = vrot.slane %v1863_v54, 4 }
 0x183   : > { %v1847_v58 = vrot.slane %v1846_v41, 1  ;;  %v1853_v59 = vmax.f32 %v1851_v50, %v1852_v55  ;;  %v1859_v7 = vrot.slane %v1858_v56, 2  ;;  %v1865_v61 = vmax.f32 %v1863_v54, %v1864_v57 }
 0x185   : > { %v1848_v2 = vmax.f32 %v1846_v41, %v1847_v58  ;;  %v1854_v3 = vrot.slane %v1853_v59, 1  ;;  %v1860_v5 = vmax.f32 %v1858_v56, %v1859_v7  ;;  %v1866_v6 = vrot.slane %v1865_v61, 2 }
 0x187   : > { %v1855_v10 = vmax.f32 %v1853_v59, %v1854_v3  ;;  %v1870_v11 = vpack.c.bf16 %v1848_v2, %v1848_v2  ;;  %v1861_v13 = vrot.slane %v1860_v5, 1  ;;  %v1867_v14 = vmax.f32 %v1865_v61, %v1866_v6 }
 0x189   : > { %v1871_v17 = vpack.c.bf16 %v1855_v10, %v1855_v10  ;;  %v1884_v18 = vrot.slane %v1870_v11, %v1883_v62  ;;  %v1862_v19 = vmax.f32 %v1860_v5, %v1861_v13  ;;  %v1868_v21 = vrot.slane %v1867_v14, 1 }
 0x18b   : > { %v1891_v22 = vrot.slane %v1884_v18, %v1883_v62  ;;  %v1898_v23 = vrot.slane %v1871_v17, %v1883_v62  ;;  %v1869_v46 = vmax.f32 %v1867_v14, %v1868_v21  ;;  %v1872_v24 = vpack.c.bf16 %v1862_v19, %v1862_v19 }
 0x18d   : > { %v1905_v25 = vrot.slane %v1898_v23, %v1883_v62  ;;  %v1940_v26 = vrot.slane %v1891_v22, %v1939_v16  ;;  %v1873_v20 = vpack.c.bf16 %v1869_v46, %v1869_v46  ;;  %v1912_v0 = vrot.slane %v1872_v24, %v1883_v62 }
 0x18f   : > { %v1954_v4 = vrot.slane %v1905_v25, %v1939_v16  ;;  %v1919_v8 = vrot.slane %v1912_v0, %v1883_v62  ;;  %v1926_v9 = vrot.slane %v1873_v20, %v1883_v62  ;;  %v1947_v27 = vrot.slane %v1940_v26, %v1939_v16 }
 0x191   : > { %v1961_v15 = vrot.slane %v1954_v4, %v1939_v16  ;;  %v1933_v28 = vrot.slane %v1926_v9, %v1883_v62  ;;  %v1968_v12 = vrot.slane %v1919_v8, %v1939_v16  ;;  %v1990_v31 = vunpack.c.l.b16 %v1947_v27 }
 0x193   : > { %v1991_v29 = vunpack.c.l.b16 %v1961_v15  ;;  %v1982_v30 = vrot.slane %v1933_v28, %v1939_v16  ;;  %v1975_v33 = vrot.slane %v1968_v12, %v1939_v16 }
 0x195   : > { %v1994_v32 = vrot.slane %v1991_v29, 7  ;;  %v1989_v34 = vrot.slane %v1982_v30, %v1939_v16  ;;  %v1992_v38 = vunpack.c.l.b16 %v1975_v33 }
 0x197   : > { %v1996_v35 = vsel %vm1995_vm1, %v1994_v32, %v1990_v31  ;;  %v1993_v36 = vunpack.c.l.b16 %v1989_v34 }
 0x198   : > { %v1999_v37 = vpack.c.b16 %v1996_v35, %v1996_v35 }
 0x199   : > { %v1997_v39 = vrot.slane %v1993_v36, 7 }
 0x19a   : > { %v2007_v40 = vrot.slane %v1999_v37, %v1883_v62 }
 0x19b   : > { %v1998_v42 = vsel %vm1995_vm1, %v1997_v39, %v1992_v38 }
 0x19c   : > { %2354 = vst.sshfl [vmem:[%s168_s21] sm:$0x1 pattern:$0x73625140] %v2007_v40  ;;  %v2000_v43 = vpack.c.b16 %v1998_v42, %v1998_v42 }
 0x19e   : > { %v2021_v44 = vrot.slane %v2000_v43, %v1883_v62 }
 0x1a0   : > { %2355 = vst.sshfl [vmem:[%s168_s21 + $0x1] sm:$0x1 pattern:$0x73625140] %v2021_v44 }
 0x1a1 PF: > { %s13_s12 = sadd.s32 1, %s2723_s12  }
 0x1a2   : > { %p10_p4 = scmp.ge.s32.totalorder %s13_s12, 4  }
 0x1a4   :  { %12 = sbr.rel (!%p10_p4) target bundleno = 1 (0x1), region = 72 }

// kernel: simple_cnn_forward.5
= control target key start
LH: loop header
LB: loop body
LE: loop exit
PB: predicated region body
PF: predicated region fallthrough
CT: control target
= control target key end

     0   :  { %s3566_s12 = smov 0   ;;  %s4201_s0 = inlined_call_operand.vmem [shape: bf16[2,10,10,128], index: 0, kind: input, shape index: {}]   ;;  %s4202_s1 = inlined_call_operand.vmem [shape: bf16[9,128,128], index: 1, kind: input, shape index: {}]   ;;  %s4203_s2 = inlined_call_operand.vmem [shape: f32[1,128], index: 2, kind: input, shape index: {}]   ;;  %s4204_s3 = inlined_call_operand.vmem [shape: bf16[2,4,4,128], index: 3, kind: output, shape index: {}]  }
   0x1 LB: > { %s2763_s13 = sadd.s32 4294967295, %s3543_s12   ;;  %p2767_p0 = scmp.ge.s32.totalorder %s3543_s12, 1  ;;  %s3543_s12 = sphi %s3566_s12, %s13_s12  }
   0x2   : > { %p137_p1 = scmp.lt.s32.totalorder %s3543_s12, 3 }
   0x4   : > { %p138_p2 = pnand %p2767_p0, %p137_p1 }
   0x6   : > { %141 = sbr.rel (%p138_p2) target bundleno = 444 (0x1bc), region = 32 }
   0xb   : > { %v3453_v0 = vld [vmem:[%s4202_s1 + $0x78] sm:$0xff]   ;;  %p161_p3 = scmp.lt.s32.totalorder %s2763_s13, 1  ;;  %v3455_v2 = vld [vmem:[%s4202_s1 + $0x70] sm:$0xff]   ;;  %v3457_v4 = vld [vmem:[%s4202_s1 + $0x68] sm:$0xff]   ;;  %vm204_vm0 = vsmask.f32 3328 }
   0xc   : > { %v3454_v1 = vld [vmem:[%s4202_s1 + $0x38] sm:$0xff]   ;;  %3211 = vmatprep.subr.bf16.mxu0 %v3453_v0  ;;  %v3456_v3 = vld [vmem:[%s4202_s1 + $0x30] sm:$0xff]   ;;  %v3458_v5 = vld [vmem:[%s4202_s1 + $0x28] sm:$0xff]   ;;  %vm205_vm1 = vsmask.f32 7440  ;;  %vm626_vm3 = vcmask 1042432  }
   0xd   : > { %3235 = vmatprep.subr.bf16.mxu1 %v3454_v1  ;;  %3212 = vmatpush3.bf16.msra.mxu0 %v3453_v0  ;;  %s4214_s13 = smov (!%p161_p3, %s2763_s13), 1  ;;  %v3459_v6 = vld [vmem:[%s4202_s1 + $0x60] sm:$0xff]   ;;  %v3461_v8 = vld [vmem:[%s4202_s1 + $0x58] sm:$0xff]   ;;  %v3463_v10 = vld [vmem:[%s4202_s1 + $0x50] sm:$0xff]   ;;  %vm627_vm4 = vcmask 1046532   ;;  %vm2256_vm6 = vcmask 1041408  }
   0xe   : > { %3236 = vmatpush3.bf16.msra.mxu1 %v3454_v1  ;;  %3213 = vmatprep.subr.bf16.mxu0 %v3455_v2  ;;  %v3460_v7 = vld [vmem:[%s4202_s1 + $0x20] sm:$0xff]   ;;  %s3443_s30 = smul.u32 80, %s4214_s13  ;;  %v3462_v9 = vld [vmem:[%s4202_s1 + $0x18] sm:$0xff]   ;;  %v3464_v14 = vld [vmem:[%s4202_s1 + $0x10] sm:$0xff]   ;;  %vm2642_vm7 = vcmask 1041409   ;;  %vm2645_vm8 = vcmask 1042434  }
   0xf   : > { %3237 = vmatprep.subr.bf16.mxu1 %v3456_v3  ;;  %v3465_v17 = vld [vmem:[%s4202_s1 + $0x48] sm:$0xff]   ;;  %vm3653_vm2 = vmor %vm204_vm0, %vm205_vm1  ;;  %v3467_v46 = vld [vmem:[%s4202_s1 + $0x40] sm:$0xff]   ;;  %vm2648_vm9 = vcmask 1043459   ;;  %s3102_s18 = sshll.u32 %s4214_s13, 3 }
  0x10   : > { %s3610_s10 = scalar_lea.vmem %s4201_s0, %s3443_s30  ;;  %v3466_v23 = vld [vmem:[%s4202_s1 + $0x8] sm:$0xff]   ;;  %v3468_v50 = vld [vmem:[%s4202_s1] sm:$0xff]   ;;  %v3471_v59 = vld [vmem:[%s4202_s1 + $0xb8] sm:$0xff]   ;;  %s4155_s13 = scalar_lea.vmem %s4204_s3, %s3102_s18 }
  0x11   : > { %3214 = vmatpush3.bf16.msra.mxu0 %v3455_v2  ;;  %v172_v11 = vld [vmem:[%s3610_s10] sm:$0xf]  ;;  %v173_v12 = vld [vmem:[%s3610_s10 + $0x8] sm:$0xf]  ;;  %v3618_v13 = vld [vmem:[%s3610_s10 + $0x4] sm:$0x1] }
  0x12   : > { %3238 = vmatpush3.bf16.msra.mxu1 %v3456_v3  ;;  %3215 = vmatprep.subr.bf16.mxu0 %v3457_v4  ;;  %v3624_v15 = vld [vmem:[%s3610_s10 + $0xc] sm:$0x1]  ;;  %v2799_v16 = vcombine.low %v172_v11, %v173_v12  ;;  %v208_v18 = vshrl.u32 %v172_v11, 16  ;;  %v211_v19 = vshll.u32 %v172_v11, 16  ;;  %v217_v20 = vshll.u32 %v3618_v13, 16  ;;  %v3472_v62 = vld [vmem:[%s4202_s1 + $0xf8] sm:$0xff]   ;;  %vm3736_vm5 = vmor %vm626_vm3, %vm627_vm4 }
  0x13   : > { %3239 = vmatprep.subr.bf16.mxu1 %v3458_v5  ;;  %v222_v21 = vshrl.u32 %v173_v12, 16  ;;  %v3631_v22 = vld [vmem:[%s3610_s10 + $0x10] sm:$0xf]  ;;  %v225_v24 = vshll.u32 %v173_v12, 16  ;;  %v231_v25 = vshll.u32 %v3624_v15, 16  ;;  %v3476_v11 = vld [vmem:[%s4202_s1 + $0xe8] sm:$0xff]  }
  0x14   : > { %3251 = vmatprep.mubr.bf16.mxu1 %v2799_v16  ;;  %v3638_v26 = vld [vmem:[%s3610_s10 + $0x18] sm:$0xf]  ;;  %v210_v27 = vrot.slane %v208_v18, 4  ;;  %v213_v28 = vrot.slane %v211_v19, 5  ;;  %v219_v29 = vrot.slane %v217_v20, 5  ;;  %v236_v35 = vshrl.u32 %v3631_v22, 16 }
  0x15   : > { %3216 = vmatpush3.bf16.msra.mxu0 %v3457_v4  ;;  %v224_v30 = vrot.slane %v222_v21, 4  ;;  %v3641_v31 = vld [vmem:[%s3610_s10 + $0x14] sm:$0x1]  ;;  %v227_v32 = vrot.slane %v225_v24, 5  ;;  %v233_v33 = vrot.slane %v231_v25, 5  ;;  %v239_v36 = vshll.u32 %v3631_v22, 16 }
  0x16   : > { %3240 = vmatpush3.bf16.msra.mxu1 %v3458_v5  ;;  %3217 = vmatprep.subr.bf16.mxu0 %v3459_v6  ;;  %v3644_v34 = vld [vmem:[%s3610_s10 + $0x1c] sm:$0x1]  ;;  %v214_v37 = vor.u32 %v213_v28, %v210_v27  ;;  %v245_v38 = vshll.u32 %v3641_v31, 16  ;;  %v250_v39 = vshrl.u32 %v3638_v26, 16  ;;  %v253_v40 = vshll.u32 %v3638_v26, 16  ;;  %v3473_v3 = vld [vmem:[%s4202_s1 + $0xb0] sm:$0xff]  }
  0x17   : > { %3241 = vmatprep.subr.bf16.mxu1 %v3460_v7  ;;  %v228_v42 = vor.u32 %v227_v32, %v224_v30  ;;  %v238_v43 = vrot.slane %v236_v35, 4  ;;  %v241_v44 = vrot.slane %v239_v36, 5  ;;  %v259_v45 = vshll.u32 %v3644_v34, 16  ;;  %v3474_v5 = vld [vmem:[%s4202_s1 + $0xf0] sm:$0xff]   ;;  %v3709_v28 = vld [vmem:[%s3610_s10 + $0x3c] sm:$0x1] }
  0x18   : > { %v215_v47 = vrot.slane %v214_v37, 4  ;;  %v252_v48 = vrot.slane %v250_v39, 4  ;;  %v255_v49 = vrot.slane %v253_v40, 5  ;;  %v247_v53 = vrot.slane %v245_v38, 5  ;;  %v178_v18 = vld [vmem:[%s3610_s10 + $0x30] sm:$0xf] }
  0x19   : > { %3218 = vmatpush3.bf16.msra.mxu0 %v3459_v6  ;;  %v229_v51 = vrot.slane %v228_v42, 4  ;;  %v242_v52 = vor.u32 %v241_v44, %v238_v43  ;;  %v261_v56 = vrot.slane %v259_v45, 5  ;;  %v2800_v2 = vcombine.low %v3631_v22, %v3638_v26  ;;  %v176_v6 = vld [vmem:[%s3610_s10 + $0x20] sm:$0xf]  ;;  %v179_v22 = vld [vmem:[%s3610_s10 + $0x38] sm:$0xf] }
  0x1a   : > { %3242 = vmatpush3.bf16.msra.mxu1 %v3460_v7  ;;  %3219 = vmatprep.subr.bf16.mxu0 %v3461_v8  ;;  %v220_v54 = vsel %vm3653_vm2, %v215_v47, %v219_v29  ;;  %v256_v55 = vor.u32 %v255_v49, %v252_v48  ;;  %v631_v4 = vrot.slane %v3618_v13, 5  ;;  %v3475_v7 = vld [vmem:[%s4202_s1 + $0xa8] sm:$0xff]   ;;  %v264_v12 = vshrl.u32 %v176_v6, 16  ;;  %v3477_v39 = vld [vmem:[%s4202_s1 + $0xa0] sm:$0xff]   ;;  %v605_v13 = vld [vmem:[%s3610_s10 + $0x18] sm:$0xe] }
  0x1b   : > { %3243 = vmatprep.subr.bf16.mxu1 %v3462_v9  ;;  %v234_v57 = vsel %vm3653_vm2, %v229_v51, %v233_v33  ;;  %v243_v58 = vrot.slane %v242_v52, 4  ;;  %v292_v32 = vshrl.u32 %v178_v18, 16  ;;  %v295_v33 = vshll.u32 %v178_v18, 16  ;;  %v3478_v45 = vld [vmem:[%s4202_s1 + $0xe0] sm:$0xff]  }
  0x1c   : > { %v2787_v60 = vcombine.low %v220_v54, %v234_v57  ;;  %v257_v61 = vrot.slane %v256_v55, 4  ;;  %v266_v24 = vrot.slane %v264_v12, 4  ;;  %v306_v37 = vshrl.u32 %v179_v22, 16  ;;  %v3479_v57 = vld [vmem:[%s4202_s1 + $0x98] sm:$0xff]  }
  0x1d   : > { %3220 = vmatpush3.bf16.msra.mxu0 %v3461_v8  ;;  %v248_v63 = vsel %vm3653_vm2, %v243_v58, %v247_v53  ;;  %v177_v8 = vld [vmem:[%s3610_s10 + $0x28] sm:$0xf]  ;;  %v309_v38 = vshll.u32 %v179_v22, 16  ;;  %v294_v42 = vrot.slane %v292_v32, 4  ;;  %v297_v43 = vrot.slane %v295_v33, 5 }
  0x1e   : > { %3244 = vmatpush3.bf16.msra.mxu1 %v3462_v9  ;;  %3221 = vmatprep.subr.bf16.mxu0 %v3463_v10  ;;  %v262_v0 = vsel %vm3653_vm2, %v257_v61, %v261_v56  ;;  %v3693_v9 = vld [vmem:[%s3610_s10 + $0x24] sm:$0x1]  ;;  %v281_v19 = vshll.u32 %v177_v8, 16  ;;  %v2801_v21 = vcombine.low %v176_v6, %v177_v8  ;;  %v315_v44 = vshll.u32 %v3709_v28, 16 }
  0x1f   : > { %3245 = vmatprep.subr.bf16.mxu1 %v3464_v14  ;;  %3227 = vmatprep.mubr.bf16.mxu0 %v2787_v60  ;;  %v2788_v1 = vcombine.low %v248_v63, %v262_v0  ;;  %v273_v16 = vshll.u32 %v3693_v9, 16  ;;  %v308_v47 = vrot.slane %v306_v37, 4  ;;  %v311_v48 = vrot.slane %v309_v38, 5  ;;  %v602_v63 = vld [vmem:[%s3610_s10] sm:$0xe] }
  0x20   : > { %v283_v29 = vrot.slane %v281_v19, 5  ;;  %v2802_v52 = vcombine.low %v178_v18, %v179_v22  ;;  %v635_v53 = vrot.slane %v3624_v15, 5  ;;  %v317_v56 = vrot.slane %v315_v44, 5  ;;  %v3480_v15 = vld [vmem:[%s4202_s1 + $0xd8] sm:$0xff]   ;;  %v603_v0 = vld [vmem:[%s3610_s10 + $0x8] sm:$0xe] }
  0x21   : > { %3222 = vmatpush3.bf16.msra.mxu0 %v3463_v10  ;;  %v3696_v10 = vld [vmem:[%s3610_s10 + $0x2c] sm:$0x1]  ;;  %v275_v26 = vrot.slane %v273_v16, 5  ;;  %v312_v55 = vor.u32 %v311_v48, %v308_v47  ;;  %v604_v18 = vld [vmem:[%s3610_s10 + $0x10] sm:$0xe]  ;;  %v639_v19 = vrot.slane %v3641_v31, 5 }
  0x22   : > { %3246 = vmatpush3.bf16.msra.mxu1 %v3464_v14  ;;  %3223 = vmatprep.subr.bf16.mxu0 %v3465_v17  ;;  %v267_v14 = vshll.u32 %v176_v6, 16  ;;  %v287_v20 = vshll.u32 %v3696_v10, 16  ;;  %v3485_v16 = vld [vmem:[%s4202_s1 + $0x88] sm:$0xff]   ;;  %v2814_v22 = vrot.slane %v605_v13, 9  ;;  %v3488_v31 = vld [vmem:[%s4202_s1 + $0xc0] sm:$0xff]  }
  0x23   : > { %3247 = vmatprep.subr.bf16.mxu1 %v3466_v23  ;;  %v313_v61 = vrot.slane %v312_v55, 4  ;;  %v3490_v37 = vld [vmem:[%s3610_s10 + $0x18] ss:$8 sps:$4 sm:$0xff]   ;;  %v3497_v48 = vld [vmem:[%s3610_s10 + $0x28] ss:$8 sps:$4 sm:$0xff]  }
  0x24   : > { %v269_v25 = vrot.slane %v267_v14, 5  ;;  %v289_v30 = vrot.slane %v287_v20, 5  ;;  %v643_v20 = vrot.slane %v3644_v34, 5  ;;  %v651_v34 = vrot.slane %v3696_v10, 5  ;;  %v3492_v10 = vld [vmem:[%s4202_s1 + $0x178] sm:$0xff]  }
  0x25   : > { %3224 = vmatpush3.bf16.msra.mxu0 %v3465_v17  ;;  %v278_v17 = vshrl.u32 %v177_v8, 16  ;;  %v3489_v8 = vld [vmem:[%s3610_s10 + $0x8] ss:$8 sps:$4 sm:$0xff]  }
  0x26   : > { %3248 = vmatpush3.bf16.msra.mxu1 %v3466_v23  ;;  %3225 = vmatprep.subr.bf16.mxu0 %v3467_v46  ;;  %v3706_v23 = vld [vmem:[%s3610_s10 + $0x34] sm:$0x1]  ;;  %v270_v35 = vor.u32 %v269_v25, %v266_v24  ;;  %v606_v24 = vld [vmem:[%s3610_s10 + $0x20] sm:$0xe]  ;;  %v607_v25 = vld [vmem:[%s3610_s10 + $0x28] sm:$0xe] }
  0x27   : > { %3249 = vmatprep.subr.bf16.mxu1 %v3468_v50  ;;  %v280_v27 = vrot.slane %v278_v17, 4  ;;  %v301_v36 = vshll.u32 %v3706_v23, 16  ;;  %v2816_v32 = vrot.slane %v607_v25, 9  ;;  %v655_v38 = vrot.slane %v3706_v23, 5  ;;  %v3494_v23 = vld [vmem:[%s4202_s1 + $0x170] sm:$0xff]  }
  0x28   : > { %v2883_v55 = vld [vmem:[%s3610_s10 + $0x8] sm:$0xf]  ;;  %v2890_v25 = vld [vmem:[%s3610_s10 + $0x24] sm:$0x1] }
  0x29   : > { %3226 = vmatpush3.bf16.msra.mxu0 %v3467_v46  ;;  %v284_v40 = vor.u32 %v283_v29, %v280_v27  ;;  %v271_v46 = vrot.slane %v270_v35, 4  ;;  %v303_v51 = vrot.slane %v301_v36, 5  ;;  %v647_v27 = vrot.slane %v3693_v9, 5  ;;  %v3491_v29 = vld [vmem:[%s4202_s1 + $0x138] sm:$0xff]   ;;  %v608_v35 = vld [vmem:[%s3610_s10 + $0x30] sm:$0xe] }
  0x2a   : > { %3250 = vmatpush3.bf16.msra.mxu1 %v3468_v50  ;;  %3259 = vmatprep.subr.bf16.mxu0 %v3471_v59  ;;  %v298_v50 = vor.u32 %v297_v43, %v294_v42  ;;  %v644_v9 = vsel %vm3736_vm5, %v2814_v22, %v643_v20  ;;  %v609_v36 = vld [vmem:[%s3610_s10 + $0x38] sm:$0xe]  ;;  %v652_v42 = vsel %vm3736_vm5, %v2816_v32, %v651_v34  ;;  %v659_v43 = vrot.slane %v3709_v28, 5  ;;  %v2888_v20 = vld [vmem:[%s3610_s10 + $0x1c] sm:$0x1] }
  0x2b   : > { %3283 = vmatprep.subr.bf16.mxu1 %v3472_v62  ;;  %v285_v49 = vrot.slane %v284_v40, 4  ;;  %v276_v54 = vsel %vm3653_vm2, %v271_v46, %v275_v26  ;;  %v3487_v26 = vld [vmem:[%s4202_s1 + $0x80] sm:$0xff]   ;;  %v2817_v44 = vrot.slane %v608_v35, 9  ;;  %v3493_v46 = vld [vmem:[%s4202_s1 + $0x130] sm:$0xff]   ;;  %v3501_v22 = vld [vmem:[%s4202_s1 + $0x118] sm:$0xff]  }
  0x2c   : > { %3228 = vmatmul.mubr.bf16.vlgmr.msra.gmra.mxu0 %v2788_v1  ;;  %v3502_v34 = vld [vmem:[%s4202_s1 + $0x158] sm:$0xff]   ;;  %v3503_v35 = vld [vmem:[%s4202_s1 + $0x110] sm:$0xff]  }
  0x2d   : > { %3252 = vmatmul.mubr.bf16.vlgmr.msra.gmra.mxu1 %v2800_v2  ;;  %3260 = vmatpush3.bf16.msra.mxu0 %v3471_v59  ;;  %v290_v58 = vsel %vm3653_vm2, %v285_v49, %v289_v30  ;;  %v299_v59 = vrot.slane %v298_v50, 4  ;;  %v318_v2 = vsel %vm3653_vm2, %v313_v61, %v317_v56  ;;  %v2815_v30 = vrot.slane %v606_v24, 9  ;;  %v3495_v50 = vld [vmem:[%s4202_s1 + $0x128] sm:$0xff]  }
  0x2e   : > { %3284 = vmatpush3.bf16.msra.mxu1 %v3472_v62  ;;  %3261 = vmatprep.subr.bf16.mxu0 %v3473_v3  ;;  %v2789_v60 = vcombine.low %v276_v54, %v290_v58  ;;  %v656_v28 = vsel %vm3736_vm5, %v2817_v44, %v655_v38  ;;  %v3499_v54 = vld [vmem:[%s4202_s1 + $0x120] sm:$0xff]   ;;  %v2884_v56 = vld [vmem:[%s3610_s10 + $0xc] sm:$0x1]  ;;  %v2885_v58 = vld [vmem:[%s3610_s10 + $0x10] sm:$0xf] }
  0x2f   : > { %3285 = vmatprep.subr.bf16.mxu1 %v3474_v5  ;;  %3255 = vmatprep.mubr.bf16.mxu1 %v2801_v21  ;;  %v304_v62 = vsel %vm3653_vm2, %v299_v59, %v303_v51  ;;  %v2813_v21 = vrot.slane %v604_v18, 9  ;;  %v648_v40 = vsel %vm3736_vm5, %v2815_v30, %v647_v27  ;;  %v3496_v51 = vld [vmem:[%s4202_s1 + $0x168] sm:$0xff]   ;;  %v2886_v59 = vld [vmem:[%s3610_s10 + $0x14] sm:$0x1]  ;;  %v1012_v61 = vshll.u32 %v2884_v56, 16 }
  0x30   : > { %3231 = vmatprep.mubr.bf16.mxu0 %v2789_v60  ;;  %v2790_v6 = vcombine.low %v304_v62, %v318_v2  ;;  %v2837_v47 = vcombine.low %v648_v40, %v652_v42  ;;  %v1006_v60 = vshll.u32 %v2883_v55, 16  ;;  %v1017_v62 = vshrl.u32 %v2885_v58, 16  ;;  %v2927_v2 = vld [vmem:[%s3610_s10 + $0x8] sm:$0xe]  ;;  %v3504_v40 = vld [vmem:[%s4202_s1 + $0x150] sm:$0xff]  }
  0x31   : > { %3262 = vmatpush3.bf16.msra.mxu0 %v3473_v3  ;;  %v2811_v3 = vrot.slane %v602_v63, 9  ;;  %v640_v33 = vsel %vm3736_vm5, %v2813_v21, %v639_v19  ;;  %v1020_v63 = vshll.u32 %v2885_v58, 16  ;;  %v1298_v19 = vrot.slane %v2886_v59, 5  ;;  %v2889_v21 = vld [vmem:[%s3610_s10 + $0x20] sm:$0xf] }
  0x32   : > { %3286 = vmatpush3.bf16.msra.mxu1 %v3474_v5  ;;  %3263 = vmatprep.subr.bf16.mxu0 %v3475_v7  ;;  %v2812_v5 = vrot.slane %v603_v0, 9  ;;  %v1026_v0 = vshll.u32 %v2886_v59, 16  ;;  %v1045_v32 = vshrl.u32 %v2889_v21, 16  ;;  %v2891_v59 = vld [vmem:[%s3610_s10 + $0x28] sm:$0xf] }
  0x33   : > { %3287 = vmatprep.subr.bf16.mxu1 %v3476_v11  ;;  %v632_v12 = vsel %vm3736_vm5, %v2811_v3, %v631_v4  ;;  %v3486_v4 = vld [vmem:[%s4202_s1 + $0xc8] sm:$0xff]  }
  0x34   : > { %v636_v14 = vsel %vm3736_vm5, %v2812_v5, %v635_v53  ;;  %3232 = vmatmul.mubr.bf16.gmra.mxu0 %v2790_v6  ;;  %v1008_v5 = vrot.slane %v1006_v60, 5  ;;  %v2928_v6 = vld [vmem:[%s3610_s10 + $0x10] sm:$0xe]  ;;  %v1047_v44 = vrot.slane %v1045_v32, 4 }
  0x35   : > { %3264 = vmatpush3.bf16.msra.mxu0 %v3475_v7  ;;  %3256 = vmatmul.mubr.bf16.gmra.mxu1 %v2802_v52  ;;  %v3483_v7 = vld [vmem:[%s4202_s1 + $0x90] sm:$0xff]   ;;  %v2835_v17 = vcombine.low %v632_v12, %v636_v14  ;;  %v3498_v52 = vld [vmem:[%s3610_s10 + $0x38] ss:$8 sps:$4 sm:$0xff]   ;;  %v1019_v12 = vrot.slane %v1017_v62, 4  ;;  %v1022_v14 = vrot.slane %v1020_v63, 5 }
  0x36   : > { %3288 = vmatpush3.bf16.msra.mxu1 %v3476_v11  ;;  %3265 = vmatprep.subr.bf16.mxu0 %v3477_v39  ;;  %v3484_v11 = vld [vmem:[%s4202_s1 + $0xd0] sm:$0xff]  }
  0x37   : > { %3289 = vmatprep.subr.bf16.mxu1 %v3478_v45  ;;  %3299 = vmatprep.mubr.bf16.mxu1 %v3489_v8  ;;  %v1294_v8 = vrot.slane %v2884_v56, 5  ;;  %v1023_v24 = vor.u32 %v1022_v14, %v1019_v12  ;;  %v3506_v56 = vld [vmem:[%s4202_s1 + $0x148] sm:$0xff]   ;;  %v2893_v60 = vld [vmem:[%s3610_s10 + $0x30] sm:$0xf]  ;;  %v3880_v63 = vld [vmem:[%s3610_s10 + $0x34] sm:$0x1] }
  0x38   : > { %3275 = vmatprep.mubr.bf16.mxu0 %v2835_v17  ;;  %v2887_v17 = vld [vmem:[%s3610_s10 + $0x18] sm:$0xf]  ;;  %v3891_v12 = vld [vmem:[%s3610_s10 + $0x3c] sm:$0x1] }
  0x39   : > { %3266 = vmatpush3.bf16.msra.mxu0 %v3477_v39  ;;  %v2836_v39 = vcombine.low %v640_v33, %v644_v9  ;;  %v1034_v27 = vshll.u32 %v2887_v17, 16  ;;  %v1048_v33 = vshll.u32 %v2889_v21, 16  ;;  %v2929_v9 = vld [vmem:[%s3610_s10 + $0x18] sm:$0xe]  ;;  %v3896_v21 = vld [vmem:[%s3610_s10 + $0x44] sm:$0x1] }
  0x3a   : > { %3290 = vmatpush3.bf16.msra.mxu1 %v3478_v45  ;;  %3267 = vmatprep.subr.bf16.mxu0 %v3479_v57  ;;  %v2818_v45 = vrot.slane %v609_v36, 9  ;;  %v1024_v36 = vrot.slane %v1023_v24, 4  ;;  %v3508_v24 = vld [vmem:[%s4202_s1 + $0x140] sm:$0xff]  }
  0x3b   : > { %3291 = vmatprep.subr.bf16.mxu1 %v3480_v15  ;;  %v1036_v38 = vrot.slane %v1034_v27, 5 }
  0x3c   : > { %v660_v49 = vsel %vm3736_vm5, %v2818_v45, %v659_v43  ;;  %v1050_v45 = vrot.slane %v1048_v33, 5 }
  0x3d   : > { %3268 = vmatpush3.bf16.msra.mxu0 %v3479_v57  ;;  %v2838_v53 = vcombine.low %v656_v28, %v660_v49  ;;  %v3500_v57 = vld [vmem:[%s4202_s1 + $0x160] sm:$0xff]  }
  0x3e   : > { %3292 = vmatpush3.bf16.msra.mxu1 %v3480_v15  ;;  %3269 = vmatprep.subr.bf16.mxu0 %v3483_v7  ;;  %v1003_v15 = vshrl.u32 %v2883_v55, 16  ;;  %v1051_v49 = vor.u32 %v1050_v45, %v1047_v44  ;;  %v1306_v55 = vrot.slane %v2890_v25, 5 }
  0x3f   : > { %3293 = vmatprep.subr.bf16.mxu1 %v3484_v11 }
  0x40   : > { %v1005_v3 = vrot.slane %v1003_v15, 4  ;;  %v3868_v15 = vld [vmem:[%s3610_s10 + $0x2c] sm:$0x1] }
  0x41   : > { %3270 = vmatpush3.bf16.msra.mxu0 %v3483_v7  ;;  %v2935_v7 = vrot.slane %v2927_v2, 9  ;;  %v1062_v2 = vshll.u32 %v2891_v59, 16 }
  0x42   : > { %3294 = vmatpush3.bf16.msra.mxu1 %v3484_v11  ;;  %3271 = vmatprep.subr.bf16.mxu0 %v3485_v16  ;;  %v1014_v11 = vrot.slane %v1012_v61, 5  ;;  %v1009_v18 = vor.u32 %v1008_v5, %v1005_v3  ;;  %v2895_v3 = vld [vmem:[%s3610_s10 + $0x38] sm:$0xf]  ;;  %v3507_v5 = vld [vmem:[%s4202_s1 + $0x100] sm:$0xff]  }
  0x43   : > { %3295 = vmatprep.subr.bf16.mxu1 %v3486_v4  ;;  %v1295_v13 = vsel %vm3736_vm5, %v2935_v7, %v1294_v8  ;;  %v1068_v7 = vshll.u32 %v3868_v15, 16  ;;  %v1073_v8 = vshrl.u32 %v2893_v60, 16 }
  0x45   : > { %3272 = vmatpush3.bf16.msra.mxu0 %v3485_v16  ;;  %v1028_v16 = vrot.slane %v1026_v0, 5  ;;  %v1059_v0 = vshrl.u32 %v2891_v59, 16 }
  0x46   : > { %3296 = vmatpush3.bf16.msra.mxu1 %v3486_v4  ;;  %3273 = vmatprep.subr.bf16.mxu0 %v3487_v26  ;;  %v2936_v4 = vrot.slane %v2928_v6, 9 }
  0x47   : > { %3297 = vmatprep.subr.bf16.mxu1 %v3488_v31  ;;  %v1061_v14 = vrot.slane %v1059_v0, 4  ;;  %v3513_v0 = vld [vmem:[%s4202_s1 + $0x1a8] sm:$0xff]  }
  0x48   : > { %v1299_v30 = vsel %vm3736_vm5, %v2936_v4, %v1298_v19  ;;  %v1070_v4 = vrot.slane %v1068_v7, 5  ;;  %v1075_v19 = vrot.slane %v1073_v8, 4  ;;  %v3514_v8 = vld [vmem:[%s4202_s1 + $0x1e8] sm:$0xff]  }
  0x49   : > { %3274 = vmatpush3.bf16.msra.mxu0 %v3487_v26  ;;  %v1031_v26 = vshrl.u32 %v2887_v17, 16  ;;  %v1082_v17 = vshll.u32 %v3880_v63, 16 }
  0x4a   : > { %3298 = vmatpush3.bf16.msra.mxu1 %v3488_v31  ;;  %3307 = vmatprep.subr.bf16.mxu0 %v3491_v29  ;;  %v1040_v31 = vshll.u32 %v2888_v20, 16 }
  0x4b   : > { %3331 = vmatprep.subr.bf16.mxu1 %v3492_v10 }
  0x4c   : > { %3276 = vmatmul.mubr.bf16.vlgmr.msra.gmra.mxu0 %v2836_v39  ;;  %v2930_v39 = vld [vmem:[%s3610_s10 + $0x20] sm:$0xe]  ;;  %v3848_v43 = vrot.slane %v1040_v31, 5  ;;  %v1096_v31 = vshll.u32 %v3891_v12, 16 }
  0x4d   : > { %3300 = vmatmul.mubr.bf16.vlgmr.msra.gmra.mxu1 %v3490_v37  ;;  %3308 = vmatpush3.bf16.msra.mxu0 %v3491_v29  ;;  %v1010_v29 = vrot.slane %v1009_v18, 4  ;;  %v2959_v37 = vcombine.low %v1295_v13, %v1299_v30  ;;  %v2897_v18 = vld [vmem:[%s3610_s10 + $0x40] sm:$0xf]  ;;  %v1087_v13 = vshrl.u32 %v2895_v3, 16 }
  0x4e   : > { %3332 = vmatpush3.bf16.msra.mxu1 %v3492_v10  ;;  %3309 = vmatprep.subr.bf16.mxu0 %v3493_v46  ;;  %v1033_v10 = vrot.slane %v1031_v26, 4  ;;  %v1084_v26 = vrot.slane %v1082_v17, 5  ;;  %v1101_v30 = vshrl.u32 %v2897_v18, 16  ;;  %v1104_v32 = vshll.u32 %v2897_v18, 16  ;;  %v3525_v17 = vld [vmem:[%s3610_s10 + $0x10] ss:$8 sps:$4 sm:$0xff]  }
  0x4f   : > { %3333 = vmatprep.subr.bf16.mxu1 %v3494_v23  ;;  %3279 = vmatprep.mubr.bf16.mxu0 %v2837_v47  ;;  %v1015_v42 = vsel %vm3653_vm2, %v1010_v29, %v1014_v11  ;;  %v1054_v47 = vshll.u32 %v2890_v25, 16  ;;  %v1076_v11 = vshll.u32 %v2893_v60, 16  ;;  %v1089_v27 = vrot.slane %v1087_v13, 4  ;;  %v3512_v60 = vld [vmem:[%s4202_s1 + $0x1f0] sm:$0xff]  }
  0x50   : > { %3303 = vmatprep.mubr.bf16.mxu1 %v3497_v48  ;;  %v2937_v48 = vrot.slane %v2929_v9, 9  ;;  %v3509_v9 = vld [vmem:[%s4202_s1 + $0x1b8] sm:$0xff]   ;;  %v1098_v45 = vrot.slane %v1096_v31, 5  ;;  %v3007_v18 = vld [vmem:[%s3610_s10 + $0x10] sm:$0xf] }
  0x51   : > { %3310 = vmatpush3.bf16.msra.mxu0 %v3493_v46  ;;  %v1029_v46 = vsel %vm3653_vm2, %v1024_v36, %v1028_v16  ;;  %v1064_v16 = vrot.slane %v1062_v2, 5  ;;  %v1110_v36 = vshll.u32 %v3896_v21, 16  ;;  %v3956_v13 = vld [vmem:[%s3610_s10 + $0x14] sm:$0x1] }
  0x52   : > { %3334 = vmatpush3.bf16.msra.mxu1 %v3494_v23  ;;  %3311 = vmatprep.subr.bf16.mxu0 %v3495_v50  ;;  %v1037_v23 = vor.u32 %v1036_v38, %v1033_v10  ;;  %v2915_v28 = vcombine.low %v1015_v42, %v1029_v46  ;;  %v3510_v10 = vld [vmem:[%s4202_s1 + $0x1f8] sm:$0xff]   ;;  %v1106_v42 = vrot.slane %v1104_v32, 5  ;;  %v2931_v46 = vld [vmem:[%s3610_s10 + $0x28] sm:$0xe] }
  0x53   : > { %3335 = vmatprep.subr.bf16.mxu1 %v3496_v51  ;;  %v1065_v25 = vor.u32 %v1064_v16, %v1061_v14  ;;  %v3515_v14 = vld [vmem:[%s4202_s1 + $0x1a0] sm:$0xff]  }
  0x54   : > { %3280 = vmatmul.mubr.bf16.gmra.mxu0 %v2838_v53  ;;  %v3855_v53 = vrot.slane %v1037_v23, 4  ;;  %v2932_v23 = vld [vmem:[%s3610_s10 + $0x30] sm:$0xe]  ;;  %v3516_v16 = vld [vmem:[%s4202_s1 + $0x1e0] sm:$0xff]  }
  0x55   : > { %3312 = vmatpush3.bf16.msra.mxu0 %v3495_v50  ;;  %3304 = vmatmul.mubr.bf16.gmra.mxu1 %v3498_v52  ;;  %v1302_v50 = vrot.slane %v2888_v20, 5  ;;  %v3505_v52 = vld [vmem:[%s4202_s1 + $0x108] sm:$0xff]   ;;  %v1078_v20 = vrot.slane %v1076_v11, 5 }
  0x56   : > { %3336 = vmatpush3.bf16.msra.mxu1 %v3496_v51  ;;  %3313 = vmatprep.subr.bf16.mxu0 %v3499_v54  ;;  %v2938_v51 = vrot.slane %v2930_v39, 9  ;;  %v1043_v61 = vsel %vm3653_vm2, %v3855_v53, %v3848_v43  ;;  %v2934_v53 = vld [vmem:[%s3610_s10 + $0x40] sm:$0xe] }
  0x57   : > { %3337 = vmatprep.subr.bf16.mxu1 %v3500_v57  ;;  %3347 = vmatprep.mubr.bf16.mxu1 %v2959_v37  ;;  %v3864_v58 = vsel %vm3736_vm5, %v2937_v48, %v1302_v50  ;;  %v1310_v37 = vrot.slane %v3868_v15, 5  ;;  %v3511_v48 = vld [vmem:[%s4202_s1 + $0x1b0] sm:$0xff]   ;;  %v1112_v50 = vrot.slane %v1110_v36, 5  ;;  %v2942_v15 = vrot.slane %v2934_v53, 9 }
  0x58   : > { %3323 = vmatprep.mubr.bf16.mxu0 %v2915_v28  ;;  %v3877_v62 = vsel %vm3736_vm5, %v2938_v51, %v1306_v55  ;;  %v2939_v51 = vrot.slane %v2931_v46, 9  ;;  %v2940_v55 = vrot.slane %v2932_v23, 9 }
  0x59   : > { %3314 = vmatpush3.bf16.msra.mxu0 %v3499_v54  ;;  %v3857_v54 = vrot.slane %v1054_v47, 5  ;;  %v2960_v33 = vcombine.low %v3864_v58, %v3877_v62  ;;  %v1314_v47 = vrot.slane %v3880_v63, 5  ;;  %v1322_v63 = vrot.slane %v3896_v21, 5 }
  0x5a   : > { %3338 = vmatpush3.bf16.msra.mxu1 %v3500_v57  ;;  %3315 = vmatprep.subr.bf16.mxu0 %v3501_v22  ;;  %v1052_v57 = vrot.slane %v1051_v49, 4  ;;  %v1311_v59 = vsel %vm3736_vm5, %v2939_v51, %v1310_v37  ;;  %v1669_v21 = vshll.u32 %v3007_v18, 16  ;;  %v3975_v37 = vld [vmem:[%s3610_s10 + $0x24] sm:$0x1] }
  0x5b   : > { %3339 = vmatprep.subr.bf16.mxu1 %v3502_v34  ;;  %v1315_v62 = vsel %vm3736_vm5, %v2940_v55, %v1314_v47  ;;  %v1323_v7 = vsel %vm3736_vm5, %v2942_v15, %v1322_v63  ;;  %v1703_v46 = vshll.u32 %v3975_v37, 16  ;;  %v3015_v63 = vld [vmem:[%s3610_s10 + $0x30] sm:$0xf] }
  0x5c   : > { %v1057_v6 = vsel %vm3653_vm2, %v1052_v57, %v3857_v54  ;;  %v1318_v57 = vrot.slane %v3891_v12, 5  ;;  %v2961_v2 = vcombine.low %v1311_v59, %v1315_v62 }
  0x5d   : > { %3316 = vmatpush3.bf16.msra.mxu0 %v3501_v22  ;;  %v1090_v22 = vshll.u32 %v2895_v3, 16  ;;  %v2916_v43 = vcombine.low %v1043_v61, %v1057_v6  ;;  %v1705_v59 = vrot.slane %v1703_v46, 5  ;;  %v3528_v46 = vld [vmem:[%s4202_s1 + $0x230] sm:$0xff]  }
  0x5e   : > { %3340 = vmatpush3.bf16.msra.mxu1 %v3502_v34  ;;  %3317 = vmatprep.subr.bf16.mxu0 %v3503_v35  ;;  %v1079_v34 = vor.u32 %v1078_v20, %v1075_v19  ;;  %v3960_v19 = vld [vmem:[%s3610_s10 + $0x1c] sm:$0x1]  ;;  %v1666_v20 = vshrl.u32 %v3007_v18, 16 }
  0x5f   : > { %3341 = vmatprep.subr.bf16.mxu1 %v3504_v40  ;;  %v1092_v29 = vrot.slane %v1090_v22, 5  ;;  %v1675_v22 = vshll.u32 %v3956_v13, 16 }
  0x60   : > { %v1080_v38 = vrot.slane %v1079_v34, 4  ;;  %v1668_v31 = vrot.slane %v1666_v20, 4  ;;  %v1671_v34 = vrot.slane %v1669_v21, 5 }
  0x61   : > { %3318 = vmatpush3.bf16.msra.mxu0 %v3503_v35  ;;  %v1066_v35 = vrot.slane %v1065_v25, 4  ;;  %v1093_v39 = vor.u32 %v1092_v29, %v1089_v27  ;;  %v3517_v27 = vld [vmem:[%s4202_s1 + $0x198] sm:$0xff]  }
  0x62   : > { %3342 = vmatpush3.bf16.msra.mxu1 %v3504_v40  ;;  %3319 = vmatprep.subr.bf16.mxu0 %v3505_v52  ;;  %v1103_v40 = vrot.slane %v1101_v30, 4  ;;  %v1085_v28 = vsel %vm3653_vm2, %v1080_v38, %v1084_v26  ;;  %v1689_v26 = vshll.u32 %v3960_v19, 16  ;;  %v3518_v29 = vld [vmem:[%s4202_s1 + $0x1d8] sm:$0xff]   ;;  %v1677_v30 = vrot.slane %v1675_v22, 5  ;;  %v3979_v38 = vld [vmem:[%s3610_s10 + $0x2c] sm:$0x1] }
  0x63   : > { %3343 = vmatprep.subr.bf16.mxu1 %v3506_v56  ;;  %v1071_v44 = vsel %vm3653_vm2, %v1066_v35, %v1070_v4  ;;  %v1094_v54 = vrot.slane %v1093_v39, 4  ;;  %v3009_v4 = vld [vmem:[%s3610_s10 + $0x18] sm:$0xf]  ;;  %v3519_v35 = vld [vmem:[%s4202_s1 + $0x190] sm:$0xff]   ;;  %v1672_v36 = vor.u32 %v1671_v34, %v1668_v31  ;;  %v4018_v22 = vld [vmem:[%s3610_s10 + $0x44] sm:$0x1] }
  0x64   : > { %v1107_v49 = vor.u32 %v1106_v42, %v1103_v40  ;;  %v2917_v61 = vcombine.low %v1071_v44, %v1085_v28  ;;  %v1683_v25 = vshll.u32 %v3009_v4, 16  ;;  %v3520_v39 = vld [vmem:[%s4202_s1 + $0x1d0] sm:$0xff]   ;;  %v1691_v42 = vrot.slane %v1689_v26, 5 }
  0x65   : > { %3320 = vmatpush3.bf16.msra.mxu0 %v3505_v52  ;;  %v2933_v52 = vld [vmem:[%s3610_s10 + $0x38] sm:$0xe]  ;;  %v1099_v3 = vsel %vm3653_vm2, %v1094_v54, %v1098_v45  ;;  %v1673_v45 = vrot.slane %v1672_v36, 4  ;;  %v3521_v54 = vld [vmem:[%s4202_s1 + $0x188] sm:$0xff]  }
  0x66   : > { %3344 = vmatpush3.bf16.msra.mxu1 %v3506_v56  ;;  %3321 = vmatprep.subr.bf16.mxu0 %v3507_v5  ;;  %v2941_v56 = vrot.slane %v2933_v52, 9  ;;  %v1108_v58 = vrot.slane %v1107_v49, 4 }
  0x67   : > { %3345 = vmatprep.subr.bf16.mxu1 %v3508_v24  ;;  %v1678_v51 = vsel %vm3653_vm2, %v1673_v45, %v1677_v30  ;;  %v4022_v30 = vld [vmem:[%s3610_s10 + $0x4c] sm:$0x1] }
  0x68   : > { %v1319_v6 = vsel %vm3736_vm5, %v2941_v56, %v1318_v57  ;;  %v3522_v57 = vld [vmem:[%s4202_s1 + $0x1c8] sm:$0xff]  }
  0x69   : > { %3322 = vmatpush3.bf16.msra.mxu0 %v3507_v5  ;;  %v1113_v5 = vsel %vm3653_vm2, %v1108_v58, %v1112_v50  ;;  %v2962_v12 = vcombine.low %v1319_v6, %v1323_v7  ;;  %v1717_v50 = vshll.u32 %v3979_v38, 16  ;;  %v1725_v6 = vshll.u32 %v3015_v63, 16  ;;  %v3523_v7 = vld [vmem:[%s4202_s1 + $0x180] sm:$0xff]  }
  0x6a   : > { %3346 = vmatpush3.bf16.msra.mxu1 %v3508_v24  ;;  %3355 = vmatprep.subr.bf16.mxu0 %v3509_v9  ;;  %v2918_v11 = vcombine.low %v1099_v3, %v1113_v5  ;;  %v1680_v24 = vshrl.u32 %v3009_v4, 16  ;;  %v4002_v3 = vld [vmem:[%s3610_s10 + $0x3c] sm:$0x1]  ;;  %v1722_v5 = vshrl.u32 %v3015_v63, 16 }
  0x6b   : > { %3379 = vmatprep.subr.bf16.mxu1 %v3510_v10  ;;  %v1727_v20 = vrot.slane %v1725_v6, 5  ;;  %v1745_v21 = vshll.u32 %v4002_v3, 16 }
  0x6c   : > { %3324 = vmatmul.mubr.bf16.vlgmr.msra.gmra.mxu0 %v2916_v43  ;;  %v1682_v32 = vrot.slane %v1680_v24, 4  ;;  %v1724_v4 = vrot.slane %v1722_v5, 4  ;;  %v3056_v5 = vld [vmem:[%s3610_s10 + $0x38] sm:$0xe] }
  0x6d   : > { %3348 = vmatmul.mubr.bf16.vlgmr.msra.gmra.mxu1 %v2960_v33  ;;  %3356 = vmatpush3.bf16.msra.mxu0 %v3509_v9  ;;  %v1685_v33 = vrot.slane %v1683_v25, 5  ;;  %v3011_v9 = vld [vmem:[%s3610_s10 + $0x20] sm:$0xf] }
  0x6e   : > { %3380 = vmatpush3.bf16.msra.mxu1 %v3510_v10  ;;  %3357 = vmatprep.subr.bf16.mxu0 %v3511_v48  ;;  %v3013_v10 = vld [vmem:[%s3610_s10 + $0x28] sm:$0xf]  ;;  %v1694_v43 = vshrl.u32 %v3011_v9, 16  ;;  %v1697_v44 = vshll.u32 %v3011_v9, 16  ;;  %v1728_v34 = vor.u32 %v1727_v20, %v1724_v4  ;;  %v3533_v20 = vld [vmem:[%s4202_s1 + $0x218] sm:$0xff]  }
  0x6f   : > { %3381 = vmatprep.subr.bf16.mxu1 %v3512_v60  ;;  %3327 = vmatprep.mubr.bf16.mxu0 %v2917_v61  ;;  %v1686_v40 = vor.u32 %v1685_v33, %v1682_v32  ;;  %v1708_v23 = vshrl.u32 %v3013_v10, 16  ;;  %v1711_v47 = vshll.u32 %v3013_v10, 16  ;;  %v1719_v61 = vrot.slane %v1717_v50, 5  ;;  %v3526_v9 = vld [vmem:[%s3610_s10 + $0x20] ss:$8 sps:$4 sm:$0xff]  }
  0x70   : > { %3351 = vmatprep.mubr.bf16.mxu1 %v2961_v2  ;;  %v1696_v28 = vrot.slane %v1694_v43, 4  ;;  %v1699_v49 = vrot.slane %v1697_v44, 5  ;;  %v3017_v2 = vld [vmem:[%s3610_s10 + $0x38] sm:$0xf]  ;;  %v1759_v33 = vshll.u32 %v4018_v22, 16  ;;  %v1773_v44 = vshll.u32 %v4022_v30, 16 }
  0x71   : > { %3358 = vmatpush3.bf16.msra.mxu0 %v3511_v48  ;;  %v1687_v48 = vrot.slane %v1686_v40, 4  ;;  %v1710_v52 = vrot.slane %v1708_v23, 4  ;;  %v1713_v53 = vrot.slane %v1711_v47, 5 }
  0x72   : > { %3382 = vmatpush3.bf16.msra.mxu1 %v3512_v60  ;;  %3359 = vmatprep.subr.bf16.mxu0 %v3513_v0  ;;  %v1700_v56 = vor.u32 %v1699_v49, %v1696_v28  ;;  %v3529_v28 = vld [vmem:[%s3610_s10 + $0x30] ss:$8 sps:$4 sm:$0xff]  }
  0x73   : > { %3383 = vmatprep.subr.bf16.mxu1 %v3514_v8  ;;  %v1692_v55 = vsel %vm3653_vm2, %v1687_v48, %v1691_v42  ;;  %v1714_v15 = vor.u32 %v1713_v53, %v1710_v52  ;;  %v1729_v42 = vrot.slane %v1728_v34, 4  ;;  %v1775_v52 = vrot.slane %v1773_v44, 5 }
  0x74   : > { %3328 = vmatmul.mubr.bf16.gmra.mxu0 %v2918_v11  ;;  %v3039_v58 = vcombine.low %v1678_v51, %v1692_v55  ;;  %v1701_v60 = vrot.slane %v1700_v56, 4  ;;  %v1761_v51 = vrot.slane %v1759_v33, 5  ;;  %v1957_v56 = vrot.slane %v3956_v13, 5  ;;  %v3531_v13 = vld [vmem:[%s4202_s1 + $0x228] sm:$0xff]  }
  0x75   : > { %3360 = vmatpush3.bf16.msra.mxu0 %v3513_v0  ;;  %3352 = vmatmul.mubr.bf16.gmra.mxu1 %v2962_v12  ;;  %v1715_v62 = vrot.slane %v1714_v15, 4  ;;  %v3998_v0 = vld [vmem:[%s3610_s10 + $0x34] sm:$0x1]  ;;  %v1736_v12 = vshrl.u32 %v3017_v2, 16  ;;  %v3052_v15 = vld [vmem:[%s3610_s10 + $0x18] sm:$0xe] }
  0x76   : > { %3384 = vmatpush3.bf16.msra.mxu1 %v3514_v8  ;;  %3361 = vmatprep.subr.bf16.mxu0 %v3515_v14  ;;  %v1706_v8 = vsel %vm3653_vm2, %v1701_v60, %v1705_v59  ;;  %v1731_v11 = vshll.u32 %v3998_v0, 16  ;;  %v3051_v59 = vld [vmem:[%s3610_s10 + $0x10] sm:$0xe]  ;;  %v1961_v60 = vrot.slane %v3960_v19, 5  ;;  %v3060_v63 = vrot.slane %v3052_v15, 9 }
  0x77   : > { %3385 = vmatprep.subr.bf16.mxu1 %v3516_v16  ;;  %3371 = vmatprep.mubr.bf16.mxu0 %v3525_v17  ;;  %v3524_v17 = vld [vmem:[%s4202_s1 + $0x1c0] sm:$0xff]   ;;  %v1720_v18 = vsel %vm3653_vm2, %v1715_v62, %v1719_v61  ;;  %v1738_v25 = vrot.slane %v1736_v12, 4  ;;  %v3059_v62 = vrot.slane %v3051_v59, 9  ;;  %v1969_v33 = vrot.slane %v3979_v38, 5 }
  0x78   : > { %3395 = vmatprep.mubr.bf16.mxu1 %v3039_v58  ;;  %v1733_v24 = vrot.slane %v1731_v11, 5  ;;  %v3040_v45 = vcombine.low %v1706_v8, %v1720_v18  ;;  %v3064_v8 = vrot.slane %v3056_v5, 9  ;;  %v1977_v11 = vrot.slane %v4002_v3, 5  ;;  %v3530_v12 = vld [vmem:[%s3610_s10 + $0x40] ss:$8 sps:$4 sm:$0xff]  }
  0x79   : > { %3362 = vmatpush3.bf16.msra.mxu0 %v3515_v14  ;;  %v1739_v14 = vshll.u32 %v3017_v2, 16  ;;  %v3055_v2 = vld [vmem:[%s3610_s10 + $0x30] sm:$0xe]  ;;  %v3532_v3 = vld [vmem:[%s4202_s1 + $0x220] sm:$0xff]  }
  0x7a   : > { %3386 = vmatpush3.bf16.msra.mxu1 %v3516_v16  ;;  %3363 = vmatprep.subr.bf16.mxu0 %v3517_v27  ;;  %v3019_v16 = vld [vmem:[%s3610_s10 + $0x40] sm:$0xf]  ;;  %v1734_v49 = vsel %vm3653_vm2, %v1729_v42, %v1733_v24  ;;  %v3063_v19 = vrot.slane %v3055_v2, 9  ;;  %v3535_v24 = vld [vmem:[%s4202_s1 + $0x208] sm:$0xff]  }
  0x7b   : > { %3387 = vmatprep.subr.bf16.mxu1 %v3518_v29  ;;  %v1741_v26 = vrot.slane %v1739_v14, 5  ;;  %v1750_v31 = vshrl.u32 %v3019_v16, 16  ;;  %v1753_v32 = vshll.u32 %v3019_v16, 16  ;;  %v1958_v14 = vsel %vm3736_vm5, %v3059_v62, %v1957_v56 }
  0x7c   : > { %v1962_v16 = vsel %vm3736_vm5, %v3060_v63, %v1961_v60 }
  0x7d   : > { %3364 = vmatpush3.bf16.msra.mxu0 %v3517_v27  ;;  %v3021_v27 = vld [vmem:[%s3610_s10 + $0x48] sm:$0xf]  ;;  %v1742_v36 = vor.u32 %v1741_v26, %v1738_v25  ;;  %v1752_v10 = vrot.slane %v1750_v31, 4  ;;  %v1755_v43 = vrot.slane %v1753_v32, 5  ;;  %v3083_v18 = vcombine.low %v1958_v14, %v1962_v16  ;;  %v3053_v25 = vld [vmem:[%s3610_s10 + $0x20] sm:$0xe] }
  0x7e   : > { %3388 = vmatpush3.bf16.msra.mxu1 %v3518_v29  ;;  %3365 = vmatprep.subr.bf16.mxu0 %v3519_v35  ;;  %v1747_v29 = vrot.slane %v1745_v21, 5  ;;  %v1767_v40 = vshll.u32 %v3021_v27, 16  ;;  %v3534_v21 = vld [vmem:[%s4202_s1 + $0x210] sm:$0xff]   ;;  %v3054_v26 = vld [vmem:[%s3610_s10 + $0x28] sm:$0xe]  ;;  %v3061_v34 = vrot.slane %v3053_v25, 9 }
  0x7f   : > { %3389 = vmatprep.subr.bf16.mxu1 %v3520_v39  ;;  %v1743_v23 = vrot.slane %v1742_v36, 4  ;;  %v1756_v50 = vor.u32 %v1755_v43, %v1752_v10  ;;  %v3058_v31 = vld [vmem:[%s3610_s10 + $0x48] sm:$0xe]  ;;  %v3062_v32 = vrot.slane %v3054_v26, 9  ;;  %v3536_v36 = vld [vmem:[%s4202_s1 + $0x200] sm:$0xff]  }
  0x80   : > { %v1769_v48 = vrot.slane %v1767_v40, 5 }
  0x81   : > { %3366 = vmatpush3.bf16.msra.mxu0 %v3519_v35  ;;  %v3527_v35 = vld [vmem:[%s4202_s1 + $0x238] sm:$0xff]   ;;  %v1748_v53 = vsel %vm3653_vm2, %v1743_v23, %v1747_v29  ;;  %v1757_v55 = vrot.slane %v1756_v50, 4  ;;  %v1965_v29 = vrot.slane %v3975_v37, 5  ;;  %v1970_v38 = vsel %vm3736_vm5, %v3062_v32, %v1969_v33 }
  0x82   : > { %3390 = vmatpush3.bf16.msra.mxu1 %v3520_v39  ;;  %3367 = vmatprep.subr.bf16.mxu0 %v3521_v54  ;;  %v1764_v39 = vshrl.u32 %v3021_v27, 16  ;;  %v3057_v27 = vld [vmem:[%s3610_s10 + $0x40] sm:$0xe] }
  0x83   : > { %3391 = vmatprep.subr.bf16.mxu1 %v3522_v57  ;;  %v1762_v61 = vsel %vm3653_vm2, %v1757_v55, %v1761_v51  ;;  %v3065_v10 = vrot.slane %v3057_v27, 9  ;;  %v1966_v37 = vsel %vm3736_vm5, %v3061_v34, %v1965_v29 }
  0x84   : > { %v1766_v47 = vrot.slane %v1764_v39, 4  ;;  %v3066_v39 = vrot.slane %v3058_v31, 9  ;;  %v3084_v40 = vcombine.low %v1966_v37, %v1970_v38 }
  0x85   : > { %3368 = vmatpush3.bf16.msra.mxu0 %v3521_v54 }
  0x86   : > { %3392 = vmatpush3.bf16.msra.mxu1 %v3522_v57  ;;  %3369 = vmatprep.subr.bf16.mxu0 %v3523_v7  ;;  %v1770_v54 = vor.u32 %v1769_v48, %v1766_v47  ;;  %v3041_v57 = vcombine.low %v1734_v49, %v1748_v53 }
  0x87   : > { %3393 = vmatprep.subr.bf16.mxu1 %v3524_v17 }
  0x88   : > { %v1771_v58 = vrot.slane %v1770_v54, 4 }
  0x89   : > { %3370 = vmatpush3.bf16.msra.mxu0 %v3523_v7  ;;  %v1973_v7 = vrot.slane %v3998_v0, 5  ;;  %v1978_v0 = vsel %vm3736_vm5, %v3064_v8, %v1977_v11 }
  0x8a   : > { %3394 = vmatpush3.bf16.msra.mxu1 %v3524_v17  ;;  %3403 = vmatprep.subr.bf16.mxu0 %v3527_v35  ;;  %v1776_v6 = vsel %vm3653_vm2, %v1771_v58, %v1775_v52 }
  0x8b   : > { %3427 = vmatprep.subr.bf16.mxu1 %v3527_v35  ;;  %v3042_v17 = vcombine.low %v1762_v61, %v1776_v6  ;;  %v1974_v41 = vsel %vm3736_vm5, %v3063_v19, %v1973_v7 }
  0x8c   : > { %3372 = vmatmul.mubr.bf16.vlgmr.msra.gmra.mxu0 %v3526_v9  ;;  %v3085_v4 = vcombine.low %v1974_v41, %v1978_v0  ;;  %v1981_v9 = vrot.slane %v4018_v22, 5 }
  0x8d   : > { %3396 = vmatmul.mubr.bf16.vlgmr.msra.gmra.mxu1 %v3040_v45  ;;  %3404 = vmatpush3.bf16.msra.mxu0 %v3527_v35 }
  0x8e   : > { %3435 = vmatpush3.bf16.msra.mxu1 %v3527_v35  ;;  %3405 = vmatprep.subr.bf16.mxu0 %v3528_v46  ;;  %v1985_v35 = vrot.slane %v4022_v30, 5  ;;  %v1982_v22 = vsel %vm3736_vm5, %v3065_v10, %v1981_v9 }
  0x8f   : > { %3428 = vmatprep.subr.bf16.mxu1 %v3528_v46  ;;  %3375 = vmatprep.mubr.bf16.mxu0 %v3529_v28 }
  0x90   : > { %3399 = vmatprep.mubr.bf16.mxu1 %v3041_v57  ;;  %v1986_v30 = vsel %vm3736_vm5, %v3066_v39, %v1985_v35 }
  0x91   : > { %3406 = vmatpush3.bf16.msra.mxu0 %v3528_v46  ;;  %v3086_v42 = vcombine.low %v1982_v22, %v1986_v30 }
  0x92   : > { %3436 = vmatpush3.bf16.msra.mxu1 %v3528_v46  ;;  %3407 = vmatprep.subr.bf16.mxu0 %v3531_v13 }
  0x93   : > { %3429 = vmatprep.subr.bf16.mxu1 %v3531_v13 }
  0x94   : > { %3376 = vmatmul.mubr.bf16.gmra.mxu0 %v3530_v12 }
  0x95   : > { %3408 = vmatpush3.bf16.msra.mxu0 %v3531_v13  ;;  %3400 = vmatmul.mubr.bf16.gmra.mxu1 %v3042_v17 }
  0x96   : > { %3437 = vmatpush3.bf16.msra.mxu1 %v3531_v13  ;;  %3409 = vmatprep.subr.bf16.mxu0 %v3532_v3 }
  0x97   : > { %3430 = vmatprep.subr.bf16.mxu1 %v3532_v3  ;;  %3419 = vmatprep.mubr.bf16.mxu0 %v3083_v18 }
  0x98   : > { %3423 = vmatprep.mubr.bf16.mxu1 %v3085_v4 }
  0x99   : > { %3410 = vmatpush3.bf16.msra.mxu0 %v3532_v3 }
  0x9a   : > { %3438 = vmatpush3.bf16.msra.mxu1 %v3532_v3  ;;  %3411 = vmatprep.subr.bf16.mxu0 %v3533_v20 }
  0x9b   : > { %3431 = vmatprep.subr.bf16.mxu1 %v3533_v20 }
  0x9d   : > { %3412 = vmatpush3.bf16.msra.mxu0 %v3533_v20 }
  0x9e   : > { %3439 = vmatpush3.bf16.msra.mxu1 %v3533_v20  ;;  %3413 = vmatprep.subr.bf16.mxu0 %v3534_v21 }
  0x9f   : > { %3432 = vmatprep.subr.bf16.mxu1 %v3534_v21 }
  0xa1   : > { %3414 = vmatpush3.bf16.msra.mxu0 %v3534_v21 }
  0xa2   : > { %3440 = vmatpush3.bf16.msra.mxu1 %v3534_v21  ;;  %3415 = vmatprep.subr.bf16.mxu0 %v3535_v24 }
  0xa3   : > { %3433 = vmatprep.subr.bf16.mxu1 %v3535_v24 }
  0xa5   : > { %3416 = vmatpush3.bf16.msra.mxu0 %v3535_v24 }
  0xa6   : > { %3441 = vmatpush3.bf16.msra.mxu1 %v3535_v24  ;;  %3417 = vmatprep.subr.bf16.mxu0 %v3536_v36 }
  0xa7   : > { %3434 = vmatprep.subr.bf16.mxu1 %v3536_v36 }
  0xa9   : > { %3418 = vmatpush3.bf16.msra.mxu0 %v3536_v36 }
  0xaa   : > { %3442 = vmatpush3.bf16.msra.mxu1 %v3536_v36 }
  0xac   : > { %3420 = vmatmul.mubr.bf16.vlgmr.msra.gmra.mxu0 %v3084_v40 }
  0xad   : > { %3424 = vmatmul.mubr.bf16.vlgmr.msra.gmra.mxu1 %v3086_v42 }
  0xec   : > { %v3229_v43 = vpop.f32.mrf.mxu0 }
  0xed   : > { %v3253_v44 = vpop.f32.mrf.mxu1 }
  0xee   : > { %v434_v45 = vpop.f32.mrf.mxu0  ;;  %v580_v37 = vadd.f32 %v3253_v44, %v3229_v43 }
  0xef   : > { %v571_v46 = vpop.f32.mrf.mxu1 }
  0xf0   : > { %v572_v23 = vadd.f32 %v571_v46, %v434_v45  ;;  %v3230_v47 = vpop.f32.mrf.mxu0 }
  0xf1   : > { %v3254_v48 = vpop.f32.mrf.mxu1 }
  0xf2   : > { %v437_v28 = vpop.f32.mrf.mxu0  ;;  %v583_v45 = vadd.f32 %v3254_v48, %v3230_v47 }
  0xf3   : > { %v574_v49 = vpop.f32.mrf.mxu1 }
  0xf4   : > { %v4093_v50 = vadd.f32 %v574_v49, %v437_v28  ;;  %v3233_v52 = vpop.f32.mrf.mxu0 }
  0xf5   : > { %v3257_v1 = vpop.f32.mrf.mxu1 }
  0xf6   : > { %4209 = vst [vmem:[#allocation2_spill] sm:$0xff] %v4093_v50  ;;  %v450_v54 = vpop.f32.mrf.mxu0  ;;  %v596_v22 = vadd.f32 %v3257_v1, %v3233_v52 }
  0xf7   : > { %v587_v51 = vpop.f32.mrf.mxu1 }
  0xf8   : > { %v588_v55 = vadd.f32 %v587_v51, %v450_v54  ;;  %v3234_v56 = vpop.f32.mrf.mxu0 }
  0xf9   : > { %v3258_v53 = vpop.f32.mrf.mxu1 }
  0xfa   : > { %v453_v58 = vpop.f32.mrf.mxu0  ;;  %v599_v49 = vadd.f32 %v3258_v53, %v3234_v56 }
  0xfb   : > { %v590_v57 = vpop.f32.mrf.mxu1 }
  0xfc   : > { %v591_v59 = vadd.f32 %v590_v57, %v453_v58 }
  0xfd   : > { %v4211_v43 = vld [vmem:[#allocation2_spill] sm:$0xff] }
 0x10c   : > { %v3277_v15 = vpop.f32.mrf.mxu0 }
 0x10d   : > { %v3301_v13 = vpop.f32.mrf.mxu1  ;;  %v809_v40 = vadd.f32 %v3277_v15, %v580_v37 }
 0x10e   : > { %v776_v60 = vpop.f32.mrf.mxu0 }
 0x10f   : > { %v947_v6 = vpop.f32.mrf.mxu1  ;;  %v807_v46 = vadd.f32 %v776_v60, %v572_v23  ;;  %v980_v54 = vadd.f32 %v3301_v13, %v809_v40 }
 0x110   : > { %v3278_v61 = vpop.f32.mrf.mxu0 }
 0x111   : > { %v3302_v19 = vpop.f32.mrf.mxu1  ;;  %v978_v50 = vadd.f32 %v947_v6, %v807_v46 }
 0x112   : > { %v779_v62 = vpop.f32.mrf.mxu0 }
 0x113   : > { %v950_v7 = vpop.f32.mrf.mxu1  ;;  %v808_v44 = vadd.f32 %v779_v62, %v4211_v43 }
 0x114   : > { %v3281_v63 = vpop.f32.mrf.mxu0 }
 0x115   : > { %v3305_v8 = vpop.f32.mrf.mxu1  ;;  %v813_v42 = vadd.f32 %v3281_v63, %v596_v22  ;;  %v979_v53 = vadd.f32 %v950_v7, %v808_v44 }
 0x116   : > { %v792_v2 = vpop.f32.mrf.mxu0 }
 0x117   : > { %v811_v5 = vadd.f32 %v792_v2, %v588_v55  ;;  %v963_v12 = vpop.f32.mrf.mxu1  ;;  %v810_v55 = vadd.f32 %v3278_v61, %v583_v45  ;;  %v984_v58 = vadd.f32 %v3305_v8, %v813_v42  ;;  %v2176_v42 = vlaneseq }
 0x118   : > { %v3282_v11 = vpop.f32.mrf.mxu0 }
 0x119   : > { %v3306_v16 = vpop.f32.mrf.mxu1  ;;  %v814_v2 = vadd.f32 %v3282_v11, %v599_v49  ;;  %v982_v1 = vadd.f32 %v963_v12, %v811_v5  ;;  %v981_v63 = vadd.f32 %v3302_v19, %v810_v55 }
 0x11a   : > { %v795_v14 = vpop.f32.mrf.mxu0 }
 0x11b   : > { %v966_v41 = vpop.f32.mrf.mxu1  ;;  %v812_v52 = vadd.f32 %v795_v14, %v591_v59  ;;  %v985_v48 = vadd.f32 %v3306_v16, %v814_v2 }
 0x11d   : > { %v983_v61 = vadd.f32 %v966_v41, %v812_v52 }
 0x12c   : > { %v3325_v17 = vpop.f32.mrf.mxu0 }
 0x12d   : > { %v3349_v3 = vpop.f32.mrf.mxu1 }
 0x12e   : > { %v1229_v0 = vpop.f32.mrf.mxu0 }
 0x12f   : > { %v1439_v4 = vpop.f32.mrf.mxu1  ;;  %v1260_v47 = vadd.f32 %v1229_v0, %v978_v50 }
 0x130   : > { %v3326_v18 = vpop.f32.mrf.mxu0 }
 0x131   : > { %v3350_v21 = vpop.f32.mrf.mxu1  ;;  %v1263_v13 = vadd.f32 %v3326_v18, %v981_v63  ;;  %v1470_v6 = vadd.f32 %v1439_v4, %v1260_v47  ;;  %v3545_v4 = vmov 1983009808  }
 0x132   : > { %v1232_v20 = vpop.f32.mrf.mxu0 }
 0x133   : > { %v1442_v25 = vpop.f32.mrf.mxu1  ;;  %v1261_v40 = vadd.f32 %v1232_v20, %v979_v53  ;;  %v1473_v14 = vadd.f32 %v3350_v21, %v1263_v13  ;;  %v2174_v20 = vunpack.c.l.s4 %v3545_v4 }
 0x134   : > { %v3329_v24 = vpop.f32.mrf.mxu0 }
 0x135   : > { %v3353_v26 = vpop.f32.mrf.mxu1  ;;  %v1266_v15 = vadd.f32 %v3329_v24, %v984_v58  ;;  %v1471_v24 = vadd.f32 %v1442_v25, %v1261_v40  ;;  %v3095_v25 = vld [vmem:[%s4203_s2] ss:$0 sm:$0xff]  ;;  %v2177_v58 = vshrl.u32 %v2176_v42, 7 }
 0x136   : > { %v1245_v27 = vpop.f32.mrf.mxu0 }
 0x137   : > { %v1455_v31 = vpop.f32.mrf.mxu1  ;;  %v1264_v60 = vadd.f32 %v1245_v27, %v982_v1  ;;  %v1476_v22 = vadd.f32 %v3353_v26, %v1266_v15 }
 0x138   : > { %v3330_v34 = vpop.f32.mrf.mxu0 }
 0x139   : > { %v3354_v29 = vpop.f32.mrf.mxu1  ;;  %v1267_v8 = vadd.f32 %v3330_v34, %v985_v48  ;;  %v1474_v5 = vadd.f32 %v1455_v31, %v1264_v60 }
 0x13a   : > { %v1248_v32 = vpop.f32.mrf.mxu0 }
 0x13b   : > { %v1458_v9 = vpop.f32.mrf.mxu1  ;;  %v1265_v59 = vadd.f32 %v1248_v32, %v983_v61  ;;  %v1477_v50 = vadd.f32 %v3354_v29, %v1267_v8 }
 0x13d   : > { %v1475_v41 = vadd.f32 %v1458_v9, %v1265_v59 }
 0x14c   : > { %v3373_v33 = vpop.f32.mrf.mxu0 }
 0x14d   : > { %v3397_v35 = vpop.f32.mrf.mxu1 }
 0x14e   : > { %v1610_v36 = vpop.f32.mrf.mxu0 }
 0x14f   : > { %v1892_v10 = vpop.f32.mrf.mxu1  ;;  %v1641_v19 = vadd.f32 %v1610_v36, %v1470_v6 }
 0x150   : > { %v3374_v39 = vpop.f32.mrf.mxu0 }
 0x151   : > { %v4095_v38 = vpop.f32.mrf.mxu1 }
 0x152   : > { %4210 = vst [vmem:[#allocation3_spill] sm:$0xff] %v4095_v38  ;;  %v1613_v30 = vpop.f32.mrf.mxu0  ;;  %v1262_v38 = vadd.f32 %v3325_v17, %v980_v54 }
 0x153   : > { %v4097_v28 = vpop.f32.mrf.mxu1 }
 0x154   : > { %v3377_v51 = vpop.f32.mrf.mxu0  ;;  %v1472_v56 = vadd.f32 %v3349_v3, %v1262_v38  ;;  %v1644_v3 = vadd.f32 %v3374_v39, %v1473_v14  ;;  %v1642_v38 = vadd.f32 %v1613_v30, %v1471_v24 }
 0x155   : > { %v3401_v57 = vpop.f32.mrf.mxu1  ;;  %v1647_v12 = vadd.f32 %v3377_v51, %v1476_v22 }
 0x156   : > { %v1626_v37 = vpop.f32.mrf.mxu0  ;;  %v1643_v62 = vadd.f32 %v3373_v33, %v1472_v56  ;;  %v1923_v33 = vadd.f32 %v1892_v10, %v1641_v19  ;;  %v2175_v10 = vunpack.c.0.s8 %v2174_v20  ;;  %v1924_v30 = vadd.f32 %v4097_v28, %v1642_v38 }
 0x157   : > { %v1908_v23 = vpop.f32.mrf.mxu1  ;;  %v1645_v0 = vadd.f32 %v1626_v37, %v1474_v5  ;;  %v1929_v26 = vadd.f32 %v3401_v57, %v1647_v12 }
 0x158   : > { %v3378_v11 = vpop.f32.mrf.mxu0  ;;  %v1925_v7 = vadd.f32 %v3397_v35, %v1643_v62  ;;  %v4105_v13 = vsub.s32 %v2175_v10, %v2177_v58 }
 0x159   : > { %v3402_v17 = vpop.f32.mrf.mxu1  ;;  %v1648_v27 = vadd.f32 %v3378_v11, %v1477_v50  ;;  %v1927_v21 = vadd.f32 %v1908_v23, %v1645_v0  ;;  %v4212_v39 = vld [vmem:[#allocation3_spill] sm:$0xff] }
 0x15a   : > { %v1629_v16 = vpop.f32.mrf.mxu0  ;;  %v1926_v9 = vadd.f32 %v4212_v39, %v1644_v3 }
 0x15b   : > { %v1911_v18 = vpop.f32.mrf.mxu1  ;;  %v1646_v36 = vadd.f32 %v1629_v16, %v1475_v41  ;;  %v1930_v49 = vadd.f32 %v3402_v17, %v1648_v27 }
 0x15d   : > { %v1928_v43 = vadd.f32 %v1911_v18, %v1646_v36 }
 0x16c   : > { %v3421_v34 = vpop.f32.mrf.mxu0 }
 0x16d   : > { %v2135_v31 = vadd.f32 %v3421_v34, %v1925_v7  ;;  %v3425_v32 = vpop.f32.mrf.mxu1 }
 0x16e   : > { %v2139_v29 = vadd.f32 %v3425_v32, %v1929_v26  ;;  %v2102_v35 = vpop.f32.mrf.mxu0 }
 0x16f   : > { %v2133_v45 = vadd.f32 %v2102_v35, %v1923_v33  ;;  %v2118_v46 = vpop.f32.mrf.mxu1  ;;  %v2150_v55 = vadd.f32 %v3095_v25, %v2135_v31 }
 0x170   : > { %v2137_v51 = vadd.f32 %v2118_v46, %v1927_v21  ;;  %v3422_v54 = vpop.f32.mrf.mxu0  ;;  %v2154_v44 = vadd.f32 %v3095_v25, %v2139_v29 }
 0x171   : > { %v2136_v57 = vadd.f32 %v3422_v54, %v1926_v9  ;;  %v3426_v2 = vpop.f32.mrf.mxu1  ;;  %v2148_v15 = vadd.f32 %v3095_v25, %v2133_v45  ;;  %v2158_v53 = vmax.f32 %v2150_v55, 0.0 }
 0x172   : > { %v2140_v1 = vadd.f32 %v3426_v2, %v1930_v49  ;;  %v2105_v52 = vpop.f32.mrf.mxu0  ;;  %v2152_v23 = vadd.f32 %v3095_v25, %v2137_v51  ;;  %v2162_v61 = vmax.f32 %v2154_v44, 0.0 }
 0x173   : > { %v2151_v37 = vadd.f32 %v3095_v25, %v2136_v57  ;;  %v2134_v63 = vadd.f32 %v2105_v52, %v1924_v30  ;;  %v2121_v47 = vpop.f32.mrf.mxu1  ;;  %v2156_v11 = vmax.f32 %v2148_v15, 0.0 }
 0x174   : > { %v2155_v48 = vadd.f32 %v3095_v25, %v2140_v1  ;;  %v2138_v60 = vadd.f32 %v2121_v47, %v1928_v43  ;;  %v2160_v62 = vmax.f32 %v2152_v23, 0.0 }
 0x175   : > { %v2159_v56 = vmax.f32 %v2151_v37, 0.0  ;;  %v2149_v28 = vadd.f32 %v3095_v25, %v2134_v63 }
 0x176   : > { %v2163_v22 = vmax.f32 %v2155_v48, 0.0  ;;  %v2153_v8 = vadd.f32 %v3095_v25, %v2138_v60 }
 0x177   : > { %v2165_v6 = vmax.f32 %v2158_v53, %v2159_v56  ;;  %v2157_v40 = vmax.f32 %v2149_v28, 0.0 }
 0x178   : > { %v2167_v17 = vmax.f32 %v2162_v61, %v2163_v22  ;;  %v2161_v5 = vmax.f32 %v2153_v8, 0.0 }
 0x179   : > { %v2189_v59 = vcombine.high %v2165_v6, %v2165_v6  ;;  %v2196_v12 = vrot.slane %v2165_v6, %v4105_v13  ;;  %v4108_v14 = vmax.f32 %v2156_v11, %v2157_v40 }
 0x17a   : > { %v2223_v19 = vcombine.high %v2167_v17, %v2167_v17  ;;  %v2230_v50 = vrot.slane %v2167_v17, %v4105_v13  ;;  %v4111_v0 = vmax.f32 %v2160_v62, %v2161_v5 }
 0x17b   : > { %v2203_v16 = vrot.slane %v2189_v59, %v4105_v13  ;;  %v2204_v24 = vcombine.high %v2196_v12, %v2196_v12  ;;  %v2285_v7 = vsel %vm2256_vm6, %v2196_v12, -inf  ;;  %v2172_v3 = vcombine.high %v4108_v14, %v4108_v14 }
 0x17c   : > { %v2286_v18 = vrot.slane %v2285_v7, 4  ;;  %v2237_v41 = vrot.slane %v2223_v19, %v4105_v13  ;;  %v2238_v26 = vcombine.high %v2230_v50, %v2230_v50  ;;  %v2341_v27 = vsel %vm2256_vm6, %v2230_v50, -inf }
 0x17d   : > { %v2205_v34 = vcombine.high %v2203_v16, %v2203_v16  ;;  %v2292_v4 = vsel %vm2256_vm6, %v2204_v24, -inf  ;;  %v2299_v20 = vsel %vm2256_vm6, %v2203_v16, -inf  ;;  %v2342_v33 = vrot.slane %v2341_v27, 4 }
 0x17e   : > { %v2287_v38 = vmax.f32 %v2285_v7, %v2286_v18  ;;  %v2293_v31 = vrot.slane %v2292_v4, 4  ;;  %v2300_v32 = vrot.slane %v2299_v20, 4  ;;  %v2239_v42 = vcombine.high %v2237_v41, %v2237_v41 }
 0x17f   : > { %v2306_v21 = vsel %vm2256_vm6, %v2205_v34, -inf  ;;  %v2343_v36 = vmax.f32 %v2341_v27, %v2342_v33  ;;  %v2348_v25 = vsel %vm2256_vm6, %v2238_v26, -inf  ;;  %v2355_v29 = vsel %vm2256_vm6, %v2237_v41, -inf }
 0x180   : > { %v2288_v35 = vrot.slane %v2287_v38, 2  ;;  %v2294_v39 = vmax.f32 %v2292_v4, %v2293_v31  ;;  %v2301_v9 = vmax.f32 %v2299_v20, %v2300_v32  ;;  %v2307_v45 = vrot.slane %v2306_v21, 4 }
 0x181   : > { %v2344_v46 = vrot.slane %v2343_v36, 2  ;;  %v2349_v49 = vrot.slane %v2348_v25, 4  ;;  %v2356_v51 = vrot.slane %v2355_v29, 4  ;;  %v2362_v54 = vsel %vm2256_vm6, %v2239_v42, -inf }
 0x182   : > { %v2289_v10 = vmax.f32 %v2287_v38, %v2288_v35  ;;  %v2295_v30 = vrot.slane %v2294_v39, 2  ;;  %v2302_v55 = vrot.slane %v2301_v9, 2  ;;  %v2308_v57 = vmax.f32 %v2306_v21, %v2307_v45 }
 0x183   : > { %v2345_v58 = vmax.f32 %v2343_v36, %v2344_v46  ;;  %v2350_v2 = vmax.f32 %v2348_v25, %v2349_v49  ;;  %v2357_v43 = vmax.f32 %v2355_v29, %v2356_v51  ;;  %v2363_v44 = vrot.slane %v2362_v54, 4 }
 0x184   : > { %v2290_v1 = vrot.slane %v2289_v10, 1  ;;  %v2296_v52 = vmax.f32 %v2294_v39, %v2295_v30  ;;  %v2303_v15 = vmax.f32 %v2301_v9, %v2302_v55  ;;  %v2309_v37 = vrot.slane %v2308_v57, 2 }
 0x185   : > { %v2346_v63 = vrot.slane %v2345_v58, 1  ;;  %v2351_v47 = vrot.slane %v2350_v2, 2  ;;  %v2358_v23 = vrot.slane %v2357_v43, 2  ;;  %v2364_v48 = vmax.f32 %v2362_v54, %v2363_v44 }
 0x186   : > { %v2291_v60 = vmax.f32 %v2289_v10, %v2290_v1  ;;  %v2297_v53 = vrot.slane %v2296_v52, 1  ;;  %v2304_v56 = vrot.slane %v2303_v15, 1  ;;  %v2310_v28 = vmax.f32 %v2308_v57, %v2309_v37 }
 0x187   : > { %v2347_v61 = vmax.f32 %v2345_v58, %v2346_v63  ;;  %v2352_v22 = vmax.f32 %v2350_v2, %v2351_v47  ;;  %v2359_v8 = vmax.f32 %v2357_v43, %v2358_v23  ;;  %v2365_v11 = vrot.slane %v2364_v48, 2 }
 0x188   : > { %v2298_v6 = vmax.f32 %v2296_v52, %v2297_v53  ;;  %v2305_v40 = vmax.f32 %v2303_v15, %v2304_v56  ;;  %v2311_v62 = vrot.slane %v2310_v28, 1  ;;  %v2373_v17 = vpack.c.bf16 %v2291_v60, %v2291_v60 }
 0x189   : > { %v2353_v5 = vrot.slane %v2352_v22, 1  ;;  %v2360_v59 = vrot.slane %v2359_v8, 1  ;;  %v2366_v12 = vmax.f32 %v2364_v48, %v2365_v11  ;;  %v2381_v19 = vpack.c.bf16 %v2347_v61, %v2347_v61 }
 0x18a   : > { %v2312_v50 = vmax.f32 %v2310_v28, %v2311_v62  ;;  %v2374_v16 = vpack.c.bf16 %v2298_v6, %v2298_v6  ;;  %v2375_v24 = vpack.c.bf16 %v2305_v40, %v2305_v40  ;;  %v2435_v7 = vrot.slane %v2373_v17, %v4105_v13 }
 0x18b   : > { %v2354_v18 = vmax.f32 %v2352_v22, %v2353_v5  ;;  %v2361_v41 = vmax.f32 %v2359_v8, %v2360_v59  ;;  %v2367_v26 = vrot.slane %v2366_v12, 1  ;;  %v2491_v27 = vrot.slane %v2381_v19, %v4105_v13 }
 0x18c   : > { %v2376_v34 = vpack.c.bf16 %v2312_v50, %v2312_v50  ;;  %v2442_v4 = vrot.slane %v2374_v16, %v4105_v13  ;;  %v2449_v20 = vrot.slane %v2375_v24, %v4105_v13  ;;  %v2547_v33 = vrot.slane %v2435_v7, %v4105_v13 }
 0x18d   : > { %v2368_v38 = vmax.f32 %v2366_v12, %v2367_v26  ;;  %v2382_v31 = vpack.c.bf16 %v2354_v18, %v2354_v18  ;;  %v2383_v32 = vpack.c.bf16 %v2361_v41, %v2361_v41  ;;  %v2603_v42 = vrot.slane %v2491_v27, %v4105_v13 }
 0x18e   : > { %v2456_v21 = vrot.slane %v2376_v34, %v4105_v13  ;;  %v2554_v36 = vrot.slane %v2442_v4, %v4105_v13  ;;  %v2561_v25 = vrot.slane %v2449_v20, %v4105_v13  ;;  %v2629_v29 = vunpack.c.l.b16 %v2547_v33 }
 0x18f   : > { %v2384_v35 = vpack.c.bf16 %v2368_v38, %v2368_v38  ;;  %v2498_v39 = vrot.slane %v2382_v31, %v4105_v13  ;;  %v2505_v9 = vrot.slane %v2383_v32, %v4105_v13  ;;  %v2637_v45 = vunpack.c.l.b16 %v2603_v42 }
 0x190   : > { %v2568_v46 = vrot.slane %v2456_v21, %v4105_v13  ;;  %v2630_v49 = vunpack.c.l.b16 %v2554_v36  ;;  %v2631_v51 = vunpack.c.l.b16 %v2561_v25  ;;  %v2179_v54 = vrot.slane %v4108_v14, %v4105_v13 }
 0x191   : > { %v2512_v10 = vrot.slane %v2384_v35, %v4105_v13  ;;  %v2610_v30 = vrot.slane %v2498_v39, %v4105_v13  ;;  %v2617_v55 = vrot.slane %v2505_v9, %v4105_v13  ;;  %v2186_v57 = vrot.slane %v2172_v3, %v4105_v13 }
 0x192   : > { %v2632_v58 = vunpack.c.l.b16 %v2568_v46  ;;  %v2650_v2 = vrot.slane %v2630_v49, 7  ;;  %v2652_v43 = vrot.slane %v2631_v51, 6  ;;  %v2187_v44 = vcombine.high %v2179_v54, %v2179_v54 }
 0x193   : > { %v2624_v1 = vrot.slane %v2512_v10, %v4105_v13  ;;  %v2638_v52 = vunpack.c.l.b16 %v2610_v30  ;;  %v2639_v15 = vunpack.c.l.b16 %v2617_v55  ;;  %v2188_v37 = vcombine.high %v2186_v57, %v2186_v57 }
 0x194   : > { %v2651_v63 = vsel %vm2642_vm7, %v2650_v2, %v2629_v29  ;;  %v2654_v47 = vrot.slane %v2632_v58, 5  ;;  %v2257_v23 = vsel %vm2256_vm6, %v2179_v54, -inf  ;;  %v2264_v48 = vsel %vm2256_vm6, %v2187_v44, -inf }
 0x195   : > { %v2653_v14 = vsel %vm2645_vm8, %v2652_v43, %v2651_v63  ;;  %v2640_v3 = vunpack.c.l.b16 %v2624_v1  ;;  %v2662_v60 = vrot.slane %v2638_v52, 7  ;;  %v2664_v53 = vrot.slane %v2639_v15, 6 }
 0x196   : > { %v2655_v56 = vsel %vm2648_vm9, %v2654_v47, %v2653_v14  ;;  %v2258_v28 = vrot.slane %v2257_v23, 4  ;;  %v2265_v61 = vrot.slane %v2264_v48, 4  ;;  %v2271_v22 = vsel %vm2256_vm6, %v2186_v57, -inf }
 0x197   : > { %v2669_v8 = vpack.c.b16 %v2655_v56, %v2655_v56  ;;  %v2663_v11 = vsel %vm2642_vm7, %v2662_v60, %v2637_v45  ;;  %v2666_v6 = vrot.slane %v2640_v3, 5  ;;  %v2272_v40 = vrot.slane %v2271_v22, 4 }
 0x198   : > { %v2665_v62 = vsel %vm2645_vm8, %v2664_v53, %v2663_v11  ;;  %v2259_v17 = vmax.f32 %v2257_v23, %v2258_v28  ;;  %v2266_v5 = vmax.f32 %v2264_v48, %v2265_v61  ;;  %v2278_v59 = vsel %vm2256_vm6, %v2188_v37, -inf }
 0x199   : > { %3097 = vst.sshfl [vmem:[%s4155_s13 + $0x2] sm:$0x3 pattern:$0x76325410] %v2669_v8  ;;  %v2667_v12 = vsel %vm2648_vm9, %v2666_v6, %v2665_v62  ;;  %v2273_v19 = vmax.f32 %v2271_v22, %v2272_v40  ;;  %v2279_v50 = vrot.slane %v2278_v59, 4  ;;  %v2206_v16 = vcombine.high %v4111_v0, %v4111_v0 }
 0x19a   : > { %v2671_v24 = vpack.c.b16 %v2667_v12, %v2667_v12  ;;  %v2260_v7 = vrot.slane %v2259_v17, 2  ;;  %v2267_v18 = vrot.slane %v2266_v5, 2  ;;  %v2213_v41 = vrot.slane %v4111_v0, %v4105_v13 }
 0x19b   : > { %v2274_v26 = vrot.slane %v2273_v19, 2  ;;  %v2280_v27 = vmax.f32 %v2278_v59, %v2279_v50  ;;  %v2220_v34 = vrot.slane %v2206_v16, %v4105_v13 }
 0x19c   : > { %3099 = vst.sshfl [vmem:[%s4155_s13 + $0x6] sm:$0x3 pattern:$0x76325410] %v2671_v24  ;;  %v2261_v4 = vmax.f32 %v2259_v17, %v2260_v7  ;;  %v2268_v20 = vmax.f32 %v2266_v5, %v2267_v18  ;;  %v2221_v33 = vcombine.high %v2213_v41, %v2213_v41  ;;  %v2313_v38 = vsel %vm2256_vm6, %v2213_v41, -inf }
 0x19d   : > { %v2275_v31 = vmax.f32 %v2273_v19, %v2274_v26  ;;  %v2281_v32 = vrot.slane %v2280_v27, 2  ;;  %v2222_v42 = vcombine.high %v2220_v34, %v2220_v34  ;;  %v2314_v21 = vrot.slane %v2313_v38, 4 }
 0x19e   : > { %v2262_v36 = vrot.slane %v2261_v4, 1  ;;  %v2269_v25 = vrot.slane %v2268_v20, 1  ;;  %v2320_v29 = vsel %vm2256_vm6, %v2221_v33, -inf  ;;  %v2327_v0 = vsel %vm2256_vm6, %v2220_v34, -inf }
 0x19f   : > { %v2276_v35 = vrot.slane %v2275_v31, 1  ;;  %v2282_v39 = vmax.f32 %v2280_v27, %v2281_v32  ;;  %v2315_v9 = vmax.f32 %v2313_v38, %v2314_v21  ;;  %v2321_v45 = vrot.slane %v2320_v29, 4 }
 0x1a0   : > { %v2263_v46 = vmax.f32 %v2261_v4, %v2262_v36  ;;  %v2270_v49 = vmax.f32 %v2268_v20, %v2269_v25  ;;  %v2328_v51 = vrot.slane %v2327_v0, 4  ;;  %v2334_v54 = vsel %vm2256_vm6, %v2222_v42, -inf }
 0x1a1   : > { %v2277_v10 = vmax.f32 %v2275_v31, %v2276_v35  ;;  %v2283_v30 = vrot.slane %v2282_v39, 1  ;;  %v2316_v55 = vrot.slane %v2315_v9, 2  ;;  %v2322_v57 = vmax.f32 %v2320_v29, %v2321_v45 }
 0x1a2   : > { %v2369_v58 = vpack.c.bf16 %v2263_v46, %v2263_v46  ;;  %v2370_v2 = vpack.c.bf16 %v2270_v49, %v2270_v49  ;;  %v2329_v43 = vmax.f32 %v2327_v0, %v2328_v51  ;;  %v2335_v44 = vrot.slane %v2334_v54, 4 }
 0x1a3   : > { %v2284_v1 = vmax.f32 %v2282_v39, %v2283_v30  ;;  %v2371_v52 = vpack.c.bf16 %v2277_v10, %v2277_v10  ;;  %v2317_v15 = vmax.f32 %v2315_v9, %v2316_v55  ;;  %v2323_v37 = vrot.slane %v2322_v57, 2 }
 0x1a4   : > { %v2407_v63 = vrot.slane %v2369_v58, %v4105_v13  ;;  %v2414_v47 = vrot.slane %v2370_v2, %v4105_v13  ;;  %v2330_v23 = vrot.slane %v2329_v43, 2  ;;  %v2336_v48 = vmax.f32 %v2334_v54, %v2335_v44 }
 0x1a5   : > { %v2372_v14 = vpack.c.bf16 %v2284_v1, %v2284_v1  ;;  %v2421_v3 = vrot.slane %v2371_v52, %v4105_v13  ;;  %v2318_v60 = vrot.slane %v2317_v15, 1  ;;  %v2324_v53 = vmax.f32 %v2322_v57, %v2323_v37 }
 0x1a6   : > { %v2519_v56 = vrot.slane %v2407_v63, %v4105_v13  ;;  %v2526_v28 = vrot.slane %v2414_v47, %v4105_v13  ;;  %v2331_v61 = vmax.f32 %v2329_v43, %v2330_v23  ;;  %v2337_v22 = vrot.slane %v2336_v48, 2 }
 0x1a7   : > { %v2428_v8 = vrot.slane %v2372_v14, %v4105_v13  ;;  %v2533_v11 = vrot.slane %v2421_v3, %v4105_v13  ;;  %v2319_v6 = vmax.f32 %v2317_v15, %v2318_v60  ;;  %v2325_v40 = vrot.slane %v2324_v53, 1 }
 0x1a8   : > { %v2626_v62 = vunpack.c.l.b16 %v2526_v28  ;;  %v2332_v17 = vrot.slane %v2331_v61, 1  ;;  %v2338_v5 = vmax.f32 %v2336_v48, %v2337_v22  ;;  %v2625_v16 = vunpack.c.l.b16 %v2519_v56 }
 0x1a9   : > { %v2540_v59 = vrot.slane %v2428_v8, %v4105_v13  ;;  %v2627_v12 = vunpack.c.l.b16 %v2533_v11  ;;  %v2326_v19 = vmax.f32 %v2324_v53, %v2325_v40  ;;  %v2377_v50 = vpack.c.bf16 %v2319_v6, %v2319_v6 }
 0x1aa   : > { %v2641_v24 = vrot.slane %v2626_v62, 7  ;;  %v2333_v7 = vmax.f32 %v2331_v61, %v2332_v17  ;;  %v2339_v18 = vrot.slane %v2338_v5, 1 }
 0x1ab   : > { %v2628_v41 = vunpack.c.l.b16 %v2540_v59  ;;  %v2644_v26 = vrot.slane %v2627_v12, 6  ;;  %v2378_v27 = vpack.c.bf16 %v2326_v19, %v2326_v19  ;;  %v2463_v34 = vrot.slane %v2377_v50, %v4105_v13 }
 0x1ac   : > { %v2643_v4 = vsel %vm2642_vm7, %v2641_v24, %v2625_v16  ;;  %v2340_v20 = vmax.f32 %v2338_v5, %v2339_v18  ;;  %v2379_v33 = vpack.c.bf16 %v2333_v7, %v2333_v7 }
 0x1ad   : > { %v2646_v38 = vsel %vm2645_vm8, %v2644_v26, %v2643_v4  ;;  %v2647_v31 = vrot.slane %v2628_v41, 5  ;;  %v2470_v32 = vrot.slane %v2378_v27, %v4105_v13  ;;  %v2575_v25 = vrot.slane %v2463_v34, %v4105_v13 }
 0x1ae   : > { %v2380_v42 = vpack.c.bf16 %v2340_v20, %v2340_v20  ;;  %v2477_v21 = vrot.slane %v2379_v33, %v4105_v13 }
 0x1af   : > { %v2649_v36 = vsel %vm2648_vm9, %v2647_v31, %v2646_v38  ;;  %v2582_v29 = vrot.slane %v2470_v32, %v4105_v13  ;;  %v2633_v49 = vunpack.c.l.b16 %v2575_v25 }
 0x1b0   : > { %v2668_v0 = vpack.c.b16 %v2649_v36, %v2649_v36  ;;  %v2484_v35 = vrot.slane %v2380_v42, %v4105_v13  ;;  %v2589_v39 = vrot.slane %v2477_v21, %v4105_v13 }
 0x1b1   : > { %v2634_v9 = vunpack.c.l.b16 %v2582_v29 }
 0x1b2   : > { %3096 = vst.sshfl [vmem:[%s4155_s13] sm:$0x3 pattern:$0x76325410] %v2668_v0  ;;  %v2596_v45 = vrot.slane %v2484_v35, %v4105_v13  ;;  %v2635_v46 = vunpack.c.l.b16 %v2589_v39 }
 0x1b3   : > { %v2656_v51 = vrot.slane %v2634_v9, 7 }
 0x1b4   : > { %v2636_v54 = vunpack.c.l.b16 %v2596_v45  ;;  %v2658_v10 = vrot.slane %v2635_v46, 6 }
 0x1b5   : > { %v2657_v30 = vsel %vm2642_vm7, %v2656_v51, %v2633_v49 }
 0x1b6   : > { %v2659_v55 = vsel %vm2645_vm8, %v2658_v10, %v2657_v30  ;;  %v2660_v57 = vrot.slane %v2636_v54, 5 }
 0x1b8   : > { %v2661_v58 = vsel %vm2648_vm9, %v2660_v57, %v2659_v55 }
 0x1b9   : > { %v2670_v2 = vpack.c.b16 %v2661_v58, %v2661_v58 }
 0x1bb   : > { %3098 = vst.sshfl [vmem:[%s4155_s13 + $0x4] sm:$0x3 pattern:$0x76325410] %v2670_v2 }
 0x1bc PF: > { %s13_s12 = sadd.s32 1, %s3543_s12  }
 0x1bd   : > { %p10_p4 = scmp.ge.s32.totalorder %s13_s12, 4  }
 0x1bf   :  { %12 = sbr.rel (!%p10_p4) target bundleno = 1 (0x1), region = 72 }

// kernel: simple_cnn_forward.4
= control target key start
LH: loop header
LB: loop body
LE: loop exit
PB: predicated region body
PF: predicated region fallthrough
CT: control target
= control target key end

     0   :  { %s7888_s12 = smov 0   ;;  %s10717_s0 = inlined_call_operand.vmem [shape: bf16[2,18,18,128], index: 0, kind: input, shape index: {}]   ;;  %s10718_s1 = inlined_call_operand.vmem [shape: bf16[9,128,128], index: 1, kind: input, shape index: {}]   ;;  %s10719_s2 = inlined_call_operand.vmem [shape: f32[1,128], index: 2, kind: input, shape index: {}]   ;;  %s10720_s3 = inlined_call_operand.vmem [shape: bf16[2,8,8,128], index: 3, kind: output, shape index: {}]  }
   0x1 LB: > { %s6331_s13 = sadd.s32 4294967295, %s7865_s12   ;;  %p6335_p0 = scmp.ge.s32.totalorder %s7865_s12, 1  ;;  %s7865_s12 = sphi %s7888_s12, %s13_s12  }
   0x2   : > { %p137_p1 = scmp.lt.s32.totalorder %s7865_s12, 3 }
   0x4   : > { %p138_p2 = pnand %p6335_p0, %p137_p1 }
   0x6   : > { %141 = sbr.rel (%p138_p2) target bundleno = 724 (0x2d4), region = 32 }
   0xb   : > { %v7729_v0 = vld [vmem:[%s10718_s1 + $0x78] sm:$0xff]   ;;  %p161_p3 = scmp.lt.s32.totalorder %s6331_s13, 1  ;;  %v7730_v1 = vld [vmem:[%s10718_s1 + $0x70] sm:$0xff]   ;;  %v7731_v2 = vld [vmem:[%s10718_s1 + $0x68] sm:$0xff]   ;;  %vm236_vm0 = vsmask.f32 3328 }
   0xc   : > { %7271 = vmatprep.subr.bf16.mxu0 %v7729_v0  ;;  %7703 = vmatprep.subr.bf16.mxu1 %v7729_v0  ;;  %v7732_v3 = vld [vmem:[%s10718_s1 + $0x60] sm:$0xff]   ;;  %vm237_vm1 = vsmask.f32 7440  ;;  %v7733_v17 = vld [vmem:[%s10718_s1 + $0x58] sm:$0xff]   ;;  %v7734_v33 = vld [vmem:[%s10718_s1 + $0x50] sm:$0xff]   ;;  %vm1266_vm3 = vcmask 1042432  }
   0xd   : > { %s10883_s13 = smov (!%p161_p3, %s6331_s13), 1  ;;  %7272 = vmatpush3.bf16.msra.mxu0 %v7729_v0  ;;  %7711 = vmatpush3.bf16.msra.mxu1 %v7729_v0  ;;  %vm7942_vm2 = vmor %vm236_vm0, %vm237_vm1  ;;  %v7735_v58 = vld [vmem:[%s10718_s1 + $0x48] sm:$0xff]   ;;  %vm1267_vm4 = vcmask 1046532   ;;  %vm5420_vm6 = vcmask 1041408   ;;  %vm6189_vm7 = vcmask 1041409   ;;  %vm6191_vm8 = vcmask 1042434  }
   0xe   : > { %7273 = vmatprep.subr.bf16.mxu0 %v7730_v1  ;;  %7704 = vmatprep.subr.bf16.mxu1 %v7730_v1  ;;  %s7719_s20 = smul.u32 216, %s10883_s13  ;;  %vm8253_vm5 = vmor %vm1266_vm3, %vm1267_vm4  ;;  %vm6193_vm9 = vcmask 1043459   ;;  %vm6195_vm10 = vcmask 1044484   ;;  %vm6197_vm11 = vcmask 1045509   ;;  %vm6199_vm12 = vcmask 1046534   ;;  %s6990_s18 = sshll.u32 %s10883_s13, 5 }
   0xf   : > { %vm6201_vm13 = vcmask 1047559  }
  0x10   : > { %s7911_s23 = scalar_lea.vmem %s10717_s0, %s7719_s20  ;;  %s10487_s20 = scalar_lea.vmem %s10720_s3, %s6990_s18 }
  0x11   : > { %7274 = vmatpush3.bf16.msra.mxu0 %v7730_v1  ;;  %7712 = vmatpush3.bf16.msra.mxu1 %v7730_v1  ;;  %v7917_v4 = vld [vmem:[%s7911_s23] sm:$0xf]  ;;  %v7920_v5 = vld [vmem:[%s7911_s23 + $0x4] sm:$0xf]  ;;  %v7923_v6 = vld [vmem:[%s7911_s23 + $0x8] sm:$0x1] }
  0x12   : > { %7275 = vmatprep.subr.bf16.mxu0 %v7731_v2  ;;  %7705 = vmatprep.subr.bf16.mxu1 %v7731_v2  ;;  %v240_v7 = vshrl.u32 %v7917_v4, 16  ;;  %v243_v8 = vshll.u32 %v7917_v4, 16  ;;  %v249_v9 = vshll.u32 %v7920_v5, 16  ;;  %v253_v10 = vshrl.u32 %v7920_v5, 16  ;;  %v188_v12 = vld [vmem:[%s7911_s23 + $0x60] sm:$0xf] }
  0x13   : > { %v259_v11 = vshll.u32 %v7923_v6, 16  ;;  %v189_v15 = vld [vmem:[%s7911_s23 + $0x64] sm:$0xf]  ;;  %v228_v16 = vld [vmem:[%s7911_s23 + $0x68] sm:$0x1]  ;;  %v432_v21 = vshrl.u32 %v188_v12, 16 }
  0x14   : > { %v242_v13 = vrot.slane %v240_v7, 4  ;;  %v245_v14 = vrot.slane %v243_v8, 5  ;;  %v251_v18 = vrot.slane %v249_v9, 5  ;;  %v255_v19 = vrot.slane %v253_v10, 4  ;;  %v7938_v26 = vld [vmem:[%s7911_s23 + $0xc] sm:$0xf] }
  0x15   : > { %7276 = vmatpush3.bf16.msra.mxu0 %v7731_v2  ;;  %7713 = vmatpush3.bf16.msra.mxu1 %v7731_v2  ;;  %v435_v23 = vshll.u32 %v188_v12, 16  ;;  %v441_v24 = vshll.u32 %v189_v15, 16  ;;  %v445_v25 = vshrl.u32 %v189_v15, 16  ;;  %v261_v29 = vrot.slane %v259_v11, 5  ;;  %v7947_v32 = vld [vmem:[%s7911_s23 + $0x10] sm:$0xf] }
  0x16   : > { %7277 = vmatprep.subr.bf16.mxu0 %v7732_v3  ;;  %7706 = vmatprep.subr.bf16.mxu1 %v7732_v3  ;;  %v246_v22 = vor.u32 %v245_v14, %v242_v13  ;;  %v256_v28 = vor.u32 %v255_v19, %v251_v18  ;;  %v434_v30 = vrot.slane %v432_v21, 4  ;;  %v451_v31 = vshll.u32 %v228_v16, 16  ;;  %v7953_v40 = vld [vmem:[%s7911_s23 + $0x14] sm:$0x1]  ;;  %v190_v47 = vld [vmem:[%s7911_s23 + $0x6c] sm:$0xf] }
  0x17   : > { %v437_v35 = vrot.slane %v435_v23, 5  ;;  %v443_v36 = vrot.slane %v441_v24, 5  ;;  %v447_v37 = vrot.slane %v445_v25, 4  ;;  %v264_v41 = vshrl.u32 %v7938_v26, 16  ;;  %v191_v52 = vld [vmem:[%s7911_s23 + $0x70] sm:$0xf] }
  0x18   : > { %v247_v34 = vrot.slane %v246_v22, 4  ;;  %v257_v38 = vrot.slane %v256_v28, 4  ;;  %v453_v39 = vrot.slane %v451_v31, 5  ;;  %v267_v42 = vshll.u32 %v7938_v26, 16  ;;  %v229_v57 = vld [vmem:[%s7911_s23 + $0x74] sm:$0x1] }
  0x19   : > { %7278 = vmatpush3.bf16.msra.mxu0 %v7732_v3  ;;  %7714 = vmatpush3.bf16.msra.mxu1 %v7732_v3  ;;  %v438_v44 = vor.u32 %v437_v35, %v434_v30  ;;  %v448_v45 = vor.u32 %v447_v37, %v443_v36  ;;  %v273_v46 = vshll.u32 %v7947_v32, 16  ;;  %v266_v49 = vrot.slane %v264_v41, 4  ;;  %v7976_v14 = vld [vmem:[%s7911_s23 + $0x18] sm:$0xf]  ;;  %v7736_v15 = vld [vmem:[%s10718_s1 + $0x40] sm:$0xff]  }
  0x1a   : > { %7279 = vmatprep.subr.bf16.mxu0 %v7733_v17  ;;  %7707 = vmatprep.subr.bf16.mxu1 %v7733_v17  ;;  %v252_v43 = vsel %vm7942_vm2, %v247_v34, %v251_v18  ;;  %v262_v48 = vsel %vm7942_vm2, %v257_v38, %v261_v29  ;;  %v269_v50 = vrot.slane %v267_v42, 5  ;;  %v277_v51 = vshrl.u32 %v7947_v32, 16  ;;  %v7984_v19 = vld [vmem:[%s7911_s23 + $0x1c] sm:$0xf]  ;;  %v7989_v25 = vld [vmem:[%s7911_s23 + $0x20] sm:$0x1] }
  0x1b   : > { %v6355_v53 = vcombine.low %v252_v43, %v262_v48  ;;  %v439_v54 = vrot.slane %v438_v44, 4  ;;  %v449_v55 = vrot.slane %v448_v45, 4  ;;  %v275_v56 = vrot.slane %v273_v46, 5  ;;  %v192_v34 = vld [vmem:[%s7911_s23 + $0x78] sm:$0xf] }
  0x1c   : > { %v270_v59 = vor.u32 %v269_v50, %v266_v49  ;;  %v279_v60 = vrot.slane %v277_v51, 4  ;;  %v283_v61 = vshll.u32 %v7953_v40, 16  ;;  %v456_v1 = vshrl.u32 %v190_v47, 16  ;;  %v7737_v41 = vld [vmem:[%s10718_s1 + $0x38] sm:$0xff]   ;;  %v230_v49 = vld [vmem:[%s7911_s23 + $0x80] sm:$0x1] }
  0x1d   : > { %7280 = vmatpush3.bf16.msra.mxu0 %v7733_v17  ;;  %7715 = vmatpush3.bf16.msra.mxu1 %v7733_v17  ;;  %v444_v63 = vsel %vm7942_vm2, %v439_v54, %v443_v36  ;;  %v454_v0 = vsel %vm7942_vm2, %v449_v55, %v453_v39  ;;  %v459_v2 = vshll.u32 %v190_v47, 16  ;;  %v465_v12 = vshll.u32 %v191_v52, 16  ;;  %v7998_v39 = vld [vmem:[%s7911_s23 + $0x7c] sm:$0xf] }
  0x1e   : > { %7281 = vmatprep.subr.bf16.mxu0 %v7734_v33  ;;  %7708 = vmatprep.subr.bf16.mxu1 %v7734_v33  ;;  %v6363_v3 = vcombine.low %v444_v63, %v454_v0  ;;  %v271_v7 = vrot.slane %v270_v59, 4  ;;  %v280_v8 = vor.u32 %v279_v60, %v275_v56  ;;  %v285_v9 = vrot.slane %v283_v61, 5  ;;  %v7738_v42 = vld [vmem:[%s10718_s1 + $0xb8] sm:$0xff]   ;;  %v7740_v59 = vld [vmem:[%s10718_s1 + $0xb0] sm:$0xff]   ;;  %v8025_v0 = vld [vmem:[%s7911_s23 + $0x28] sm:$0xf] }
  0x1f   : > { %7287 = vmatprep.mubr.bf16.mxu0 %v6355_v53  ;;  %v458_v10 = vrot.slane %v456_v1, 4  ;;  %v461_v11 = vrot.slane %v459_v2, 5  ;;  %v469_v13 = vshrl.u32 %v191_v52, 16  ;;  %v475_v18 = vshll.u32 %v229_v57, 16  ;;  %v7739_v52 = vld [vmem:[%s10718_s1 + $0x30] sm:$0xff]  }
  0x20   : > { %v276_v16 = vsel %vm7942_vm2, %v271_v7, %v275_v56  ;;  %v281_v17 = vrot.slane %v280_v8, 4  ;;  %7303 = vmatprep.mubr.bf16.mxu1 %v6363_v3  ;;  %v467_v23 = vrot.slane %v465_v12, 5  ;;  %v288_v28 = vshrl.u32 %v7976_v14, 16  ;;  %v8016_v57 = vld [vmem:[%s7911_s23 + $0x24] sm:$0xf] }
  0x21   : > { %7282 = vmatpush3.bf16.msra.mxu0 %v7734_v33  ;;  %7716 = vmatpush3.bf16.msra.mxu1 %v7734_v33  ;;  %v462_v22 = vor.u32 %v461_v11, %v458_v10  ;;  %v471_v24 = vrot.slane %v469_v13, 4  ;;  %v477_v30 = vrot.slane %v475_v18, 5  ;;  %v291_v31 = vshll.u32 %v7976_v14, 16  ;;  %v8028_v8 = vld [vmem:[%s7911_s23 + $0x2c] sm:$0x1] }
  0x22   : > { %7283 = vmatprep.subr.bf16.mxu0 %v7735_v58  ;;  %7709 = vmatprep.subr.bf16.mxu1 %v7735_v58  ;;  %v286_v29 = vsel %vm7942_vm2, %v281_v17, %v285_v9  ;;  %v297_v33 = vshll.u32 %v7984_v19, 16  ;;  %v290_v38 = vrot.slane %v288_v28, 4  ;;  %v301_v45 = vshrl.u32 %v7984_v19, 16  ;;  %v8032_v13 = vld [vmem:[%s7911_s23 + $0x84] sm:$0xf] }
  0x23   : > { %v6356_v35 = vcombine.low %v276_v16, %v286_v29  ;;  %v463_v36 = vrot.slane %v462_v22, 4  ;;  %v472_v37 = vor.u32 %v471_v24, %v467_v23  ;;  %v293_v43 = vrot.slane %v291_v31, 5  ;;  %v8039_v22 = vld [vmem:[%s7911_s23 + $0x88] sm:$0xf] }
  0x24   : > { %v299_v44 = vrot.slane %v297_v33, 5  ;;  %v307_v46 = vshll.u32 %v7989_v25, 16  ;;  %v480_v50 = vshrl.u32 %v192_v34, 16  ;;  %v483_v51 = vshll.u32 %v192_v34, 16 }
  0x25   : > { %7284 = vmatpush3.bf16.msra.mxu0 %v7735_v58  ;;  %7717 = vmatpush3.bf16.msra.mxu1 %v7735_v58  ;;  %v468_v47 = vsel %vm7942_vm2, %v463_v36, %v467_v23  ;;  %v473_v48 = vrot.slane %v472_v37, 4  ;;  %v294_v53 = vor.u32 %v293_v43, %v290_v38  ;;  %v303_v54 = vrot.slane %v301_v45, 4  ;;  %v8048_v36 = vld [vmem:[%s7911_s23 + $0x8c] sm:$0x1] }
  0x26   : > { %7285 = vmatprep.subr.bf16.mxu0 %v7736_v15  ;;  %7710 = vmatprep.subr.bf16.mxu1 %v7736_v15  ;;  %v309_v55 = vrot.slane %v307_v46, 5  ;;  %v489_v56 = vshll.u32 %v7998_v39, 16  ;;  %v482_v60 = vrot.slane %v480_v50, 4  ;;  %v485_v61 = vrot.slane %v483_v51, 5  ;;  %v7742_v37 = vld [vmem:[%s10718_s1 + $0xa8] sm:$0xff]  }
  0x27   : > { %v478_v58 = vsel %vm7942_vm2, %v473_v48, %v477_v30  ;;  %v493_v63 = vshrl.u32 %v7998_v39, 16  ;;  %v295_v2 = vrot.slane %v294_v53, 4  ;;  %v304_v3 = vor.u32 %v303_v54, %v299_v44  ;;  %v7741_v30 = vld [vmem:[%s10718_s1 + $0x28] sm:$0xff]   ;;  %v8063_v53 = vld [vmem:[%s7911_s23 + $0x30] sm:$0xf] }
  0x28   : > { %v6364_v1 = vcombine.low %v468_v47, %v478_v58  ;;  %v491_v7 = vrot.slane %v489_v56, 5  ;;  %v486_v9 = vor.u32 %v485_v61, %v482_v60  ;;  %v499_v11 = vshll.u32 %v230_v49, 16  ;;  %v8072_v60 = vld [vmem:[%s7911_s23 + $0x34] sm:$0xf] }
  0x29   : > { %7286 = vmatpush3.bf16.msra.mxu0 %v7736_v15  ;;  %7718 = vmatpush3.bf16.msra.mxu1 %v7736_v15  ;;  %v495_v10 = vrot.slane %v493_v63, 4  ;;  %v312_v12 = vshrl.u32 %v8016_v57, 16  ;;  %v300_v15 = vsel %vm7942_vm2, %v295_v2, %v299_v44  ;;  %v305_v16 = vrot.slane %v304_v3, 4 }
  0x2a   : > { %7319 = vmatprep.subr.bf16.mxu1 %v7737_v41  ;;  %7367 = vmatprep.subr.bf16.mxu0 %v7738_v42  ;;  %v315_v17 = vshll.u32 %v8016_v57, 16  ;;  %v321_v18 = vshll.u32 %v8025_v0, 16  ;;  %v487_v23 = vrot.slane %v486_v9, 4  ;;  %v501_v28 = vrot.slane %v499_v11, 5 }
  0x2b   : > { %v496_v24 = vor.u32 %v495_v10, %v491_v7  ;;  %v314_v29 = vrot.slane %v312_v12, 4  ;;  %v310_v31 = vsel %vm7942_vm2, %v305_v16, %v309_v55  ;;  %v331_v43 = vshll.u32 %v8028_v8, 16  ;;  %v8080_v16 = vld [vmem:[%s7911_s23 + $0x38] sm:$0x1] }
  0x2c   : > { %7288 = vmatmul.mubr.bf16.vlgmr.msra.gmra.mxu0 %v6356_v35  ;;  %7304 = vmatmul.mubr.bf16.vlgmr.msra.gmra.mxu1 %v6364_v1  ;;  %v317_v33 = vrot.slane %v315_v17, 5  ;;  %v323_v34 = vrot.slane %v321_v18, 5  ;;  %v325_v35 = vshrl.u32 %v8025_v0, 16  ;;  %v6357_v38 = vcombine.low %v300_v15, %v310_v31  ;;  %v8084_v18 = vld [vmem:[%s7911_s23 + $0x90] sm:$0xf] }
  0x2d   : > { %7320 = vmatpush3.bf16.msra.mxu1 %v7737_v41  ;;  %7368 = vmatpush3.bf16.msra.mxu0 %v7738_v42  ;;  %v492_v41 = vsel %vm7942_vm2, %v487_v23, %v491_v7  ;;  %v497_v42 = vrot.slane %v496_v24, 4  ;;  %v504_v46 = vshrl.u32 %v8032_v13, 16  ;;  %v507_v47 = vshll.u32 %v8032_v13, 16  ;;  %v8090_v31 = vld [vmem:[%s7911_s23 + $0x94] sm:$0xf] }
  0x2e   : > { %7321 = vmatprep.subr.bf16.mxu1 %v7739_v52  ;;  %7369 = vmatprep.subr.bf16.mxu0 %v7740_v59  ;;  %v318_v44 = vor.u32 %v317_v33, %v314_v29  ;;  %v327_v45 = vrot.slane %v325_v35, 4  ;;  %v333_v49 = vrot.slane %v331_v43, 5  ;;  %v513_v50 = vshll.u32 %v8039_v22, 16 }
  0x2f   : > { %v502_v48 = vsel %vm7942_vm2, %v497_v42, %v501_v28  ;;  %v517_v51 = vshrl.u32 %v8039_v22, 16  ;;  %7291 = vmatprep.mubr.bf16.mxu0 %v6357_v38  ;;  %v506_v58 = vrot.slane %v504_v46, 4  ;;  %v509_v61 = vrot.slane %v507_v47, 5  ;;  %v7746_v38 = vld [vmem:[%s10718_s1 + $0x98] sm:$0xff]   ;;  %v7747_v46 = vld [vmem:[%s10718_s1 + $0x10] sm:$0xff]  }
  0x30   : > { %v6365_v54 = vcombine.low %v492_v41, %v502_v48  ;;  %v319_v55 = vrot.slane %v318_v44, 4  ;;  %v328_v56 = vor.u32 %v327_v45, %v323_v34  ;;  %v515_v63 = vrot.slane %v513_v50, 5  ;;  %v8100_v44 = vld [vmem:[%s7911_s23 + $0x98] sm:$0x1] }
  0x31   : > { %7322 = vmatpush3.bf16.msra.mxu1 %v7739_v52  ;;  %7370 = vmatpush3.bf16.msra.mxu0 %v7740_v59  ;;  %v7743_v52 = vld [vmem:[%s10718_s1 + $0x20] sm:$0xff]   ;;  %v519_v1 = vrot.slane %v517_v51, 4  ;;  %v523_v2 = vshll.u32 %v8048_v36, 16  ;;  %v336_v9 = vshrl.u32 %v8063_v53, 16  ;;  %v339_v10 = vshll.u32 %v8063_v53, 16 }
  0x32   : > { %7323 = vmatprep.subr.bf16.mxu1 %v7741_v30  ;;  %v7744_v59 = vld [vmem:[%s10718_s1 + $0xa0] sm:$0xff]   ;;  %7371 = vmatprep.subr.bf16.mxu0 %v7742_v37  ;;  %v324_v3 = vsel %vm7942_vm2, %v319_v55, %v323_v34  ;;  %v329_v7 = vrot.slane %v328_v56, 4  ;;  %v510_v11 = vor.u32 %v509_v61, %v506_v58  ;;  %v345_v17 = vshll.u32 %v8072_v60, 16  ;;  %v8113_v51 = vld [vmem:[%s7911_s23 + $0x3c] sm:$0xf]  ;;  %v7748_v55 = vld [vmem:[%s10718_s1 + $0x90] sm:$0xff]  }
  0x33   : > { %7307 = vmatprep.mubr.bf16.mxu1 %v6365_v54  ;;  %v520_v12 = vor.u32 %v519_v1, %v515_v63  ;;  %v525_v15 = vrot.slane %v523_v2, 5  ;;  %v338_v24 = vrot.slane %v336_v9, 4  ;;  %v341_v28 = vrot.slane %v339_v10, 5  ;;  %v8116_v54 = vld [vmem:[%s7911_s23 + $0x40] sm:$0xf] }
  0x34   : > { %v334_v23 = vsel %vm7942_vm2, %v329_v7, %v333_v49  ;;  %v349_v29 = vshrl.u32 %v8072_v60, 16  ;;  %v511_v34 = vrot.slane %v510_v11, 4  ;;  %v355_v43 = vshll.u32 %v8080_v16, 16  ;;  %v8123_v7 = vld [vmem:[%s7911_s23 + $0x44] sm:$0x1] }
  0x35   : > { %7324 = vmatpush3.bf16.msra.mxu1 %v7741_v30  ;;  %7372 = vmatpush3.bf16.msra.mxu0 %v7742_v37  ;;  %v7745_v30 = vld [vmem:[%s10718_s1 + $0x18] sm:$0xff]   ;;  %v6358_v33 = vcombine.low %v324_v3, %v334_v23  ;;  %v521_v35 = vrot.slane %v520_v12, 4  ;;  %v347_v37 = vrot.slane %v345_v17, 5  ;;  %v342_v41 = vor.u32 %v341_v28, %v338_v24  ;;  %v8135_v28 = vld [vmem:[%s7911_s23 + $0xa0] sm:$0xf] }
  0x36   : > { %7325 = vmatprep.subr.bf16.mxu1 %v7743_v52  ;;  %7373 = vmatprep.subr.bf16.mxu0 %v7744_v59  ;;  %v351_v42 = vrot.slane %v349_v29, 4  ;;  %v528_v45 = vshrl.u32 %v8084_v18, 16  ;;  %v516_v47 = vsel %vm7942_vm2, %v511_v34, %v515_v63  ;;  %v531_v49 = vshll.u32 %v8084_v18, 16  ;;  %v8126_v9 = vld [vmem:[%s7911_s23 + $0x9c] sm:$0xf]  ;;  %v7749_v29 = vld [vmem:[%s10718_s1 + $0x8] sm:$0xff]  }
  0x37   : > { %7292 = vmatmul.mubr.bf16.gmra.mxu0 %v6358_v33  ;;  %v526_v48 = vsel %vm7942_vm2, %v521_v35, %v525_v15  ;;  %v537_v50 = vshll.u32 %v8090_v31, 16  ;;  %v343_v58 = vrot.slane %v342_v41, 4  ;;  %v357_v63 = vrot.slane %v355_v43, 5  ;;  %v7750_v41 = vld [vmem:[%s10718_s1 + $0x88] sm:$0xff]  }
  0x38   : > { %v6366_v56 = vcombine.low %v516_v47, %v526_v48  ;;  %v352_v61 = vor.u32 %v351_v42, %v347_v37  ;;  %v533_v1 = vrot.slane %v531_v49, 5  ;;  %v541_v3 = vshrl.u32 %v8090_v31, 16 }
  0x39   : > { %7326 = vmatpush3.bf16.msra.mxu1 %v7743_v52  ;;  %7374 = vmatpush3.bf16.msra.mxu0 %v7744_v59  ;;  %v530_v52 = vrot.slane %v528_v45, 4  ;;  %v539_v2 = vrot.slane %v537_v50, 5  ;;  %v348_v10 = vsel %vm7942_vm2, %v343_v58, %v347_v37  ;;  %v547_v11 = vshll.u32 %v8100_v44, 16 }
  0x3a   : > { %7327 = vmatprep.subr.bf16.mxu1 %v7745_v30  ;;  %7375 = vmatprep.subr.bf16.mxu0 %v7746_v38  ;;  %v353_v59 = vrot.slane %v352_v61, 4  ;;  %v360_v12 = vshrl.u32 %v8113_v51, 16  ;;  %v543_v17 = vrot.slane %v541_v3, 4  ;;  %v363_v23 = vshll.u32 %v8113_v51, 16  ;;  %v8151_v61 = vld [vmem:[%s7911_s23 + $0xa4] sm:$0x1] }
  0x3b   : > { %7308 = vmatmul.mubr.bf16.gmra.mxu1 %v6366_v56  ;;  %v534_v15 = vor.u32 %v533_v1, %v530_v52  ;;  %v369_v24 = vshll.u32 %v8116_v54, 16  ;;  %v549_v34 = vrot.slane %v547_v11, 5  ;;  %v373_v37 = vshrl.u32 %v8116_v54, 16 }
  0x3c   : > { %v358_v33 = vsel %vm7942_vm2, %v353_v59, %v357_v63  ;;  %v362_v35 = vrot.slane %v360_v12, 4  ;;  %v544_v43 = vor.u32 %v543_v17, %v539_v2  ;;  %v365_v45 = vrot.slane %v363_v23, 5  ;;  %v8156_v59 = vld [vmem:[%s7911_s23 + $0x48] sm:$0xf]  ;;  %v8165_v17 = vld [vmem:[%s7911_s23 + $0x4c] sm:$0xf] }
  0x3d   : > { %7328 = vmatpush3.bf16.msra.mxu1 %v7745_v30  ;;  %7376 = vmatpush3.bf16.msra.mxu0 %v7746_v38  ;;  %v6359_v42 = vcombine.low %v348_v10, %v358_v33  ;;  %v535_v30 = vrot.slane %v534_v15, 4  ;;  %v371_v47 = vrot.slane %v369_v24, 5  ;;  %v375_v48 = vrot.slane %v373_v37, 4 }
  0x3e   : > { %7329 = vmatprep.subr.bf16.mxu1 %v7747_v46  ;;  %7377 = vmatprep.subr.bf16.mxu0 %v7748_v55  ;;  %v379_v49 = vshll.u32 %v8123_v7, 16  ;;  %v552_v50 = vshrl.u32 %v8126_v9, 16  ;;  %v545_v56 = vrot.slane %v544_v43, 4  ;;  %v366_v58 = vor.u32 %v365_v45, %v362_v35 }
  0x3f   : > { %7295 = vmatprep.mubr.bf16.mxu0 %v6359_v42  ;;  %v540_v38 = vsel %vm7942_vm2, %v535_v30, %v539_v2  ;;  %v555_v63 = vshll.u32 %v8126_v9, 16  ;;  %v376_v52 = vor.u32 %v375_v48, %v371_v47  ;;  %v561_v10 = vshll.u32 %v8135_v28, 16  ;;  %v7751_v2 = vld [vmem:[%s10718_s1] sm:$0xff]   ;;  %v8174_v30 = vld [vmem:[%s7911_s23 + $0x50] sm:$0x1] }
  0x40   : > { %v381_v1 = vrot.slane %v379_v49, 5  ;;  %v554_v3 = vrot.slane %v552_v50, 4  ;;  %v550_v11 = vsel %vm7942_vm2, %v545_v56, %v549_v34  ;;  %v367_v12 = vrot.slane %v366_v58, 4 }
  0x41   : > { %7330 = vmatpush3.bf16.msra.mxu1 %v7747_v46  ;;  %7378 = vmatpush3.bf16.msra.mxu0 %v7748_v55  ;;  %v557_v15 = vrot.slane %v555_v63, 5  ;;  %v565_v46 = vshrl.u32 %v8135_v28, 16  ;;  %v7752_v55 = vld [vmem:[%s10718_s1 + $0x80] sm:$0xff]   ;;  %v6367_v23 = vcombine.low %v540_v38, %v550_v11  ;;  %v377_v24 = vrot.slane %v376_v52, 4  ;;  %v8182_v38 = vld [vmem:[%s7911_s23 + $0xa8] sm:$0xf] }
  0x42   : > { %7331 = vmatprep.subr.bf16.mxu1 %v7749_v29  ;;  %7379 = vmatprep.subr.bf16.mxu0 %v7750_v41  ;;  %v563_v33 = vrot.slane %v561_v10, 5  ;;  %v571_v35 = vshll.u32 %v8151_v61, 16  ;;  %v372_v34 = vsel %vm7942_vm2, %v367_v12, %v371_v47  ;;  %v384_v43 = vshrl.u32 %v8156_v59, 16  ;;  %10747 = vst [vmem:[#allocation2_spill] sm:$0xff] %v8182_v38  ;;  %v8187_v47 = vld [vmem:[%s10718_s1 + $0xf8] sm:$0xff]  }
  0x43   : > { %v558_v37 = vor.u32 %v557_v15, %v554_v3  ;;  %v567_v42 = vrot.slane %v565_v46, 4  ;;  %7311 = vmatprep.mubr.bf16.mxu1 %v6367_v23  ;;  %v382_v45 = vsel %vm7942_vm2, %v377_v24, %v381_v1  ;;  %v387_v49 = vshll.u32 %v8156_v59, 16  ;;  %v8190_v52 = vld [vmem:[%s7911_s23 + $0xac] sm:$0xf]  ;;  %v8195_v1 = vld [vmem:[%s10718_s1 + $0x138] sm:$0xff]  }
  0x44   : > { %v573_v48 = vrot.slane %v571_v35, 5  ;;  %v393_v50 = vshll.u32 %v8165_v17, 16  ;;  %v386_v63 = vrot.slane %v384_v43, 4  ;;  %v397_v10 = vshrl.u32 %v8165_v17, 16  ;;  %v8200_v12 = vld [vmem:[%s7911_s23 + $0xb0] sm:$0x1] }
  0x45   : > { %7332 = vmatpush3.bf16.msra.mxu1 %v7749_v29  ;;  %7380 = vmatpush3.bf16.msra.mxu0 %v7750_v41  ;;  %v6360_v29 = vcombine.low %v372_v34, %v382_v45  ;;  %v559_v56 = vrot.slane %v558_v37, 4  ;;  %v568_v58 = vor.u32 %v567_v42, %v563_v33  ;;  %v389_v41 = vrot.slane %v387_v49, 5  ;;  %10748 = vst [vmem:[#allocation3_spill] sm:$0xff] %v8200_v12  ;;  %v8203_v15 = vld [vmem:[%s7911_s23 + $0x54] sm:$0xf] }
  0x46   : > { %7333 = vmatprep.subr.bf16.mxu1 %v7751_v2  ;;  %7381 = vmatprep.subr.bf16.mxu0 %v7752_v55  ;;  %v395_v3 = vrot.slane %v393_v50, 5  ;;  %v403_v11 = vshll.u32 %v8174_v30, 16  ;;  %v576_v24 = vshrl.u32 %v8182_v38, 16  ;;  %v579_v35 = vshll.u32 %v8182_v38, 16  ;;  %v8210_v34 = vld [vmem:[%s7911_s23 + $0x58] sm:$0xf] }
  0x47   : > { %7296 = vmatmul.mubr.bf16.gmra.mxu0 %v6360_v29  ;;  %v564_v46 = vsel %vm7942_vm2, %v559_v56, %v563_v33  ;;  %v569_v23 = vrot.slane %v568_v58, 4  ;;  %v390_v37 = vor.u32 %v389_v41, %v386_v63  ;;  %v399_v42 = vrot.slane %v397_v10, 4 }
  0x48   : > { %v405_v43 = vrot.slane %v403_v11, 5  ;;  %v585_v45 = vshll.u32 %v8190_v52, 16  ;;  %v578_v49 = vrot.slane %v576_v24, 4  ;;  %v581_v50 = vrot.slane %v579_v35, 5 }
  0x49   : > { %7334 = vmatpush3.bf16.msra.mxu1 %v7751_v2  ;;  %7382 = vmatpush3.bf16.msra.mxu0 %v7752_v55  ;;  %v574_v33 = vsel %vm7942_vm2, %v569_v23, %v573_v48  ;;  %v589_v29 = vshrl.u32 %v8190_v52, 16  ;;  %v391_v56 = vrot.slane %v390_v37, 4  ;;  %v400_v58 = vor.u32 %v399_v42, %v395_v3  ;;  %v8219_v55 = vld [vmem:[%s7911_s23 + $0x5c] sm:$0x1]  ;;  %v8224_v48 = vld [vmem:[%s7911_s23 + $0xb4] sm:$0xf] }
  0x4a   : > { %7415 = vmatprep.subr.bf16.mxu1 %v8187_v47  ;;  %7463 = vmatprep.subr.bf16.mxu0 %v8195_v1  ;;  %v6368_v2 = vcombine.low %v564_v46, %v574_v33  ;;  %v587_v63 = vrot.slane %v585_v45, 5  ;;  %v582_v41 = vor.u32 %v581_v50, %v578_v49  ;;  %v595_v11 = vshll.u32 %v8200_v12, 16  ;;  %10749 = vst [vmem:[#allocation4_spill] sm:$0xff] %v8224_v48  ;;  %v8231_v37 = vld [vmem:[%s7911_s23 + $0xb8] sm:$0xf] }
  0x4b   : > { %v591_v10 = vrot.slane %v589_v29, 4  ;;  %v408_v21 = vshrl.u32 %v8203_v15, 16  ;;  %v396_v23 = vsel %vm7942_vm2, %v391_v56, %v395_v3  ;;  %v401_v24 = vrot.slane %v400_v58, 4  ;;  %10750 = vst [vmem:[#allocation5_spill] sm:$0xff] %v8231_v37  ;;  %v8237_v3 = vld [vmem:[%s7911_s23 + $0xbc] sm:$0x1] }
  0x4c   : > { %7312 = vmatmul.mubr.bf16.gmra.mxu1 %v6368_v2  ;;  %v411_v46 = vshll.u32 %v8203_v15, 16  ;;  %v417_v35 = vshll.u32 %v8210_v34, 16  ;;  %v583_v42 = vrot.slane %v582_v41, 4  ;;  %v597_v33 = vrot.slane %v595_v11, 5  ;;  %10751 = vst [vmem:[#allocation6_spill] sm:$0xff] %v8237_v3 }
  0x4d   : > { %v592_v45 = vor.u32 %v591_v10, %v587_v63  ;;  %v410_v49 = vrot.slane %v408_v21, 4  ;;  %v406_v50 = vsel %vm7942_vm2, %v401_v24, %v405_v43  ;;  %v421_v62 = vshrl.u32 %v8210_v34, 16  ;;  %v1218_v10 = vld [vmem:[%s7911_s23] sm:$0xe] }
  0x4e   : > { %v413_v29 = vrot.slane %v411_v46, 5  ;;  %v419_v2 = vrot.slane %v417_v35, 5  ;;  %v6361_v56 = vcombine.low %v396_v23, %v406_v50  ;;  %v588_v58 = vsel %vm7942_vm2, %v583_v42, %v587_v63 }
  0x4f   : > { %v593_v20 = vrot.slane %v592_v45, 4  ;;  %v427_v41 = vshll.u32 %v8219_v55, 16  ;;  %v423_v21 = vrot.slane %v421_v62, 4  ;;  %v600_v12 = vshrl.u32 %v8224_v48, 16 }
  0x50   : > { %v414_v11 = vor.u32 %v413_v29, %v410_v49  ;;  %v603_v43 = vshll.u32 %v8224_v48, 16  ;;  %7299 = vmatprep.mubr.bf16.mxu0 %v6361_v56  ;;  %v609_v46 = vshll.u32 %v8231_v37, 16  ;;  %v613_v63 = vshrl.u32 %v8231_v37, 16  ;;  %v1219_v49 = vld [vmem:[%s7911_s23 + $0xc] sm:$0xe] }
  0x51   : > { %v598_v24 = vsel %vm7942_vm2, %v593_v20, %v597_v33  ;;  %v429_v23 = vrot.slane %v427_v41, 5  ;;  %v424_v45 = vor.u32 %v423_v21, %v419_v2  ;;  %v602_v50 = vrot.slane %v600_v12, 4  ;;  %v1220_v20 = vld [vmem:[%s7911_s23 + $0x18] sm:$0xe] }
  0x52   : > { %v6369_v35 = vcombine.low %v588_v58, %v598_v24  ;;  %v415_v42 = vrot.slane %v414_v11, 4  ;;  %v605_v62 = vrot.slane %v603_v43, 5  ;;  %v611_v29 = vrot.slane %v609_v46, 5 }
  0x53   : > { %v615_v38 = vrot.slane %v613_v63, 4  ;;  %v619_v48 = vshll.u32 %v8237_v3, 16  ;;  %v425_v58 = vrot.slane %v424_v45, 4  ;;  %v6403_v41 = vrot.slane %v1218_v10, 9 }
  0x54   : > { %7315 = vmatprep.mubr.bf16.mxu1 %v6369_v35  ;;  %v420_v33 = vsel %vm7942_vm2, %v415_v42, %v419_v2  ;;  %v1271_v12 = vrot.slane %v7920_v5, 5  ;;  %v606_v11 = vor.u32 %v605_v62, %v602_v50  ;;  %v6404_v24 = vrot.slane %v1219_v49, 9 }
  0x55   : > { %v616_v21 = vor.u32 %v615_v38, %v611_v29  ;;  %v621_v43 = vrot.slane %v619_v48, 5  ;;  %v430_v46 = vsel %vm7942_vm2, %v425_v58, %v429_v23  ;;  %v1278_v35 = vrot.slane %v7947_v32, 5 }
  0x56   : > { %v1272_v63 = vsel %vm8253_vm5, %v6403_v41, %v1271_v12  ;;  %v1273_v3 = vrot.slane %v1271_v12, 4  ;;  %v6362_v37 = vcombine.low %v420_v33, %v430_v46  ;;  %v607_v2 = vrot.slane %v606_v11, 4  ;;  %v1222_v12 = vld [vmem:[%s7911_s23 + $0x30] sm:$0xe]  ;;  %v1224_v46 = vld [vmem:[%s7911_s23 + $0x48] sm:$0xe] }
  0x57   : > { %v617_v42 = vrot.slane %v616_v21, 4  ;;  %v6379_v10 = vcombine.low %v7917_v4, %v7920_v5  ;;  %v10754_v38 = vrot.slane %v7923_v6, 5  ;;  %v1280_v45 = vrot.slane %v1278_v35, 4 }
  0x58   : > { %v6405_v23 = vrot.slane %v1220_v20, 9  ;;  %7300 = vmatmul.mubr.bf16.gmra.mxu0 %v6362_v37  ;;  %v612_v50 = vsel %vm7942_vm2, %v607_v2, %v611_v29  ;;  %v1285_v33 = vrot.slane %v7984_v19, 5  ;;  %v1279_v4 = vsel %vm8253_vm5, %v6404_v24, %v1278_v35  ;;  %v1223_v24 = vld [vmem:[%s7911_s23 + $0x3c] sm:$0xe] }
  0x59   : > { %v1275_v48 = vsel %vm8253_vm5, %v1273_v3, %v10754_v38  ;;  %v622_v49 = vsel %vm7942_vm2, %v617_v42, %v621_v43  ;;  %v10755_v5 = vrot.slane %v7953_v40, 5  ;;  %v1288_v37 = vrot.slane %v7989_v25, 5  ;;  %v1221_v3 = vld [vmem:[%s7911_s23 + $0x24] sm:$0xe]  ;;  %v7760_v25 = vld [vmem:[%s10718_s1 + $0x130] sm:$0xff]  }
  0x5a   : > { %v6435_v62 = vcombine.low %v1272_v63, %v1275_v48  ;;  %v6370_v58 = vcombine.low %v612_v50, %v622_v49  ;;  %v1286_v29 = vsel %vm8253_vm5, %v6405_v23, %v1285_v33  ;;  %v1287_v20 = vrot.slane %v1285_v33, 4  ;;  %v7759_v23 = vld [vmem:[%s10718_s1 + $0xf0] sm:$0xff]  }
  0x5b   : > { %v1282_v6 = vsel %vm8253_vm5, %v1280_v45, %v10755_v5  ;;  %v1292_v41 = vrot.slane %v8025_v0, 5  ;;  %v6406_v21 = vrot.slane %v1221_v3, 9  ;;  %v1299_v43 = vrot.slane %v8072_v60, 5  ;;  %v8328_v3 = vld [vmem:[%s7911_s23 + $0x68] sm:$0x1] }
  0x5c   : > { %7383 = vmatprep.mubr.bf16.mxu0 %v6435_v62  ;;  %7316 = vmatmul.mubr.bf16.gmra.mxu1 %v6370_v58  ;;  %v6436_v11 = vcombine.low %v1279_v4, %v1282_v6  ;;  %v1289_v40 = vsel %vm8253_vm5, %v1287_v20, %v1288_v37  ;;  %v1295_v2 = vrot.slane %v8028_v8, 5  ;;  %v6407_v42 = vrot.slane %v1222_v12, 9  ;;  %v1225_v37 = vld [vmem:[%s7911_s23 + $0x54] sm:$0xe]  ;;  %v8352_v12 = vld [vmem:[%s7911_s23 + $0x60] sm:$0xe] }
  0x5d   : > { %7335 = vmatprep.mubr.bf16.mxu1 %v6379_v10  ;;  %v6437_v63 = vcombine.low %v1286_v29, %v1289_v40  ;;  %v1294_v35 = vrot.slane %v1292_v41, 4  ;;  %v1301_v38 = vrot.slane %v1299_v43, 4  ;;  %v1302_v10 = vrot.slane %v8080_v16, 5 }
  0x5e   : > { %v1306_v48 = vrot.slane %v8116_v54, 5  ;;  %v6381_v45 = vcombine.low %v7976_v14, %v7984_v19  ;;  %v1313_v50 = vrot.slane %v8165_v17, 5  ;;  %v6408_v49 = vrot.slane %v1223_v24, 9  ;;  %v7768_v24 = vld [vmem:[%s10718_s1 + $0x120] sm:$0xff]  }
  0x5f   : > { %v1309_v8 = vrot.slane %v8123_v7, 5  ;;  %v6409_v33 = vrot.slane %v1224_v46, 9  ;;  %v1293_v14 = vsel %vm8253_vm5, %v6406_v21, %v1292_v41  ;;  %v1296_v19 = vsel %vm8253_vm5, %v1294_v35, %v1295_v2  ;;  %v8364_v46 = vld [vmem:[%s7911_s23 + $0x78] sm:$0xe]  ;;  %v7767_v2 = vld [vmem:[%s10718_s1 + $0xe0] sm:$0xff]  }
  0x60   : > { %7384 = vmatmul.mubr.bf16.vlgmr.msra.gmra.mxu0 %v6436_v11  ;;  %v1308_v62 = vrot.slane %v1306_v48, 4  ;;  %v1315_v16 = vrot.slane %v1313_v50, 4  ;;  %v1316_v58 = vrot.slane %v8174_v30, 5  ;;  %v1300_v4 = vsel %vm8253_vm5, %v6407_v42, %v1299_v43  ;;  %v8355_v11 = vld [vmem:[%s7911_s23 + $0x6c] sm:$0xe] }
  0x61   : > { %7464 = vmatpush3.bf16.msra.mxu0 %v8195_v1  ;;  %7387 = vmatprep.mubr.bf16.mxu0 %v6437_v63  ;;  %v1303_v7 = vsel %vm8253_vm5, %v1301_v38, %v1302_v10  ;;  %v7764_v1 = vld [vmem:[%s10718_s1 + $0x128] sm:$0xff]   ;;  %v1320_v5 = vrot.slane %v8210_v34, 5  ;;  %v10756_v6 = vcombine.low %v7938_v26, %v7947_v32  ;;  %v6382_v30 = vcombine.low %v8016_v57, %v8025_v0  ;;  %v1229_v63 = vld [vmem:[%s7911_s23 + $0x84] sm:$0xe]  ;;  %v1230_v42 = vld [vmem:[%s7911_s23 + $0x90] sm:$0xe] }
  0x62   : > { %7465 = vmatprep.subr.bf16.mxu0 %v7760_v25  ;;  %v1330_v29 = vrot.slane %v8328_v3, 5  ;;  %v6438_v20 = vcombine.low %v1293_v14, %v1296_v19  ;;  %v8334_v41 = vsel %vm8253_vm5, %v6408_v49, %v1306_v48  ;;  %v8338_v26 = vsel %vm8253_vm5, %v1308_v62, %v1309_v8  ;;  %v7763_v32 = vld [vmem:[%s10718_s1 + $0xe8] sm:$0xff]   ;;  %v8383_v48 = vld [vmem:[%s7911_s23 + $0x64] sm:$0xf]  ;;  %v1231_v49 = vld [vmem:[%s7911_s23 + $0x9c] sm:$0xe] }
  0x63   : > { %v6439_v57 = vcombine.low %v1300_v4, %v1303_v7  ;;  %v8345_v0 = vsel %vm8253_vm5, %v6409_v33, %v1313_v50  ;;  %v6383_v40 = vcombine.low %v8063_v53, %v8072_v60  ;;  %v6410_v21 = vrot.slane %v1225_v37, 9  ;;  %v8405_v4 = vld [vmem:[%s7911_s23 + $0x74] sm:$0x1] }
  0x64   : > { %7336 = vmatmul.mubr.bf16.vlgmr.msra.gmra.mxu1 %v10756_v6  ;;  %v1323_v43 = vrot.slane %v8219_v55, 5  ;;  %v6384_v35 = vcombine.low %v8113_v51, %v8116_v54  ;;  %v6440_v53 = vcombine.low %v8334_v41, %v8338_v26  ;;  %v6385_v60 = vcombine.low %v8156_v59, %v8165_v17  ;;  %v7853_v54 = vld [vmem:[%s7911_s23 + $0x80] sm:$0x1] }
  0x65   : > { %7416 = vmatpush3.bf16.msra.mxu1 %v8187_v47  ;;  %7339 = vmatprep.mubr.bf16.mxu1 %v6381_v45  ;;  %v8349_v47 = vsel %vm8253_vm5, %v1315_v16, %v1316_v58  ;;  %v6386_v55 = vcombine.low %v8203_v15, %v8210_v34  ;;  %v6411_v10 = vrot.slane %v8352_v12, 9  ;;  %v1327_v45 = vrot.slane %v8383_v48, 5  ;;  %v8401_v16 = vld [vmem:[%s7911_s23 + $0x70] sm:$0xf]  ;;  %v7854_v17 = vld [vmem:[%s7911_s23 + $0x60] sm:$0xf] }
  0x66   : > { %7417 = vmatprep.subr.bf16.mxu1 %v7759_v23  ;;  %7466 = vmatpush3.bf16.msra.mxu0 %v7760_v25  ;;  %v1322_v25 = vrot.slane %v1320_v5, 4  ;;  %v6441_v38 = vcombine.low %v8345_v0, %v8349_v47  ;;  %v6412_v62 = vrot.slane %v8355_v11, 9  ;;  %v1348_v8 = vrot.slane %v8039_v22, 5  ;;  %v1232_v0 = vld [vmem:[%s7911_s23 + $0xa8] sm:$0xe]  ;;  %v8585_v15 = vld [vmem:[%s10718_s1 + $0x1b8] sm:$0xff]  }
  0x67   : > { %7467 = vmatprep.subr.bf16.mxu0 %v7764_v1  ;;  %v1351_v33 = vrot.slane %v8048_v36, 5  ;;  %v8394_v14 = vsel %vm8253_vm5, %v6410_v21, %v1320_v5  ;;  %v1334_v58 = vrot.slane %v8401_v16, 5  ;;  %v1337_v7 = vrot.slane %v8405_v4, 5  ;;  %v7771_v36 = vld [vmem:[%s10718_s1 + $0xd8] sm:$0xff]  }
  0x68   : > { %7388 = vmatmul.mubr.bf16.gmra.mxu0 %v6438_v20  ;;  %v8398_v19 = vsel %vm8253_vm5, %v1322_v25, %v1323_v43  ;;  %v6413_v5 = vrot.slane %v8364_v46, 9  ;;  %v1350_v37 = vrot.slane %v1348_v8, 4  ;;  %v6415_v41 = vrot.slane %v1230_v42, 9  ;;  %v6531_v42 = vld [vmem:[%s7911_s23 + $0xc] sm:$0xf] }
  0x69   : > { %7418 = vmatpush3.bf16.msra.mxu1 %v7759_v23  ;;  %7391 = vmatprep.mubr.bf16.mxu0 %v6439_v57  ;;  %v6414_v23 = vrot.slane %v1229_v63, 9  ;;  %v1355_v26 = vrot.slane %v8090_v31, 5  ;;  %v1358_v57 = vrot.slane %v8100_v44, 5  ;;  %v1341_v47 = vrot.slane %v7998_v39, 5 }
  0x6a   : > { %7419 = vmatprep.subr.bf16.mxu1 %v7763_v32  ;;  %7468 = vmatpush3.bf16.msra.mxu0 %v7764_v1  ;;  %v7772_v1 = vld [vmem:[%s10718_s1 + $0x118] sm:$0xff]   ;;  %v8429_v21 = vsel %vm8253_vm5, %v1350_v37, %v1351_v33  ;;  %v1362_v63 = vrot.slane %v8135_v28, 5  ;;  %v6417_v33 = vrot.slane %v1232_v0, 9  ;;  %v1369_v37 = vrot.slane %v8190_v52, 5  ;;  %v7775_v0 = vld [vmem:[%s10718_s1 + $0xd0] sm:$0xff]  }
  0x6b   : > { %7469 = vmatprep.subr.bf16.mxu0 %v7768_v24  ;;  %v8417_v6 = vsel %vm8253_vm5, %v6414_v23, %v1348_v8  ;;  %v8437_v44 = vsel %vm8253_vm5, %v6415_v41, %v1355_v26  ;;  %v1357_v43 = vrot.slane %v1355_v26, 4  ;;  %v7776_v23 = vld [vmem:[%s10718_s1 + $0x110] sm:$0xff]   ;;  %v1365_v8 = vrot.slane %v8151_v61, 5  ;;  %v10758_v61 = vld [vmem:[#allocation3_spill] sm:$0xff] }
  0x6c   : > { %7340 = vmatmul.mubr.bf16.gmra.mxu1 %v6382_v30  ;;  %v1329_v30 = vrot.slane %v1327_v45, 4  ;;  %v1364_v20 = vrot.slane %v1362_v63, 4  ;;  %v1372_v50 = vrot.slane %v10758_v61, 5  ;;  %v1328_v61 = vsel %vm8253_vm5, %v6411_v10, %v1327_v45  ;;  %v6534_v45 = vld [vmem:[%s7911_s23 + $0x18] sm:$0xf] }
  0x6d   : > { %7343 = vmatprep.mubr.bf16.mxu1 %v6383_v40  ;;  %7420 = vmatpush3.bf16.msra.mxu1 %v7763_v32  ;;  %v6416_v40 = vrot.slane %v1231_v49, 9  ;;  %v8449_v32 = vld [vmem:[%s7911_s23 + $0x10] sm:$0xf]  ;;  %v8453_v41 = vsel %vm8253_vm5, %v1357_v43, %v1358_v57  ;;  %v1371_v57 = vrot.slane %v1369_v37, 4  ;;  %v2139_v12 = vshrl.u32 %v6531_v42, 16 }
  0x6e   : > { %7421 = vmatprep.subr.bf16.mxu1 %v7767_v2  ;;  %7470 = vmatpush3.bf16.msra.mxu0 %v7768_v24  ;;  %v10757_v24 = vld [vmem:[#allocation2_spill] sm:$0xff]  ;;  %v10760_v43 = vld [vmem:[#allocation4_spill] sm:$0xff]  ;;  %v2142_v10 = vshll.u32 %v6531_v42, 16  ;;  %v1336_v51 = vrot.slane %v1334_v58, 4  ;;  %v2148_v59 = vshll.u32 %v8449_v32, 16  ;;  %v1342_v4 = vsel %vm8253_vm5, %v6413_v5, %v1341_v47 }
  0x6f   : > { %7471 = vmatprep.subr.bf16.mxu0 %v7772_v1  ;;  %v8457_v26 = vsel %vm8253_vm5, %v6416_v40, %v1362_v63  ;;  %v10759_v40 = vld [vmem:[#allocation5_spill] sm:$0xff]  ;;  %v8523_v42 = vld [vmem:[%s7911_s23 + $0x14] sm:$0x1]  ;;  %v2141_v63 = vrot.slane %v2139_v12, 4  ;;  %v10762_v5 = vld [vmem:[#allocation6_spill] sm:$0xff] }
  0x70   : > { %7392 = vmatmul.mubr.bf16.gmra.mxu0 %v6440_v53  ;;  %v2144_v49 = vrot.slane %v2142_v10, 5  ;;  %v6537_v53 = vld [vmem:[%s7911_s23 + $0x24] sm:$0xf]  ;;  %v1338_v11 = vsel %vm8253_vm5, %v1336_v51, %v1337_v7 }
  0x71   : > { %7422 = vmatpush3.bf16.msra.mxu1 %v7767_v2  ;;  %7395 = vmatprep.mubr.bf16.mxu0 %v6441_v38  ;;  %v8467_v2 = vsel %vm8253_vm5, %v6417_v33, %v1369_v37  ;;  %v6442_v38 = vcombine.low %v8394_v14, %v8398_v19  ;;  %v1331_v33 = vsel %vm8253_vm5, %v1329_v30, %v1330_v29  ;;  %v7780_v14 = vld [vmem:[%s10718_s1 + $0x108] sm:$0xff]   ;;  %v7784_v30 = vld [vmem:[%s10718_s1 + $0x100] sm:$0xff]   ;;  %v8542_v19 = vrot.slane %v2148_v59, 5 }
  0x72   : > { %7423 = vmatprep.subr.bf16.mxu1 %v7771_v36  ;;  %7472 = vmatpush3.bf16.msra.mxu0 %v7772_v1  ;;  %v8485_v37 = vsel %vm8253_vm5, %v1364_v20, %v1365_v8  ;;  %v8497_v29 = vsel %vm8253_vm5, %v1371_v57, %v1372_v50  ;;  %v7779_v50 = vld [vmem:[%s10718_s1 + $0xc8] sm:$0xff]   ;;  %v8512_v1 = vld [vmem:[%s7911_s23 + $0xb4] sm:$0xe]  ;;  %v6443_v20 = vcombine.low %v1328_v61, %v1331_v33  ;;  %v2152_v8 = vshrl.u32 %v8449_v32, 16  ;;  %v8540_v61 = vld [vmem:[%s7911_s23 + $0x1c] sm:$0xf] }
  0x73   : > { %7473 = vmatprep.subr.bf16.mxu0 %v7776_v23  ;;  %v8527_v57 = vld [vmem:[%s7911_s23 + $0x6c] sm:$0xf]  ;;  %v2163_v33 = vshrl.u32 %v6534_v45, 16  ;;  %v2172_v51 = vshll.u32 %v8540_v61, 16  ;;  %v2176_v39 = vshrl.u32 %v8540_v61, 16  ;;  %v2187_v59 = vshrl.u32 %v6537_v53, 16 }
  0x74   : > { %7344 = vmatmul.mubr.bf16.gmra.mxu1 %v6384_v35  ;;  %v1344_v35 = vrot.slane %v7853_v54, 5  ;;  %v6388_v54 = vcombine.low %v8527_v57, %v8401_v16  ;;  %v2154_v3 = vrot.slane %v2152_v8, 4  ;;  %v2190_v46 = vshll.u32 %v6537_v53, 16  ;;  %v7857_v8 = vld [vmem:[%s7911_s23 + $0x7c] sm:$0xf] }
  0x75   : > { %7347 = vmatprep.mubr.bf16.mxu1 %v6385_v60  ;;  %7424 = vmatpush3.bf16.msra.mxu1 %v7771_v36  ;;  %v6387_v60 = vcombine.low %v7854_v17, %v8383_v48  ;;  %v1343_v36 = vrot.slane %v1341_v47, 4  ;;  %v8537_v48 = vsel %vm8253_vm5, %v6412_v62, %v1334_v58  ;;  %v2166_v17 = vshll.u32 %v6534_v45, 16  ;;  %v7783_v58 = vld [vmem:[%s10718_s1 + $0xc0] sm:$0xff]   ;;  %v8567_v45 = vld [vmem:[%s7911_s23 + $0x28] sm:$0xf] }
  0x76   : > { %7425 = vmatprep.subr.bf16.mxu1 %v7775_v0  ;;  %7474 = vmatpush3.bf16.msra.mxu0 %v7776_v23  ;;  %v10730_v62 = vrot.slane %v10759_v40, 5  ;;  %v8554_v23 = vld [vmem:[%s7911_s23 + $0x20] sm:$0x1]  ;;  %v2165_v12 = vrot.slane %v2163_v33, 4  ;;  %10761 = vst [vmem:[#allocation2_spill] sm:$0xff] %v8567_v45  ;;  %v6444_v34 = vcombine.low %v8537_v48, %v1338_v11  ;;  %v2196_v53 = vshll.u32 %v8567_v45, 16 }
  0x77   : > { %7475 = vmatprep.subr.bf16.mxu0 %v7780_v14  ;;  %v2168_v10 = vrot.slane %v2166_v17, 5  ;;  %v1345_v7 = vsel %vm8253_vm5, %v1343_v36, %v1344_v35  ;;  %v2145_v35 = vor.u32 %v2144_v49, %v2141_v63  ;;  %v8580_v36 = vld [vmem:[%s10718_s1 + $0x178] sm:$0xff]   ;;  %v6540_v63 = vld [vmem:[%s7911_s23 + $0x30] sm:$0xf]  ;;  %v8601_v48 = vld [vmem:[%s7911_s23 + $0x34] sm:$0xf] }
  0x78   : > { %7396 = vmatmul.mubr.bf16.gmra.mxu0 %v6442_v38  ;;  %v2158_v38 = vshll.u32 %v8523_v42, 16  ;;  %v6445_v17 = vcombine.low %v1342_v4, %v1345_v7  ;;  %10764 = vst [vmem:[#allocation5_spill] sm:$0xff] %v8601_v48  ;;  %v8603_v11 = vrot.slane %v2172_v51, 5  ;;  %v2192_v47 = vrot.slane %v2190_v46, 5  ;;  %v8622_v46 = vld [vmem:[%s7911_s23 + $0x40] sm:$0xf] }
  0x79   : > { %7426 = vmatpush3.bf16.msra.mxu1 %v7775_v0  ;;  %7399 = vmatprep.mubr.bf16.mxu0 %v6443_v20  ;;  %v2155_v20 = vor.u32 %v2154_v3, %v8542_v19  ;;  %v2169_v49 = vor.u32 %v2168_v10, %v2165_v12  ;;  %v7856_v3 = vld [vmem:[%s7911_s23 + $0x78] sm:$0xf]  ;;  %v2178_v12 = vrot.slane %v2176_v39, 4  ;;  %v2189_v10 = vrot.slane %v2187_v59, 4  ;;  %10765 = vst [vmem:[#allocation4_spill] sm:$0xff] %v8622_v46 }
  0x7a   : > { %7427 = vmatprep.subr.bf16.mxu1 %v7779_v50  ;;  %7476 = vmatpush3.bf16.msra.mxu0 %v7780_v14  ;;  %v2182_v14 = vshll.u32 %v8554_v23, 16  ;;  %v6389_v33 = vcombine.low %v7856_v3, %v7857_v8  ;;  %v8594_v25 = vrot.slane %v2158_v38, 5  ;;  %v8606_v0 = vld [vmem:[%s7911_s23 + $0x38] sm:$0x1]  ;;  %v8608_v4 = vrot.slane %v2145_v35, 4 }
  0x7b   : > { %7477 = vmatprep.subr.bf16.mxu0 %v7784_v30  ;;  %v8610_v7 = vrot.slane %v2155_v20, 4  ;;  %v2211_v3 = vshrl.u32 %v6540_v63, 16  ;;  %v6543_v8 = vld [vmem:[%s7911_s23 + $0x3c] sm:$0xf]  ;;  %v8618_v51 = vrot.slane %v2196_v53, 5  ;;  %v2214_v39 = vshll.u32 %v6540_v63, 16 }
  0x7c   : > { %7348 = vmatmul.mubr.bf16.gmra.mxu1 %v6386_v55  ;;  %v1378_v55 = vrot.slane %v10730_v62, 4  ;;  %v8612_v38 = vrot.slane %v2182_v14, 5  ;;  %v2220_v59 = vshll.u32 %v8601_v48, 16  ;;  %v2224_v20 = vshrl.u32 %v8601_v48, 16 }
  0x7d   : > { %7351 = vmatprep.mubr.bf16.mxu1 %v6387_v60  ;;  %7428 = vmatpush3.bf16.msra.mxu1 %v7779_v50  ;;  %v8597_v60 = vld [vmem:[%s7911_s23 + $0x2c] sm:$0x1]  ;;  %v2200_v50 = vshrl.u32 %v8567_v45, 16  ;;  %v2179_v14 = vor.u32 %v2178_v12, %v8603_v11  ;;  %v2213_v53 = vrot.slane %v2211_v3, 4  ;;  %v2216_v63 = vrot.slane %v2214_v39, 5 }
  0x7e   : > { %7429 = vmatprep.subr.bf16.mxu1 %v7783_v58  ;;  %10763 = vst [vmem:[#allocation3_spill] sm:$0xff] %v8597_v60  ;;  %7478 = vmatpush3.bf16.msra.mxu0 %v7784_v30  ;;  %v8616_v30 = vrot.slane %v2169_v49, 4  ;;  %v2235_v49 = vshrl.u32 %v6543_v8, 16  ;;  %v2238_v62 = vshll.u32 %v6543_v8, 16  ;;  %v2226_v48 = vrot.slane %v2224_v20, 4 }
  0x7f   : > { %7559 = vmatprep.subr.bf16.mxu0 %v8585_v15  ;;  %v2202_v35 = vrot.slane %v2200_v50, 4  ;;  %v8632_v50 = vrot.slane %v2220_v59, 5  ;;  %v8635_v45 = vld [vmem:[%s7911_s23 + $0x44] sm:$0x1]  ;;  %v2248_v12 = vshrl.u32 %v8622_v46, 16  ;;  %v10766_v16 = vrot.slane %v10759_v40, 5 }
  0x80   : > { %7400 = vmatmul.mubr.bf16.gmra.mxu0 %v6444_v34  ;;  %v2206_v34 = vshll.u32 %v8597_v60, 16  ;;  %v10767_v57 = vrot.slane %v8512_v1, 9  ;;  %v8656_v39 = vld [vmem:[%s7911_s23 + $0x4c] sm:$0xf]  ;;  %v2237_v59 = vrot.slane %v2235_v49, 4  ;;  %v2240_v20 = vrot.slane %v2238_v62, 5 }
  0x81   : > { %7430 = vmatpush3.bf16.msra.mxu1 %v7783_v58  ;;  %7403 = vmatprep.mubr.bf16.mxu0 %v6445_v17  ;;  %v2193_v58 = vor.u32 %v2192_v47, %v2189_v10  ;;  %v2230_v17 = vshll.u32 %v8606_v0, 16  ;;  %v2244_v47 = vshll.u32 %v8622_v46, 16  ;;  %v6546_v10 = vld [vmem:[%s7911_s23 + $0x48] sm:$0xf]  ;;  %v2203_v8 = vor.u32 %v2202_v35, %v8618_v51 }
  0x82   : > { %7511 = vmatprep.subr.bf16.mxu1 %v8580_v36  ;;  %v2250_v1 = vrot.slane %v2248_v12, 4  ;;  %v8660_v46 = vrot.slane %v2179_v14, 4  ;;  %v2151_v62 = vsel %vm7942_vm2, %v8608_v4, %v8542_v19  ;;  %v2161_v35 = vsel %vm7942_vm2, %v8610_v7, %v8594_v25  ;;  %v6549_v4 = vld [vmem:[%s7911_s23 + $0x54] sm:$0xf] }
  0x83   : > { %v8658_v60 = vrot.slane %v2244_v47, 5  ;;  %v2262_v14 = vshll.u32 %v6546_v10, 16  ;;  %v2254_v49 = vshll.u32 %v8635_v45, 16  ;;  %v2272_v19 = vshrl.u32 %v8656_v39, 16 }
  0x84   : > { %7352 = vmatmul.mubr.bf16.gmra.mxu1 %v6388_v54  ;;  %v8646_v54 = vsel %vm8253_vm5, %v10767_v57, %v10766_v16  ;;  %v8662_v16 = vrot.slane %v2193_v58, 4  ;;  %v8664_v57 = vrot.slane %v2206_v34, 5  ;;  %v2268_v58 = vshll.u32 %v8656_v39, 16 }
  0x85   : > { %7355 = vmatprep.mubr.bf16.mxu1 %v6389_v33  ;;  %v10768_v33 = vrot.slane %v10762_v5, 5  ;;  %v2259_v5 = vshrl.u32 %v6546_v10, 16  ;;  %v10770_v34 = vcombine.low %v8437_v44, %v8453_v41  ;;  %v8685_v47 = vrot.slane %v2203_v8, 4  ;;  %v8691_v10 = vld [vmem:[%s7911_s23 + $0x58] sm:$0xf] }
  0x86   : > { %v8687_v12 = vrot.slane %v2230_v17, 5  ;;  %v2241_v25 = vor.u32 %v2240_v20, %v2237_v59  ;;  %v2251_v7 = vor.u32 %v2250_v1, %v8658_v60  ;;  %v10771_v44 = vcombine.low %v8032_v13, %v8039_v22  ;;  %v8697_v41 = vld [vmem:[%s7911_s23 + $0x50] sm:$0x1] }
  0x87   : > { %v8652_v3 = vsel %vm8253_vm5, %v1378_v55, %v10768_v33  ;;  %v10769_v55 = vcombine.low %v8417_v6, %v8429_v21  ;;  %v2217_v6 = vor.u32 %v2216_v63, %v2213_v53  ;;  %v2227_v21 = vor.u32 %v2226_v48, %v8632_v50 }
  0x88   : > { %v2261_v48 = vrot.slane %v2259_v5, 4  ;;  %v2264_v53 = vrot.slane %v2262_v14, 5  ;;  %v8699_v63 = vrot.slane %v2268_v58, 5  ;;  %v2274_v17 = vrot.slane %v2272_v19, 4  ;;  %v6552_v5 = vld [vmem:[%s7911_s23 + $0x60] sm:$0xf] }
  0x89   : > { %7404 = vmatmul.mubr.bf16.gmra.mxu0 %v10769_v55  ;;  %v10772_v33 = vcombine.low %v8084_v18, %v8090_v31  ;;  %v2283_v8 = vshrl.u32 %v6549_v4, 16  ;;  %v2286_v59 = vshll.u32 %v6549_v4, 16  ;;  %v8704_v20 = vrot.slane %v2217_v6, 4  ;;  %v8721_v31 = vld [vmem:[%s7911_s23 + $0x64] sm:$0xf] }
  0x8a   : > { %7407 = vmatprep.mubr.bf16.mxu0 %v10770_v34  ;;  %v8706_v1 = vrot.slane %v2227_v21, 4  ;;  %v8708_v13 = vrot.slane %v2254_v49, 5  ;;  %v2292_v22 = vshll.u32 %v8691_v10, 16  ;;  %v6450_v55 = vcombine.low %v8646_v54, %v8652_v3  ;;  %v8717_v34 = vld [vmem:[%s7911_s23 + $0x5c] sm:$0x1] }
  0x8b   : > { %v6595_v14 = vcombine.low %v2151_v62, %v2161_v35  ;;  %v8714_v58 = vrot.slane %v2241_v25, 4  ;;  %v2296_v18 = vshrl.u32 %v8691_v10, 16  ;;  %v8723_v6 = vrot.slane %v2251_v7, 4 }
  0x8c   : > { %7356 = vmatmul.mubr.bf16.gmra.mxu1 %v10771_v44  ;;  %v2278_v21 = vshll.u32 %v8697_v41, 16  ;;  %v2307_v49 = vshrl.u32 %v6552_v5, 16  ;;  %v2310_v19 = vshll.u32 %v6552_v5, 16  ;;  %v10773_v4 = vcombine.low %v8457_v26, %v8485_v37 }
  0x8d   : > { %7359 = vmatprep.mubr.bf16.mxu1 %v10772_v33  ;;  %v2265_v54 = vor.u32 %v2264_v53, %v2261_v48  ;;  %v2275_v3 = vor.u32 %v2274_v17, %v8699_v63  ;;  %v2285_v62 = vrot.slane %v2283_v8, 4  ;;  %v2288_v35 = vrot.slane %v2286_v59, 5  ;;  %v8761_v8 = vld [vmem:[%s7911_s23 + $0x70] sm:$0xf] }
  0x8e   : > { %v10774_v25 = vcombine.low %v8467_v2, %v8497_v29  ;;  %v8733_v7 = vrot.slane %v2292_v22, 5  ;;  %v2298_v44 = vrot.slane %v2296_v18, 4  ;;  %v2302_v33 = vshll.u32 %v8717_v34, 16 }
  0x8f   : > { %v2316_v26 = vshll.u32 %v8721_v31, 16  ;;  %v2175_v37 = vsel %vm7942_vm2, %v8616_v30, %v8603_v11  ;;  %v2185_v2 = vsel %vm7942_vm2, %v8660_v46, %v8612_v38  ;;  %v2309_v29 = vrot.slane %v2307_v49, 4  ;;  %v6555_v46 = vld [vmem:[%s7911_s23 + $0x6c] sm:$0xf] }
  0x90   : > { %v2312_v48 = vrot.slane %v2310_v19, 5  ;;  %v10775_v53 = vcombine.low %v8126_v9, %v8135_v28  ;;  %v2199_v17 = vsel %vm7942_vm2, %v8662_v16, %v8618_v51  ;;  %v2209_v11 = vsel %vm7942_vm2, %v8685_v47, %v8664_v57  ;;  %v8769_v16 = vld [vmem:[%s7911_s23 + $0x68] sm:$0x1] }
  0x91   : > { %7408 = vmatmul.mubr.bf16.gmra.mxu0 %v10773_v4  ;;  %v8756_v30 = vrot.slane %v2278_v21, 5  ;;  %v2320_v38 = vshrl.u32 %v8721_v31, 16  ;;  %v10776_v9 = vcombine.low %v10757_v24, %v8190_v52  ;;  %v8766_v28 = vrot.slane %v2265_v54, 4  ;;  %v7785_v52 = vld [vmem:[%s7911_s23 + $0xc] sm:$0xff]  }
  0x92   : > { %7411 = vmatprep.mubr.bf16.mxu0 %v10774_v25  ;;  %v2289_v51 = vor.u32 %v2288_v35, %v2285_v62  ;;  %v2331_v59 = vshrl.u32 %v6555_v46, 16  ;;  %v2334_v57 = vshll.u32 %v6555_v46, 16  ;;  %v8771_v47 = vrot.slane %v2275_v3, 4  ;;  %v8782_v62 = vld [vmem:[%s7911_s23 + $0x74] sm:$0x1] }
  0x93   : > { %v2299_v22 = vor.u32 %v2298_v44, %v8733_v7  ;;  %v8774_v5 = vrot.slane %v2302_v33, 5  ;;  %v2340_v18 = vshll.u32 %v8761_v8, 16  ;;  %v2313_v24 = vor.u32 %v2312_v48, %v2309_v29  ;;  %v6558_v25 = vld [vmem:[%s7911_s23 + $0x78] sm:$0xf]  ;;  %v8786_v44 = vld [vmem:[%s7911_s23 + $0x7c] sm:$0xf] }
  0x94   : > { %7360 = vmatmul.mubr.bf16.gmra.mxu1 %v10775_v53  ;;  %v8778_v21 = vrot.slane %v2316_v26, 5  ;;  %v2322_v49 = vrot.slane %v2320_v38, 4  ;;  %v2344_v19 = vshrl.u32 %v8761_v8, 16  ;;  %v6596_v4 = vcombine.low %v2175_v37, %v2185_v2  ;;  %v8793_v26 = vld [vmem:[%s7911_s23 + $0x80] sm:$0x1] }
  0x95   : > { %7363 = vmatprep.mubr.bf16.mxu1 %v10776_v9  ;;  %v6597_v54 = vcombine.low %v2199_v17, %v2209_v11  ;;  %v2333_v3 = vrot.slane %v2331_v59, 4  ;;  %v2336_v35 = vrot.slane %v2334_v57, 5  ;;  %v8788_v33 = vrot.slane %v2289_v51, 4 }
  0x96   : > { %v8790_v53 = vrot.slane %v2340_v18, 5  ;;  %v2346_v29 = vrot.slane %v2344_v19, 4  ;;  %v2355_v48 = vshrl.u32 %v6558_v25, 16  ;;  %v2326_v37 = vshll.u32 %v8769_v16, 16  ;;  %v6561_v19 = vld [vmem:[%s7911_s23 + $0x84] sm:$0xf] }
  0x97   : > { %v2358_v2 = vshll.u32 %v6558_v25, 16  ;;  %v2364_v17 = vshll.u32 %v8786_v44, 16  ;;  %v2368_v11 = vshrl.u32 %v8786_v44, 16  ;;  %v8798_v38 = vrot.slane %v2299_v22, 4  ;;  %v7789_v25 = vld [vmem:[%s7911_s23 + $0x24] sm:$0xff]  }
  0x98   : > { %v8800_v46 = vrot.slane %v2313_v24, 4  ;;  %v2357_v9 = vrot.slane %v2355_v48, 4  ;;  %v10777_v51 = vcombine.low %v10760_v43, %v10759_v40  ;;  %v2223_v22 = vsel %vm7942_vm2, %v8704_v20, %v8632_v50 }
  0x99   : > { %7412 = vmatmul.mubr.bf16.gmra.mxu0 %v6450_v55  ;;  %v2323_v55 = vor.u32 %v2322_v49, %v8778_v21  ;;  %v2360_v59 = vrot.slane %v2358_v2, 5  ;;  %v8806_v57 = vrot.slane %v2364_v17, 5  ;;  %v2370_v18 = vrot.slane %v2368_v11, 4  ;;  %v8855_v17 = vld [vmem:[%s7911_s23 + $0x8c] sm:$0x1] }
  0x9a   : > { %7479 = vmatprep.mubr.bf16.mxu0 %v6595_v14  ;;  %v2337_v14 = vor.u32 %v2336_v35, %v2333_v3  ;;  %v2347_v24 = vor.u32 %v2346_v29, %v8790_v53  ;;  %v2350_v49 = vshll.u32 %v8782_v62, 16  ;;  %v2374_v40 = vshll.u32 %v8793_v26, 16  ;;  %v8829_v3 = vld [vmem:[%s7911_s23 + $0x88] sm:$0xf]  ;;  %v7786_v35 = vld [vmem:[%s7911_s23 + $0x18] sm:$0xff]  }
  0x9b   : > { %v2233_v43 = vsel %vm7942_vm2, %v8706_v1, %v8687_v12  ;;  %v2257_v50 = vsel %vm7942_vm2, %v8723_v6, %v8708_v13  ;;  %v2361_v20 = vor.u32 %v2360_v59, %v2357_v9  ;;  %v7792_v12 = vld [vmem:[%s10718_s1 + $0x1b0] sm:$0xff]   ;;  %v8836_v1 = vrot.slane %v2326_v37, 5  ;;  %v8860_v11 = vld [vmem:[%s10718_s1 + $0x1a8] sm:$0xff]  }
  0x9c   : > { %7364 = vmatmul.mubr.bf16.gmra.mxu1 %v10777_v51  ;;  %v2382_v29 = vshll.u32 %v6561_v19, 16  ;;  %v7791_v13 = vld [vmem:[%s10718_s1 + $0x170] sm:$0xff]   ;;  %v2271_v6 = vsel %vm7942_vm2, %v8766_v28, %v8699_v63  ;;  %v2281_v48 = vsel %vm7942_vm2, %v8771_v47, %v8756_v30  ;;  %v8850_v37 = vrot.slane %v2323_v55, 4 }
  0x9d   : > { %7431 = vmatprep.mubr.bf16.mxu1 %v7785_v52  ;;  %v2247_v52 = vsel %vm7942_vm2, %v8714_v58, %v8658_v60  ;;  %v2371_v60 = vor.u32 %v2370_v18, %v8806_v57  ;;  %v2379_v58 = vshrl.u32 %v6561_v19, 16  ;;  %v8852_v2 = vrot.slane %v2337_v14, 4  ;;  %v6564_v14 = vld [vmem:[%s7911_s23 + $0x90] sm:$0xf]  ;;  %v8883_v59 = vld [vmem:[%s7911_s23 + $0x94] sm:$0xf] }
  0x9e   : > { %v8862_v63 = vrot.slane %v2347_v24, 4  ;;  %v8864_v28 = vrot.slane %v2350_v49, 5  ;;  %v2388_v30 = vshll.u32 %v8829_v3, 16  ;;  %v2392_v47 = vshrl.u32 %v8829_v3, 16  ;;  %10778 = vst [vmem:[#allocation6_spill] sm:$0xff] %v8883_v59 }
  0x9f   : > { %v2305_v55 = vsel %vm7942_vm2, %v8798_v38, %v8774_v5  ;;  %v8877_v9 = vrot.slane %v2361_v20, 4  ;;  %v8879_v51 = vrot.slane %v2374_v40, 5  ;;  %v2384_v18 = vrot.slane %v2382_v29, 5  ;;  %v7795_v5 = vld [vmem:[%s10718_s1 + $0x168] sm:$0xff]  }
  0xa0   : > { %v2406_v38 = vshll.u32 %v6564_v14, 16  ;;  %v2412_v24 = vshll.u32 %v8883_v59, 16  ;;  %v2416_v49 = vshrl.u32 %v8883_v59, 16  ;;  %v6598_v40 = vcombine.low %v2223_v22, %v2233_v43 }
  0xa1   : > { %7480 = vmatmul.mubr.bf16.vlgmr.msra.gmra.mxu0 %v6596_v4  ;;  %v2295_v4 = vsel %vm7942_vm2, %v8788_v33, %v8733_v7  ;;  %v2398_v7 = vshll.u32 %v8855_v17, 16  ;;  %v2403_v33 = vshrl.u32 %v6564_v14, 16  ;;  %v6599_v20 = vcombine.low %v2247_v52, %v2257_v50 }
  0xa2   : > { %7560 = vmatpush3.bf16.msra.mxu0 %v8585_v15  ;;  %7483 = vmatprep.mubr.bf16.mxu0 %v6597_v54  ;;  %v8885_v15 = vrot.slane %v2371_v60, 4  ;;  %v2381_v54 = vrot.slane %v2379_v58, 4  ;;  %v8894_v19 = vrot.slane %v2388_v30, 5  ;;  %v7790_v60 = vld [vmem:[%s7911_s23 + $0x30] sm:$0xff]   ;;  %v7800_v58 = vld [vmem:[%s10718_s1 + $0x1a0] sm:$0xff]   ;;  %v2408_v14 = vrot.slane %v2406_v38, 5 }
  0xa3   : > { %7561 = vmatprep.subr.bf16.mxu0 %v7792_v12  ;;  %v2405_v29 = vrot.slane %v2403_v33, 4  ;;  %v2418_v22 = vrot.slane %v2416_v49, 4  ;;  %v8902_v43 = vcombine.low %v2271_v6, %v2281_v48  ;;  %v8905_v52 = vcombine.low %v2295_v4, %v2305_v55  ;;  %v6567_v30 = vld [vmem:[%s7911_s23 + $0x9c] sm:$0xf]  ;;  %v8927_v4 = vld [vmem:[%s7911_s23 + $0xa4] sm:$0x1] }
  0xa4   : > { %7432 = vmatmul.mubr.bf16.vlgmr.msra.gmra.mxu1 %v7786_v35  ;;  %v2394_v35 = vrot.slane %v2392_v47, 4  ;;  %v2385_v48 = vor.u32 %v2384_v18, %v2381_v54  ;;  %v8924_v47 = vld [vmem:[%s7911_s23 + $0xa0] sm:$0xf]  ;;  %10781 = vst [vmem:[#allocation9_spill] sm:$0xff] %v8927_v4  ;;  %v2427_v55 = vshrl.u32 %v6567_v30, 16  ;;  %v2430_v33 = vshll.u32 %v6567_v30, 16 }
  0xa5   : > { %7512 = vmatpush3.bf16.msra.mxu1 %v8580_v36  ;;  %7435 = vmatprep.mubr.bf16.mxu1 %v7789_v25  ;;  %v8900_v36 = vrot.slane %v2412_v24, 5  ;;  %v2329_v25 = vsel %vm7942_vm2, %v8850_v37, %v8836_v1  ;;  %10780 = vst [vmem:[#allocation8_spill] sm:$0xff] %v8924_v47  ;;  %v7793_v38 = vld [vmem:[%s7911_s23 + $0x3c] sm:$0xff]   ;;  %v2436_v37 = vshll.u32 %v8924_v47, 16  ;;  %v2440_v24 = vshrl.u32 %v8924_v47, 16 }
  0xa6   : > { %7513 = vmatprep.subr.bf16.mxu1 %v7791_v13  ;;  %7562 = vmatpush3.bf16.msra.mxu0 %v7792_v12  ;;  %v8916_v12 = vld [vmem:[%s7911_s23 + $0x98] sm:$0x1]  ;;  %v2395_v1 = vor.u32 %v2394_v35, %v8894_v19  ;;  %v7799_v54 = vld [vmem:[%s10718_s1 + $0x160] sm:$0xff]   ;;  %v2409_v18 = vor.u32 %v2408_v14, %v2405_v29  ;;  %v2429_v30 = vrot.slane %v2427_v55, 4  ;;  %v2432_v49 = vrot.slane %v2430_v33, 5 }
  0xa7   : > { %7563 = vmatprep.subr.bf16.mxu0 %v8860_v11  ;;  %10779 = vst [vmem:[#allocation7_spill] sm:$0xff] %v8916_v12  ;;  %v2422_v35 = vshll.u32 %v8916_v12, 16  ;;  %v2442_v6 = vrot.slane %v2440_v24, 4  ;;  %v2446_v50 = vshll.u32 %v8927_v4, 16  ;;  %v6570_v47 = vld [vmem:[%s7911_s23 + $0xa8] sm:$0xf] }
  0xa8   : > { %v7803_v29 = vld [vmem:[%s10718_s1 + $0x158] sm:$0xff]   ;;  %v8950_v14 = vrot.slane %v2385_v48, 4  ;;  %v2451_v55 = vshrl.u32 %v6570_v47, 16  ;;  %v2454_v33 = vshll.u32 %v6570_v47, 16  ;;  %v8963_v4 = vld [vmem:[%s7911_s23 + $0xb0] sm:$0x1] }
  0xa9   : > { %7484 = vmatmul.mubr.bf16.gmra.mxu0 %v6598_v40  ;;  %7514 = vmatpush3.bf16.msra.mxu1 %v7791_v13  ;;  %v7804_v13 = vld [vmem:[%s10718_s1 + $0x198] sm:$0xff]   ;;  %v2419_v40 = vor.u32 %v2418_v22, %v8900_v36  ;;  %v8952_v22 = vrot.slane %v2398_v7, 5  ;;  %v7794_v48 = vld [vmem:[%s7911_s23 + $0x48] sm:$0xff]   ;;  %v8966_v7 = vrot.slane %v2395_v1, 4  ;;  %v8968_v12 = vrot.slane %v2409_v18, 4 }
  0xaa   : > { %7487 = vmatprep.mubr.bf16.mxu0 %v6599_v20  ;;  %7515 = vmatprep.subr.bf16.mxu1 %v7795_v5  ;;  %v8943_v20 = vrot.slane %v2436_v37, 5  ;;  %v2433_v37 = vor.u32 %v2432_v49, %v2429_v30  ;;  %v8970_v59 = vrot.slane %v2422_v35, 5  ;;  %v7807_v49 = vld [vmem:[%s10718_s1 + $0x150] sm:$0xff]   ;;  %v8987_v18 = vrot.slane %v2454_v33, 5 }
  0xab   : > { %7564 = vmatpush3.bf16.msra.mxu0 %v8860_v11  ;;  %v8955_v11 = vld [vmem:[%s7911_s23 + $0xac] sm:$0xf]  ;;  %v2470_v35 = vshll.u32 %v8963_v4, 16 }
  0xac   : > { %7436 = vmatmul.mubr.bf16.gmra.mxu1 %v7790_v60  ;;  %7565 = vmatprep.subr.bf16.mxu0 %v7800_v58  ;;  %10782 = vst [vmem:[#allocation10_spill] sm:$0xff] %v8955_v11  ;;  %v2353_v60 = vsel %vm7942_vm2, %v8862_v63, %v8864_v28  ;;  %v2443_v24 = vor.u32 %v2442_v6, %v8943_v20  ;;  %v2460_v47 = vshll.u32 %v8955_v11, 16  ;;  %v7797_v63 = vld [vmem:[%s7911_s23 + $0x54] sm:$0xff]   ;;  %v8977_v28 = vrot.slane %v2419_v40, 4 }
  0xad   : > { %7439 = vmatprep.mubr.bf16.mxu1 %v7793_v38  ;;  %7516 = vmatpush3.bf16.msra.mxu1 %v7795_v5  ;;  %v7808_v5 = vld [vmem:[%s10718_s1 + $0x190] sm:$0xff]   ;;  %v8979_v6 = vrot.slane %v2446_v50, 5  ;;  %v8981_v38 = vrot.slane %v2451_v55, 4  ;;  %v2464_v1 = vshrl.u32 %v8955_v11, 16  ;;  %v8996_v40 = vrot.slane %v2433_v37, 4 }
  0xae   : > { %7517 = vmatprep.subr.bf16.mxu1 %v7799_v54  ;;  %v8998_v30 = vrot.slane %v2443_v24, 4  ;;  %v6573_v55 = vld [vmem:[%s7911_s23 + $0xb4] sm:$0xf]  ;;  %v9002_v11 = vld [vmem:[%s7911_s23 + $0xb8] sm:$0xf]  ;;  %v7811_v24 = vld [vmem:[%s10718_s1 + $0x148] sm:$0xff]  }
  0xaf   : > { %7566 = vmatpush3.bf16.msra.mxu0 %v7800_v58  ;;  %v10783_v58 = vsel %vm7942_vm2, %v8800_v46, %v8778_v21  ;;  %10784 = vst [vmem:[#allocation11_spill] sm:$0xff] %v9002_v11  ;;  %v2367_v21 = vsel %vm7942_vm2, %v8877_v9, %v8806_v57  ;;  %v9014_v46 = vrot.slane %v2460_v47, 5  ;;  %v6576_v37 = vld [vmem:[%s7911_s23 + $0xc0] sm:$0xf]  ;;  %v2377_v57 = vsel %vm7942_vm2, %v8885_v15, %v8879_v51  ;;  %v9041_v47 = vld [vmem:[%s7911_s23 + $0xc4] sm:$0xf] }
  0xb0   : > { %7567 = vmatprep.subr.bf16.mxu0 %v7804_v13  ;;  %v6602_v50 = vcombine.low %v10783_v58, %v2329_v25  ;;  %v2475_v25 = vshrl.u32 %v6573_v55, 16  ;;  %v2391_v9 = vsel %vm7942_vm2, %v8950_v14, %v8894_v19  ;;  %10787 = vst [vmem:[#allocation13_spill] sm:$0xff] %v9041_v47  ;;  %v9044_v51 = vld [vmem:[%s7911_s23 + $0xc8] sm:$0x1]  ;;  %v2508_v58 = vshll.u32 %v9041_v47, 16 }
  0xb1   : > { %7488 = vmatmul.mubr.bf16.gmra.mxu0 %v8902_v43  ;;  %7518 = vmatpush3.bf16.msra.mxu1 %v7799_v54  ;;  %v10785_v43 = vsel %vm7942_vm2, %v8852_v2, %v8790_v53  ;;  %v2466_v54 = vrot.slane %v2464_v1, 4  ;;  %v2478_v53 = vshll.u32 %v6573_v55, 16  ;;  %v2484_v2 = vshll.u32 %v9002_v11, 16 }
  0xb2   : > { %7491 = vmatprep.mubr.bf16.mxu0 %v8905_v52  ;;  %v6603_v33 = vcombine.low %v10785_v43, %v2353_v60  ;;  %7519 = vmatprep.subr.bf16.mxu1 %v7803_v29  ;;  %v7812_v52 = vld [vmem:[%s10718_s1 + $0x188] sm:$0xff]   ;;  %v2488_v60 = vshrl.u32 %v9002_v11, 16  ;;  %v2477_v15 = vrot.slane %v2475_v25, 4  ;;  %v10788_v55 = vrot.slane %v8449_v32, 5 }
  0xb3   : > { %7568 = vmatpush3.bf16.msra.mxu0 %v7804_v13  ;;  %v2401_v13 = vsel %vm7942_vm2, %v8966_v7, %v8952_v22  ;;  %v2480_v19 = vrot.slane %v2478_v53, 5  ;;  %v9046_v14 = vrot.slane %v2484_v2, 5  ;;  %v2499_v22 = vshrl.u32 %v6576_v37, 16  ;;  %v7798_v2 = vld [vmem:[%s7911_s23 + $0x60] sm:$0xff]  }
  0xb4   : > { %7440 = vmatmul.mubr.bf16.gmra.mxu1 %v7794_v48  ;;  %7569 = vmatprep.subr.bf16.mxu0 %v7808_v5  ;;  %v9038_v48 = vld [vmem:[%s7911_s23 + $0xbc] sm:$0x1]  ;;  %v2490_v1 = vrot.slane %v2488_v60, 4  ;;  %v2502_v7 = vshll.u32 %v6576_v37, 16  ;;  %v9051_v43 = vrot.slane %v10788_v55, 4  ;;  %v9056_v25 = vrot.slane %v2470_v35, 5 }
  0xb5   : > { %10786 = vst [vmem:[#allocation12_spill] sm:$0xff] %v9038_v48  ;;  %7443 = vmatprep.mubr.bf16.mxu1 %v7797_v63  ;;  %7520 = vmatpush3.bf16.msra.mxu1 %v7803_v29  ;;  %v2457_v63 = vor.u32 %v8987_v18, %v8981_v38  ;;  %v2467_v29 = vor.u32 %v2466_v54, %v9014_v46  ;;  %v2512_v53 = vshrl.u32 %v9041_v47, 16  ;;  %v2494_v60 = vshll.u32 %v9038_v48, 16  ;;  %v7801_v38 = vld [vmem:[%s7911_s23 + $0x6c] sm:$0xff]   ;;  %v9076_v48 = vld [vmem:[%s7911_s23 + $0x18] sm:$0xe] }
  0xb6   : > { %7521 = vmatprep.subr.bf16.mxu1 %v7807_v49  ;;  %v2501_v37 = vrot.slane %v2499_v22, 4  ;;  %v2504_v11 = vrot.slane %v2502_v7, 5  ;;  %v9061_v55 = vrot.slane %v2508_v58, 5  ;;  %v2481_v18 = vor.u32 %v2480_v19, %v2477_v15  ;;  %v7815_v22 = vld [vmem:[%s10718_s1 + $0x140] sm:$0xff]   ;;  %v9073_v58 = vld [vmem:[%s7911_s23 + $0xc] sm:$0xe] }
  0xb7   : > { %7570 = vmatpush3.bf16.msra.mxu0 %v7808_v5  ;;  %v7816_v5 = vld [vmem:[%s10718_s1 + $0x180] sm:$0xff]   ;;  %v2491_v35 = vor.u32 %v2490_v1, %v9046_v14  ;;  %v2514_v54 = vrot.slane %v2512_v53, 4  ;;  %v2518_v47 = vshll.u32 %v9044_v51, 16  ;;  %v6604_v15 = vcombine.low %v2367_v21, %v2377_v57 }
  0xb8   : > { %7571 = vmatprep.subr.bf16.mxu0 %v7812_v52  ;;  %v2505_v7 = vor.u32 %v2504_v11, %v2501_v37  ;;  %v6605_v19 = vcombine.low %v2391_v9, %v2401_v13  ;;  %v9084_v1 = vrot.slane %v2457_v63, 4  ;;  %v9086_v11 = vrot.slane %v2467_v29, 4  ;;  %v7802_v9 = vld [vmem:[%s7911_s23 + $0x78] sm:$0xff]   ;;  %v7805_v37 = vld [vmem:[%s7911_s23 + $0x84] sm:$0xff]  }
  0xb9   : > { %7492 = vmatmul.mubr.bf16.gmra.mxu0 %v6602_v50  ;;  %7522 = vmatpush3.bf16.msra.mxu1 %v7807_v49  ;;  %v9081_v49 = vld [vmem:[%s10718_s1 + $0x238] sm:$0xff]   ;;  %v2515_v50 = vor.u32 %v2514_v54, %v9061_v55  ;;  %v9095_v53 = vrot.slane %v2491_v35, 4  ;;  %v9097_v21 = vrot.slane %v2494_v60, 5  ;;  %v9103_v63 = vrot.slane %v2518_v47, 5  ;;  %v6622_v60 = vld [vmem:[%s7911_s23 + $0x30] sm:$0xe] }
  0xba   : > { %7495 = vmatprep.mubr.bf16.mxu0 %v6603_v33  ;;  %7523 = vmatprep.subr.bf16.mxu1 %v7811_v24  ;;  %v9091_v33 = vld [vmem:[%s10718_s1 + $0x1f8] sm:$0xff]   ;;  %v9101_v13 = vrot.slane %v2505_v7, 4  ;;  %v2913_v29 = vrot.slane %v8523_v42, 5  ;;  %v10789_v35 = vld [vmem:[#allocation2_spill] sm:$0xff]  ;;  %v6638_v47 = vrot.slane %v6622_v60, 9  ;;  %v10792_v60 = vld [vmem:[#allocation3_spill] sm:$0xff] }
  0xbb   : > { %7572 = vmatpush3.bf16.msra.mxu0 %v7812_v52  ;;  %v9093_v52 = vrot.slane %v2481_v18, 4  ;;  %v10790_v7 = vld [vmem:[#allocation5_spill] sm:$0xff]  ;;  %v2934_v18 = vrot.slane %v8606_v0, 5  ;;  %v2449_v0 = vsel %vm7942_vm2, %v8998_v30, %v8979_v6  ;;  %v2948_v30 = vrot.slane %v8697_v41, 5 }
  0xbc   : > { %7444 = vmatmul.mubr.bf16.gmra.mxu1 %v7798_v2  ;;  %7573 = vmatprep.subr.bf16.mxu0 %v7816_v5  ;;  %v2931_v57 = vrot.slane %v10790_v7, 5  ;;  %v10791_v2 = vld [vmem:[#allocation4_spill] sm:$0xff] }
  0xbd   : > { %7447 = vmatprep.mubr.bf16.mxu1 %v7801_v38  ;;  %7524 = vmatpush3.bf16.msra.mxu1 %v7811_v24  ;;  %v9108_v24 = vrot.slane %v2515_v50, 4  ;;  %v2917_v38 = vrot.slane %v8540_v61, 5  ;;  %v2415_v50 = vsel %vm7942_vm2, %v8968_v12, %v8900_v36  ;;  %v2938_v54 = vrot.slane %v10791_v2, 5  ;;  %v6623_v12 = vld [vmem:[%s7911_s23 + $0x3c] sm:$0xe] }
  0xbe   : > { %7525 = vmatprep.subr.bf16.mxu1 %v7815_v22  ;;  %v9130_v7 = vsel %vm8253_vm5, %v6638_v47, %v2931_v57  ;;  %v2933_v36 = vrot.slane %v2931_v57, 4  ;;  %v6639_v2 = vrot.slane %v6623_v12, 9  ;;  %v7806_v47 = vld [vmem:[%s7911_s23 + $0x90] sm:$0xff]   ;;  %v2955_v12 = vrot.slane %v8717_v34, 5 }
  0xbf   : > { %7574 = vmatpush3.bf16.msra.mxu0 %v7816_v5  ;;  %v2425_v5 = vsel %vm7942_vm2, %v8977_v28, %v8970_v59  ;;  %v2439_v59 = vsel %vm7942_vm2, %v8996_v40, %v8943_v20  ;;  %v2940_v28 = vrot.slane %v2938_v54, 4  ;;  %v2945_v20 = vrot.slane %v8656_v39, 5 }
  0xc0   : > { %7655 = vmatprep.subr.bf16.mxu0 %v9081_v49  ;;  %v9144_v57 = vsel %vm8253_vm5, %v2933_v36, %v2934_v18  ;;  %v6607_v18 = vcombine.low %v2439_v59, %v2449_v0  ;;  %v9159_v39 = vsel %vm8253_vm5, %v6639_v2, %v2938_v54  ;;  %v2463_v36 = vsel %vm7942_vm2, %v9084_v1, %v9014_v46  ;;  %v6625_v54 = vld [vmem:[%s7911_s23 + $0x54] sm:$0xe] }
  0xc1   : > { %7496 = vmatmul.mubr.bf16.gmra.mxu0 %v6604_v15  ;;  %7526 = vmatpush3.bf16.msra.mxu1 %v7815_v22  ;;  %v2927_v15 = vrot.slane %v10792_v60, 5  ;;  %v2941_v22 = vrot.slane %v8635_v45, 5  ;;  %v6670_v40 = vcombine.low %v9130_v7, %v9144_v57  ;;  %v6624_v45 = vld [vmem:[%s7911_s23 + $0x48] sm:$0xe]  ;;  %v2473_v46 = vsel %vm7942_vm2, %v9086_v11, %v9056_v25  ;;  %v7826_v7 = vld [vmem:[%s7911_s23 + $0x54] sm:$0xff]  }
  0xc2   : > { %7499 = vmatprep.mubr.bf16.mxu0 %v6605_v19  ;;  %7607 = vmatprep.subr.bf16.mxu1 %v9091_v33  ;;  %v6606_v19 = vcombine.low %v2415_v50, %v2425_v5  ;;  %v2947_v50 = vrot.slane %v2945_v20, 4  ;;  %v7809_v5 = vld [vmem:[%s7911_s23 + $0x9c] sm:$0xff]   ;;  %v2959_v2 = vrot.slane %v8721_v31, 5  ;;  %v2487_v34 = vsel %vm7942_vm2, %v9093_v52, %v9046_v14 }
  0xc3   : > { %v9151_v6 = vsel %vm8253_vm5, %v2940_v28, %v2941_v22  ;;  %v6641_v28 = vrot.slane %v6625_v54, 9  ;;  %v6626_v22 = vld [vmem:[%s7911_s23 + $0x60] sm:$0xe]  ;;  %v2962_v25 = vrot.slane %v8769_v16, 5  ;;  %v2497_v11 = vsel %vm7942_vm2, %v9095_v53, %v9097_v21 }
  0xc4   : > { %7448 = vmatmul.mubr.bf16.gmra.mxu1 %v7802_v9  ;;  %v2952_v9 = vrot.slane %v8691_v10, 5  ;;  %v6671_v41 = vcombine.low %v9159_v39, %v9151_v6  ;;  %v9174_v59 = vsel %vm8253_vm5, %v2947_v50, %v2948_v30  ;;  %v2966_v14 = vrot.slane %v8761_v8, 5  ;;  %v6852_v6 = vld [vmem:[%s7911_s23 + $0x24] sm:$0xe] }
  0xc5   : > { %7451 = vmatprep.mubr.bf16.mxu1 %v7805_v37  ;;  %v6640_v37 = vrot.slane %v6624_v45, 9  ;;  %v2961_v45 = vrot.slane %v2959_v2, 4  ;;  %v6608_v52 = vcombine.low %v2463_v36, %v2473_v46  ;;  %v2969_v8 = vrot.slane %v8782_v62, 5  ;;  %v6628_v36 = vld [vmem:[%s7911_s23 + $0x78] sm:$0xe] }
  0xc6   : > { %v2954_v0 = vrot.slane %v2952_v9, 4  ;;  %v9201_v31 = vsel %vm8253_vm5, %v6641_v28, %v2952_v9  ;;  %v2968_v9 = vrot.slane %v2966_v14, 4  ;;  %v2973_v54 = vrot.slane %v8786_v44, 5 }
  0xc7   : > { %v9170_v10 = vsel %vm8253_vm5, %v6640_v37, %v2945_v20  ;;  %v6642_v20 = vrot.slane %v6626_v22, 9  ;;  %v9213_v53 = vsel %vm8253_vm5, %v2961_v45, %v2962_v25  ;;  %v6609_v37 = vcombine.low %v2487_v34, %v2497_v11 }
  0xc8   : > { %v9229_v46 = vsel %vm8253_vm5, %v2968_v9, %v2969_v8  ;;  %v6644_v62 = vrot.slane %v6628_v36, 9  ;;  %v2980_v28 = vrot.slane %v8829_v3, 5  ;;  %v2975_v44 = vrot.slane %v2973_v54, 4  ;;  %v7817_v8 = vld [vmem:[%s7911_s23 + $0x18] sm:$0xff]   ;;  %v10797_v36 = vld [vmem:[#allocation8_spill] sm:$0xff] }
  0xc9   : > { %7500 = vmatmul.mubr.bf16.gmra.mxu0 %v6606_v19  ;;  %v9192_v19 = vsel %vm8253_vm5, %v2954_v0, %v2955_v12  ;;  %v9208_v16 = vsel %vm8253_vm5, %v6642_v20, %v2959_v2  ;;  %v2976_v0 = vrot.slane %v8793_v26, 5  ;;  %v2983_v26 = vrot.slane %v8855_v17, 5  ;;  %v6629_v20 = vld [vmem:[%s7911_s23 + $0x84] sm:$0xe] }
  0xca   : > { %7503 = vmatprep.mubr.bf16.mxu0 %v6607_v18  ;;  %v6627_v18 = vld [vmem:[%s7911_s23 + $0x6c] sm:$0xe]  ;;  %v2511_v2 = vsel %vm7942_vm2, %v9101_v13, %v9061_v55  ;;  %v9241_v34 = vsel %vm8253_vm5, %v6644_v62, %v2973_v54  ;;  %v2521_v3 = vsel %vm7942_vm2, %v9108_v24, %v9103_v63  ;;  %v6645_v25 = vrot.slane %v6629_v20, 9  ;;  %v10795_v63 = vld [vmem:[#allocation6_spill] sm:$0xff] }
  0xcb   : > { %v6643_v21 = vrot.slane %v6627_v18, 9  ;;  %v9250_v17 = vsel %vm8253_vm5, %v2975_v44, %v2976_v0  ;;  %v2982_v11 = vrot.slane %v2980_v28, 4  ;;  %v10793_v45 = vrot.slane %v8449_v32, 5  ;;  %v6630_v18 = vld [vmem:[%s7911_s23 + $0x90] sm:$0xe]  ;;  %v7829_v62 = vld [vmem:[%s7911_s23 + $0x60] sm:$0xff]  }
  0xcc   : > { %7452 = vmatmul.mubr.bf16.gmra.mxu1 %v7806_v47  ;;  %v7810_v47 = vld [vmem:[%s7911_s23 + $0xa8] sm:$0xff]   ;;  %v10794_v55 = vrot.slane %v9073_v58, 9  ;;  %v2987_v24 = vrot.slane %v10795_v63, 5  ;;  %v9267_v32 = vsel %vm8253_vm5, %v6645_v25, %v2980_v28  ;;  %v2994_v54 = vrot.slane %v10797_v36, 5 }
  0xcd   : > { %7455 = vmatprep.mubr.bf16.mxu1 %v7809_v5  ;;  %v7813_v5 = vld [vmem:[%s7911_s23 + $0xb4] sm:$0xff]   ;;  %v9225_v12 = vsel %vm8253_vm5, %v6643_v21, %v2966_v14  ;;  %v6621_v14 = vld [vmem:[%s7911_s23 + $0x24] sm:$0xe]  ;;  %v10796_v21 = vld [vmem:[#allocation7_spill] sm:$0xff]  ;;  %v9271_v58 = vsel %vm8253_vm5, %v2982_v11, %v2983_v26  ;;  %v6610_v0 = vcombine.low %v2511_v2, %v2521_v3  ;;  %v2914_v28 = vsel %vm8253_vm5, %v9051_v43, %v2913_v29 }
  0xce   : > { %v2911_v13 = vsel %vm8253_vm5, %v10794_v55, %v10793_v45  ;;  %v2990_v9 = vrot.slane %v10796_v21, 5  ;;  %v2989_v44 = vrot.slane %v2987_v24, 4  ;;  %v7814_v45 = vld [vmem:[%s7911_s23 + $0xc0] sm:$0xff]   ;;  %v2919_v26 = vrot.slane %v2917_v38, 4  ;;  %v6631_v2 = vld [vmem:[%s7911_s23 + $0x9c] sm:$0xe] }
  0xcf   : > { %v2996_v3 = vrot.slane %v2994_v54, 4  ;;  %v6647_v11 = vrot.slane %v6631_v2, 9  ;;  %v10799_v55 = vld [vmem:[#allocation10_spill] sm:$0xff]  ;;  %v6632_v63 = vld [vmem:[%s7911_s23 + $0xa8] sm:$0xe]  ;;  %v6667_v21 = vcombine.low %v2911_v13, %v2914_v28  ;;  %v10803_v28 = vrot.slane %v9076_v48, 9 }
  0xd0   : > { %v9292_v25 = vsel %vm8253_vm5, %v2989_v44, %v2990_v9  ;;  %v3001_v42 = vrot.slane %v10799_v55, 5  ;;  %v9415_v43 = vld [vmem:[%s7911_s23 + $0x34] sm:$0xf] }
  0xd1   : > { %7504 = vmatmul.mubr.bf16.gmra.mxu0 %v6608_v52  ;;  %v9305_v9 = vsel %vm8253_vm5, %v6647_v11, %v2994_v54  ;;  %v6633_v54 = vld [vmem:[%s7911_s23 + $0xb4] sm:$0xe]  ;;  %v3835_v39 = vshll.u32 %v9415_v43, 16 }
  0xd2   : > { %7507 = vmatprep.mubr.bf16.mxu0 %v6609_v37  ;;  %v6646_v37 = vrot.slane %v6630_v18, 9  ;;  %v6637_v18 = vrot.slane %v6621_v14, 9  ;;  %v3003_v36 = vrot.slane %v3001_v42, 4  ;;  %v10800_v14 = vrot.slane %v10789_v35, 5 }
  0xd3   : > { %v6649_v55 = vrot.slane %v6633_v54, 9 }
  0xd4   : > { %7456 = vmatmul.mubr.bf16.gmra.mxu1 %v7810_v47  ;;  %v10798_v47 = vld [vmem:[#allocation9_spill] sm:$0xff]  ;;  %v2926_v44 = vrot.slane %v10800_v14, 4  ;;  %v10805_v61 = vmov %v10800_v14  ;;  %v3018_v14 = vrot.slane %v9044_v51, 5  ;;  %v6769_v51 = vld [vmem:[%s7911_s23 + $0x30] sm:$0xf] }
  0xd5   : > { %7459 = vmatprep.mubr.bf16.mxu1 %v7813_v5  ;;  %v2997_v20 = vrot.slane %v10798_v47, 5  ;;  %v9287_v5 = vsel %vm8253_vm5, %v6646_v37, %v2987_v24  ;;  %v3004_v24 = vrot.slane %v8963_v4, 5  ;;  %v6648_v37 = vrot.slane %v6632_v63, 9 }
  0xd6   : > { %v10804_v63 = vrot.slane %v8554_v23, 5  ;;  %v2925_v48 = vsel %vm8253_vm5, %v6637_v18, %v10805_v61  ;;  %v2928_v23 = vsel %vm8253_vm5, %v2926_v44, %v2927_v15  ;;  %v9385_v61 = vld [vmem:[%s7911_s23 + $0x28] sm:$0xf] }
  0xd7   : > { %v9299_v29 = vsel %vm8253_vm5, %v2996_v3, %v2997_v20  ;;  %v10801_v20 = vld [vmem:[#allocation11_spill] sm:$0xff]  ;;  %v9314_v4 = vsel %vm8253_vm5, %v6648_v37, %v3001_v42  ;;  %v9318_v13 = vsel %vm8253_vm5, %v3003_v36, %v3004_v24  ;;  %v2918_v3 = vsel %vm8253_vm5, %v10803_v28, %v2917_v38  ;;  %v6634_v37 = vld [vmem:[%s7911_s23 + $0xc0] sm:$0xe]  ;;  %v10806_v38 = vld [vmem:[#allocation13_spill] sm:$0xff] }
  0xd8   : > { %v3008_v2 = vrot.slane %v10801_v20, 5  ;;  %v2921_v24 = vsel %vm8253_vm5, %v2919_v26, %v10804_v63  ;;  %v3015_v36 = vrot.slane %v10806_v38, 5  ;;  %v6650_v18 = vrot.slane %v6634_v37, 9  ;;  %v7824_v20 = vld [vmem:[%s10718_s1 + $0x230] sm:$0xff]   ;;  %v6766_v63 = vld [vmem:[%s7911_s23 + $0x24] sm:$0xf] }
  0xd9   : > { %7508 = vmatmul.mubr.bf16.gmra.mxu0 %v6610_v0  ;;  %v6668_v15 = vcombine.low %v2918_v3, %v2921_v24  ;;  %v6669_v54 = vcombine.low %v2925_v48, %v2928_v23  ;;  %v7823_v28 = vld [vmem:[%s10718_s1 + $0x1f0] sm:$0xff]   ;;  %v7822_v48 = vld [vmem:[%s7911_s23 + $0x3c] sm:$0xff]   ;;  %v3802_v37 = vshrl.u32 %v6766_v63, 16  ;;  %v7825_v38 = vld [vmem:[%s7911_s23 + $0x48] sm:$0xff]   ;;  %v3811_v23 = vshll.u32 %v9385_v61, 16 }
  0xda   : > { %7575 = vmatprep.mubr.bf16.mxu0 %v7817_v8  ;;  %v10802_v8 = vld [vmem:[#allocation12_spill] sm:$0xff]  ;;  %v3010_v42 = vrot.slane %v3008_v2, 4  ;;  %v9349_v26 = vsel %vm8253_vm5, %v6649_v55, %v3008_v2  ;;  %v3017_v60 = vrot.slane %v3015_v36, 4  ;;  %v9362_v44 = vsel %vm8253_vm5, %v6650_v18, %v3015_v36  ;;  %v6763_v2 = vld [vmem:[%s7911_s23 + $0x18] sm:$0xf]  ;;  %v7828_v55 = vld [vmem:[%s10718_s1 + $0x228] sm:$0xff]  }
  0xdb   : > { %v3011_v0 = vrot.slane %v10802_v8, 5  ;;  %v3781_v24 = vshll.u32 %v6763_v2, 16  ;;  %v7827_v36 = vld [vmem:[%s10718_s1 + $0x1e8] sm:$0xff]   ;;  %v6765_v18 = vld [vmem:[%s7911_s23 + $0x20] sm:$0x1]  ;;  %v3804_v11 = vrot.slane %v3802_v37, 4 }
  0xdc   : > { %7460 = vmatmul.mubr.bf16.gmra.mxu1 %v7814_v45  ;;  %v7818_v45 = vld [vmem:[%s7911_s23 + $0x24] sm:$0xff]   ;;  %v9367_v8 = vsel %vm8253_vm5, %v3017_v60, %v3018_v14  ;;  %v3805_v14 = vshll.u32 %v6766_v63, 16  ;;  %v9405_v63 = vld [vmem:[%s7911_s23 + $0x2c] sm:$0x1]  ;;  %v3826_v37 = vshrl.u32 %v6769_v51, 16 }
  0xdd   : > { %7527 = vmatprep.mubr.bf16.mxu1 %v6667_v21  ;;  %v7821_v21 = vld [vmem:[%s7911_s23 + $0x30] sm:$0xff]   ;;  %v9353_v35 = vsel %vm8253_vm5, %v3010_v42, %v3011_v0  ;;  %v9370_v0 = vld [vmem:[%s7911_s23 + $0x1c] sm:$0xf]  ;;  %v3778_v42 = vshrl.u32 %v6763_v2, 16 }
  0xde   : > { %v4549_v3 = vrot.slane %v9370_v0, 5  ;;  %v3807_v47 = vrot.slane %v3805_v14, 5 }
  0xdf   : > { %v3780_v60 = vrot.slane %v3778_v42, 4  ;;  %v7831_v42 = vld [vmem:[%s10718_s1 + $0x1e0] sm:$0xff]  }
  0xe1   : > { %7576 = vmatmul.mubr.bf16.vlgmr.msra.gmra.mxu0 %v7818_v45  ;;  %v3791_v45 = vshrl.u32 %v9370_v0, 16 }
  0xe2   : > { %7656 = vmatpush3.bf16.msra.mxu0 %v9081_v49  ;;  %7579 = vmatprep.mubr.bf16.mxu0 %v7821_v21  ;;  %v3787_v49 = vshll.u32 %v9370_v0, 16  ;;  %v3815_v21 = vshrl.u32 %v9385_v61, 16 }
  0xe3   : > { %7657 = vmatprep.subr.bf16.mxu0 %v7824_v20 }
  0xe4   : > { %7528 = vmatmul.mubr.bf16.vlgmr.msra.gmra.mxu1 %v6668_v15  ;;  %v6851_v15 = vld [vmem:[%s7911_s23 + $0x18] sm:$0xe]  ;;  %v9400_v2 = vrot.slane %v3787_v49, 5  ;;  %v3797_v49 = vshll.u32 %v6765_v18, 16  ;;  %v3817_v0 = vrot.slane %v3815_v21, 4 }
  0xe5   : > { %7608 = vmatpush3.bf16.msra.mxu1 %v9091_v33  ;;  %7531 = vmatprep.mubr.bf16.mxu1 %v6669_v54  ;;  %v7832_v33 = vld [vmem:[%s10718_s1 + $0x220] sm:$0xff]   ;;  %v3793_v54 = vrot.slane %v3791_v45, 4  ;;  %v9412_v45 = vrot.slane %v3811_v23, 5  ;;  %v7836_v23 = vld [vmem:[%s10718_s1 + $0x218] sm:$0xff]  }
  0xe6   : > { %7609 = vmatprep.subr.bf16.mxu1 %v7823_v28  ;;  %7658 = vmatpush3.bf16.msra.mxu0 %v7824_v20  ;;  %v3783_v20 = vrot.slane %v3781_v24, 5 }
  0xe7   : > { %7659 = vmatprep.subr.bf16.mxu0 %v7828_v55  ;;  %v3794_v21 = vor.u32 %v3793_v54, %v9400_v2  ;;  %v3818_v54 = vor.u32 %v3817_v0, %v9412_v45 }
  0xe9   : > { %7580 = vmatmul.mubr.bf16.gmra.mxu0 %v7822_v48  ;;  %7610 = vmatpush3.bf16.msra.mxu1 %v7823_v28  ;;  %v6867_v48 = vrot.slane %v6851_v15, 9  ;;  %v4552_v28 = vrot.slane %v6765_v18, 5  ;;  %v4551_v18 = vrot.slane %v4549_v3, 4  ;;  %v3821_v15 = vshll.u32 %v9405_v63, 16 }
  0xea   : > { %7583 = vmatprep.mubr.bf16.mxu0 %v7825_v38  ;;  %7611 = vmatprep.subr.bf16.mxu1 %v7827_v36  ;;  %v3829_v38 = vshll.u32 %v6769_v51, 16  ;;  %v4556_v51 = vrot.slane %v9385_v61, 5  ;;  %v3839_v61 = vshrl.u32 %v9415_v43, 16 }
  0xeb   : > { %7660 = vmatpush3.bf16.msra.mxu0 %v7828_v55  ;;  %v3784_v55 = vor.u32 %v3783_v20, %v3780_v60  ;;  %v7835_v60 = vld [vmem:[%s10718_s1 + $0x1d8] sm:$0xff]   ;;  %v9438_v20 = vrot.slane %v3797_v49, 5  ;;  %v7840_v49 = vld [vmem:[%s10718_s1 + $0x210] sm:$0xff]  }
  0xec   : > { %v9410_v24 = vpop.f32.mrf.mxu0  ;;  %7532 = vmatmul.mubr.bf16.gmra.mxu1 %v6670_v40  ;;  %7661 = vmatprep.subr.bf16.mxu0 %v7832_v33  ;;  %v9420_v14 = vpop.f32.mrf.mxu1  ;;  %v3808_v40 = vor.u32 %v3807_v47, %v3804_v11  ;;  %v3828_v47 = vrot.slane %v3826_v37, 4  ;;  %v3831_v11 = vrot.slane %v3829_v38, 5  ;;  %v9465_v37 = vld [vmem:[%s7911_s23 + $0x40] sm:$0xf]  ;;  %v4558_v50 = vrot.slane %v4556_v51, 4 }
  0xed   : > { %10807 = vst [vmem:[#allocation2_spill] sm:$0xff] %v9420_v14  ;;  %7535 = vmatprep.mubr.bf16.mxu1 %v6671_v41  ;;  %7612 = vmatpush3.bf16.msra.mxu1 %v7827_v36  ;;  %v9445_v41 = vsel %vm8253_vm5, %v6867_v48, %v4549_v3  ;;  %v6772_v36 = vld [vmem:[%s7911_s23 + $0x3c] sm:$0xf]  ;;  %v9454_v0 = vrot.slane %v3784_v55, 4  ;;  %v9460_v3 = vsel %vm8253_vm5, %v4551_v18, %v4552_v28  ;;  %v9462_v48 = vrot.slane %v3821_v15, 5  ;;  %v7839_v55 = vld [vmem:[%s10718_s1 + $0x1d0] sm:$0xff]  }
  0xee   : > { %v9431_v57 = vpop.f32.mrf.mxu0  ;;  %7613 = vmatprep.subr.bf16.mxu1 %v7831_v42  ;;  %v9449_v52 = vpop.f32.mrf.mxu1  ;;  %v9472_v22 = vrot.slane %v3808_v40, 4  ;;  %v4559_v28 = vrot.slane %v9405_v63, 5  ;;  %v3819_v18 = vrot.slane %v3818_v54, 4  ;;  %v9476_v15 = vld [vmem:[%s7911_s23 + $0x38] sm:$0x1]  ;;  %v3853_v30 = vshll.u32 %v6772_v36, 16 }
  0xef   : > { %7662 = vmatpush3.bf16.msra.mxu0 %v7832_v33  ;;  %10808 = vst [vmem:[#allocation5_spill] sm:$0xff] %v9449_v52  ;;  %v9456_v33 = vrot.slane %v3794_v21, 4  ;;  %v6868_v21 = vrot.slane %v6852_v6, 9  ;;  %v3832_v1 = vor.u32 %v3831_v11, %v3828_v47  ;;  %v9480_v52 = vrot.slane %v3839_v61, 4  ;;  %v6853_v40 = vld [vmem:[%s7911_s23 + $0x30] sm:$0xe] }
  0xf0   : > { %7663 = vmatprep.subr.bf16.mxu0 %v7836_v23  ;;  %v9467_v38 = vpop.f32.mrf.mxu0  ;;  %v3859_v6 = vshll.u32 %v9465_v37, 16  ;;  %v3863_v63 = vshrl.u32 %v9465_v37, 16  ;;  %v9488_v54 = vpop.f32.mrf.mxu1  ;;  %v10811_v11 = vcombine.low %v9201_v31, %v9192_v19  ;;  %v7830_v61 = vld [vmem:[%s7911_s23 + $0x6c] sm:$0xff]   ;;  %v9521_v19 = vsel %vm8253_vm5, %v4558_v50, %v4559_v28  ;;  %v9539_v28 = vld [vmem:[%s7911_s23 + $0x44] sm:$0x1] }
  0xf1   : > { %7584 = vmatmul.mubr.bf16.gmra.mxu0 %v7826_v7  ;;  %7614 = vmatpush3.bf16.msra.mxu1 %v7831_v42  ;;  %v9478_v7 = vrot.slane %v3835_v39, 5  ;;  %v3850_v42 = vshrl.u32 %v6772_v36, 16  ;;  %10810 = vst [vmem:[#allocation4_spill] sm:$0xff] %v9488_v54  ;;  %v3790_v39 = vsel %vm7942_vm2, %v9454_v0, %v9400_v2  ;;  %v3800_v47 = vsel %vm7942_vm2, %v9456_v33, %v9438_v20  ;;  %v7833_v36 = vld [vmem:[%s7911_s23 + $0x78] sm:$0xff]   ;;  %v9532_v33 = vld [vmem:[%s7911_s23 + $0x4c] sm:$0xf] }
  0xf2   : > { %7587 = vmatprep.mubr.bf16.mxu0 %v7829_v62  ;;  %7615 = vmatprep.subr.bf16.mxu1 %v7835_v60  ;;  %v10809_v62 = vcombine.low %v9170_v10, %v9174_v59  ;;  %v4563_v59 = vrot.slane %v9415_v43, 5  ;;  %v3814_v2 = vsel %vm7942_vm2, %v9472_v22, %v9412_v45  ;;  %v9517_v20 = vsel %vm8253_vm5, %v6868_v21, %v4556_v51  ;;  %v6775_v43 = vld [vmem:[%s7911_s23 + $0x48] sm:$0xf]  ;;  %v9543_v54 = vpop.f32.mrf.mxu1  ;;  %v6854_v14 = vld [vmem:[%s7911_s23 + $0x3c] sm:$0xe] }
  0xf3   : > { %7664 = vmatpush3.bf16.msra.mxu0 %v7836_v23  ;;  %v7844_v23 = vld [vmem:[%s10718_s1 + $0x208] sm:$0xff]   ;;  %v3845_v31 = vshll.u32 %v9476_v15, 16  ;;  %v3824_v22 = vsel %vm7942_vm2, %v3819_v18, %v9462_v48  ;;  %v6869_v45 = vrot.slane %v6853_v40, 9  ;;  %v3852_v0 = vrot.slane %v3850_v42, 4  ;;  %10813 = vst [vmem:[#allocation6_spill] sm:$0xff] %v9543_v54  ;;  %v7847_v42 = vld [vmem:[%s10718_s1 + $0x1c0] sm:$0xff]  }
  0xf4   : > { %7536 = vmatmul.mubr.bf16.gmra.mxu1 %v10809_v62  ;;  %7665 = vmatprep.subr.bf16.mxu0 %v7840_v49  ;;  %v9509_v62 = vpop.f32.mrf.mxu0  ;;  %v3855_v51 = vrot.slane %v3853_v30, 5  ;;  %v9534_v50 = vrot.slane %v3832_v1, 4  ;;  %v3842_v21 = vor.u32 %v9480_v52, %v9478_v7  ;;  %v3865_v10 = vrot.slane %v3863_v63, 4  ;;  %v7848_v30 = vld [vmem:[%s10718_s1 + $0x200] sm:$0xff]  }
  0xf5   : > { %7539 = vmatprep.mubr.bf16.mxu1 %v10811_v11  ;;  %7616 = vmatpush3.bf16.msra.mxu1 %v7835_v60  ;;  %10812 = vst [vmem:[#allocation3_spill] sm:$0xff] %v9509_v62  ;;  %v7843_v60 = vld [vmem:[%s10718_s1 + $0x1c8] sm:$0xff]   ;;  %v9541_v11 = vrot.slane %v3859_v6, 5  ;;  %v4565_v48 = vrot.slane %v4563_v59, 4  ;;  %v3874_v1 = vshrl.u32 %v6775_v43, 16  ;;  %v3877_v18 = vshll.u32 %v6775_v43, 16 }
  0xf6   : > { %7617 = vmatprep.subr.bf16.mxu1 %v7839_v55  ;;  %v9554_v40 = vcombine.low %v3790_v39, %v3800_v47  ;;  %v3887_v63 = vshrl.u32 %v9532_v33, 16  ;;  %v9562_v43 = vrot.slane %v3845_v31, 5  ;;  %v3869_v54 = vshll.u32 %v9539_v28, 16  ;;  %v6778_v39 = vld [vmem:[%s7911_s23 + $0x54] sm:$0xf]  ;;  %v7834_v6 = vld [vmem:[%s7911_s23 + $0x84] sm:$0xff]  }
  0xf7   : > { %7666 = vmatpush3.bf16.msra.mxu0 %v7840_v49  ;;  %v4566_v49 = vrot.slane %v9476_v15, 5  ;;  %v9549_v52 = vpop.f32.mrf.mxu0  ;;  %v3883_v15 = vshll.u32 %v9532_v33, 16  ;;  %v4570_v31 = vrot.slane %v9465_v37, 5  ;;  %v10817_v37 = vcombine.low %v9225_v12, %v9229_v46  ;;  %v7837_v47 = vld [vmem:[%s7911_s23 + $0x90] sm:$0xff]  }
  0xf8   : > { %7667 = vmatprep.subr.bf16.mxu0 %v7844_v23  ;;  %10814 = vst [vmem:[#allocation7_spill] sm:$0xff] %v9549_v52 }
  0xf9   : > { %7588 = vmatmul.mubr.bf16.gmra.mxu0 %v7830_v61  ;;  %7618 = vmatpush3.bf16.msra.mxu1 %v7839_v55  ;;  %v9560_v61 = vcombine.low %v3814_v2, %v3824_v22  ;;  %v3856_v55 = vor.u32 %v3855_v51, %v3852_v0  ;;  %v3866_v2 = vor.u32 %v3865_v10, %v9541_v11  ;;  %v9578_v22 = vld [vmem:[%s7911_s23 + $0x58] sm:$0xf]  ;;  %v9585_v51 = vrot.slane %v3842_v21, 4 }
  0xfa   : > { %7591 = vmatprep.mubr.bf16.mxu0 %v7833_v36  ;;  %7619 = vmatprep.subr.bf16.mxu1 %v7843_v60  ;;  %v9573_v36 = vsel %vm8253_vm5, %v6869_v45, %v4563_v59  ;;  %v10815_v0 = vcombine.low %v9208_v16, %v9213_v53  ;;  %v9589_v59 = vsel %vm8253_vm5, %v4565_v48, %v4566_v49  ;;  %v3876_v45 = vrot.slane %v3874_v1, 4  ;;  %v9596_v16 = vpop.f32.mrf.mxu0  ;;  %v6777_v1 = vld [vmem:[%s7911_s23 + $0x50] sm:$0x1] }
  0xfb   : > { %7668 = vmatpush3.bf16.msra.mxu0 %v7844_v23  ;;  %v9583_v23 = vpop.f32.mrf.mxu1  ;;  %v3879_v10 = vrot.slane %v3877_v18, 5  ;;  %10818 = vst [vmem:[#allocation9_spill] sm:$0xff] %v9596_v16  ;;  %v6870_v53 = vrot.slane %v6854_v14, 9  ;;  %v3889_v21 = vrot.slane %v3887_v63, 4  ;;  %v3857_v48 = vrot.slane %v3856_v55, 4 }
  0xfc   : > { %7540 = vmatmul.mubr.bf16.gmra.mxu1 %v10815_v0  ;;  %10816 = vst [vmem:[#allocation8_spill] sm:$0xff] %v9583_v23  ;;  %7669 = vmatprep.subr.bf16.mxu0 %v7848_v30  ;;  %v9598_v0 = vrot.slane %v3883_v15, 5  ;;  %v3898_v23 = vshrl.u32 %v6778_v39, 16  ;;  %v3871_v49 = vrot.slane %v3869_v54, 5  ;;  %v3901_v18 = vshll.u32 %v6778_v39, 16  ;;  %v9614_v39 = vpop.f32.mrf.mxu0 }
  0xfd   : > { %7543 = vmatprep.mubr.bf16.mxu1 %v10817_v37  ;;  %7620 = vmatpush3.bf16.msra.mxu1 %v7843_v60  ;;  %v3907_v52 = vshll.u32 %v9578_v22, 16  ;;  %v3867_v12 = vrot.slane %v3866_v2, 4  ;;  %v4572_v46 = vrot.slane %v4570_v31, 4  ;;  %v4573_v37 = vrot.slane %v9539_v28, 5  ;;  %v9604_v60 = vpop.f32.mrf.mxu1  ;;  %v6781_v55 = vld [vmem:[%s7911_s23 + $0x60] sm:$0xf] }
  0xfe   : > { %7621 = vmatprep.subr.bf16.mxu1 %v7847_v42  ;;  %v3911_v14 = vshrl.u32 %v9578_v22, 16  ;;  %10819 = vst [vmem:[#allocation10_spill] sm:$0xff] %v9604_v60  ;;  %v3848_v15 = vsel %vm7942_vm2, %v9585_v51, %v9562_v43  ;;  %v3880_v63 = vor.u32 %v3879_v10, %v3876_v45  ;;  %v3890_v28 = vor.u32 %v3889_v21, %v9598_v0  ;;  %v6855_v60 = vld [vmem:[%s7911_s23 + $0x48] sm:$0xe] }
  0xff   : > { %7670 = vmatpush3.bf16.msra.mxu0 %v7848_v30  ;;  %v4577_v30 = vrot.slane %v9532_v33, 5  ;;  %v3893_v2 = vshll.u32 %v6777_v1, 16  ;;  %v3900_v16 = vrot.slane %v3898_v23, 4  ;;  %v3903_v62 = vrot.slane %v3901_v18, 5  ;;  %v9639_v10 = vpop.f32.mrf.mxu1 }
 0x100   : > { %v3862_v43 = vsel %vm7942_vm2, %v3857_v48, %v9541_v11  ;;  %v9623_v33 = vsel %vm8253_vm5, %v6870_v53, %v4570_v31  ;;  %v3872_v51 = vsel %vm7942_vm2, %v3867_v12, %v3871_v49  ;;  %v9631_v23 = vsel %vm8253_vm5, %v4572_v46, %v4573_v37  ;;  %10821 = vst [vmem:[#allocation11_spill] sm:$0xff] %v9639_v10  ;;  %v9642_v49 = vld [vmem:[%s7911_s23 + $0x64] sm:$0xf]  ;;  %v7838_v12 = vld [vmem:[%s7911_s23 + $0x9c] sm:$0xff]   ;;  %v9648_v46 = vpop.f32.mrf.mxu0 }
 0x101   : > { %7592 = vmatmul.mubr.bf16.gmra.mxu0 %v7834_v6  ;;  %7622 = vmatpush3.bf16.msra.mxu1 %v7847_v42  ;;  %v9625_v6 = vrot.slane %v3907_v52, 5  ;;  %v3913_v42 = vrot.slane %v3911_v14, 4  ;;  %v3922_v45 = vshrl.u32 %v6781_v55, 16  ;;  %v3925_v11 = vshll.u32 %v6781_v55, 16  ;;  %v7841_v55 = vld [vmem:[%s7911_s23 + $0xa8] sm:$0xff]  }
 0x102   : > { %7595 = vmatprep.mubr.bf16.mxu0 %v7837_v47  ;;  %v9634_v47 = vld [vmem:[%s7911_s23 + $0x5c] sm:$0x1]  ;;  %v10820_v31 = vcombine.low %v9241_v34, %v9250_v17  ;;  %v3881_v52 = vrot.slane %v3880_v63, 4  ;;  %v6871_v53 = vrot.slane %v6855_v60, 9  ;;  %v4579_v21 = vrot.slane %v4577_v30, 4 }
 0x103   : > { %v4580_v48 = vrot.slane %v6777_v1, 5  ;;  %v10822_v18 = vcombine.low %v9267_v32, %v9271_v58  ;;  %v3891_v37 = vrot.slane %v3890_v28, 4  ;;  %v3895_v14 = vrot.slane %v3893_v2, 5  ;;  %v6856_v63 = vld [vmem:[%s7911_s23 + $0x54] sm:$0xe]  ;;  %v9666_v28 = vpop.f32.mrf.mxu1 }
 0x104   : > { %7544 = vmatmul.mubr.bf16.gmra.mxu1 %v10820_v31  ;;  %v3904_v34 = vor.u32 %v3903_v62, %v3900_v16  ;;  %v4584_v17 = vrot.slane %v9578_v22, 5  ;;  %v3914_v60 = vor.u32 %v3913_v42, %v9625_v6  ;;  %v3917_v1 = vshll.u32 %v9634_v47, 16  ;;  %10824 = vst [vmem:[#allocation12_spill] sm:$0xff] %v9666_v28  ;;  %v6857_v62 = vld [vmem:[%s7911_s23 + $0x60] sm:$0xe] }
 0x105   : > { %7547 = vmatprep.mubr.bf16.mxu1 %v10822_v18  ;;  %v3924_v31 = vrot.slane %v3922_v45, 4  ;;  %v3927_v54 = vrot.slane %v3925_v11, 5  ;;  %v10823_v32 = vsel %vm7942_vm2, %v9534_v50, %v9478_v7  ;;  %v3931_v22 = vshll.u32 %v9642_v49, 16 }
 0x106   : > { %v9660_v58 = vcombine.low %v10823_v32, %v3848_v15  ;;  %v3935_v16 = vshrl.u32 %v9642_v49, 16  ;;  %v9668_v2 = vcombine.low %v3862_v43, %v3872_v51  ;;  %v3886_v42 = vsel %vm7942_vm2, %v3881_v52, %v9598_v0  ;;  %v6784_v15 = vld [vmem:[%s7911_s23 + $0x6c] sm:$0xf]  ;;  %v9686_v32 = vld [vmem:[%s7911_s23 + $0x70] sm:$0xf] }
 0x107   : > { %v9675_v7 = vsel %vm8253_vm5, %v6871_v53, %v4577_v30  ;;  %v9679_v50 = vsel %vm8253_vm5, %v4579_v21, %v4580_v48  ;;  %v9682_v45 = vpop.f32.mrf.mxu0  ;;  %v3905_v43 = vrot.slane %v3904_v34, 4  ;;  %v6872_v51 = vrot.slane %v6856_v63, 9  ;;  %v6783_v53 = vld [vmem:[%s7911_s23 + $0x68] sm:$0x1] }
 0x108   : > { %10825 = vst [vmem:[#allocation13_spill] sm:$0xff] %v9682_v45  ;;  %v4586_v11 = vrot.slane %v4584_v17, 4  ;;  %v4587_v18 = vrot.slane %v9634_v47, 5  ;;  %v3896_v0 = vsel %vm7942_vm2, %v3891_v37, %v3895_v14  ;;  %v3915_v30 = vrot.slane %v3914_v60, 4  ;;  %v6859_v45 = vld [vmem:[%s7911_s23 + $0x78] sm:$0xe] }
 0x109   : > { %7596 = vmatmul.mubr.bf16.gmra.mxu0 %v7838_v12  ;;  %v3919_v52 = vrot.slane %v3917_v1, 5  ;;  %v3928_v21 = vor.u32 %v3927_v54, %v3924_v31  ;;  %v9691_v48 = vrot.slane %v3931_v22, 5  ;;  %v3937_v12 = vrot.slane %v3935_v16, 4  ;;  %v7842_v31 = vld [vmem:[%s7911_s23 + $0xb4] sm:$0xff]  }
 0x10a   : > { %7599 = vmatprep.mubr.bf16.mxu0 %v7841_v55  ;;  %v3946_v34 = vshrl.u32 %v6784_v15, 16  ;;  %v3949_v63 = vshll.u32 %v6784_v15, 16  ;;  %v10826_v47 = vcombine.low %v9287_v5, %v9292_v25  ;;  %v4591_v14 = vrot.slane %v9642_v49, 5  ;;  %v9708_v5 = vpop.f32.mrf.mxu0 }
 0x10b   : > { %v3955_v54 = vshll.u32 %v9686_v32, 16  ;;  %v3959_v60 = vshrl.u32 %v9686_v32, 16  ;;  %v10828_v1 = vcombine.low %v9305_v9, %v9299_v29  ;;  %10829 = vst [vmem:[#allocation15_spill] sm:$0xff] %v9708_v5  ;;  %v9710_v25 = vcombine.low %v3886_v42, %v3896_v0  ;;  %v6787_v29 = vld [vmem:[%s7911_s23 + $0x78] sm:$0xf]  ;;  %v7845_v9 = vld [vmem:[%s7911_s23 + $0xc0] sm:$0xff]  }
 0x10c   : > { %7548 = vmatmul.mubr.bf16.gmra.mxu1 %v10826_v47  ;;  %v9697_v55 = vpop.f32.mrf.mxu1  ;;  %v3910_v22 = vsel %vm7942_vm2, %v3905_v43, %v9625_v6  ;;  %v9717_v49 = vsel %vm8253_vm5, %v6872_v51, %v4584_v17  ;;  %v9721_v16 = vsel %vm8253_vm5, %v4586_v11, %v4587_v18  ;;  %v3920_v15 = vsel %vm7942_vm2, %v3915_v30, %v3919_v52  ;;  %v9734_v43 = vld [vmem:[%s7911_s23 + $0x74] sm:$0x1]  ;;  %v9791_v5 = vld [vmem:[%s7911_s23 + $0x8c] sm:$0x1] }
 0x10d   : > { %10827 = vst [vmem:[#allocation14_spill] sm:$0xff] %v9697_v55  ;;  %7551 = vmatprep.mubr.bf16.mxu1 %v10828_v1  ;;  %v9727_v47 = vrot.slane %v3928_v21, 4  ;;  %v3941_v42 = vshll.u32 %v6783_v53, 16  ;;  %v6873_v0 = vrot.slane %v6857_v62, 9  ;;  %v9730_v1 = vld [vmem:[%s7911_s23 + $0x7c] sm:$0xf]  ;;  %v3938_v6 = vor.u32 %v3937_v12, %v9691_v48  ;;  %v9740_v21 = vpop.f32.mrf.mxu0 }
 0x10e   : > { %v4594_v17 = vrot.slane %v6783_v53, 5  ;;  %v3948_v51 = vrot.slane %v3946_v34, 4  ;;  %v3951_v11 = vrot.slane %v3949_v63, 5  ;;  %v9736_v18 = vpop.f32.mrf.mxu1  ;;  %v4593_v37 = vrot.slane %v4591_v14, 4  ;;  %10831 = vst [vmem:[#allocation17_spill] sm:$0xff] %v9740_v21 }
 0x10f   : > { %10830 = vst [vmem:[#allocation16_spill] sm:$0xff] %v9736_v18  ;;  %v9738_v55 = vrot.slane %v3955_v54, 5  ;;  %v3961_v30 = vrot.slane %v3959_v60, 4  ;;  %v3970_v52 = vshrl.u32 %v6787_v29, 16  ;;  %v6858_v53 = vld [vmem:[%s7911_s23 + $0x6c] sm:$0xe]  ;;  %v9747_v18 = vcombine.low %v3910_v22, %v3920_v15 }
 0x110   : > { %v3973_v12 = vshll.u32 %v6787_v29, 16  ;;  %v3979_v34 = vshll.u32 %v9730_v1, 16  ;;  %v3983_v63 = vshrl.u32 %v9730_v1, 16  ;;  %v9749_v54 = vrot.slane %v3941_v42, 5  ;;  %v6790_v62 = vld [vmem:[%s7911_s23 + $0x84] sm:$0xf]  ;;  %v9770_v42 = vpop.f32.mrf.mxu1 }
 0x111   : > { %7600 = vmatmul.mubr.bf16.gmra.mxu0 %v7842_v31  ;;  %10832 = vst [vmem:[#allocation18_spill] sm:$0xff] %v9747_v18  ;;  %v9753_v60 = vsel %vm8253_vm5, %v6873_v0, %v4591_v14  ;;  %v3965_v31 = vshll.u32 %v9734_v43, 16  ;;  %v9761_v28 = vrot.slane %v3938_v6, 4  ;;  %v4598_v22 = vrot.slane %v9686_v32, 5  ;;  %v9765_v15 = vld [vmem:[%s7911_s23 + $0x88] sm:$0xf] }
 0x112   : > { %7603 = vmatprep.mubr.bf16.mxu0 %v7845_v9  ;;  %v3952_v9 = vor.u32 %v3951_v11, %v3948_v51  ;;  %v10833_v14 = vcombine.low %v9314_v4, %v9318_v13  ;;  %10834 = vst [vmem:[#allocation19_spill] sm:$0xff] %v9770_v42  ;;  %v7846_v0 = vld [vmem:[%s7911_s23 + $0xcc] sm:$0xff]   ;;  %v9775_v10 = vsel %vm8253_vm5, %v4593_v37, %v4594_v17  ;;  %v6874_v6 = vrot.slane %v6858_v53, 9  ;;  %v9778_v11 = vpop.f32.mrf.mxu0  ;;  %v9784_v4 = vld [vmem:[%s7911_s23 + $0x80] sm:$0x1] }
 0x113   : > { %v3962_v29 = vor.u32 %v3961_v30, %v9738_v55  ;;  %v3972_v51 = vrot.slane %v3970_v52, 4  ;;  %10835 = vst [vmem:[#allocation20_spill] sm:$0xff] %v9778_v11  ;;  %v10836_v32 = vcombine.low %v9349_v26, %v9353_v35  ;;  %v3975_v13 = vrot.slane %v3973_v12, 5 }
 0x114   : > { %7552 = vmatmul.mubr.bf16.gmra.mxu1 %v10833_v14  ;;  %v9786_v14 = vrot.slane %v3979_v34, 5  ;;  %v3985_v42 = vrot.slane %v3983_v63, 4  ;;  %v3994_v21 = vshrl.u32 %v6790_v62, 16  ;;  %v3967_v37 = vrot.slane %v3965_v31, 5 }
 0x115   : > { %7555 = vmatprep.mubr.bf16.mxu1 %v10836_v32  ;;  %v4601_v17 = vrot.slane %v9734_v43, 5  ;;  %v3997_v30 = vshll.u32 %v6790_v62, 16  ;;  %v4003_v52 = vshll.u32 %v9765_v15, 16  ;;  %v3953_v53 = vrot.slane %v3952_v9, 4  ;;  %v9794_v32 = vpop.f32.mrf.mxu1 }
 0x116   : > { %v4600_v11 = vrot.slane %v4598_v22, 4  ;;  %v3996_v26 = vrot.slane %v3994_v21, 4  ;;  %v4007_v35 = vshrl.u32 %v9765_v15, 16  ;;  %v3963_v12 = vrot.slane %v3962_v29, 4 }
 0x117   : > { %v3989_v34 = vshll.u32 %v9784_v4, 16  ;;  %v3999_v63 = vrot.slane %v3997_v30, 5  ;;  %v9797_v31 = vrot.slane %v4003_v52, 5  ;;  %v3976_v62 = vor.u32 %v3975_v13, %v3972_v51  ;;  %v6860_v52 = vld [vmem:[%s7911_s23 + $0x84] sm:$0xe] }
 0x118   : > { %v9799_v43 = vpop.f32.mrf.mxu0  ;;  %v3986_v9 = vor.u32 %v3985_v42, %v9786_v14  ;;  %v4605_v21 = vrot.slane %v9730_v1, 5  ;;  %v4009_v18 = vrot.slane %v4007_v35, 4  ;;  %v10837_v29 = vcombine.low %v9445_v41, %v9460_v3 }
 0x119   : > { %7604 = vmatmul.mubr.bf16.gmra.mxu0 %v7846_v0  ;;  %v3944_v30 = vsel %vm7942_vm2, %v9761_v28, %v9749_v54  ;;  %v9815_v51 = vsel %vm8253_vm5, %v6874_v6, %v4598_v22  ;;  %v4013_v42 = vshll.u32 %v9791_v5, 16  ;;  %v3958_v41 = vsel %vm7942_vm2, %v3953_v53, %v9738_v55  ;;  %v6793_v54 = vld [vmem:[%s7911_s23 + $0x90] sm:$0xf] }
 0x11a   : > { %7671 = vmatprep.mubr.bf16.mxu0 %v10837_v29  ;;  %v9818_v1 = vpop.f32.mrf.mxu0  ;;  %v4000_v3 = vor.u32 %v3999_v63, %v3996_v26  ;;  %v4010_v13 = vor.u32 %v4009_v18, %v9797_v31  ;;  %v4612_v28 = vrot.slane %v9765_v15, 5  ;;  %v10839_v22 = vcombine.low %v9362_v44, %v9367_v8 }
 0x11b   : > { %v3968_v6 = vsel %vm7942_vm2, %v3963_v12, %v3967_v37  ;;  %v9836_v55 = vsel %vm8253_vm5, %v4600_v11, %v4601_v17  ;;  %v3991_v53 = vrot.slane %v3989_v34, 5  ;;  %v6875_v18 = vrot.slane %v6859_v45, 9  ;;  %v9845_v12 = vld [vmem:[%s7911_s23 + $0x94] sm:$0xf] }
 0x11c   : > { %v9827_v35 = vpop.f32.mrf.mxu1  ;;  %7556 = vmatmul.mubr.bf16.gmra.mxu1 %v10839_v22  ;;  %v9838_v26 = vpop.f32.mrf.mxu0  ;;  %v3977_v15 = vrot.slane %v3976_v62, 4  ;;  %v3987_v63 = vrot.slane %v3986_v9, 4  ;;  %v4607_v29 = vrot.slane %v4605_v21, 4  ;;  %v4608_v0 = vrot.slane %v9784_v4, 5 }
 0x11d   : > { %10838 = vst [vmem:[#allocation21_spill] sm:$0xff] %v9827_v35  ;;  %7623 = vmatprep.mubr.bf16.mxu1 %v9554_v40  ;;  %v4015_v8 = vrot.slane %v4013_v42, 5  ;;  %v6876_v37 = vrot.slane %v6860_v52, 9  ;;  %v4018_v11 = vshrl.u32 %v6793_v54, 16  ;;  %v4021_v17 = vshll.u32 %v6793_v54, 16 }
 0x11e   : > { %v9842_v44 = vpop.f32.mrf.mxu1  ;;  %v9847_v34 = vpop.f32.mrf.mxu0  ;;  %v4001_v45 = vrot.slane %v4000_v3, 4  ;;  %v4011_v22 = vrot.slane %v4010_v13, 4  ;;  %v4614_v40 = vrot.slane %v4612_v28, 4  ;;  %v4615_v62 = vrot.slane %v9791_v5, 5  ;;  %v9868_v54 = vld [vmem:[%s7911_s23 + $0x98] sm:$0x1] }
 0x11f   : > { %10840 = vst [vmem:[#allocation22_spill] sm:$0xff] %v9842_v44  ;;  %v10842_v4 = vsel %vm7942_vm2, %v9727_v47, %v9691_v48  ;;  %v9859_v52 = vcombine.low %v3958_v41, %v3968_v6  ;;  %v9865_v13 = vsel %vm8253_vm5, %v6875_v18, %v4605_v21  ;;  %v3982_v48 = vsel %vm7942_vm2, %v3977_v15, %v9786_v14  ;;  %v6796_v41 = vld [vmem:[%s7911_s23 + $0x9c] sm:$0xf]  ;;  %v9885_v6 = vld [vmem:[%s7911_s23 + $0xa0] sm:$0xf] }
 0x120   : > { %v9850_v9 = vpop.f32.mrf.mxu1  ;;  %v9857_v42 = vcombine.low %v10842_v4, %v3944_v30  ;;  %v7385_v5 = vpop.f32.mrf.mxu0  ;;  %v3992_v47 = vsel %vm7942_vm2, %v3987_v63, %v3991_v53  ;;  %v9880_v30 = vsel %vm8253_vm5, %v4607_v29, %v4608_v0  ;;  %v4027_v21 = vshll.u32 %v9845_v12, 16  ;;  %v9972_v35 = vld [vmem:[%s7911_s23 + $0xb0] sm:$0x1] }
 0x121   : > { %10841 = vst [vmem:[#allocation23_spill] sm:$0xff] %v9850_v9  ;;  %v10843_v9 = vcombine.low %v9517_v20, %v9521_v19  ;;  %v10845_v20 = vcombine.low %v9573_v36, %v9589_v59  ;;  %v9894_v19 = vsel %vm8253_vm5, %v6876_v37, %v4612_v28  ;;  %v4020_v14 = vrot.slane %v4018_v11, 4  ;;  %v9909_v37 = vld [vmem:[%s7911_s23 + $0x90] sm:$0xe] }
 0x122   : > { %v9887_v18 = vpop.f32.mrf.mxu1  ;;  %v4023_v53 = vrot.slane %v4021_v17, 5  ;;  %v4031_v0 = vshrl.u32 %v9845_v12, 16  ;;  %v1544_v15 = vpop.f32.mrf.mxu0  ;;  %v4006_v63 = vsel %vm7942_vm2, %v4001_v45, %v9797_v31  ;;  %v4016_v29 = vsel %vm7942_vm2, %v4011_v22, %v4015_v8 }
 0x123   : > { %7672 = vmatmul.mubr.bf16.vlgmr.msra.gmra.mxu0 %v10843_v9  ;;  %10844 = vst [vmem:[#allocation24_spill] sm:$0xff] %v9887_v18  ;;  %v9904_v36 = vsel %vm8253_vm5, %v4614_v40, %v4615_v62  ;;  %v4037_v59 = vshll.u32 %v9868_v54, 16  ;;  %v4042_v11 = vshrl.u32 %v6796_v41, 16  ;;  %v4045_v17 = vshll.u32 %v6796_v41, 16 }
 0x124   : > { %7675 = vmatprep.mubr.bf16.mxu0 %v10845_v20  ;;  %v7337_v28 = vpop.f32.mrf.mxu1  ;;  %7624 = vmatmul.mubr.bf16.vlgmr.msra.gmra.mxu1 %v9560_v61  ;;  %v4051_v9 = vshll.u32 %v9885_v6, 16  ;;  %v4055_v31 = vshrl.u32 %v9885_v6, 16  ;;  %v7386_v45 = vpop.f32.mrf.mxu0  ;;  %v9915_v22 = vcombine.low %v3982_v48, %v3992_v47  ;;  %v9919_v40 = vrot.slane %v4027_v21, 5  ;;  %v9933_v61 = vld [vmem:[%s7911_s23 + $0xa4] sm:$0x1] }
 0x125   : > { %v1100_v8 = vadd.f32 %v7337_v28, %v9410_v24  ;;  %7627 = vmatprep.mubr.bf16.mxu1 %v9660_v58  ;;  %v9921_v4 = vcombine.low %v4006_v63, %v4016_v29  ;;  %v4024_v20 = vor.u32 %v4023_v53, %v4020_v14  ;;  %v4033_v24 = vrot.slane %v4031_v0, 4  ;;  %v6799_v28 = vld [vmem:[%s7911_s23 + $0xa8] sm:$0xf]  ;;  %v9938_v14 = vld [vmem:[%s7911_s23 + $0xac] sm:$0xf] }
 0x126   : > { %v1091_v62 = vpop.f32.mrf.mxu1  ;;  %v1547_v48 = vpop.f32.mrf.mxu0  ;;  %v9929_v47 = vrot.slane %v4037_v59, 5  ;;  %v6877_v21 = vrot.slane %v9909_v37, 9  ;;  %v4044_v29 = vrot.slane %v4042_v11, 4  ;;  %v4047_v18 = vrot.slane %v4045_v17, 5 }
 0x127   : > { %v9926_v3 = vadd.f32 %v7385_v5, %v1100_v8  ;;  %v1092_v58 = vadd.f32 %v1091_v62, %v9431_v57  ;;  %v9935_v44 = vrot.slane %v4051_v9, 5  ;;  %v4057_v41 = vrot.slane %v4055_v31, 4  ;;  %v10851_v62 = vld [vmem:[#allocation3_spill] sm:$0xff] }
 0x128   : > { %v7338_v63 = vpop.f32.mrf.mxu1  ;;  %v7389_v5 = vpop.f32.mrf.mxu0  ;;  %v10848_v0 = vcombine.low %v9623_v33, %v9631_v23  ;;  %v4066_v59 = vshrl.u32 %v6799_v28, 16  ;;  %v4069_v37 = vshll.u32 %v6799_v28, 16  ;;  %v10849_v11 = vcombine.low %v9675_v7, %v9679_v50 }
 0x129   : > { %10846 = vst [vmem:[#allocation25_spill] sm:$0xff] %v9926_v3  ;;  %v9940_v53 = vadd.f32 %v1544_v15, %v1092_v58  ;;  %v1103_v57 = vadd.f32 %v7338_v63, %v9467_v38  ;;  %v9949_v17 = vrot.slane %v4024_v20, 4  ;;  %v4034_v15 = vor.u32 %v4033_v24, %v9919_v40  ;;  %v6862_v58 = vld [vmem:[%s7911_s23 + $0x9c] sm:$0xe] }
 0x12a   : > { %v1094_v8 = vpop.f32.mrf.mxu1  ;;  %v4619_v9 = vrot.slane %v9845_v12, 5  ;;  %v4061_v38 = vshll.u32 %v9933_v61, 16  ;;  %v1560_v23 = vpop.f32.mrf.mxu0  ;;  %v4622_v28 = vrot.slane %v9868_v54, 5  ;;  %v4075_v63 = vshll.u32 %v9938_v14, 16 }
 0x12b   : > { %10847 = vst [vmem:[#allocation26_spill] sm:$0xff] %v9940_v53  ;;  %7676 = vmatmul.mubr.bf16.gmra.mxu0 %v10848_v0  ;;  %v9954_v31 = vadd.f32 %v7386_v45, %v1103_v57  ;;  %v1095_v33 = vadd.f32 %v1094_v8, %v10851_v62  ;;  %v4048_v50 = vor.u32 %v4047_v18, %v4044_v29  ;;  %v4626_v12 = vrot.slane %v9885_v6, 5  ;;  %v10852_v57 = vld [vmem:[#allocation7_spill] sm:$0xff]  ;;  %v10853_v6 = vld [vmem:[#allocation9_spill] sm:$0xff] }
 0x12c   : > { %7679 = vmatprep.mubr.bf16.mxu0 %v10849_v11  ;;  %v7341_v7 = vpop.f32.mrf.mxu1  ;;  %7628 = vmatmul.mubr.bf16.gmra.mxu1 %v9668_v2  ;;  %v4058_v20 = vor.u32 %v4057_v41, %v9935_v44  ;;  %v4079_v45 = vshrl.u32 %v9938_v14, 16  ;;  %v7390_v8 = vpop.f32.mrf.mxu0  ;;  %v4068_v54 = vrot.slane %v4066_v59, 4  ;;  %v4071_v11 = vrot.slane %v4069_v37, 5 }
 0x12d   : > { %10850 = vst [vmem:[#allocation27_spill] sm:$0xff] %v9954_v31  ;;  %v9964_v24 = vadd.f32 %v1547_v48, %v1095_v33  ;;  %v1116_v0 = vadd.f32 %v7341_v7, %v10852_v57  ;;  %7631 = vmatprep.mubr.bf16.mxu1 %v9710_v25  ;;  %v4035_v31 = vrot.slane %v4034_v15, 4  ;;  %v4621_v2 = vrot.slane %v4619_v9, 4 }
 0x12e   : > { %v1107_v62 = vpop.f32.mrf.mxu1  ;;  %v4063_v18 = vrot.slane %v4061_v38, 5  ;;  %v6878_v29 = vrot.slane %v6862_v58, 9  ;;  %v1563_v3 = vpop.f32.mrf.mxu0  ;;  %v9974_v48 = vrot.slane %v4075_v63, 5  ;;  %v4081_v33 = vrot.slane %v4079_v45, 4 }
 0x12f   : > { %v9968_v41 = vadd.f32 %v7389_v5, %v1116_v0  ;;  %v1108_v53 = vadd.f32 %v1107_v62, %v10853_v6  ;;  %v4049_v57 = vrot.slane %v4048_v50, 4  ;;  %v4059_v25 = vrot.slane %v4058_v20, 4 }
 0x130   : > { %v7342_v7 = vpop.f32.mrf.mxu1  ;;  %v4628_v59 = vrot.slane %v4626_v12, 4  ;;  %v4629_v37 = vrot.slane %v9933_v61, 5  ;;  %v7393_v38 = vpop.f32.mrf.mxu0  ;;  %v10854_v58 = vcombine.low %v9717_v49, %v9721_v16  ;;  %v9985_v63 = vsel %vm8253_vm5, %v6877_v21, %v4619_v9  ;;  %v6863_v21 = vld [vmem:[%s7911_s23 + $0xa8] sm:$0xe] }
 0x131   : > { %v9977_v15 = vadd.f32 %v1560_v23, %v1108_v53  ;;  %v1119_v5 = vadd.f32 %v7342_v7, %v9614_v39  ;;  %v4072_v50 = vor.u32 %v4071_v11, %v4068_v54  ;;  %v10855_v20 = vcombine.low %v9753_v60, %v9775_v10 }
 0x132   : > { %v1110_v45 = vpop.f32.mrf.mxu1  ;;  %v4030_v39 = vsel %vm7942_vm2, %v9949_v17, %v9919_v40  ;;  %v4040_v49 = vsel %vm7942_vm2, %v4035_v31, %v9929_v47  ;;  %v9999_v16 = vsel %vm8253_vm5, %v4621_v2, %v4622_v28  ;;  %v4085_v61 = vshll.u32 %v9972_v35, 16  ;;  %v1576_v60 = vpop.f32.mrf.mxu0  ;;  %v6802_v17 = vld [vmem:[%s7911_s23 + $0xb4] sm:$0xf]  ;;  %v10856_v47 = vld [vmem:[#allocation18_spill] sm:$0xff]  ;;  %v10028_v2 = vld [vmem:[%s7911_s23 + $0xb8] sm:$0xf] }
 0x133   : > { %7680 = vmatmul.mubr.bf16.gmra.mxu0 %v10854_v58  ;;  %v10003_v53 = vadd.f32 %v7390_v8, %v1119_v5  ;;  %v1111_v10 = vadd.f32 %v1110_v45, %v9648_v46  ;;  %v4082_v9 = vor.u32 %v4081_v33, %v9974_v48  ;;  %v4633_v40 = vrot.slane %v9938_v14, 5  ;;  %v10857_v8 = vld [vmem:[#allocation13_spill] sm:$0xff] }
 0x134   : > { %7683 = vmatprep.mubr.bf16.mxu0 %v10855_v20  ;;  %v7345_v23 = vpop.f32.mrf.mxu1  ;;  %7632 = vmatmul.mubr.bf16.gmra.mxu1 %v10856_v47  ;;  %v4054_v31 = vsel %vm7942_vm2, %v4049_v57, %v9935_v44  ;;  %v4064_v28 = vsel %vm7942_vm2, %v4059_v25, %v4063_v18  ;;  %v10017_v46 = vsel %vm8253_vm5, %v6878_v29, %v4626_v12  ;;  %v7394_v11 = vpop.f32.mrf.mxu0  ;;  %v4073_v62 = vrot.slane %v4072_v50, 4  ;;  %v10858_v57 = vld [vmem:[#allocation15_spill] sm:$0xff]  ;;  %v10862_v47 = vld [vmem:[#allocation20_spill] sm:$0xff] }
 0x135   : > { %v10021_v0 = vsel %vm8253_vm5, %v4628_v59, %v4629_v37  ;;  %v10023_v14 = vadd.f32 %v1563_v3, %v1111_v10  ;;  %v1132_v54 = vadd.f32 %v7345_v23, %v10857_v8  ;;  %7635 = vmatprep.mubr.bf16.mxu1 %v9857_v42  ;;  %v6879_v44 = vrot.slane %v6863_v21, 9 }
 0x136   : > { %v1123_v18 = vpop.f32.mrf.mxu1  ;;  %v4087_v6 = vrot.slane %v4085_v61, 5  ;;  %v4636_v12 = vrot.slane %v9972_v35, 5  ;;  %v4090_v29 = vshrl.u32 %v6802_v17, 16  ;;  %v4093_v33 = vshll.u32 %v6802_v17, 16  ;;  %v1579_v25 = vpop.f32.mrf.mxu0 }
 0x137   : > { %v10031_v7 = vadd.f32 %v7393_v38, %v1132_v54  ;;  %v1124_v3 = vadd.f32 %v1123_v18, %v10858_v57  ;;  %v4083_v59 = vrot.slane %v4082_v9, 4  ;;  %v4635_v37 = vrot.slane %v4633_v40, 4  ;;  %v10859_v38 = vld [vmem:[#allocation17_spill] sm:$0xff] }
 0x138   : > { %v7346_v42 = vpop.f32.mrf.mxu1  ;;  %v10034_v5 = vcombine.low %v4030_v39, %v4040_v49  ;;  %v6909_v58 = vcombine.low %v9985_v63, %v9999_v16  ;;  %v10038_v50 = vcombine.low %v4054_v31, %v4064_v28  ;;  %v4099_v35 = vshll.u32 %v10028_v2, 16  ;;  %v7397_v61 = vpop.f32.mrf.mxu0  ;;  %v6805_v49 = vld [vmem:[%s7911_s23 + $0xc0] sm:$0xf]  ;;  %v10052_v16 = vld [vmem:[%s7911_s23 + $0xc4] sm:$0xf] }
 0x139   : > { %v10041_v45 = vadd.f32 %v1576_v60, %v1124_v3  ;;  %v1135_v20 = vadd.f32 %v7346_v42, %v10859_v38  ;;  %v10860_v21 = vcombine.low %v9815_v51, %v9836_v55  ;;  %v6910_v39 = vcombine.low %v10017_v46, %v10021_v0  ;;  %v10867_v46 = vld [vmem:[#allocation6_spill] sm:$0xff] }
 0x13a   : > { %v4103_v63 = vshrl.u32 %v10028_v2, 16  ;;  %v1126_v10 = vpop.f32.mrf.mxu1  ;;  %v10861_v60 = vcombine.low %v9865_v13, %v9880_v30  ;;  %v4078_v51 = vsel %vm7942_vm2, %v4073_v62, %v9974_v48  ;;  %v10062_v55 = vsel %vm8253_vm5, %v6879_v44, %v4633_v40  ;;  %v1592_v28 = vpop.f32.mrf.mxu0  ;;  %v10074_v30 = vld [vmem:[%s7911_s23 + $0xbc] sm:$0x1]  ;;  %v6864_v48 = vld [vmem:[%s7911_s23 + $0xb4] sm:$0xe] }
 0x13b   : > { %7684 = vmatmul.mubr.bf16.gmra.mxu0 %v10860_v21  ;;  %v4092_v9 = vrot.slane %v4090_v29, 4  ;;  %v4095_v17 = vrot.slane %v4093_v33, 5  ;;  %v10064_v23 = vadd.f32 %v7394_v11, %v1135_v20  ;;  %v1127_v31 = vadd.f32 %v1126_v10, %v10862_v47  ;;  %v10096_v20 = vld [vmem:[%s7911_s23 + $0xc8] sm:$0x1] }
 0x13c   : > { %7687 = vmatprep.mubr.bf16.mxu0 %v10861_v60  ;;  %v4088_v8 = vsel %vm7942_vm2, %v4083_v59, %v4087_v6  ;;  %v10071_v13 = vsel %vm8253_vm5, %v4635_v37, %v4636_v12  ;;  %v7349_v54 = vpop.f32.mrf.mxu1  ;;  %7636 = vmatmul.mubr.bf16.gmra.mxu1 %v9859_v52  ;;  %v10078_v40 = vrot.slane %v4099_v35, 5  ;;  %v4114_v11 = vshrl.u32 %v6805_v49, 16  ;;  %v7398_v29 = vpop.f32.mrf.mxu0 }
 0x13d   : > { %v4117_v62 = vshll.u32 %v6805_v49, 16  ;;  %v4123_v44 = vshll.u32 %v10052_v16, 16  ;;  %v10081_v18 = vadd.f32 %v1579_v25, %v1127_v31  ;;  %v1148_v6 = vadd.f32 %v7349_v54, %v9799_v43  ;;  %7639 = vmatprep.mubr.bf16.mxu1 %v9915_v22 }
 0x13e   : > { %v4105_v12 = vrot.slane %v4103_v63, 4  ;;  %v4127_v33 = vshrl.u32 %v10052_v16, 16  ;;  %v1139_v57 = vpop.f32.mrf.mxu1  ;;  %v4096_v3 = vor.u32 %v4095_v17, %v4092_v9  ;;  %v4109_v52 = vshll.u32 %v10074_v30, 16  ;;  %v1595_v43 = vpop.f32.mrf.mxu0  ;;  %v6808_v9 = vld [vmem:[%s7911_s23 + $0xcc] sm:$0xf] }
 0x13f   : > { %v6880_v59 = vrot.slane %v6864_v48, 9  ;;  %v4640_v37 = vrot.slane %v10028_v2, 5  ;;  %v10088_v42 = vadd.f32 %v7397_v61, %v1148_v6  ;;  %v1140_v25 = vadd.f32 %v1139_v57, %v9818_v1  ;;  %v6865_v48 = vld [vmem:[%s7911_s23 + $0xc0] sm:$0xe] }
 0x140   : > { %v10091_v35 = vcombine.low %v4078_v51, %v4088_v8  ;;  %v6911_v22 = vcombine.low %v10062_v55, %v10071_v13  ;;  %v7350_v38 = vpop.f32.mrf.mxu1  ;;  %v4116_v21 = vrot.slane %v4114_v11, 4  ;;  %v4119_v63 = vrot.slane %v4117_v62, 5  ;;  %v7401_v10 = vpop.f32.mrf.mxu0  ;;  %v10118_v8 = vld [vmem:[%s7911_s23 + $0xd0] sm:$0xf] }
 0x141   : > { %v10098_v49 = vrot.slane %v4123_v44, 5  ;;  %v4129_v2 = vrot.slane %v4127_v33, 4  ;;  %v10100_v61 = vadd.f32 %v1592_v28, %v1140_v25  ;;  %v1151_v1 = vadd.f32 %v7350_v38, %v9838_v26 }
 0x142   : > { %v10863_v60 = vcombine.low %v9894_v19, %v9904_v36  ;;  %v4106_v51 = vor.u32 %v4105_v12, %v10078_v40  ;;  %v4643_v55 = vrot.slane %v10074_v30, 5  ;;  %v1142_v17 = vpop.f32.mrf.mxu1  ;;  %v10109_v47 = vrot.slane %v4096_v3, 4  ;;  %v1608_v13 = vpop.f32.mrf.mxu0 }
 0x143   : > { %v10111_v31 = vrot.slane %v4109_v52, 5  ;;  %v10115_v26 = vsel %vm8253_vm5, %v6880_v59, %v4640_v37  ;;  %v4642_v28 = vrot.slane %v4640_v37, 4  ;;  %v10120_v19 = vadd.f32 %v7398_v29, %v1151_v1  ;;  %v10864_v29 = vld [vmem:[#allocation2_spill] sm:$0xff] }
 0x144   : > { %7688 = vmatmul.mubr.bf16.gmra.mxu0 %v10863_v60  ;;  %v1143_v36 = vadd.f32 %v1142_v17, %v9847_v34  ;;  %v4133_v30 = vshll.u32 %v10096_v20, 16  ;;  %v7353_v54 = vpop.f32.mrf.mxu1  ;;  %7640 = vmatmul.mubr.bf16.gmra.mxu1 %v9921_v4  ;;  %v4120_v11 = vor.u32 %v4119_v63, %v4116_v21  ;;  %v4130_v62 = vor.u32 %v4129_v2, %v10098_v49  ;;  %v7402_v57 = vpop.f32.mrf.mxu0 }
 0x145   : > { %7691 = vmatprep.mubr.bf16.mxu0 %v6909_v58  ;;  %v4647_v58 = vrot.slane %v10052_v16, 5  ;;  %v4138_v44 = vshrl.u32 %v6808_v9, 16  ;;  %v4141_v6 = vshll.u32 %v6808_v9, 16  ;;  %v1164_v33 = vadd.f32 %v7353_v54, %v10864_v29  ;;  %7643 = vmatprep.mubr.bf16.mxu1 %v10034_v5 }
 0x146   : > { %v10128_v12 = vadd.f32 %v1595_v43, %v1143_v36  ;;  %v4147_v34 = vshll.u32 %v10118_v8, 16  ;;  %v4151_v3 = vshrl.u32 %v10118_v8, 16  ;;  %v1155_v16 = vpop.f32.mrf.mxu1  ;;  %v4107_v52 = vrot.slane %v4106_v51, 4  ;;  %v10865_v43 = vld [vmem:[#allocation5_spill] sm:$0xff]  ;;  %v1611_v21 = vpop.f32.mrf.mxu0  ;;  %v10866_v36 = vld [vmem:[#allocation4_spill] sm:$0xff] }
 0x147   : > { %v4644_v4 = vsel %vm8253_vm5, %v4642_v28, %v4643_v55  ;;  %v6881_v59 = vrot.slane %v6865_v48, 9  ;;  %v4650_v37 = vrot.slane %v10096_v20, 5  ;;  %v10137_v25 = vadd.f32 %v7401_v10, %v1164_v33  ;;  %v6810_v20 = vld [vmem:[%s7911_s23 + $0xd4] sm:$0x1] }
 0x148   : > { %v1156_v38 = vadd.f32 %v1155_v16, %v10865_v43  ;;  %v4135_v63 = vrot.slane %v4133_v30, 5  ;;  %v4649_v5 = vrot.slane %v4647_v58, 4  ;;  %v7354_v2 = vpop.f32.mrf.mxu1  ;;  %v4121_v1 = vrot.slane %v4120_v11, 4 }
 0x149   : > { %v4131_v60 = vrot.slane %v4130_v62, 4  ;;  %v4140_v9 = vrot.slane %v4138_v44, 4  ;;  %v4143_v17 = vrot.slane %v4141_v6, 5  ;;  %v1167_v55 = vadd.f32 %v7354_v2, %v10866_v36  ;;  %v7405_v28 = vpop.f32.mrf.mxu0  ;;  %v6866_v6 = vld [vmem:[%s7911_s23 + $0xcc] sm:$0xe] }
 0x14a   : > { %v10140_v51 = vadd.f32 %v1608_v13, %v1156_v38  ;;  %v10147_v10 = vrot.slane %v4147_v34, 5  ;;  %v4153_v30 = vrot.slane %v4151_v3, 4  ;;  %v1158_v48 = vpop.f32.mrf.mxu1  ;;  %v4102_v13 = vsel %vm7942_vm2, %v10109_v47, %v10078_v40 }
 0x14b   : > { %v4112_v54 = vsel %vm7942_vm2, %v4107_v52, %v10111_v31  ;;  %v4654_v11 = vrot.slane %v10118_v8, 5  ;;  %v10157_v62 = vadd.f32 %v7402_v57, %v1167_v55  ;;  %v1159_v0 = vadd.f32 %v1158_v48, %v10867_v46  ;;  %v10868_v57 = vld [vmem:[#allocation8_spill] sm:$0xff] }
 0x14c   : > { %7692 = vmatmul.mubr.bf16.gmra.mxu0 %v6910_v39  ;;  %v1624_v39 = vpop.f32.mrf.mxu0  ;;  %v4648_v44 = vsel %vm8253_vm5, %v6881_v59, %v4647_v58  ;;  %v7357_v29 = vpop.f32.mrf.mxu1  ;;  %7644 = vmatmul.mubr.bf16.gmra.mxu1 %v10038_v50  ;;  %v6912_v40 = vcombine.low %v10115_v26, %v4644_v4  ;;  %v4126_v47 = vsel %vm7942_vm2, %v4121_v1, %v10098_v49  ;;  %v4157_v8 = vshll.u32 %v6810_v20, 16  ;;  %v10871_v48 = vld [vmem:[#allocation12_spill] sm:$0xff] }
 0x14d   : > { %7695 = vmatprep.mubr.bf16.mxu0 %v6911_v22  ;;  %v4651_v22 = vsel %vm8253_vm5, %v4649_v5, %v4650_v37  ;;  %v4144_v31 = vor.u32 %v4143_v17, %v4140_v9  ;;  %v10170_v33 = vadd.f32 %v1611_v21, %v1159_v0  ;;  %v1180_v34 = vadd.f32 %v7357_v29, %v10868_v57  ;;  %v10869_v37 = vld [vmem:[#allocation10_spill] sm:$0xff]  ;;  %v10870_v9 = vld [vmem:[#allocation11_spill] sm:$0xff] }
 0x14e   : > { %v7406_v58 = vpop.f32.mrf.mxu0  ;;  %7647 = vmatprep.mubr.bf16.mxu1 %v10091_v35  ;;  %v4136_v3 = vsel %vm7942_vm2, %v4131_v60, %v4135_v63  ;;  %v4154_v50 = vor.u32 %v4153_v30, %v10147_v10  ;;  %v1171_v16 = vpop.f32.mrf.mxu1  ;;  %v6913_v26 = vcombine.low %v4648_v44, %v4651_v22  ;;  %v6882_v52 = vrot.slane %v6866_v6, 9  ;;  %v10872_v44 = vld [vmem:[#allocation14_spill] sm:$0xff] }
 0x14f   : > { %v4656_v4 = vrot.slane %v4654_v11, 4  ;;  %v4657_v59 = vrot.slane %v6810_v20, 5  ;;  %v10177_v49 = vadd.f32 %v7405_v28, %v1180_v34  ;;  %v1172_v43 = vadd.f32 %v1171_v16, %v10869_v37  ;;  %v10875_v37 = vld [vmem:[#allocation21_spill] sm:$0xff] }
 0x150   : > { %v1627_v38 = vpop.f32.mrf.mxu0  ;;  %v7358_v21 = vpop.f32.mrf.mxu1  ;;  %v6840_v5 = vcombine.low %v4102_v13, %v4112_v54  ;;  %v6841_v2 = vcombine.low %v4126_v47, %v4136_v3  ;;  %v4145_v1 = vrot.slane %v4144_v31, 4  ;;  %v4155_v17 = vrot.slane %v4154_v50, 4  ;;  %v10873_v47 = vld [vmem:[#allocation16_spill] sm:$0xff] }
 0x151   : > { %v10180_v35 = vadd.f32 %v1624_v39, %v1172_v43  ;;  %v1183_v63 = vadd.f32 %v7358_v21, %v10870_v9  ;;  %v4159_v36 = vrot.slane %v4157_v8, 5  ;;  %v4655_v28 = vsel %vm8253_vm5, %v6882_v52, %v4654_v11 }
 0x152   : > { %v7409_v60 = vpop.f32.mrf.mxu0  ;;  %v1174_v55 = vpop.f32.mrf.mxu1  ;;  %v4658_v20 = vsel %vm8253_vm5, %v4656_v4, %v4657_v59  ;;  %v4150_v0 = vsel %vm7942_vm2, %v4145_v1, %v10147_v10  ;;  %v10874_v10 = vld [vmem:[#allocation19_spill] sm:$0xff] }
 0x153   : > { %v10187_v30 = vadd.f32 %v7406_v58, %v1183_v63  ;;  %v1175_v13 = vadd.f32 %v1174_v55, %v10871_v48  ;;  %v4160_v56 = vsel %vm7942_vm2, %v4155_v17, %v4159_v36  ;;  %v6914_v11 = vcombine.low %v4655_v28, %v4658_v20  ;;  %v10877_v17 = vld [vmem:[#allocation23_spill] sm:$0xff]  ;;  %v10878_v20 = vld [vmem:[#allocation24_spill] sm:$0xff] }
 0x154   : > { %7696 = vmatmul.mubr.bf16.gmra.mxu0 %v6912_v40  ;;  %v1640_v54 = vpop.f32.mrf.mxu0  ;;  %v7361_v46 = vpop.f32.mrf.mxu1  ;;  %7648 = vmatmul.mubr.bf16.gmra.mxu1 %v6840_v5  ;;  %v6842_v34 = vcombine.low %v4150_v0, %v4160_v56  ;;  %v10879_v0 = vld [vmem:[#allocation25_spill] sm:$0xff] }
 0x155   : > { %7699 = vmatprep.mubr.bf16.mxu0 %v6913_v26  ;;  %v10193_v39 = vadd.f32 %v1627_v38, %v1175_v13  ;;  %v1196_v22 = vadd.f32 %v7361_v46, %v10872_v44  ;;  %7651 = vmatprep.mubr.bf16.mxu1 %v6841_v2  ;;  %v10876_v2 = vld [vmem:[#allocation22_spill] sm:$0xff] }
 0x156   : > { %v7410_v6 = vpop.f32.mrf.mxu0  ;;  %v1187_v29 = vpop.f32.mrf.mxu1 }
 0x157   : > { %v10198_v40 = vadd.f32 %v7409_v60, %v1196_v22  ;;  %v1188_v31 = vadd.f32 %v1187_v29, %v10873_v47 }
 0x158   : > { %v1643_v8 = vpop.f32.mrf.mxu0  ;;  %v7362_v57 = vpop.f32.mrf.mxu1 }
 0x159   : > { %v10201_v58 = vadd.f32 %v1640_v54, %v1188_v31  ;;  %v1199_v3 = vadd.f32 %v7362_v57, %v10874_v10  ;;  %v10881_v57 = vld [vmem:[#allocation27_spill] sm:$0xff] }
 0x15a   : > { %v7413_v50 = vpop.f32.mrf.mxu0  ;;  %v1190_v16 = vpop.f32.mrf.mxu1 }
 0x15b   : > { %v10204_v26 = vadd.f32 %v7410_v6, %v1199_v3  ;;  %v1191_v27 = vadd.f32 %v1190_v16, %v9794_v32 }
 0x15c   : > { %7700 = vmatmul.mubr.bf16.gmra.mxu0 %v6914_v11  ;;  %v1656_v52 = vpop.f32.mrf.mxu0  ;;  %v7365_v4 = vpop.f32.mrf.mxu1  ;;  %7652 = vmatmul.mubr.bf16.gmra.mxu1 %v6842_v34  ;;  %v10880_v11 = vld [vmem:[#allocation26_spill] sm:$0xff] }
 0x15d   : > { %v10207_v59 = vadd.f32 %v1643_v8, %v1191_v27  ;;  %v1212_v43 = vadd.f32 %v7365_v4, %v10875_v37 }
 0x15e   : > { %v7414_v38 = vpop.f32.mrf.mxu0  ;;  %v1203_v21 = vpop.f32.mrf.mxu1 }
 0x15f   : > { %v10210_v5 = vadd.f32 %v7413_v50, %v1212_v43  ;;  %v1204_v1 = vadd.f32 %v1203_v21, %v10876_v2 }
 0x160   : > { %v1659_v9 = vpop.f32.mrf.mxu0  ;;  %v7366_v63 = vpop.f32.mrf.mxu1 }
 0x161   : > { %v10213_v60 = vadd.f32 %v1656_v52, %v1204_v1  ;;  %v1215_v36 = vadd.f32 %v7366_v63, %v10877_v17 }
 0x162   : > { %v7481_v32 = vpop.f32.mrf.mxu0  ;;  %v1206_v55 = vpop.f32.mrf.mxu1 }
 0x163   : > { %v10216_v28 = vadd.f32 %v7414_v38, %v1215_v36  ;;  %v1207_v48 = vadd.f32 %v1206_v55, %v10878_v20 }
 0x164   : > { %v2685_v13 = vpop.f32.mrf.mxu0  ;;  %v7433_v54 = vpop.f32.mrf.mxu1 }
 0x165   : > { %v10219_v46 = vadd.f32 %v1659_v9, %v1207_v48  ;;  %v2060_v44 = vadd.f32 %v7433_v54, %v10879_v0 }
 0x166   : > { %v7482_v22 = vpop.f32.mrf.mxu0  ;;  %v1931_v6 = vpop.f32.mrf.mxu1 }
 0x167   : > { %v10222_v56 = vadd.f32 %v7481_v32, %v2060_v44  ;;  %v2058_v29 = vadd.f32 %v1931_v6, %v10880_v11 }
 0x168   : > { %v2688_v47 = vpop.f32.mrf.mxu0  ;;  %v7434_v31 = vpop.f32.mrf.mxu1 }
 0x169   : > { %v10225_v8 = vadd.f32 %v2685_v13, %v2058_v29  ;;  %v2061_v34 = vadd.f32 %v7434_v31, %v10881_v57 }
 0x16a   : > { %v7485_v10 = vpop.f32.mrf.mxu0  ;;  %v1934_v3 = vpop.f32.mrf.mxu1 }
 0x16b   : > { %v10228_v50 = vadd.f32 %v7482_v22, %v2061_v34  ;;  %v2059_v16 = vadd.f32 %v1934_v3, %v9964_v24 }
 0x16c   : > { %v2701_v27 = vpop.f32.mrf.mxu0  ;;  %v7437_v52 = vpop.f32.mrf.mxu1 }
 0x16d   : > { %v10231_v4 = vadd.f32 %v2688_v47, %v2059_v16  ;;  %v2064_v37 = vadd.f32 %v7437_v52, %v9968_v41 }
 0x16e   : > { %v7486_v43 = vpop.f32.mrf.mxu0  ;;  %v1947_v38 = vpop.f32.mrf.mxu1 }
 0x16f   : > { %v10234_v21 = vadd.f32 %v7485_v10, %v2064_v37  ;;  %v2062_v2 = vadd.f32 %v1947_v38, %v9977_v15 }
 0x170   : > { %v2704_v1 = vpop.f32.mrf.mxu0  ;;  %v7438_v9 = vpop.f32.mrf.mxu1 }
 0x171   : > { %v10237_v63 = vadd.f32 %v2701_v27, %v2062_v2  ;;  %v2065_v17 = vadd.f32 %v7438_v9, %v10003_v53 }
 0x172   : > { %v7489_v36 = vpop.f32.mrf.mxu0  ;;  %v1950_v24 = vpop.f32.mrf.mxu1 }
 0x173   : > { %v10240_v32 = vadd.f32 %v7486_v43, %v2065_v17  ;;  %v2063_v55 = vadd.f32 %v1950_v24, %v10023_v14 }
 0x174   : > { %v2717_v20 = vpop.f32.mrf.mxu0  ;;  %v7441_v41 = vpop.f32.mrf.mxu1 }
 0x175   : > { %v10243_v48 = vadd.f32 %v2704_v1, %v2063_v55  ;;  %v2068_v13 = vadd.f32 %v7441_v41, %v10031_v7 }
 0x176   : > { %v7490_v54 = vpop.f32.mrf.mxu0  ;;  %v1963_v15 = vpop.f32.mrf.mxu1 }
 0x177   : > { %v10246_v0 = vadd.f32 %v7489_v36, %v2068_v13  ;;  %v2066_v44 = vadd.f32 %v1963_v15, %v10041_v45 }
 0x178   : > { %v2720_v22 = vpop.f32.mrf.mxu0  ;;  %v7442_v53 = vpop.f32.mrf.mxu1 }
 0x179   : > { %v10249_v6 = vadd.f32 %v2717_v20, %v2066_v44  ;;  %v2069_v11 = vadd.f32 %v7442_v53, %v10064_v23 }
 0x17a   : > { %v7493_v29 = vpop.f32.mrf.mxu0  ;;  %v1966_v14 = vpop.f32.mrf.mxu1 }
 0x17b   : > { %v10252_v47 = vadd.f32 %v7490_v54, %v2069_v11  ;;  %v2067_v31 = vadd.f32 %v1966_v14, %v10081_v18 }
 0x17c   : > { %v2733_v57 = vpop.f32.mrf.mxu0  ;;  %v7445_v7 = vpop.f32.mrf.mxu1 }
 0x17d   : > { %v10255_v34 = vadd.f32 %v2720_v22, %v2067_v31  ;;  %v2072_v10 = vadd.f32 %v7445_v7, %v10088_v42 }
 0x17e   : > { %v7494_v3 = vpop.f32.mrf.mxu0  ;;  %v1979_v45 = vpop.f32.mrf.mxu1 }
 0x17f   : > { %v10258_v16 = vadd.f32 %v7493_v29, %v2072_v10  ;;  %v2070_v27 = vadd.f32 %v1979_v45, %v10100_v61 }
 0x180   : > { %v2736_v52 = vpop.f32.mrf.mxu0  ;;  %v7446_v23 = vpop.f32.mrf.mxu1 }
 0x181   : > { %v10261_v37 = vadd.f32 %v2733_v57, %v2070_v27  ;;  %v2073_v43 = vadd.f32 %v7446_v23, %v10120_v19 }
 0x182   : > { %v7497_v38 = vpop.f32.mrf.mxu0  ;;  %v1982_v18 = vpop.f32.mrf.mxu1 }
 0x183   : > { %v10264_v2 = vadd.f32 %v7494_v3, %v2073_v43  ;;  %v2071_v1 = vadd.f32 %v1982_v18, %v10128_v12 }
 0x184   : > { %v2749_v9 = vpop.f32.mrf.mxu0  ;;  %v7449_v42 = vpop.f32.mrf.mxu1 }
 0x185   : > { %v10267_v17 = vadd.f32 %v2736_v52, %v2071_v1  ;;  %v2076_v36 = vadd.f32 %v7449_v42, %v10137_v25 }
 0x186   : > { %v7498_v24 = vpop.f32.mrf.mxu0  ;;  %v1995_v61 = vpop.f32.mrf.mxu1 }
 0x187   : > { %v10270_v55 = vadd.f32 %v7497_v38, %v2076_v36  ;;  %v2074_v20 = vadd.f32 %v1995_v61, %v10140_v51 }
 0x188   : > { %v2752_v41 = vpop.f32.mrf.mxu0  ;;  %v7450_v19 = vpop.f32.mrf.mxu1 }
 0x189   : > { %v10273_v13 = vadd.f32 %v2749_v9, %v2074_v20  ;;  %v2077_v54 = vadd.f32 %v7450_v19, %v10157_v62 }
 0x18a   : > { %v7501_v15 = vpop.f32.mrf.mxu0  ;;  %v1998_v12 = vpop.f32.mrf.mxu1 }
 0x18b   : > { %v10276_v44 = vadd.f32 %v7498_v24, %v2077_v54  ;;  %v2075_v22 = vadd.f32 %v1998_v12, %v10170_v33 }
 0x18c   : > { %v2765_v53 = vpop.f32.mrf.mxu0  ;;  %v7453_v25 = vpop.f32.mrf.mxu1 }
 0x18d   : > { %v10279_v11 = vadd.f32 %v2752_v41, %v2075_v22  ;;  %v2080_v29 = vadd.f32 %v7453_v25, %v10177_v49 }
 0x18e   : > { %v7502_v14 = vpop.f32.mrf.mxu0  ;;  %v2011_v51 = vpop.f32.mrf.mxu1 }
 0x18f   : > { %v10282_v31 = vadd.f32 %v7501_v15, %v2080_v29  ;;  %v2078_v57 = vadd.f32 %v2011_v51, %v10180_v35 }
 0x190   : > { %v2768_v7 = vpop.f32.mrf.mxu0  ;;  %v7454_v62 = vpop.f32.mrf.mxu1 }
 0x191   : > { %v10285_v10 = vadd.f32 %v2765_v53, %v2078_v57  ;;  %v2081_v3 = vadd.f32 %v7454_v62, %v10187_v30 }
 0x192   : > { %v7505_v45 = vpop.f32.mrf.mxu0  ;;  %v2014_v33 = vpop.f32.mrf.mxu1 }
 0x193   : > { %v10288_v27 = vadd.f32 %v7502_v14, %v2081_v3  ;;  %v2079_v52 = vadd.f32 %v2014_v33, %v10193_v39 }
 0x194   : > { %v2781_v23 = vpop.f32.mrf.mxu0  ;;  %v7457_v49 = vpop.f32.mrf.mxu1 }
 0x195   : > { %v10291_v43 = vadd.f32 %v2768_v7, %v2079_v52  ;;  %v2084_v38 = vadd.f32 %v7457_v49, %v10198_v40 }
 0x196   : > { %v7506_v18 = vpop.f32.mrf.mxu0  ;;  %v2027_v35 = vpop.f32.mrf.mxu1 }
 0x197   : > { %v10294_v1 = vadd.f32 %v7505_v45, %v2084_v38  ;;  %v2082_v9 = vadd.f32 %v2027_v35, %v10201_v58 }
 0x198   : > { %v2784_v42 = vpop.f32.mrf.mxu0  ;;  %v7458_v30 = vpop.f32.mrf.mxu1 }
 0x199   : > { %v10297_v36 = vadd.f32 %v2781_v23, %v2082_v9  ;;  %v2085_v24 = vadd.f32 %v7458_v30, %v10204_v26 }
 0x19a   : > { %v7509_v61 = vpop.f32.mrf.mxu0  ;;  %v2030_v39 = vpop.f32.mrf.mxu1 }
 0x19b   : > { %v10300_v20 = vadd.f32 %v7506_v18, %v2085_v24  ;;  %v2083_v41 = vadd.f32 %v2030_v39, %v10207_v59 }
 0x19c   : > { %v2797_v19 = vpop.f32.mrf.mxu0  ;;  %v7461_v40 = vpop.f32.mrf.mxu1 }
 0x19d   : > { %v10303_v54 = vadd.f32 %v2784_v42, %v2083_v41  ;;  %v2088_v15 = vadd.f32 %v7461_v40, %v10210_v5 }
 0x19e   : > { %v7510_v12 = vpop.f32.mrf.mxu0  ;;  %v2043_v58 = vpop.f32.mrf.mxu1 }
 0x19f   : > { %v10306_v22 = vadd.f32 %v7509_v61, %v2088_v15  ;;  %v2086_v53 = vadd.f32 %v2043_v58, %v10213_v60 }
 0x1a0   : > { %v2800_v25 = vpop.f32.mrf.mxu0  ;;  %v7462_v26 = vpop.f32.mrf.mxu1 }
 0x1a1   : > { %v10309_v29 = vadd.f32 %v2797_v19, %v2086_v53  ;;  %v2089_v14 = vadd.f32 %v7462_v26, %v10216_v28 }
 0x1a2   : > { %v10312_v51 = vpop.f32.mrf.mxu0  ;;  %v2046_v59 = vpop.f32.mrf.mxu1 }
 0x1a3   : > { %v10314_v57 = vadd.f32 %v7510_v12, %v2089_v14  ;;  %v2087_v7 = vadd.f32 %v2046_v59, %v10219_v46 }
 0x1a4   : > { %v10317_v5 = vpop.f32.mrf.mxu0  ;;  %v10319_v62 = vpop.f32.mrf.mxu1 }
 0x1a5   : > { %v10321_v3 = vadd.f32 %v2800_v25, %v2087_v7 }
 0x1a6   : > { %v10323_v60 = vpop.f32.mrf.mxu0  ;;  %v10325_v45 = vpop.f32.mrf.mxu1 }
 0x1a8   : > { %v10327_v33 = vpop.f32.mrf.mxu0  ;;  %v10329_v28 = vpop.f32.mrf.mxu1 }
 0x1aa   : > { %v7581_v52 = vpop.f32.mrf.mxu0  ;;  %v10331_v23 = vpop.f32.mrf.mxu1 }
 0x1ac   : > { %v3586_v49 = vpop.f32.mrf.mxu0  ;;  %v7533_v38 = vpop.f32.mrf.mxu1 }
 0x1ad   : > { %v3316_v46 = vadd.f32 %v7533_v38, %v10234_v21 }
 0x1ae   : > { %v7582_v18 = vpop.f32.mrf.mxu0  ;;  %v3199_v35 = vpop.f32.mrf.mxu1 }
 0x1af   : > { %v10334_v9 = vadd.f32 %v7581_v52, %v3316_v46  ;;  %v3314_v42 = vadd.f32 %v3199_v35, %v10237_v63 }
 0x1b0   : > { %v3589_v30 = vpop.f32.mrf.mxu0  ;;  %v7534_v24 = vpop.f32.mrf.mxu1 }
 0x1b1   : > { %v10337_v61 = vadd.f32 %v3586_v49, %v3314_v42  ;;  %v3317_v39 = vadd.f32 %v7534_v24, %v10240_v32 }
 0x1b2   : > { %v7585_v41 = vpop.f32.mrf.mxu0  ;;  %v3202_v19 = vpop.f32.mrf.mxu1 }
 0x1b3   : > { %v10340_v40 = vadd.f32 %v7582_v18, %v3317_v39  ;;  %v3315_v15 = vadd.f32 %v3202_v19, %v10243_v48 }
 0x1b4   : > { %v3602_v12 = vpop.f32.mrf.mxu0  ;;  %v7537_v21 = vpop.f32.mrf.mxu1 }
 0x1b5   : > { %v10343_v58 = vadd.f32 %v3589_v30, %v3315_v15  ;;  %v3320_v53 = vadd.f32 %v7537_v21, %v10246_v0 }
 0x1b6   : > { %v7586_v25 = vpop.f32.mrf.mxu0  ;;  %v3215_v63 = vpop.f32.mrf.mxu1 }
 0x1b7   : > { %v10346_v26 = vadd.f32 %v7585_v41, %v3320_v53  ;;  %v3318_v14 = vadd.f32 %v3215_v63, %v10249_v6 }
 0x1b8   : > { %v3605_v59 = vpop.f32.mrf.mxu0  ;;  %v7538_v32 = vpop.f32.mrf.mxu1 }
 0x1b9   : > { %v10349_v7 = vadd.f32 %v3602_v12, %v3318_v14  ;;  %v3321_v52 = vadd.f32 %v7538_v32, %v10252_v47 }
 0x1ba   : > { %v7589_v49 = vpop.f32.mrf.mxu0  ;;  %v3218_v48 = vpop.f32.mrf.mxu1 }
 0x1bb   : > { %v10352_v38 = vadd.f32 %v7586_v25, %v3321_v52  ;;  %v3319_v46 = vadd.f32 %v3218_v48, %v10255_v34 }
 0x1bc   : > { %v3618_v18 = vpop.f32.mrf.mxu0  ;;  %v7541_v0 = vpop.f32.mrf.mxu1 }
 0x1bd   : > { %v10355_v35 = vadd.f32 %v3605_v59, %v3319_v46  ;;  %v3324_v42 = vadd.f32 %v7541_v0, %v10258_v16 }
 0x1be   : > { %v7590_v30 = vpop.f32.mrf.mxu0  ;;  %v3231_v6 = vpop.f32.mrf.mxu1 }
 0x1bf   : > { %v10358_v24 = vadd.f32 %v7589_v49, %v3324_v42  ;;  %v3322_v39 = vadd.f32 %v3231_v6, %v10261_v37 }
 0x1c0   : > { %v3621_v41 = vpop.f32.mrf.mxu0  ;;  %v7542_v47 = vpop.f32.mrf.mxu1 }
 0x1c1   : > { %v10361_v19 = vadd.f32 %v3618_v18, %v3322_v39  ;;  %v3325_v15 = vadd.f32 %v7542_v47, %v10264_v2 }
 0x1c2   : > { %v7593_v12 = vpop.f32.mrf.mxu0  ;;  %v3234_v34 = vpop.f32.mrf.mxu1 }
 0x1c3   : > { %v10364_v21 = vadd.f32 %v7590_v30, %v3325_v15  ;;  %v3323_v53 = vadd.f32 %v3234_v34, %v10267_v17 }
 0x1c4   : > { %v3634_v25 = vpop.f32.mrf.mxu0  ;;  %v7545_v16 = vpop.f32.mrf.mxu1 }
 0x1c5   : > { %v10367_v63 = vadd.f32 %v3621_v41, %v3323_v53  ;;  %v3328_v14 = vadd.f32 %v7545_v16, %v10270_v55 }
 0x1c6   : > { %v7594_v59 = vpop.f32.mrf.mxu0  ;;  %v3247_v37 = vpop.f32.mrf.mxu1 }
 0x1c7   : > { %v10370_v32 = vadd.f32 %v7593_v12, %v3328_v14  ;;  %v3326_v52 = vadd.f32 %v3247_v37, %v10273_v13 }
 0x1c8   : > { %v3637_v49 = vpop.f32.mrf.mxu0  ;;  %v7546_v2 = vpop.f32.mrf.mxu1 }
 0x1c9   : > { %v10373_v48 = vadd.f32 %v3634_v25, %v3326_v52  ;;  %v3329_v46 = vadd.f32 %v7546_v2, %v10276_v44 }
 0x1ca   : > { %v7597_v18 = vpop.f32.mrf.mxu0  ;;  %v3250_v17 = vpop.f32.mrf.mxu1 }
 0x1cb   : > { %v10376_v0 = vadd.f32 %v7594_v59, %v3329_v46  ;;  %v3327_v42 = vadd.f32 %v3250_v17, %v10279_v11 }
 0x1cc   : > { %v3650_v30 = vpop.f32.mrf.mxu0  ;;  %v7549_v55 = vpop.f32.mrf.mxu1 }
 0x1cd   : > { %v10379_v6 = vadd.f32 %v3637_v49, %v3327_v42  ;;  %v3332_v39 = vadd.f32 %v7549_v55, %v10282_v31 }
 0x1ce   : > { %v7598_v41 = vpop.f32.mrf.mxu0  ;;  %v3263_v13 = vpop.f32.mrf.mxu1 }
 0x1cf   : > { %v10382_v47 = vadd.f32 %v7597_v18, %v3332_v39  ;;  %v3330_v15 = vadd.f32 %v3263_v13, %v10285_v10 }
 0x1d0   : > { %v3653_v12 = vpop.f32.mrf.mxu0  ;;  %v7550_v44 = vpop.f32.mrf.mxu1 }
 0x1d1   : > { %v10385_v34 = vadd.f32 %v3650_v30, %v3330_v15  ;;  %v3333_v53 = vadd.f32 %v7550_v44, %v10288_v27  ;;  %v3312_v44 = vadd.f32 %v10319_v62, %v10222_v56  ;;  %v3313_v56 = vadd.f32 %v10329_v28, %v10228_v50  ;;  %v10430_v50 = vld [vmem:[%s10719_s2] ss:$0 sm:$0xff] }
 0x1d2   : > { %v7601_v25 = vpop.f32.mrf.mxu0  ;;  %v3266_v11 = vpop.f32.mrf.mxu1 }
 0x1d3   : > { %v10388_v16 = vadd.f32 %v7598_v41, %v3333_v53  ;;  %v3331_v14 = vadd.f32 %v3266_v11, %v10291_v43  ;;  %v3700_v28 = vadd.f32 %v10323_v60, %v3313_v56 }
 0x1d4   : > { %v3666_v59 = vpop.f32.mrf.mxu0  ;;  %v7553_v31 = vpop.f32.mrf.mxu1 }
 0x1d5   : > { %v10391_v37 = vadd.f32 %v3653_v12, %v3331_v14  ;;  %v3336_v52 = vadd.f32 %v7553_v31, %v10294_v1 }
 0x1d6   : > { %v7602_v49 = vpop.f32.mrf.mxu0  ;;  %v3279_v10 = vpop.f32.mrf.mxu1 }
 0x1d7   : > { %v10394_v2 = vadd.f32 %v7601_v25, %v3336_v52  ;;  %v3334_v46 = vadd.f32 %v3279_v10, %v10297_v36  ;;  %v3699_v52 = vadd.f32 %v10312_v51, %v3312_v44 }
 0x1d8   : > { %v3669_v18 = vpop.f32.mrf.mxu0  ;;  %v7554_v27 = vpop.f32.mrf.mxu1 }
 0x1d9   : > { %v10397_v17 = vadd.f32 %v3666_v59, %v3334_v46  ;;  %v3337_v42 = vadd.f32 %v7554_v27, %v10300_v20  ;;  %v7867_v46 = vmov 1983009808  }
 0x1da   : > { %v7605_v30 = vpop.f32.mrf.mxu0  ;;  %v3282_v43 = vpop.f32.mrf.mxu1 }
 0x1db   : > { %v10400_v55 = vadd.f32 %v7602_v49, %v3337_v42  ;;  %v3335_v39 = vadd.f32 %v3282_v43, %v10303_v54  ;;  %v3310_v54 = vadd.f32 %v10325_v45, %v10225_v8  ;;  %v5088_v8 = vlaneseq }
 0x1dc   : > { %v3682_v41 = vpop.f32.mrf.mxu0  ;;  %v7557_v1 = vpop.f32.mrf.mxu1 }
 0x1dd   : > { %v10403_v13 = vadd.f32 %v3669_v18, %v3335_v39  ;;  %v3340_v15 = vadd.f32 %v7557_v1, %v10306_v22  ;;  %v5086_v18 = vunpack.c.l.s4 %v7867_v46  ;;  %v3697_v45 = vadd.f32 %v10317_v5, %v3310_v54 }
 0x1de   : > { %v7606_v12 = vpop.f32.mrf.mxu0  ;;  %v3295_v36 = vpop.f32.mrf.mxu1  ;;  %v5089_v5 = vshrl.u32 %v5088_v8, 7 }
 0x1df   : > { %v10408_v53 = vadd.f32 %v7605_v30, %v3340_v15  ;;  %v3338_v20 = vadd.f32 %v3295_v36, %v10309_v29 }
 0x1e0   : > { %v3685_v25 = vpop.f32.mrf.mxu0  ;;  %v7558_v11 = vpop.f32.mrf.mxu1 }
 0x1e1   : > { %v10413_v14 = vadd.f32 %v3682_v41, %v3338_v20  ;;  %v3341_v59 = vadd.f32 %v7558_v11, %v10314_v57  ;;  %v3311_v57 = vadd.f32 %v10331_v23, %v10231_v4  ;;  %v5087_v41 = vunpack.c.0.s8 %v5086_v18 }
 0x1e2   : > { %v3298_v22 = vpop.f32.mrf.mxu1 }
 0x1e3   : > { %v7673_v31 = vpop.f32.mrf.mxu0  ;;  %v10419_v62 = vadd.f32 %v7606_v12, %v3341_v59  ;;  %v3339_v29 = vadd.f32 %v3298_v22, %v10321_v3  ;;  %v3698_v4 = vadd.f32 %v10327_v33, %v3311_v57  ;;  %v10436_v60 = vsub.s32 %v5087_v41, %v5089_v5 }
 0x1e4   : > { %v7625_v10 = vpop.f32.mrf.mxu1 }
 0x1e5   : > { %v4822_v49 = vpop.f32.mrf.mxu0  ;;  %v10425_v27 = vadd.f32 %v3685_v25, %v3339_v29  ;;  %v4453_v51 = vadd.f32 %v7625_v10, %v3699_v52 }
 0x1e6   : > { %v4324_v3 = vpop.f32.mrf.mxu1 }
 0x1e7   : > { %v7674_v42 = vpop.f32.mrf.mxu0  ;;  %v4951_v30 = vadd.f32 %v7673_v31, %v4453_v51  ;;  %v4451_v43 = vadd.f32 %v4324_v3, %v3697_v45 }
 0x1e8   : > { %v7626_v1 = vpop.f32.mrf.mxu1 }
 0x1e9   : > { %v4825_v39 = vpop.f32.mrf.mxu0  ;;  %v4990_v23 = vadd.f32 %v10430_v50, %v4951_v30  ;;  %v4949_v15 = vadd.f32 %v4822_v49, %v4451_v43  ;;  %v4454_v12 = vadd.f32 %v7626_v1, %v3700_v28 }
 0x1ea   : > { %v4327_v36 = vpop.f32.mrf.mxu1 }
 0x1eb   : > { %v4988_v44 = vadd.f32 %v10430_v50, %v4949_v15  ;;  %v4952_v20 = vadd.f32 %v7674_v42, %v4454_v12  ;;  %v4452_v25 = vadd.f32 %v4327_v36, %v3698_v4  ;;  %v7677_v11 = vpop.f32.mrf.mxu0  ;;  %v5022_v54 = vmax.f32 %v4990_v23, 0.0 }
 0x1ec   : > { %v7629_v59 = vpop.f32.mrf.mxu1 }
 0x1ed   : > { %v5020_v31 = vmax.f32 %v4988_v44, 0.0  ;;  %v4991_v22 = vadd.f32 %v10430_v50, %v4952_v20  ;;  %v4950_v52 = vadd.f32 %v4825_v39, %v4452_v25  ;;  %v4457_v33 = vadd.f32 %v7629_v59, %v10334_v9  ;;  %v4838_v46 = vpop.f32.mrf.mxu0 }
 0x1ee   : > { %v4340_v56 = vpop.f32.mrf.mxu1 }
 0x1ef   : > { %v5052_v29 = vmax.f32 %v5020_v31, %v5022_v54  ;;  %v4989_v49 = vadd.f32 %v10430_v50, %v4950_v52  ;;  %v4955_v10 = vadd.f32 %v7677_v11, %v4457_v33  ;;  %v5023_v18 = vmax.f32 %v4991_v22, 0.0  ;;  %v7678_v5 = vpop.f32.mrf.mxu0 }
 0x1f0   : > { %v4455_v8 = vadd.f32 %v4340_v56, %v10337_v61  ;;  %v7630_v45 = vpop.f32.mrf.mxu1 }
 0x1f1   : > { %v5084_v57 = vcombine.high %v5052_v29, %v5052_v29  ;;  %v5091_v51 = vrot.slane %v5052_v29, %v10436_v60  ;;  %v5021_v42 = vmax.f32 %v4989_v49, 0.0  ;;  %v10444_v3 = vadd.f32 %v10430_v50, %v4955_v10 }
 0x1f2   : > { %v4953_v28 = vadd.f32 %v4838_v46, %v4455_v8  ;;  %v4458_v9 = vadd.f32 %v7630_v45, %v10340_v40 }
 0x1f3   : > { %v5098_v30 = vrot.slane %v5084_v57, %v10436_v60  ;;  %v5099_v43 = vcombine.high %v5091_v51, %v5091_v51  ;;  %v5421_v39 = vsel %vm5420_vm6, %v5091_v51, -inf  ;;  %v5053_v41 = vmax.f32 %v5021_v42, %v5023_v18 }
 0x1f4   : > { %v5422_v1 = vrot.slane %v5421_v39, 4  ;;  %v5026_v61 = vmax.f32 %v10444_v3, 0.0  ;;  %v10451_v4 = vadd.f32 %v10430_v50, %v4953_v28  ;;  %v4956_v23 = vadd.f32 %v7678_v5, %v4458_v9 }
 0x1f5   : > { %v5100_v15 = vcombine.high %v5098_v30, %v5098_v30  ;;  %v5428_v12 = vsel %vm5420_vm6, %v5099_v43, -inf  ;;  %v5435_v36 = vsel %vm5420_vm6, %v5098_v30, -inf  ;;  %v5101_v40 = vcombine.high %v5053_v41, %v5053_v41 }
 0x1f6   : > { %v5423_v44 = vmax.f32 %v5421_v39, %v5422_v1  ;;  %v5429_v20 = vrot.slane %v5428_v12, 4  ;;  %v5436_v25 = vrot.slane %v5435_v36, 4  ;;  %v5108_v11 = vrot.slane %v5053_v41, %v10436_v60 }
 0x1f7   : > { %v5442_v54 = vsel %vm5420_vm6, %v5100_v15, -inf  ;;  %v5115_v59 = vrot.slane %v5101_v40, %v10436_v60  ;;  %v5024_v31 = vmax.f32 %v10451_v4, 0.0  ;;  %v10460_v22 = vadd.f32 %v10430_v50, %v4956_v23 }
 0x1f8   : > { %v5424_v52 = vrot.slane %v5423_v44, 2  ;;  %v5430_v33 = vmax.f32 %v5428_v12, %v5429_v20  ;;  %v5437_v56 = vmax.f32 %v5435_v36, %v5436_v25  ;;  %v5443_v29 = vrot.slane %v5442_v54, 4 }
 0x1f9   : > { %v5116_v49 = vcombine.high %v5108_v11, %v5108_v11  ;;  %v5117_v10 = vcombine.high %v5115_v59, %v5115_v59  ;;  %v5449_v46 = vsel %vm5420_vm6, %v5108_v11, -inf  ;;  %v5463_v18 = vsel %vm5420_vm6, %v5115_v59, -inf }
 0x1fa   : > { %v5425_v8 = vmax.f32 %v5423_v44, %v5424_v52  ;;  %v5431_v45 = vrot.slane %v5430_v33, 2  ;;  %v5438_v57 = vrot.slane %v5437_v56, 2  ;;  %v5444_v51 = vmax.f32 %v5442_v54, %v5443_v29 }
 0x1fb   : > { %v5450_v42 = vrot.slane %v5449_v46, 4  ;;  %v5456_v28 = vsel %vm5420_vm6, %v5116_v49, -inf  ;;  %v5464_v9 = vrot.slane %v5463_v18, 4  ;;  %v5470_v30 = vsel %vm5420_vm6, %v5117_v10, -inf }
 0x1fc   : > { %v5426_v43 = vrot.slane %v5425_v8, 1  ;;  %v5432_v39 = vmax.f32 %v5430_v33, %v5431_v45  ;;  %v5439_v41 = vmax.f32 %v5437_v56, %v5438_v57  ;;  %v5445_v5 = vrot.slane %v5444_v51, 2 }
 0x1fd   : > { %v5451_v1 = vmax.f32 %v5449_v46, %v5450_v42  ;;  %v5457_v4 = vrot.slane %v5456_v28, 4  ;;  %v5465_v23 = vmax.f32 %v5463_v18, %v5464_v9  ;;  %v5471_v15 = vrot.slane %v5470_v30, 4 }
 0x1fe   : > { %v5427_v12 = vmax.f32 %v5425_v8, %v5426_v43  ;;  %v5433_v36 = vrot.slane %v5432_v39, 1  ;;  %v5440_v40 = vrot.slane %v5439_v41, 1  ;;  %v5446_v44 = vmax.f32 %v5444_v51, %v5445_v5 }
 0x1ff   : > { %v5452_v20 = vrot.slane %v5451_v1, 2  ;;  %v5458_v25 = vmax.f32 %v5456_v28, %v5457_v4  ;;  %v5466_v11 = vrot.slane %v5465_v23, 2  ;;  %v5472_v54 = vmax.f32 %v5470_v30, %v5471_v15  ;;  %v4343_v30 = vpop.f32.mrf.mxu1 }
 0x200   : > { %v5434_v59 = vmax.f32 %v5432_v39, %v5433_v36  ;;  %v5441_v52 = vmax.f32 %v5439_v41, %v5440_v40  ;;  %v5447_v29 = vrot.slane %v5446_v44, 1  ;;  %v6991_v33 = vpack.c.bf16 %v5427_v12, %v5427_v12 }
 0x201   : > { %v5453_v56 = vmax.f32 %v5451_v1, %v5452_v20  ;;  %v5459_v49 = vrot.slane %v5458_v25, 2  ;;  %v5467_v10 = vmax.f32 %v5465_v23, %v5466_v11  ;;  %v5473_v46 = vrot.slane %v5472_v54, 2 }
 0x202   : > { %v5448_v18 = vmax.f32 %v5446_v44, %v5447_v29  ;;  %v6992_v45 = vpack.c.bf16 %v5434_v59, %v5434_v59  ;;  %v6993_v57 = vpack.c.bf16 %v5441_v52, %v5441_v52  ;;  %v6125_v8 = vunpack.c.l.b16 %v6991_v33  ;;  %v4841_v59 = vpop.f32.mrf.mxu0  ;;  %v7633_v52 = vpop.f32.mrf.mxu1 }
 0x203   : > { %v5454_v42 = vrot.slane %v5453_v56, 1  ;;  %v5460_v51 = vmax.f32 %v5458_v25, %v5459_v49  ;;  %v5468_v9 = vrot.slane %v5467_v10, 1  ;;  %v5474_v28 = vmax.f32 %v5472_v54, %v5473_v46 }
 0x204   : > { %v6994_v43 = vpack.c.bf16 %v5448_v18, %v5448_v18  ;;  %v6126_v39 = vunpack.c.l.b16 %v6992_v45  ;;  %v6127_v41 = vunpack.c.l.b16 %v6993_v57  ;;  %v5054_v5 = vmax.f32 %v5024_v31, %v5026_v61 }
 0x205   : > { %v5455_v1 = vmax.f32 %v5453_v56, %v5454_v42  ;;  %v5461_v4 = vrot.slane %v5460_v51, 1  ;;  %v5469_v23 = vmax.f32 %v5467_v10, %v5468_v9  ;;  %v5475_v15 = vrot.slane %v5474_v28, 1 }
 0x206   : > { %v6128_v12 = vunpack.c.l.b16 %v6994_v43  ;;  %v6190_v36 = vsel %vm6189_vm7, %v6126_v39, %v6125_v8  ;;  %v5118_v40 = vcombine.high %v5054_v5, %v5054_v5  ;;  %v5125_v44 = vrot.slane %v5054_v5, %v10436_v60  ;;  %v4356_v43 = vpop.f32.mrf.mxu1 }
 0x207   : > { %v6192_v20 = vsel %vm6191_vm8, %v6127_v41, %v6190_v36  ;;  %v5462_v25 = vmax.f32 %v5460_v51, %v5461_v4  ;;  %v5476_v11 = vmax.f32 %v5474_v28, %v5475_v15  ;;  %v6995_v54 = vpack.c.bf16 %v5455_v1, %v5455_v1  ;;  %v7681_v28 = vpop.f32.mrf.mxu0 }
 0x208   : > { %v6997_v29 = vpack.c.bf16 %v5469_v23, %v5469_v23  ;;  %v6194_v3 = vsel %vm6193_vm9, %v6128_v12, %v6192_v20  ;;  %v5132_v61 = vrot.slane %v5118_v40, %v10436_v60  ;;  %v5133_v31 = vcombine.high %v5125_v44, %v5125_v44 }
 0x209   : > { %v6996_v33 = vpack.c.bf16 %v5462_v25, %v5462_v25  ;;  %v6998_v56 = vpack.c.bf16 %v5476_v11, %v5476_v11  ;;  %v6129_v49 = vunpack.c.l.b16 %v6995_v54  ;;  %v5477_v10 = vsel %vm5420_vm6, %v5125_v44, -inf }
 0x20a   : > { %v6131_v46 = vunpack.c.l.b16 %v6997_v29  ;;  %v5134_v18 = vcombine.high %v5132_v61, %v5132_v61  ;;  %v5478_v45 = vrot.slane %v5477_v10, 4  ;;  %v5484_v57 = vsel %vm5420_vm6, %v5133_v31, -inf  ;;  %v4854_v29 = vpop.f32.mrf.mxu0 }
 0x20b   : > { %v6130_v8 = vunpack.c.l.b16 %v6996_v33  ;;  %v6132_v42 = vunpack.c.l.b16 %v6998_v56  ;;  %v6196_v51 = vsel %vm6195_vm10, %v6129_v49, %v6194_v3  ;;  %v5485_v9 = vrot.slane %v5484_v57, 4  ;;  %v7634_v3 = vpop.f32.mrf.mxu1 }
 0x20c   : > { %v5479_v39 = vmax.f32 %v5477_v10, %v5478_v45  ;;  %v5491_v41 = vsel %vm5420_vm6, %v5132_v61, -inf  ;;  %v5498_v5 = vsel %vm5420_vm6, %v5134_v18, -inf  ;;  %v5027_v1 = vmax.f32 %v10460_v22, 0.0 }
 0x20d   : > { %v6198_v4 = vsel %vm6197_vm11, %v6130_v8, %v6196_v51  ;;  %v5486_v23 = vmax.f32 %v5484_v57, %v5485_v9  ;;  %v5492_v15 = vrot.slane %v5491_v41, 4  ;;  %v5499_v12 = vrot.slane %v5498_v5, 4  ;;  %v7682_v51 = vpop.f32.mrf.mxu0 }
 0x20e   : > { %v6200_v36 = vsel %vm6199_vm12, %v6131_v46, %v6198_v4  ;;  %v5480_v40 = vrot.slane %v5479_v39, 2  ;;  %v4456_v44 = vadd.f32 %v4343_v30, %v10343_v58  ;;  %v4461_v20 = vadd.f32 %v7633_v52, %v10346_v26 }
 0x20f   : > { %v6202_v22 = vsel %vm6201_vm13, %v6132_v42, %v6200_v36  ;;  %v5487_v25 = vrot.slane %v5486_v23, 2  ;;  %v5493_v11 = vmax.f32 %v5491_v41, %v5492_v15  ;;  %v5500_v54 = vmax.f32 %v5498_v5, %v5499_v12 }
 0x210   : > { %v6252_v61 = vpack.c.b16 %v6202_v22, %v6202_v22  ;;  %v5481_v31 = vmax.f32 %v5479_v39, %v5480_v40  ;;  %v4954_v33 = vadd.f32 %v4841_v59, %v4456_v44  ;;  %v4959_v56 = vadd.f32 %v7681_v28, %v4461_v20  ;;  %v4359_v59 = vpop.f32.mrf.mxu1 }
 0x211   : > { %v5488_v58 = vmax.f32 %v5486_v23, %v5487_v25  ;;  %v5494_v30 = vrot.slane %v5493_v11, 2  ;;  %v5501_v26 = vrot.slane %v5500_v54, 2  ;;  %v4459_v52 = vadd.f32 %v4356_v43, %v10349_v7 }
 0x212   : > { %6268 = vst [vmem:[%s10487_s20] sm:$0xf] %v6252_v61  ;;  %v5482_v49 = vrot.slane %v5481_v31, 1  ;;  %v4993_v10 = vadd.f32 %v10430_v50, %v4954_v33  ;;  %v4998_v46 = vadd.f32 %v10430_v50, %v4959_v56  ;;  %v4462_v18 = vadd.f32 %v7634_v3, %v10352_v38 }
 0x213   : > { %v5489_v45 = vrot.slane %v5488_v58, 1  ;;  %v5495_v57 = vmax.f32 %v5493_v11, %v5494_v30  ;;  %v5502_v8 = vmax.f32 %v5500_v54, %v5501_v26  ;;  %v4957_v42 = vadd.f32 %v4854_v29, %v4459_v52 }
 0x214   : > { %v5483_v9 = vmax.f32 %v5481_v31, %v5482_v49  ;;  %v5025_v28 = vmax.f32 %v4993_v10, 0.0  ;;  %v5030_v39 = vmax.f32 %v4998_v46, 0.0  ;;  %v4960_v41 = vadd.f32 %v7682_v51, %v4462_v18 }
 0x215   : > { %v5490_v5 = vmax.f32 %v5488_v58, %v5489_v45  ;;  %v5496_v7 = vrot.slane %v5495_v57, 1  ;;  %v5503_v43 = vrot.slane %v5502_v8, 1  ;;  %v4996_v4 = vadd.f32 %v10430_v50, %v4957_v42 }
 0x216   : > { %v6999_v23 = vpack.c.bf16 %v5483_v9, %v5483_v9  ;;  %v5055_v15 = vmax.f32 %v5025_v28, %v5027_v1  ;;  %v10497_v12 = vadd.f32 %v10430_v50, %v4960_v41  ;;  %v4460_v38 = vadd.f32 %v4359_v59, %v10355_v35  ;;  %v4857_v1 = vpop.f32.mrf.mxu0 }
 0x217   : > { %v5497_v36 = vmax.f32 %v5495_v57, %v5496_v7  ;;  %v5504_v40 = vmax.f32 %v5502_v8, %v5503_v43  ;;  %v7000_v44 = vpack.c.bf16 %v5490_v5, %v5490_v5  ;;  %v5028_v20 = vmax.f32 %v4996_v4, 0.0 }
 0x218   : > { %v6133_v22 = vunpack.c.l.b16 %v6999_v23  ;;  %v5135_v25 = vcombine.high %v5055_v15, %v5055_v15  ;;  %v5142_v11 = vrot.slane %v5055_v15, %v10436_v60  ;;  %v5031_v54 = vmax.f32 %v10497_v12, 0.0 }
 0x219   : > { %v7001_v29 = vpack.c.bf16 %v5497_v36, %v5497_v36  ;;  %v7002_v3 = vpack.c.bf16 %v5504_v40, %v5504_v40  ;;  %v6134_v61 = vunpack.c.l.b16 %v7000_v44  ;;  %v5056_v31 = vmax.f32 %v5028_v20, %v5030_v39 }
 0x21a   : > { %v5149_v33 = vrot.slane %v5135_v25, %v10436_v60  ;;  %v5150_v56 = vcombine.high %v5142_v11, %v5142_v11  ;;  %v5505_v35 = vsel %vm5420_vm6, %v5142_v11, -inf  ;;  %v10504_v58 = vadd.f32 %v4857_v1, %v4460_v38 }
 0x21b   : > { %v6135_v30 = vunpack.c.l.b16 %v7001_v29  ;;  %v6136_v26 = vunpack.c.l.b16 %v7002_v3  ;;  %v6203_v52 = vsel %vm6189_vm7, %v6134_v61, %v6133_v22  ;;  %v5506_v49 = vrot.slane %v5505_v35, 4  ;;  %v7637_v22 = vpop.f32.mrf.mxu1 }
 0x21c   : > { %v5151_v10 = vcombine.high %v5149_v33, %v5149_v33  ;;  %v5512_v46 = vsel %vm5420_vm6, %v5150_v56, -inf  ;;  %v5519_v18 = vsel %vm5420_vm6, %v5149_v33, -inf  ;;  %v5152_v45 = vcombine.high %v5056_v31, %v5056_v31 }
 0x21d   : > { %v6204_v57 = vsel %vm6191_vm8, %v6135_v30, %v6203_v52  ;;  %v5507_v8 = vmax.f32 %v5505_v35, %v5506_v49  ;;  %v5513_v42 = vrot.slane %v5512_v46, 4  ;;  %v5520_v51 = vrot.slane %v5519_v18, 4 }
 0x21e   : > { %v5526_v59 = vsel %vm5420_vm6, %v5151_v10, -inf  ;;  %v6205_v9 = vsel %vm6193_vm9, %v6136_v26, %v6204_v57  ;;  %v5159_v28 = vrot.slane %v5056_v31, %v10436_v60  ;;  %v5166_v39 = vrot.slane %v5152_v45, %v10436_v60 }
 0x21f   : > { %v5508_v41 = vrot.slane %v5507_v8, 2  ;;  %v5514_v5 = vmax.f32 %v5512_v46, %v5513_v42  ;;  %v5521_v7 = vmax.f32 %v5519_v18, %v5520_v51  ;;  %v5527_v43 = vrot.slane %v5526_v59, 4  ;;  %v4372_v18 = vpop.f32.mrf.mxu1 }
 0x220   : > { %v5167_v4 = vcombine.high %v5159_v28, %v5159_v28  ;;  %v5168_v23 = vcombine.high %v5166_v39, %v5166_v39  ;;  %v5533_v15 = vsel %vm5420_vm6, %v5159_v28, -inf  ;;  %v5547_v38 = vsel %vm5420_vm6, %v5166_v39, -inf }
 0x221   : > { %v5509_v36 = vmax.f32 %v5507_v8, %v5508_v41  ;;  %v5515_v40 = vrot.slane %v5514_v5, 2  ;;  %v5522_v44 = vrot.slane %v5521_v7, 2  ;;  %v5528_v20 = vmax.f32 %v5526_v59, %v5527_v43  ;;  %v7685_v41 = vpop.f32.mrf.mxu0 }
 0x222   : > { %v5534_v25 = vrot.slane %v5533_v15, 4  ;;  %v5540_v11 = vsel %vm5420_vm6, %v5167_v4, -inf  ;;  %v5548_v29 = vrot.slane %v5547_v38, 4  ;;  %v5554_v3 = vsel %vm5420_vm6, %v5168_v23, -inf }
 0x223   : > { %v5510_v61 = vrot.slane %v5509_v36, 1  ;;  %v5516_v31 = vmax.f32 %v5514_v5, %v5515_v40  ;;  %v5523_v1 = vmax.f32 %v5521_v7, %v5522_v44  ;;  %v5529_v33 = vrot.slane %v5528_v20, 2  ;;  %v7638_v40 = vpop.f32.mrf.mxu1 }
 0x224   : > { %v5535_v56 = vmax.f32 %v5533_v15, %v5534_v25  ;;  %v5541_v35 = vrot.slane %v5540_v11, 4  ;;  %v5549_v30 = vmax.f32 %v5547_v38, %v5548_v29  ;;  %v5555_v26 = vrot.slane %v5554_v3, 4 }
 0x225   : > { %v5511_v52 = vmax.f32 %v5509_v36, %v5510_v61  ;;  %v5517_v49 = vrot.slane %v5516_v31, 1  ;;  %v5524_v10 = vrot.slane %v5523_v1, 1  ;;  %v5530_v46 = vmax.f32 %v5528_v20, %v5529_v33 }
 0x226   : > { %v5536_v45 = vrot.slane %v5535_v56, 2  ;;  %v5542_v57 = vmax.f32 %v5540_v11, %v5541_v35  ;;  %v5550_v8 = vrot.slane %v5549_v30, 2  ;;  %v5556_v42 = vmax.f32 %v5554_v3, %v5555_v26 }
 0x227   : > { %v5518_v51 = vmax.f32 %v5516_v31, %v5517_v49  ;;  %v5525_v59 = vmax.f32 %v5523_v1, %v5524_v10  ;;  %v5531_v28 = vrot.slane %v5530_v46, 1  ;;  %v7003_v39 = vpack.c.bf16 %v5511_v52, %v5511_v52  ;;  %v4870_v1 = vpop.f32.mrf.mxu0 }
 0x228   : > { %v5537_v5 = vmax.f32 %v5535_v56, %v5536_v45  ;;  %v5543_v7 = vrot.slane %v5542_v57, 2  ;;  %v5551_v43 = vmax.f32 %v5549_v30, %v5550_v8  ;;  %v5557_v4 = vrot.slane %v5556_v42, 2 }
 0x229   : > { %v5532_v23 = vmax.f32 %v5530_v46, %v5531_v28  ;;  %v7004_v15 = vpack.c.bf16 %v5518_v51, %v5518_v51  ;;  %v7005_v38 = vpack.c.bf16 %v5525_v59, %v5525_v59  ;;  %v6137_v36 = vunpack.c.l.b16 %v7003_v39  ;;  %v4375_v46 = vpop.f32.mrf.mxu1  ;;  %v7686_v39 = vpop.f32.mrf.mxu0 }
 0x22a   : > { %v5538_v44 = vrot.slane %v5537_v5, 1  ;;  %v5544_v20 = vmax.f32 %v5542_v57, %v5543_v7  ;;  %v5552_v25 = vrot.slane %v5551_v43, 1  ;;  %v5558_v11 = vmax.f32 %v5556_v42, %v5557_v4 }
 0x22b   : > { %v7006_v29 = vpack.c.bf16 %v5532_v23, %v5532_v23  ;;  %v6138_v3 = vunpack.c.l.b16 %v7004_v15  ;;  %v6139_v61 = vunpack.c.l.b16 %v7005_v38  ;;  %v6206_v31 = vsel %vm6195_vm10, %v6137_v36, %v6205_v9  ;;  %v7641_v15 = vpop.f32.mrf.mxu1 }
 0x22c   : > { %v5539_v33 = vmax.f32 %v5537_v5, %v5538_v44  ;;  %v5545_v56 = vrot.slane %v5544_v20, 1  ;;  %v5553_v35 = vmax.f32 %v5551_v43, %v5552_v25  ;;  %v5559_v30 = vrot.slane %v5558_v11, 1 }
 0x22d   : > { %v6140_v26 = vunpack.c.l.b16 %v7006_v29  ;;  %v6207_v52 = vsel %vm6197_vm11, %v6138_v3, %v6206_v31  ;;  %v4997_v49 = vadd.f32 %v10430_v50, %v10504_v58  ;;  %v4465_v10 = vadd.f32 %v7637_v22, %v10358_v24  ;;  %v4873_v3 = vpop.f32.mrf.mxu0 }
 0x22e   : > { %v6208_v45 = vsel %vm6199_vm12, %v6139_v61, %v6207_v52  ;;  %v5546_v57 = vmax.f32 %v5544_v20, %v5545_v56  ;;  %v5560_v8 = vmax.f32 %v5558_v11, %v5559_v30  ;;  %v7007_v9 = vpack.c.bf16 %v5539_v33, %v5539_v33 }
 0x22f   : > { %v6209_v42 = vsel %vm6201_vm13, %v6140_v26, %v6208_v45  ;;  %v7009_v51 = vpack.c.bf16 %v5553_v35, %v5553_v35  ;;  %v5029_v59 = vmax.f32 %v4997_v49, 0.0  ;;  %v4963_v28 = vadd.f32 %v7685_v41, %v4465_v10  ;;  %v7689_v45 = vpop.f32.mrf.mxu0 }
 0x230   : > { %v6253_v5 = vpack.c.b16 %v6209_v42, %v6209_v42  ;;  %v7008_v7 = vpack.c.bf16 %v5546_v57, %v5546_v57  ;;  %v7010_v43 = vpack.c.bf16 %v5560_v8, %v5560_v8  ;;  %v6141_v4 = vunpack.c.l.b16 %v7007_v9  ;;  %v4388_v57 = vpop.f32.mrf.mxu1 }
 0x231   : > { %v6143_v58 = vunpack.c.l.b16 %v7009_v51  ;;  %v5057_v24 = vmax.f32 %v5029_v59, %v5031_v54  ;;  %v5002_v22 = vadd.f32 %v10430_v50, %v4963_v28  ;;  %v4463_v23 = vadd.f32 %v4372_v18, %v10361_v19 }
 0x232   : > { %6269 = vst [vmem:[%s10487_s20 + $0x4] sm:$0xf] %v6253_v5  ;;  %v6142_v38 = vunpack.c.l.b16 %v7008_v7  ;;  %v6144_v36 = vunpack.c.l.b16 %v7010_v43  ;;  %v4466_v44 = vadd.f32 %v7638_v40, %v10364_v21  ;;  %v4464_v41 = vadd.f32 %v4375_v46, %v10367_v63 }
 0x233   : > { %v5169_v20 = vcombine.high %v5057_v24, %v5057_v24  ;;  %v5176_v25 = vrot.slane %v5057_v24, %v10436_v60  ;;  %v5034_v11 = vmax.f32 %v5002_v22, 0.0  ;;  %v4961_v29 = vadd.f32 %v4870_v1, %v4463_v23 }
 0x234   : > { %v6210_v12 = vsel %vm6189_vm7, %v6142_v38, %v6141_v4  ;;  %v4964_v54 = vadd.f32 %v7686_v39, %v4466_v44  ;;  %v4962_v61 = vadd.f32 %v4873_v3, %v4464_v41  ;;  %v4469_v19 = vadd.f32 %v7641_v15, %v10370_v32 }
 0x235   : > { %v6211_v18 = vsel %vm6191_vm8, %v6143_v58, %v6210_v12  ;;  %v5183_v31 = vrot.slane %v5169_v20, %v10436_v60  ;;  %v5184_v33 = vcombine.high %v5176_v25, %v5176_v25  ;;  %v5561_v21 = vsel %vm5420_vm6, %v5176_v25, -inf }
 0x236   : > { %v5562_v63 = vrot.slane %v5561_v21, 4  ;;  %v10539_v40 = vsel %vm6193_vm9, %v6144_v36, %v6211_v18  ;;  %v5000_v1 = vadd.f32 %v10430_v50, %v4961_v29  ;;  %v5003_v56 = vadd.f32 %v10430_v50, %v4964_v54 }
 0x237   : > { %v5185_v35 = vcombine.high %v5183_v31, %v5183_v31  ;;  %v5568_v30 = vsel %vm5420_vm6, %v5184_v33, -inf  ;;  %v5575_v32 = vsel %vm5420_vm6, %v5183_v31, -inf  ;;  %v5001_v26 = vadd.f32 %v10430_v50, %v4962_v61 }
 0x238   : > { %v5563_v52 = vmax.f32 %v5561_v21, %v5562_v63  ;;  %v5569_v49 = vrot.slane %v5568_v30, 4  ;;  %v5576_v10 = vrot.slane %v5575_v32, 4  ;;  %v5032_v46 = vmax.f32 %v5000_v1, 0.0 }
 0x239   : > { %v5582_v8 = vsel %vm5420_vm6, %v5185_v35, -inf  ;;  %v5035_v9 = vmax.f32 %v5003_v56, 0.0  ;;  %v5033_v42 = vmax.f32 %v5001_v26, 0.0  ;;  %v4967_v51 = vadd.f32 %v7689_v45, %v4469_v19 }
 0x23a   : > { %v5564_v59 = vrot.slane %v5563_v52, 2  ;;  %v5570_v28 = vmax.f32 %v5568_v30, %v5569_v49  ;;  %v5577_v39 = vmax.f32 %v5575_v32, %v5576_v10  ;;  %v5583_v5 = vrot.slane %v5582_v8, 4 }
 0x23b   : > { %v5058_v7 = vmax.f32 %v5032_v46, %v5034_v11  ;;  %v5059_v43 = vmax.f32 %v5033_v42, %v5035_v9  ;;  %v10548_v4 = vadd.f32 %v10430_v50, %v4967_v51  ;;  %v10551_v58 = vadd.f32 %v4388_v57, %v10373_v48 }
 0x23c   : > { %v5565_v24 = vmax.f32 %v5563_v52, %v5564_v59  ;;  %v5571_v22 = vrot.slane %v5570_v28, 2  ;;  %v5578_v23 = vrot.slane %v5577_v39, 2  ;;  %v5584_v15 = vmax.f32 %v5582_v8, %v5583_v5 }
 0x23d   : > { %v5186_v38 = vcombine.high %v5058_v7, %v5058_v7  ;;  %v5193_v36 = vrot.slane %v5058_v7, %v10436_v60  ;;  %v5203_v44 = vcombine.high %v5059_v43, %v5059_v43  ;;  %v5210_v41 = vrot.slane %v5059_v43, %v10436_v60 }
 0x23e   : > { %v5566_v20 = vrot.slane %v5565_v24, 1  ;;  %v5572_v25 = vmax.f32 %v5570_v28, %v5571_v22  ;;  %v5579_v11 = vmax.f32 %v5577_v39, %v5578_v23  ;;  %v5585_v29 = vrot.slane %v5584_v15, 2 }
 0x23f   : > { %v5200_v3 = vrot.slane %v5186_v38, %v10436_v60  ;;  %v5201_v12 = vcombine.high %v5193_v36, %v5193_v36  ;;  %v5589_v48 = vsel %vm5420_vm6, %v5193_v36, -inf  ;;  %v10558_v54 = vrot.slane %v5203_v44, %v10436_v60 }
 0x240   : > { %v5567_v61 = vmax.f32 %v5565_v24, %v5566_v20  ;;  %v5573_v19 = vrot.slane %v5572_v25, 1  ;;  %v5580_v18 = vrot.slane %v5579_v11, 1  ;;  %v5586_v31 = vmax.f32 %v5584_v15, %v5585_v29 }
 0x241   : > { %v5202_v33 = vcombine.high %v5200_v3, %v5200_v3  ;;  %v5590_v21 = vrot.slane %v5589_v48, 4  ;;  %v5596_v63 = vsel %vm5420_vm6, %v5201_v12, -inf  ;;  %v5603_v1 = vsel %vm5420_vm6, %v5200_v3, -inf }
 0x242   : > { %v5574_v56 = vmax.f32 %v5572_v25, %v5573_v19  ;;  %v5581_v35 = vmax.f32 %v5579_v11, %v5580_v18  ;;  %v5587_v30 = vrot.slane %v5586_v31, 1  ;;  %v7011_v32 = vpack.c.bf16 %v5567_v61, %v5567_v61 }
 0x243   : > { %v5591_v26 = vmax.f32 %v5589_v48, %v5590_v21  ;;  %v5597_v52 = vrot.slane %v5596_v63, 4  ;;  %v5604_v49 = vrot.slane %v5603_v1, 4  ;;  %v5610_v10 = vsel %vm5420_vm6, %v5202_v33, -inf }
 0x244   : > { %v5588_v46 = vmax.f32 %v5586_v31, %v5587_v30  ;;  %v7012_v45 = vpack.c.bf16 %v5574_v56, %v5574_v56  ;;  %v7013_v57 = vpack.c.bf16 %v5581_v35, %v5581_v35  ;;  %v6145_v8 = vunpack.c.l.b16 %v7011_v32 }
 0x245   : > { %v5592_v9 = vrot.slane %v5591_v26, 2  ;;  %v5598_v42 = vmax.f32 %v5596_v63, %v5597_v52  ;;  %v5605_v51 = vmax.f32 %v5603_v1, %v5604_v49  ;;  %v5611_v59 = vrot.slane %v5610_v10, 4  ;;  %v7642_v52 = vpop.f32.mrf.mxu1 }
 0x246   : > { %v7014_v28 = vpack.c.bf16 %v5588_v46, %v5588_v46  ;;  %v6146_v39 = vunpack.c.l.b16 %v7012_v45  ;;  %v6147_v5 = vunpack.c.l.b16 %v7013_v57  ;;  %v6213_v7 = vsel %vm6195_vm10, %v6145_v8, %v10539_v40 }
 0x247   : > { %v5593_v43 = vmax.f32 %v5591_v26, %v5592_v9  ;;  %v5599_v24 = vrot.slane %v5598_v42, 2  ;;  %v5606_v22 = vrot.slane %v5605_v51, 2  ;;  %v5612_v23 = vmax.f32 %v5610_v10, %v5611_v59  ;;  %v4886_v26 = vpop.f32.mrf.mxu0 }
 0x248   : > { %v6148_v15 = vunpack.c.l.b16 %v7014_v28  ;;  %v6214_v38 = vsel %vm6197_vm11, %v6146_v39, %v6213_v7  ;;  %v5218_v36 = vcombine.high %v5210_v41, %v5210_v41  ;;  %v5219_v44 = vcombine.high %v10558_v54, %v10558_v54 }
 0x249   : > { %v6215_v20 = vsel %vm6199_vm12, %v6147_v5, %v6214_v38  ;;  %v5594_v25 = vrot.slane %v5593_v43, 1  ;;  %v5600_v11 = vmax.f32 %v5598_v42, %v5599_v24  ;;  %v5607_v29 = vmax.f32 %v5605_v51, %v5606_v22  ;;  %v4391_v24 = vpop.f32.mrf.mxu1 }
 0x24a   : > { %v6216_v3 = vsel %vm6201_vm13, %v6148_v15, %v6215_v20  ;;  %v5613_v40 = vrot.slane %v5612_v23, 2  ;;  %v5617_v12 = vsel %vm5420_vm6, %v5210_v41, -inf  ;;  %v5624_v48 = vsel %vm5420_vm6, %v5218_v36, -inf }
 0x24b   : > { %v6254_v61 = vpack.c.b16 %v6216_v3, %v6216_v3  ;;  %v5595_v19 = vmax.f32 %v5593_v43, %v5594_v25  ;;  %v5601_v18 = vrot.slane %v5600_v11, 1  ;;  %v5608_v31 = vrot.slane %v5607_v29, 1  ;;  %v7690_v43 = vpop.f32.mrf.mxu0 }
 0x24c   : > { %v5614_v33 = vmax.f32 %v5612_v23, %v5613_v40  ;;  %v5618_v21 = vrot.slane %v5617_v12, 4  ;;  %v5625_v63 = vrot.slane %v5624_v48, 4  ;;  %v5631_v1 = vsel %vm5420_vm6, %v10558_v54, -inf }
 0x24d   : > { %6270 = vst [vmem:[%s10487_s20 + $0x8] sm:$0xf] %v6254_v61  ;;  %v5602_v56 = vmax.f32 %v5600_v11, %v5601_v18  ;;  %v5609_v35 = vmax.f32 %v5607_v29, %v5608_v31  ;;  %v7015_v30 = vpack.c.bf16 %v5595_v19, %v5595_v19  ;;  %v5632_v32 = vrot.slane %v5631_v1, 4  ;;  %v4889_v19 = vpop.f32.mrf.mxu0  ;;  %v7645_v18 = vpop.f32.mrf.mxu1 }
 0x24e   : > { %v5615_v41 = vrot.slane %v5614_v33, 1  ;;  %v5619_v49 = vmax.f32 %v5617_v12, %v5618_v21  ;;  %v5626_v10 = vmax.f32 %v5624_v48, %v5625_v63  ;;  %v5638_v46 = vsel %vm5420_vm6, %v5219_v44, -inf }
 0x24f   : > { %v7016_v45 = vpack.c.bf16 %v5602_v56, %v5602_v56  ;;  %v7017_v57 = vpack.c.bf16 %v5609_v35, %v5609_v35  ;;  %v6149_v8 = vunpack.c.l.b16 %v7015_v30  ;;  %v5633_v9 = vmax.f32 %v5631_v1, %v5632_v32 }
 0x250   : > { %v5616_v42 = vmax.f32 %v5614_v33, %v5615_v41  ;;  %v5620_v51 = vrot.slane %v5619_v49, 2  ;;  %v5627_v59 = vrot.slane %v5626_v10, 2  ;;  %v5639_v54 = vrot.slane %v5638_v46, 4 }
 0x251   : > { %v6150_v28 = vunpack.c.l.b16 %v7016_v45  ;;  %v6151_v39 = vunpack.c.l.b16 %v7017_v57  ;;  %v5634_v5 = vrot.slane %v5633_v9, 2  ;;  %v5038_v7 = vmax.f32 %v10548_v4, 0.0  ;;  %v4404_v45 = vpop.f32.mrf.mxu1 }
 0x252   : > { %v7018_v22 = vpack.c.bf16 %v5616_v42, %v5616_v42  ;;  %v5621_v23 = vmax.f32 %v5619_v49, %v5620_v51  ;;  %v5628_v15 = vmax.f32 %v5626_v10, %v5627_v59  ;;  %v5640_v38 = vmax.f32 %v5638_v46, %v5639_v54  ;;  %v7693_v46 = vpop.f32.mrf.mxu0 }
 0x253   : > { %v6217_v36 = vsel %vm6189_vm7, %v6150_v28, %v6149_v8  ;;  %v5635_v44 = vmax.f32 %v5633_v9, %v5634_v5  ;;  %v4965_v20 = vadd.f32 %v4886_v26, %v10551_v58  ;;  %v4470_v25 = vadd.f32 %v7642_v52, %v10376_v0 }
 0x254   : > { %v6152_v11 = vunpack.c.l.b16 %v7018_v22  ;;  %v6218_v29 = vsel %vm6191_vm8, %v6151_v39, %v6217_v36  ;;  %v5622_v3 = vrot.slane %v5621_v23, 1  ;;  %v5629_v40 = vrot.slane %v5628_v15, 1 }
 0x255   : > { %v5636_v12 = vrot.slane %v5635_v44, 1  ;;  %v5641_v4 = vrot.slane %v5640_v38, 2  ;;  %v5004_v48 = vadd.f32 %v10430_v50, %v4965_v20  ;;  %v4968_v61 = vadd.f32 %v7690_v43, %v4470_v25 }
 0x256   : > { %v5623_v31 = vmax.f32 %v5621_v23, %v5622_v3  ;;  %v5630_v33 = vmax.f32 %v5628_v15, %v5629_v40  ;;  %v6219_v21 = vsel %vm6193_vm9, %v6152_v11, %v6218_v29  ;;  %v4468_v58 = vadd.f32 %v4391_v24, %v10379_v6 }
 0x257   : > { %v5637_v63 = vmax.f32 %v5635_v44, %v5636_v12  ;;  %v5642_v0 = vmax.f32 %v5640_v38, %v5641_v4  ;;  %v5036_v1 = vmax.f32 %v5004_v48, 0.0  ;;  %v5007_v56 = vadd.f32 %v10430_v50, %v4968_v61 }
 0x258   : > { %v7019_v35 = vpack.c.bf16 %v5623_v31, %v5623_v31  ;;  %v7020_v30 = vpack.c.bf16 %v5630_v33, %v5630_v33  ;;  %v4966_v32 = vadd.f32 %v4889_v19, %v4468_v58  ;;  %v4473_v26 = vadd.f32 %v7645_v18, %v10382_v47 }
 0x259   : > { %v5643_v52 = vrot.slane %v5642_v0, 1  ;;  %v7021_v41 = vpack.c.bf16 %v5637_v63, %v5637_v63  ;;  %v5060_v49 = vmax.f32 %v5036_v1, %v5038_v7  ;;  %v5039_v10 = vmax.f32 %v5007_v56, 0.0 }
 0x25a   : > { %v6153_v57 = vunpack.c.l.b16 %v7019_v35  ;;  %v6154_v8 = vunpack.c.l.b16 %v7020_v30  ;;  %v5005_v6 = vadd.f32 %v10430_v50, %v4966_v32  ;;  %v4971_v9 = vadd.f32 %v7693_v46, %v4473_v26 }
 0x25b   : > { %v5644_v42 = vmax.f32 %v5642_v0, %v5643_v52  ;;  %v6155_v51 = vunpack.c.l.b16 %v7021_v41  ;;  %v5220_v59 = vcombine.high %v5060_v49, %v5060_v49  ;;  %v5227_v54 = vrot.slane %v5060_v49, %v10436_v60 }
 0x25c   : > { %v6220_v28 = vsel %vm6195_vm10, %v6153_v57, %v6219_v21  ;;  %v5037_v39 = vmax.f32 %v5005_v6, 0.0  ;;  %v10590_v47 = vadd.f32 %v10430_v50, %v4971_v9  ;;  %v10593_v5 = vadd.f32 %v4404_v45, %v10385_v34  ;;  %v7646_v45 = vpop.f32.mrf.mxu1 }
 0x25d   : > { %v7022_v7 = vpack.c.bf16 %v5644_v42, %v5644_v42  ;;  %v6221_v43 = vsel %vm6197_vm11, %v6154_v8, %v6220_v28  ;;  %v5234_v24 = vrot.slane %v5220_v59, %v10436_v60  ;;  %v5235_v22 = vcombine.high %v5227_v54, %v5227_v54  ;;  %v4902_v42 = vpop.f32.mrf.mxu0 }
 0x25e   : > { %v6222_v23 = vsel %vm6199_vm12, %v6155_v51, %v6221_v43  ;;  %v5645_v15 = vsel %vm5420_vm6, %v5227_v54, -inf  ;;  %v5061_v38 = vmax.f32 %v5037_v39, %v5039_v10  ;;  %v5042_v36 = vmax.f32 %v10590_v47, 0.0 }
 0x25f   : > { %v6156_v44 = vunpack.c.l.b16 %v7022_v7  ;;  %v5236_v20 = vcombine.high %v5234_v24, %v5234_v24  ;;  %v5646_v50 = vrot.slane %v5645_v15, 4  ;;  %v5652_v25 = vsel %vm5420_vm6, %v5235_v22, -inf }
 0x260   : > { %v5653_v34 = vrot.slane %v5652_v25, 4  ;;  %v5659_v11 = vsel %vm5420_vm6, %v5234_v24, -inf  ;;  %v5237_v29 = vcombine.high %v5061_v38, %v5061_v38  ;;  %v5244_v3 = vrot.slane %v5061_v38, %v10436_v60 }
 0x261   : > { %v6223_v40 = vsel %vm6201_vm13, %v6156_v44, %v6222_v23  ;;  %v5647_v12 = vmax.f32 %v5645_v15, %v5646_v50  ;;  %v5660_v4 = vrot.slane %v5659_v11, 4  ;;  %v5666_v48 = vsel %vm5420_vm6, %v5236_v20, -inf  ;;  %v4407_v44 = vpop.f32.mrf.mxu1 }
 0x262   : > { %v6255_v61 = vpack.c.b16 %v6223_v40, %v6223_v40  ;;  %v5654_v19 = vmax.f32 %v5652_v25, %v5653_v34  ;;  %v5667_v18 = vrot.slane %v5666_v48, 4  ;;  %v5251_v31 = vrot.slane %v5237_v29, %v10436_v60 }
 0x263   : > { %v5648_v33 = vrot.slane %v5647_v12, 2  ;;  %v5661_v21 = vmax.f32 %v5659_v11, %v5660_v4  ;;  %v5252_v58 = vcombine.high %v5244_v3, %v5244_v3  ;;  %v5673_v63 = vsel %vm5420_vm6, %v5244_v3, -inf  ;;  %v7694_v11 = vpop.f32.mrf.mxu0 }
 0x264   : > { %6271 = vst [vmem:[%s10487_s20 + $0xc] sm:$0xf] %v6255_v61  ;;  %v5655_v0 = vrot.slane %v5654_v19, 2  ;;  %v5668_v1 = vmax.f32 %v5666_v48, %v5667_v18  ;;  %v5253_v56 = vcombine.high %v5251_v31, %v5251_v31  ;;  %v5674_v35 = vrot.slane %v5673_v63, 4 }
 0x265   : > { %v5649_v30 = vmax.f32 %v5647_v12, %v5648_v33  ;;  %v5662_v32 = vrot.slane %v5661_v21, 2  ;;  %v5680_v26 = vsel %vm5420_vm6, %v5252_v58, -inf  ;;  %v5687_v52 = vsel %vm5420_vm6, %v5251_v31, -inf  ;;  %v7649_v58 = vpop.f32.mrf.mxu1 }
 0x266   : > { %v5656_v41 = vmax.f32 %v5654_v19, %v5655_v0  ;;  %v5669_v49 = vrot.slane %v5668_v1, 2  ;;  %v5675_v10 = vmax.f32 %v5673_v63, %v5674_v35  ;;  %v5681_v46 = vrot.slane %v5680_v26, 4  ;;  %v4905_v35 = vpop.f32.mrf.mxu0 }
 0x267   : > { %v5650_v57 = vrot.slane %v5649_v30, 1  ;;  %v5663_v8 = vmax.f32 %v5661_v21, %v5662_v32  ;;  %v5688_v6 = vrot.slane %v5687_v52, 4  ;;  %v5694_v9 = vsel %vm5420_vm6, %v5253_v56, -inf }
 0x268   : > { %v5657_v51 = vrot.slane %v5656_v41, 1  ;;  %v5670_v59 = vmax.f32 %v5668_v1, %v5669_v49  ;;  %v5676_v54 = vrot.slane %v5675_v10, 2  ;;  %v5682_v28 = vmax.f32 %v5680_v26, %v5681_v46  ;;  %v10617_v46 = vld [vmem:[%s10719_s2] ss:$0 sm:$0xff] }
 0x269   : > { %v5651_v39 = vmax.f32 %v5649_v30, %v5650_v57  ;;  %v5664_v7 = vrot.slane %v5663_v8, 1  ;;  %v5689_v43 = vmax.f32 %v5687_v52, %v5688_v6  ;;  %v5695_v24 = vrot.slane %v5694_v9, 4 }
 0x26a   : > { %v5658_v22 = vmax.f32 %v5656_v41, %v5657_v51  ;;  %v5671_v23 = vrot.slane %v5670_v59, 1  ;;  %v5677_v15 = vmax.f32 %v5675_v10, %v5676_v54  ;;  %v5683_v38 = vrot.slane %v5682_v28, 2 }
 0x26b   : > { %v5665_v20 = vmax.f32 %v5663_v8, %v5664_v7  ;;  %v7023_v50 = vpack.c.bf16 %v5651_v39, %v5651_v39  ;;  %v5690_v25 = vrot.slane %v5689_v43, 2  ;;  %v5696_v34 = vmax.f32 %v5694_v9, %v5695_v24  ;;  %v7697_v39 = vpop.f32.mrf.mxu0 }
 0x26c   : > { %v5672_v29 = vmax.f32 %v5670_v59, %v5671_v23  ;;  %v7024_v3 = vpack.c.bf16 %v5658_v22, %v5658_v22  ;;  %v5678_v40 = vrot.slane %v5677_v15, 1  ;;  %v5684_v12 = vmax.f32 %v5682_v28, %v5683_v38 }
 0x26d   : > { %v7025_v4 = vpack.c.bf16 %v5665_v20, %v5665_v20  ;;  %v6157_v48 = vunpack.c.l.b16 %v7023_v50  ;;  %v5691_v61 = vmax.f32 %v5689_v43, %v5690_v25  ;;  %v5697_v19 = vrot.slane %v5696_v34, 2 }
 0x26e   : > { %v7026_v18 = vpack.c.bf16 %v5672_v29, %v5672_v29  ;;  %v6158_v31 = vunpack.c.l.b16 %v7024_v3  ;;  %v5679_v33 = vmax.f32 %v5677_v15, %v5678_v40  ;;  %v5685_v21 = vrot.slane %v5684_v12, 1  ;;  %v4918_v29 = vpop.f32.mrf.mxu0 }
 0x26f   : > { %v6159_v63 = vunpack.c.l.b16 %v7025_v4  ;;  %v5692_v0 = vrot.slane %v5691_v61, 1  ;;  %v5698_v1 = vmax.f32 %v5696_v34, %v5697_v19  ;;  %v4969_v56 = vadd.f32 %v4902_v42, %v10593_v5  ;;  %v4420_v42 = vpop.f32.mrf.mxu1 }
 0x270   : > { %v6160_v30 = vunpack.c.l.b16 %v7026_v18  ;;  %v6224_v32 = vsel %vm6189_vm7, %v6158_v31, %v6157_v48  ;;  %v5686_v26 = vmax.f32 %v5684_v12, %v5685_v21  ;;  %v7027_v52 = vpack.c.bf16 %v5679_v33, %v5679_v33 }
 0x271   : > { %v6225_v41 = vsel %vm6191_vm8, %v6159_v63, %v6224_v32  ;;  %v5693_v49 = vmax.f32 %v5691_v61, %v5692_v0  ;;  %v5699_v10 = vrot.slane %v5698_v1, 1  ;;  %v5008_v57 = vadd.f32 %v10617_v46, %v4969_v56 }
 0x272   : > { %v7028_v8 = vpack.c.bf16 %v5686_v26, %v5686_v26  ;;  %v6161_v6 = vunpack.c.l.b16 %v7027_v52  ;;  %v6226_v5 = vsel %vm6193_vm9, %v6160_v30, %v6225_v41  ;;  %v4474_v9 = vadd.f32 %v7646_v45, %v10388_v16 }
 0x273   : > { %v5700_v51 = vmax.f32 %v5698_v1, %v5699_v10  ;;  %v7029_v59 = vpack.c.bf16 %v5693_v49, %v5693_v49  ;;  %v5040_v54 = vmax.f32 %v5008_v57, 0.0  ;;  %v4472_v28 = vadd.f32 %v4407_v44, %v10391_v37  ;;  %v7650_v44 = vpop.f32.mrf.mxu1 }
 0x274   : > { %v6162_v7 = vunpack.c.l.b16 %v7028_v8  ;;  %v6227_v43 = vsel %vm6195_vm10, %v6161_v6, %v6226_v5  ;;  %v4972_v24 = vadd.f32 %v7694_v11, %v4474_v9  ;;  %v4477_v22 = vadd.f32 %v7649_v58, %v10394_v2  ;;  %v7698_v6 = vpop.f32.mrf.mxu0 }
 0x275   : > { %v7030_v23 = vpack.c.bf16 %v5700_v51, %v5700_v51  ;;  %v6163_v15 = vunpack.c.l.b16 %v7029_v59  ;;  %v5062_v38 = vmax.f32 %v5040_v54, %v5042_v36  ;;  %v4970_v20 = vadd.f32 %v4905_v35, %v4472_v28  ;;  %v4423_v33 = vpop.f32.mrf.mxu1 }
 0x276   : > { %v6228_v16 = vsel %vm6197_vm11, %v6162_v7, %v6227_v43  ;;  %v5011_v45 = vadd.f32 %v10617_v46, %v4972_v24  ;;  %v4975_v50 = vadd.f32 %v7697_v39, %v4477_v22  ;;  %v4475_v37 = vadd.f32 %v4420_v42, %v10397_v17 }
 0x277   : > { %v6164_v25 = vunpack.c.l.b16 %v7030_v23  ;;  %v6229_v34 = vsel %vm6199_vm12, %v6163_v15, %v6228_v16  ;;  %v5254_v11 = vcombine.high %v5062_v38, %v5062_v38  ;;  %v5261_v2 = vrot.slane %v5062_v38, %v10436_v60 }
 0x278   : > { %v5043_v3 = vmax.f32 %v5011_v45, 0.0  ;;  %v5009_v47 = vadd.f32 %v10617_v46, %v4970_v20  ;;  %v5014_v36 = vadd.f32 %v10617_v46, %v4975_v50  ;;  %v4973_v40 = vadd.f32 %v4918_v29, %v4475_v37 }
 0x279   : > { %v6230_v12 = vsel %vm6201_vm13, %v6164_v25, %v6229_v34  ;;  %v5268_v4 = vrot.slane %v5254_v11, %v10436_v60  ;;  %v5269_v17 = vcombine.high %v5261_v2, %v5261_v2  ;;  %v5701_v48 = vsel %vm5420_vm6, %v5261_v2, -inf }
 0x27a   : > { %v6256_v61 = vpack.c.b16 %v6230_v12, %v6230_v12  ;;  %v5702_v19 = vrot.slane %v5701_v48, 4  ;;  %v5041_v18 = vmax.f32 %v5009_v47, 0.0  ;;  %v5046_v31 = vmax.f32 %v5014_v36, 0.0 }
 0x27b   : > { %v5270_v21 = vcombine.high %v5268_v4, %v5268_v4  ;;  %v5708_v58 = vsel %vm5420_vm6, %v5269_v17, -inf  ;;  %v5715_v63 = vsel %vm5420_vm6, %v5268_v4, -inf  ;;  %v5012_v0 = vadd.f32 %v10617_v46, %v4973_v40 }
 0x27c   : > { %6272 = vst [vmem:[%s10487_s20 + $0x10] sm:$0xf] %v6256_v61  ;;  %v5703_v1 = vmax.f32 %v5701_v48, %v5702_v19  ;;  %v5709_v56 = vrot.slane %v5708_v58, 4  ;;  %v5716_v35 = vrot.slane %v5715_v63, 4  ;;  %v5063_v30 = vmax.f32 %v5041_v18, %v5043_v3 }
 0x27d   : > { %v5722_v32 = vsel %vm5420_vm6, %v5270_v21, -inf  ;;  %v5044_v26 = vmax.f32 %v5012_v0, 0.0  ;;  %v4478_v52 = vadd.f32 %v7650_v44, %v10400_v55  ;;  %v10644_v41 = vadd.f32 %v4423_v33, %v10403_v13 }
 0x27e   : > { %v5704_v49 = vrot.slane %v5703_v1, 2  ;;  %v5710_v10 = vmax.f32 %v5708_v58, %v5709_v56  ;;  %v5717_v57 = vmax.f32 %v5715_v63, %v5716_v35  ;;  %v5723_v8 = vrot.slane %v5722_v32, 4 }
 0x27f   : > { %v5271_v5 = vcombine.high %v5063_v30, %v5063_v30  ;;  %v5278_v9 = vrot.slane %v5063_v30, %v10436_v60  ;;  %v5064_v42 = vmax.f32 %v5044_v26, %v5046_v31  ;;  %v10647_v51 = vadd.f32 %v7698_v6, %v4478_v52 }
 0x280   : > { %v5705_v59 = vmax.f32 %v5703_v1, %v5704_v49  ;;  %v5711_v54 = vrot.slane %v5710_v10, 2  ;;  %v5718_v28 = vrot.slane %v5717_v57, 2  ;;  %v5724_v39 = vmax.f32 %v5722_v32, %v5723_v8 }
 0x281   : > { %v5285_v55 = vrot.slane %v5271_v5, %v10436_v60  ;;  %v5286_v7 = vcombine.high %v5278_v9, %v5278_v9  ;;  %v5729_v13 = vsel %vm5420_vm6, %v5278_v9, -inf  ;;  %v5288_v43 = vcombine.high %v5064_v42, %v5064_v42 }
 0x282   : > { %v5706_v24 = vrot.slane %v5705_v59, 1  ;;  %v5712_v22 = vmax.f32 %v5710_v10, %v5711_v54  ;;  %v5719_v23 = vmax.f32 %v5717_v57, %v5718_v28  ;;  %v5725_v15 = vrot.slane %v5724_v39, 2 }
 0x283   : > { %v5287_v38 = vcombine.high %v5285_v55, %v5285_v55  ;;  %v5730_v20 = vrot.slane %v5729_v13, 4  ;;  %v5736_v16 = vsel %vm5420_vm6, %v5286_v7, -inf  ;;  %v5743_v45 = vsel %vm5420_vm6, %v5285_v55, -inf }
 0x284   : > { %v5707_v50 = vmax.f32 %v5705_v59, %v5706_v24  ;;  %v5713_v37 = vrot.slane %v5712_v22, 1  ;;  %v5720_v44 = vrot.slane %v5719_v23, 1  ;;  %v5726_v25 = vmax.f32 %v5724_v39, %v5725_v15 }
 0x285   : > { %v5731_v34 = vmax.f32 %v5729_v13, %v5730_v20  ;;  %v5737_v11 = vrot.slane %v5736_v16, 4  ;;  %v5744_v2 = vrot.slane %v5743_v45, 4  ;;  %v5750_v29 = vsel %vm5420_vm6, %v5287_v38, -inf }
 0x286   : > { %v5714_v3 = vmax.f32 %v5712_v22, %v5713_v37  ;;  %v5721_v47 = vmax.f32 %v5719_v23, %v5720_v44  ;;  %v5727_v36 = vrot.slane %v5726_v25, 1  ;;  %v7031_v40 = vpack.c.bf16 %v5707_v50, %v5707_v50 }
 0x287   : > { %v5732_v12 = vrot.slane %v5731_v34, 2  ;;  %v5738_v4 = vmax.f32 %v5736_v16, %v5737_v11  ;;  %v5745_v17 = vmax.f32 %v5743_v45, %v5744_v2  ;;  %v5751_v48 = vrot.slane %v5750_v29, 4 }
 0x288   : > { %v5728_v61 = vmax.f32 %v5726_v25, %v5727_v36  ;;  %v7032_v19 = vpack.c.bf16 %v5714_v3, %v5714_v3  ;;  %v7033_v18 = vpack.c.bf16 %v5721_v47, %v5721_v47  ;;  %v6165_v31 = vunpack.c.l.b16 %v7031_v40  ;;  %v4921_v3 = vpop.f32.mrf.mxu0  ;;  %v7653_v47 = vpop.f32.mrf.mxu1 }
 0x289   : > { %v5733_v33 = vmax.f32 %v5731_v34, %v5732_v12  ;;  %v5739_v21 = vrot.slane %v5738_v4, 2  ;;  %v5746_v58 = vrot.slane %v5745_v17, 2  ;;  %v5752_v63 = vmax.f32 %v5750_v29, %v5751_v48 }
 0x28a   : > { %v7034_v0 = vpack.c.bf16 %v5728_v61, %v5728_v61  ;;  %v6166_v1 = vunpack.c.l.b16 %v7032_v19  ;;  %v6167_v56 = vunpack.c.l.b16 %v7033_v18  ;;  %v5295_v35 = vrot.slane %v5064_v42, %v10436_v60 }
 0x28b   : > { %v5734_v30 = vrot.slane %v5733_v33, 1  ;;  %v5740_v32 = vmax.f32 %v5738_v4, %v5739_v21  ;;  %v5747_v26 = vmax.f32 %v5745_v17, %v5746_v58  ;;  %v5753_v52 = vrot.slane %v5752_v63, 2 }
 0x28c   : > { %v6168_v49 = vunpack.c.l.b16 %v7034_v0  ;;  %v6231_v10 = vsel %vm6189_vm7, %v6166_v1, %v6165_v31  ;;  %v5302_v57 = vrot.slane %v5288_v43, %v10436_v60  ;;  %v5303_v8 = vcombine.high %v5295_v35, %v5295_v35 }
 0x28d   : > { %v6232_v6 = vsel %vm6191_vm8, %v6167_v56, %v6231_v10  ;;  %v5735_v5 = vmax.f32 %v5733_v33, %v5734_v30  ;;  %v5741_v9 = vrot.slane %v5740_v32, 1  ;;  %v5748_v59 = vrot.slane %v5747_v26, 1  ;;  %v7701_v56 = vpop.f32.mrf.mxu0 }
 0x28e   : > { %v5754_v54 = vmax.f32 %v5752_v63, %v5753_v52  ;;  %v6233_v28 = vsel %vm6193_vm9, %v6168_v49, %v6232_v6  ;;  %v5304_v39 = vcombine.high %v5302_v57, %v5302_v57  ;;  %v5757_v42 = vsel %vm5420_vm6, %v5295_v35, -inf  ;;  %v4436_v35 = vpop.f32.mrf.mxu1 }
 0x28f   : > { %v5742_v55 = vmax.f32 %v5740_v32, %v5741_v9  ;;  %v5749_v7 = vmax.f32 %v5747_v26, %v5748_v59  ;;  %v7035_v13 = vpack.c.bf16 %v5735_v5, %v5735_v5  ;;  %v5758_v24 = vrot.slane %v5757_v42, 4 }
 0x290   : > { %v5755_v22 = vrot.slane %v5754_v54, 1  ;;  %v5764_v23 = vsel %vm5420_vm6, %v5303_v8, -inf  ;;  %v5771_v43 = vsel %vm5420_vm6, %v5302_v57, -inf  ;;  %v5778_v15 = vsel %vm5420_vm6, %v5304_v39, -inf }
 0x291   : > { %v7036_v38 = vpack.c.bf16 %v5742_v55, %v5742_v55  ;;  %v7037_v20 = vpack.c.bf16 %v5749_v7, %v5749_v7  ;;  %v6169_v16 = vunpack.c.l.b16 %v7035_v13  ;;  %v5759_v45 = vmax.f32 %v5757_v42, %v5758_v24 }
 0x292   : > { %v5756_v50 = vmax.f32 %v5754_v54, %v5755_v22  ;;  %v5765_v37 = vrot.slane %v5764_v23, 4  ;;  %v5772_v44 = vrot.slane %v5771_v43, 4  ;;  %v5779_v25 = vrot.slane %v5778_v15, 4 }
 0x293   : > { %v6170_v34 = vunpack.c.l.b16 %v7036_v38  ;;  %v6171_v11 = vunpack.c.l.b16 %v7037_v20  ;;  %v6234_v2 = vsel %vm6195_vm10, %v6169_v16, %v6233_v28  ;;  %v5760_v29 = vrot.slane %v5759_v45, 2  ;;  %v4934_v28 = vpop.f32.mrf.mxu0 }
 0x294   : > { %v7038_v36 = vpack.c.bf16 %v5756_v50, %v5756_v50  ;;  %v5766_v40 = vmax.f32 %v5764_v23, %v5765_v37  ;;  %v5773_v12 = vmax.f32 %v5771_v43, %v5772_v44  ;;  %v5780_v4 = vmax.f32 %v5778_v15, %v5779_v25 }
 0x295   : > { %v6235_v17 = vsel %vm6197_vm11, %v6170_v34, %v6234_v2  ;;  %v5761_v48 = vmax.f32 %v5759_v45, %v5760_v29  ;;  %v5015_v61 = vadd.f32 %v10617_v46, %v10647_v51  ;;  %v4974_v19 = vadd.f32 %v4921_v3, %v10644_v41 }
 0x296   : > { %v6172_v18 = vunpack.c.l.b16 %v7038_v36  ;;  %v6236_v31 = vsel %vm6199_vm12, %v6171_v11, %v6235_v17  ;;  %v5767_v33 = vrot.slane %v5766_v40, 2  ;;  %v5774_v21 = vrot.slane %v5773_v12, 2 }
 0x297   : > { %v5762_v58 = vrot.slane %v5761_v48, 1  ;;  %v5781_v63 = vrot.slane %v5780_v4, 2  ;;  %v5047_v0 = vmax.f32 %v5015_v61, 0.0  ;;  %v5013_v1 = vadd.f32 %v10617_v46, %v4974_v19 }
 0x298   : > { %v6237_v30 = vsel %vm6201_vm13, %v6172_v18, %v6236_v31  ;;  %v5768_v32 = vmax.f32 %v5766_v40, %v5767_v33  ;;  %v5775_v26 = vmax.f32 %v5773_v12, %v5774_v21  ;;  %v4481_v51 = vadd.f32 %v7653_v47, %v10408_v53  ;;  %v7654_v40 = vpop.f32.mrf.mxu1 }
 0x299   : > { %v6257_v41 = vpack.c.b16 %v6237_v30, %v6237_v30  ;;  %v5763_v52 = vmax.f32 %v5761_v48, %v5762_v58  ;;  %v5782_v49 = vmax.f32 %v5780_v4, %v5781_v63  ;;  %v5045_v10 = vmax.f32 %v5013_v1, 0.0 }
 0x29a   : > { %v5769_v57 = vrot.slane %v5768_v32, 1  ;;  %v5776_v8 = vrot.slane %v5775_v26, 1  ;;  %v4979_v6 = vadd.f32 %v7701_v56, %v4481_v51  ;;  %v4479_v5 = vadd.f32 %v4436_v35, %v10413_v14 }
 0x29b   : > { %6273 = vst [vmem:[%s10487_s20 + $0x14] sm:$0xf] %v6257_v41  ;;  %v5783_v9 = vrot.slane %v5782_v49, 1  ;;  %v7039_v59 = vpack.c.bf16 %v5763_v52, %v5763_v52  ;;  %v5065_v54 = vmax.f32 %v5045_v10, %v5047_v0  ;;  %v4482_v58 = vadd.f32 %v7654_v40, %v10419_v62 }
 0x29c   : > { %v5770_v39 = vmax.f32 %v5768_v32, %v5769_v57  ;;  %v5777_v42 = vmax.f32 %v5775_v26, %v5776_v8  ;;  %v4977_v55 = vadd.f32 %v4934_v28, %v4479_v5  ;;  %v5018_v24 = vadd.f32 %v10617_v46, %v4979_v6 }
 0x29d   : > { %v5784_v7 = vmax.f32 %v5782_v49, %v5783_v9  ;;  %v5305_v13 = vcombine.high %v5065_v54, %v5065_v54  ;;  %v5312_v53 = vrot.slane %v5065_v54, %v10436_v60  ;;  %v6173_v43 = vunpack.c.l.b16 %v7039_v59 }
 0x29e   : > { %v7040_v22 = vpack.c.bf16 %v5770_v39, %v5770_v39  ;;  %v7041_v23 = vpack.c.bf16 %v5777_v42, %v5777_v42  ;;  %v5016_v15 = vadd.f32 %v10617_v46, %v4977_v55  ;;  %v5050_v2 = vmax.f32 %v5018_v24, 0.0 }
 0x29f   : > { %v7042_v14 = vpack.c.bf16 %v5784_v7, %v5784_v7  ;;  %v5319_v38 = vrot.slane %v5305_v13, %v10436_v60  ;;  %v5320_v20 = vcombine.high %v5312_v53, %v5312_v53  ;;  %v5785_v16 = vsel %vm5420_vm6, %v5312_v53, -inf }
 0x2a0   : > { %v6174_v45 = vunpack.c.l.b16 %v7040_v22  ;;  %v6175_v50 = vunpack.c.l.b16 %v7041_v23  ;;  %v5786_v37 = vrot.slane %v5785_v16, 4  ;;  %v5048_v44 = vmax.f32 %v5016_v15, 0.0 }
 0x2a1   : > { %v5321_v25 = vcombine.high %v5319_v38, %v5319_v38  ;;  %v5792_v34 = vsel %vm5420_vm6, %v5320_v20, -inf  ;;  %v5799_v11 = vsel %vm5420_vm6, %v5319_v38, -inf  ;;  %v6176_v12 = vunpack.c.l.b16 %v7042_v14 }
 0x2a2   : > { %v6238_v29 = vsel %vm6189_vm7, %v6174_v45, %v6173_v43  ;;  %v5787_v3 = vmax.f32 %v5785_v16, %v5786_v37  ;;  %v5793_v47 = vrot.slane %v5792_v34, 4  ;;  %v5800_v36 = vrot.slane %v5799_v11, 4  ;;  %v7702_v16 = vpop.f32.mrf.mxu0 }
 0x2a3   : > { %v6239_v4 = vsel %vm6191_vm8, %v6175_v50, %v6238_v29  ;;  %v5806_v17 = vsel %vm5420_vm6, %v5321_v25, -inf  ;;  %v5066_v48 = vmax.f32 %v5048_v44, %v5050_v2  ;;  %v4980_v44 = vadd.f32 %v7702_v16, %v4482_v58  ;;  %v4439_v25 = vpop.f32.mrf.mxu1 }
 0x2a4   : > { %v5788_v61 = vrot.slane %v5787_v3, 2  ;;  %v5794_v19 = vmax.f32 %v5792_v34, %v5793_v47  ;;  %v5801_v18 = vmax.f32 %v5799_v11, %v5800_v36  ;;  %v5807_v31 = vrot.slane %v5806_v17, 4 }
 0x2a5   : > { %v5322_v33 = vcombine.high %v5066_v48, %v5066_v48  ;;  %v5329_v21 = vrot.slane %v5066_v48, %v10436_v60  ;;  %v6240_v35 = vsel %vm6193_vm9, %v6176_v12, %v6239_v4  ;;  %v4480_v12 = vadd.f32 %v4439_v25, %v10425_v27 }
 0x2a6   : > { %v5789_v63 = vmax.f32 %v5787_v3, %v5788_v61  ;;  %v5795_v0 = vrot.slane %v5794_v19, 2  ;;  %v5802_v1 = vrot.slane %v5801_v18, 2  ;;  %v5808_v56 = vmax.f32 %v5806_v17, %v5807_v31  ;;  %v4937_v61 = vpop.f32.mrf.mxu0 }
 0x2a7   : > { %v5336_v30 = vrot.slane %v5322_v33, %v10436_v60  ;;  %v5337_v32 = vcombine.high %v5329_v21, %v5329_v21  ;;  %v5813_v26 = vsel %vm5420_vm6, %v5329_v21, -inf  ;;  %v5019_v31 = vadd.f32 %v10617_v46, %v4980_v44 }
 0x2a8   : > { %v5790_v51 = vrot.slane %v5789_v63, 1  ;;  %v5796_v41 = vmax.f32 %v5794_v19, %v5795_v0  ;;  %v5803_v52 = vmax.f32 %v5801_v18, %v5802_v1  ;;  %v5809_v49 = vrot.slane %v5808_v56, 2 }
 0x2a9   : > { %v5338_v10 = vcombine.high %v5336_v30, %v5336_v30  ;;  %v5814_v57 = vrot.slane %v5813_v26, 4  ;;  %v5820_v8 = vsel %vm5420_vm6, %v5337_v32, -inf  ;;  %v5827_v62 = vsel %vm5420_vm6, %v5336_v30, -inf }
 0x2aa   : > { %v5791_v6 = vmax.f32 %v5789_v63, %v5790_v51  ;;  %v5797_v5 = vrot.slane %v5796_v41, 1  ;;  %v5804_v9 = vrot.slane %v5803_v52, 1  ;;  %v5810_v59 = vmax.f32 %v5808_v56, %v5809_v49 }
 0x2ab   : > { %v5815_v54 = vmax.f32 %v5813_v26, %v5814_v57  ;;  %v5821_v28 = vrot.slane %v5820_v8, 4  ;;  %v5828_v39 = vrot.slane %v5827_v62, 4  ;;  %v5834_v42 = vsel %vm5420_vm6, %v5338_v10, -inf }
 0x2ac   : > { %v5798_v55 = vmax.f32 %v5796_v41, %v5797_v5  ;;  %v5805_v7 = vmax.f32 %v5803_v52, %v5804_v9  ;;  %v5811_v13 = vrot.slane %v5810_v59, 1  ;;  %v7043_v53 = vpack.c.bf16 %v5791_v6, %v5791_v6 }
 0x2ad   : > { %v5816_v24 = vrot.slane %v5815_v54, 2  ;;  %v5822_v22 = vmax.f32 %v5820_v8, %v5821_v28  ;;  %v5829_v23 = vmax.f32 %v5827_v62, %v5828_v39  ;;  %v5835_v43 = vrot.slane %v5834_v42, 4 }
 0x2ae   : > { %v5812_v15 = vmax.f32 %v5810_v59, %v5811_v13  ;;  %v7044_v14 = vpack.c.bf16 %v5798_v55, %v5798_v55  ;;  %v7045_v38 = vpack.c.bf16 %v5805_v7, %v5805_v7  ;;  %v6177_v20 = vunpack.c.l.b16 %v7043_v53 }
 0x2af   : > { %v5823_v45 = vrot.slane %v5822_v22, 2  ;;  %v5830_v50 = vrot.slane %v5829_v23, 2  ;;  %v5836_v37 = vmax.f32 %v5834_v42, %v5835_v43  ;;  %v5817_v40 = vmax.f32 %v5815_v54, %v5816_v24 }
 0x2b0   : > { %v7046_v34 = vpack.c.bf16 %v5812_v15, %v5812_v15  ;;  %v6178_v11 = vunpack.c.l.b16 %v7044_v14  ;;  %v6179_v2 = vunpack.c.l.b16 %v7045_v38  ;;  %v6241_v29 = vsel %vm6195_vm10, %v6177_v20, %v6240_v35 }
 0x2b1   : > { %v5824_v3 = vmax.f32 %v5822_v22, %v5823_v45  ;;  %v5831_v17 = vmax.f32 %v5829_v23, %v5830_v50  ;;  %v5837_v48 = vrot.slane %v5836_v37, 2  ;;  %v4978_v33 = vadd.f32 %v4937_v61, %v4480_v12 }
 0x2b2   : > { %v6180_v47 = vunpack.c.l.b16 %v7046_v34  ;;  %v6242_v36 = vsel %vm6197_vm11, %v6178_v11, %v6241_v29  ;;  %v5818_v58 = vrot.slane %v5817_v40, 1  ;;  %v5051_v27 = vmax.f32 %v5019_v31, 0.0 }
 0x2b3   : > { %v6243_v4 = vsel %vm6199_vm12, %v6179_v2, %v6242_v36  ;;  %v5825_v18 = vrot.slane %v5824_v3, 1  ;;  %v5017_v63 = vadd.f32 %v10617_v46, %v4978_v33  ;;  %v5832_v0 = vrot.slane %v5831_v17, 1 }
 0x2b4   : > { %v6244_v19 = vsel %vm6201_vm13, %v6180_v47, %v6243_v4  ;;  %v5838_v1 = vmax.f32 %v5836_v37, %v5837_v48  ;;  %v5819_v30 = vmax.f32 %v5817_v40, %v5818_v58 }
 0x2b5   : > { %v6258_v21 = vpack.c.b16 %v6244_v19, %v6244_v19  ;;  %v5826_v56 = vmax.f32 %v5824_v3, %v5825_v18  ;;  %v5049_v35 = vmax.f32 %v5017_v63, 0.0  ;;  %v5833_v26 = vmax.f32 %v5831_v17, %v5832_v0 }
 0x2b6   : > { %v5839_v51 = vrot.slane %v5838_v1, 1  ;;  %v7047_v10 = vpack.c.bf16 %v5819_v30, %v5819_v30 }
 0x2b7   : > { %6274 = vst [vmem:[%s10487_s20 + $0x18] sm:$0xf] %v6258_v21  ;;  %v5067_v32 = vmax.f32 %v5049_v35, %v5051_v27  ;;  %v7048_v41 = vpack.c.bf16 %v5826_v56, %v5826_v56  ;;  %v7049_v6 = vpack.c.bf16 %v5833_v26, %v5833_v26 }
 0x2b8   : > { %v5840_v62 = vmax.f32 %v5838_v1, %v5839_v51  ;;  %v6181_v7 = vunpack.c.l.b16 %v7047_v10 }
 0x2b9   : > { %v5339_v52 = vcombine.high %v5067_v32, %v5067_v32  ;;  %v5346_v49 = vrot.slane %v5067_v32, %v10436_v60  ;;  %v6182_v9 = vunpack.c.l.b16 %v7048_v41  ;;  %v6183_v43 = vunpack.c.l.b16 %v7049_v6 }
 0x2ba   : > { %v7050_v23 = vpack.c.bf16 %v5840_v62, %v5840_v62 }
 0x2bb   : > { %v5353_v57 = vrot.slane %v5339_v52, %v10436_v60  ;;  %v5354_v8 = vcombine.high %v5346_v49, %v5346_v49  ;;  %v5841_v46 = vsel %vm5420_vm6, %v5346_v49, -inf  ;;  %v6245_v15 = vsel %vm6189_vm7, %v6182_v9, %v6181_v7 }
 0x2bc   : > { %v5842_v5 = vrot.slane %v5841_v46, 4  ;;  %v6184_v25 = vunpack.c.l.b16 %v7050_v23  ;;  %v6246_v34 = vsel %vm6191_vm8, %v6183_v43, %v6245_v15 }
 0x2bd   : > { %v5355_v59 = vcombine.high %v5353_v57, %v5353_v57  ;;  %v5848_v54 = vsel %vm5420_vm6, %v5354_v8, -inf  ;;  %v5855_v28 = vsel %vm5420_vm6, %v5353_v57, -inf }
 0x2be   : > { %v5843_v39 = vmax.f32 %v5841_v46, %v5842_v5  ;;  %v5849_v42 = vrot.slane %v5848_v54, 4  ;;  %v5856_v55 = vrot.slane %v5855_v28, 4  ;;  %v6247_v4 = vsel %vm6193_vm9, %v6184_v25, %v6246_v34 }
 0x2bf   : > { %v5862_v13 = vsel %vm5420_vm6, %v5355_v59, -inf }
 0x2c0   : > { %v5844_v53 = vrot.slane %v5843_v39, 2  ;;  %v5850_v60 = vmax.f32 %v5848_v54, %v5849_v42  ;;  %v5857_v24 = vmax.f32 %v5855_v28, %v5856_v55  ;;  %v5863_v22 = vrot.slane %v5862_v13, 4 }
 0x2c2   : > { %v5845_v14 = vmax.f32 %v5843_v39, %v5844_v53  ;;  %v5851_v38 = vrot.slane %v5850_v60, 2  ;;  %v5858_v20 = vrot.slane %v5857_v24, 2  ;;  %v5864_v16 = vmax.f32 %v5862_v13, %v5863_v22 }
 0x2c4   : > { %v5846_v45 = vrot.slane %v5845_v14, 1  ;;  %v5852_v50 = vmax.f32 %v5850_v60, %v5851_v38  ;;  %v5859_v37 = vmax.f32 %v5857_v24, %v5858_v20  ;;  %v5865_v44 = vrot.slane %v5864_v16, 2 }
 0x2c6   : > { %v5847_v11 = vmax.f32 %v5845_v14, %v5846_v45  ;;  %v5853_v2 = vrot.slane %v5852_v50, 1  ;;  %v5860_v29 = vrot.slane %v5859_v37, 1  ;;  %v5866_v3 = vmax.f32 %v5864_v16, %v5865_v44 }
 0x2c8   : > { %v5854_v47 = vmax.f32 %v5852_v50, %v5853_v2  ;;  %v5861_v36 = vmax.f32 %v5859_v37, %v5860_v29  ;;  %v5867_v40 = vrot.slane %v5866_v3, 1  ;;  %v7051_v12 = vpack.c.bf16 %v5847_v11, %v5847_v11 }
 0x2ca   : > { %v5868_v17 = vmax.f32 %v5866_v3, %v5867_v40  ;;  %v7052_v48 = vpack.c.bf16 %v5854_v47, %v5854_v47  ;;  %v7053_v61 = vpack.c.bf16 %v5861_v36, %v5861_v36  ;;  %v6185_v19 = vunpack.c.l.b16 %v7051_v12 }
 0x2cc   : > { %v7054_v18 = vpack.c.bf16 %v5868_v17, %v5868_v17  ;;  %v6186_v31 = vunpack.c.l.b16 %v7052_v48  ;;  %v6187_v33 = vunpack.c.l.b16 %v7053_v61  ;;  %v6248_v21 = vsel %vm6195_vm10, %v6185_v19, %v6247_v4 }
 0x2ce   : > { %v6188_v58 = vunpack.c.l.b16 %v7054_v18  ;;  %v6249_v63 = vsel %vm6197_vm11, %v6186_v31, %v6248_v21 }
 0x2cf   : > { %v6250_v0 = vsel %vm6199_vm12, %v6187_v33, %v6249_v63 }
 0x2d0   : > { %v6251_v1 = vsel %vm6201_vm13, %v6188_v58, %v6250_v0 }
 0x2d1   : > { %v6259_v56 = vpack.c.b16 %v6251_v1, %v6251_v1 }
 0x2d3   : > { %6275 = vst [vmem:[%s10487_s20 + $0x1c] sm:$0xf] %v6259_v56 }
 0x2d4 PF: > { %s13_s12 = sadd.s32 1, %s7865_s12  }
 0x2d5   : > { %p10_p4 = scmp.ge.s32.totalorder %s13_s12, 4  }
 0x2d7   :  { %12 = sbr.rel (!%p10_p4) target bundleno = 1 (0x1), region = 72 }

</bundles_post_ra>
